<compile_context>
chip_gen: v7x
topology: tpu7x:2x2x1
jax: 0.10.0
libtpu: 0.0.40
codegen_flags: <defaults>
</compile_context>

<pallas_src>
import numpy as np
import jax
import jax.numpy as jnp
from jax.experimental import pallas as pl
from jax.experimental.pallas import tpu as pltpu

IMAGE_SIZE = 32
PATCH = 4
GRID = IMAGE_SIZE // PATCH            # 8
NUM_PATCHES = GRID * GRID             # 64
EMBED = 64
HEADS = 2
HEAD_DIM = EMBED // HEADS             # 32
NUM_CLASSES = 10
PATCH_DIM = PATCH * PATCH * 3         # 48
PATCH_DIM_PAD = 64                    # zero-padded feature dim (lane friendly)
CLASSES_PAD = 128                     # lane-dense classifier output
MAX_TB = 128                          # max batch tile (VMEM-safe with limit)


def _transf_kernel(patches_ref, w_pe_ref, pos_ref, w_qkv_ref, b_qkv_ref,
                   w_oc_ref, b_oc_ref, out_ref):
    f32 = jnp.float32
    bf16 = jnp.bfloat16
    TB = patches_ref.shape[0]
    N = TB * NUM_PATCHES

    # ---- patch embedding: one (TB*P, 64) @ (64, 64) matmul ----
    p2d = patches_ref[...].reshape(N, PATCH_DIM_PAD)                  # bf16
    x = jnp.dot(p2d, w_pe_ref[...], preferred_element_type=f32)       # (N, E)
    # pos_ref already contains (pos + b_pe), folded on the host
    x = x.reshape(TB, NUM_PATCHES, EMBED) + pos_ref[...]
    x2 = x.reshape(N, EMBED).astype(bf16)

    acc = None
    # 2 heads; static unroll.  Per-head weights are pre-split on the host so no
    # lane-offset slicing of a fused qkv tensor is ever needed.
    for h in range(HEADS):
        # Q weights/bias already carry the 1/sqrt(Dh) scale (host fold).
        q = (jnp.dot(x2, w_qkv_ref[0, h], preferred_element_type=f32)
             + b_qkv_ref[0, h]).astype(bf16).reshape(TB, NUM_PATCHES, HEAD_DIM)
        k = (jnp.dot(x2, w_qkv_ref[1, h], preferred_element_type=f32)
             + b_qkv_ref[1, h]).astype(bf16).reshape(TB, NUM_PATCHES, HEAD_DIM)
        v = (jnp.dot(x2, w_qkv_ref[2, h], preferred_element_type=f32)
             + b_qkv_ref[2, h]).astype(bf16).reshape(TB, NUM_PATCHES, HEAD_DIM)

        s = jnp.einsum('bqd,bkd->bqk', q, k,
                       preferred_element_type=f32)                    # (TB,P,P)
        # Row-max kept for numerical safety (optional per review).
        s = s - jnp.max(s, axis=-1, keepdims=True)
        p = jnp.exp(s)
        inv_l = pl.reciprocal(jnp.sum(p, axis=-1, keepdims=True),
                              approx=True)                            # EUP slot
        o_un = jnp.einsum('bqk,bkd->bqd', p.astype(bf16), v,
                          preferred_element_type=f32)                 # (TB,P,Dh)
        # Mean-pool over patches (1/P folded into w_oc on the host).
        pooled_h = jnp.sum(o_un * inv_l, axis=1)                      # (TB, Dh)
        # Folded out-proj + classifier: (TB, Dh) @ (Dh, 128), kept in f32.
        contrib = jnp.dot(pooled_h, w_oc_ref[h], preferred_element_type=f32)
        acc = contrib if acc is None else acc + contrib

    out_ref[...] = acc + b_oc_ref[...]                                # (TB,128)


def patchify(x):
    """NCHW (B,3,32,32) -> (B, 64, 48), matching torch unfold/permute/reshape."""
    B = x.shape[0]
    x = x.reshape(B, 3, GRID, PATCH, GRID, PATCH)
    x = x.transpose(0, 2, 4, 1, 3, 5)            # (B, gi, gj, C, py, px)
    return x.reshape(B, NUM_PATCHES, PATCH_DIM)


def init_params(key):
    ks = jax.random.split(key, 9)

    def lin(k, fan_in, shape):
        s = 1.0 / np.sqrt(fan_in)
        return jax.random.uniform(k, shape, jnp.float32, -s, s)

    return dict(
        # patch_embeddings: Linear(48 -> 64), pre-transposed (in, out)
        w_pe=lin(ks[0], PATCH_DIM, (PATCH_DIM, EMBED)),
        b_pe=lin(ks[1], PATCH_DIM, (1, EMBED)),
        # position_embeddings: (num_patches, embed_dim)
        pos=jax.random.normal(ks[2], (NUM_PATCHES, EMBED), jnp.float32),
        # fused in_proj, pre-transposed: columns [Q | K | V], head-major inside
        w_qkv=lin(ks[3], EMBED, (EMBED, 3 * EMBED)),
        b_qkv=lin(ks[4], EMBED, (1, 3 * EMBED)),
        # out_proj: Linear(E -> E), pre-transposed; rows follow head-concat order
        wo=lin(ks[5], EMBED, (EMBED, EMBED)),
        bo=lin(ks[6], EMBED, (1, EMBED)),
        # classifier: Linear(E -> 10), pre-transposed
        wc=lin(ks[7], EMBED, (EMBED, NUM_CLASSES)),
        bc=lin(ks[8], EMBED, (1, NUM_CLASSES)),
    )


def _resident_spec(shape):
    """Full-array block that stays resident across the batch grid."""
    n = len(shape)
    return pl.BlockSpec(shape, lambda i, _n=n: (0,) * _n)


def _round_up(v, m):
    return ((v + m - 1) // m) * m


@jax.jit
def pyt_transf_forward(x, params):
    bf16 = jnp.bfloat16
    B = x.shape[0]
    # Batch tile: multiple of 8, capped at MAX_TB, sized so the grid has >= 2
    # steps whenever the batch allows it (lets "parallel" use both v7x cores).
    TB = min(MAX_TB, max(8, _round_up(-(-B // 2), 8)))
    nb = pl.cdiv(B, TB)
    B_pad = nb * TB

    scale = 1.0 / np.sqrt(HEAD_DIM)

    # ---- host-side packing & constant folding ----
    patches = patchify(x)                                             # (B,P,48)
    patches = jnp.pad(patches, ((0, B_pad - B), (0, 0),
                                (0, PATCH_DIM_PAD - PATCH_DIM))).astype(bf16)

    w_pe = jnp.pad(params['w_pe'],
                   ((0, PATCH_DIM_PAD - PATCH_DIM), (0, 0))).astype(bf16)
    pos_b = params['pos'] + params['b_pe']                 # fold b_pe into pos

    w_qkv, b_qkv = params['w_qkv'], params['b_qkv']
    wq = w_qkv[:, :EMBED] * scale                          # fold 1/sqrt(Dh)
    wk = w_qkv[:, EMBED:2 * EMBED]
    wv = w_qkv[:, 2 * EMBED:]
    bq = b_qkv[:, :EMBED] * scale
    bk = b_qkv[:, EMBED:2 * EMBED]
    bv = b_qkv[:, 2 * EMBED:]
    # Per-head split: (3, H, E, Dh) bf16 weights, (3, H, 1, Dh) f32 biases.
    w_qkv_h = jnp.stack(
        [w.reshape(EMBED, HEADS, HEAD_DIM).transpose(1, 0, 2)
         for w in (wq, wk, wv)]).astype(bf16)
    b_qkv_h = jnp.stack(
        [b.reshape(HEADS, 1, HEAD_DIM) for b in (bq, bk, bv)])

    # Fold out-proj + mean-pool + classifier into one matrix (exact algebra).
    wc_pad = jnp.pad(params['wc'], ((0, 0), (0, CLASSES_PAD - NUM_CLASSES)))
    bc_pad = jnp.pad(params['bc'], ((0, 0), (0, CLASSES_PAD - NUM_CLASSES)))
    w_oc = ((params['wo'] @ wc_pad) * (1.0 / NUM_PATCHES)
            ).reshape(HEADS, HEAD_DIM, CLASSES_PAD)                   # f32
    b_oc = params['bo'] @ wc_pad + bc_pad                             # (1,128)

    args = (patches, w_pe, pos_b, w_qkv_h, b_qkv_h, w_oc, b_oc)

    in_specs = [pl.BlockSpec((TB, NUM_PATCHES, PATCH_DIM_PAD),
                             lambda i: (i, 0, 0))]
    in_specs += [_resident_spec(a.shape) for a in args[1:]]
    out_specs = pl.BlockSpec((TB, CLASSES_PAD), lambda i: (i, 0))

    # advisory cost estimate
    per_sample_flops = 2 * (NUM_PATCHES * PATCH_DIM_PAD * EMBED
                            + 3 * NUM_PATCHES * EMBED * EMBED
                            + 2 * HEADS * NUM_PATCHES * NUM_PATCHES * HEAD_DIM
                            + EMBED * CLASSES_PAD)
    flops = B_pad * per_sample_flops
    transc = B_pad * HEADS * NUM_PATCHES * (NUM_PATCHES + 1)
    bytes_accessed = (sum(int(np.prod(a.shape)) * a.dtype.itemsize
                          for a in args) + B_pad * CLASSES_PAD * 4)

    logits = pl.pallas_call(
        _transf_kernel,
        grid=(nb,),
        in_specs=in_specs,
        out_specs=out_specs,
        out_shape=jax.ShapeDtypeStruct((B_pad, CLASSES_PAD), jnp.float32),
        compiler_params=pltpu.CompilerParams(
            dimension_semantics=("parallel",),
            vmem_limit_bytes=48 * 1024 * 1024),
        cost_estimate=pl.CostEstimate(flops=flops,
                                      transcendentals=transc,
                                      bytes_accessed=bytes_accessed),
    )(*args)

    return logits[:B, :NUM_CLASSES]


def reference_forward(x, params):
    """Pure-JAX f32 reference mirroring the PyTorch forward semantics."""
    patches = patchify(x)                                             # (B,P,48)
    xe = patches @ params['w_pe'] + params['b_pe'] + params['pos']    # (B,P,E)
    qkv = xe @ params['w_qkv'] + params['b_qkv']                      # (B,P,3E)
    scale = 1.0 / np.sqrt(HEAD_DIM)
    outs = []
    for h in range(HEADS):
        lo, hi = h * HEAD_DIM, (h + 1) * HEAD_DIM
        q = qkv[..., lo:hi]
        k = qkv[..., EMBED + lo:EMBED + hi]
        v = qkv[..., 2 * EMBED + lo:2 * EMBED + hi]
        s = jnp.einsum('bqd,bkd->bqk', q, k) * scale
        p = jax.nn.softmax(s, axis=-1)
        outs.append(jnp.einsum('bqk,bkd->bqd', p, v))
    ctx = jnp.concatenate(outs, axis=-1) @ params['wo'] + params['bo']
    pooled = ctx.mean(axis=1)
    return pooled @ params['wc'] + params['bc']


if __name__ == "__main__":
    key = jax.random.PRNGKey(0)
    kx, kp = jax.random.split(key)
    B = 2
    x = jax.random.normal(kx, (B, 3, IMAGE_SIZE, IMAGE_SIZE), jnp.float32)
    params = init_params(kp)

    out = jax.block_until_ready(pyt_transf_forward(x, params))
    assert out.shape == (B, NUM_CLASSES)

    ref = reference_forward(x, params)
    np.testing.assert_allclose(np.asarray(out), np.asarray(ref),
                               rtol=2e-2, atol=2e-2)
    print("KERNEL_OK")
</pallas_src>

<mosaic_0001>
module attributes {stable_mosaic.version = 11 : i64} {
  func.func @_transf_kernel(%arg0: i32, %arg1: memref<8x64x64xbf16, #tpu.memory_space<vmem>>, %arg2: memref<64x64xbf16, #tpu.memory_space<vmem>>, %arg3: memref<64x64xf32, #tpu.memory_space<vmem>>, %arg4: memref<3x2x64x32xbf16, #tpu.memory_space<vmem>>, %arg5: memref<3x2x1x32xf32, #tpu.memory_space<vmem>>, %arg6: memref<2x32x128xf32, #tpu.memory_space<vmem>>, %arg7: memref<1x128xf32, #tpu.memory_space<vmem>>, %arg8: memref<8x128xf32, #tpu.memory_space<vmem>>) attributes {dimension_semantics = [#tpu.dimension_semantics<parallel>], iteration_bounds = array<i64: 1>, scalar_prefetch = 0 : i64, scratch_operands = 0 : i64, tpu.core_type = #tpu.core_type<tc>, window_params = [{transform_indices = @transform_0, window_bounds = array<i64: 8, 64, 64>}, {pipeline_mode = #tpu.pipeline_mode<synchronous>, transform_indices = @transform_1, window_bounds = array<i64: 64, 64>}, {pipeline_mode = #tpu.pipeline_mode<synchronous>, transform_indices = @transform_2, window_bounds = array<i64: 64, 64>}, {pipeline_mode = #tpu.pipeline_mode<synchronous>, transform_indices = @transform_3, window_bounds = array<i64: 3, 2, 64, 32>}, {pipeline_mode = #tpu.pipeline_mode<synchronous>, transform_indices = @transform_4, window_bounds = array<i64: 3, 2, 1, 32>}, {pipeline_mode = #tpu.pipeline_mode<synchronous>, transform_indices = @transform_5, window_bounds = array<i64: 2, 32, 128>}, {pipeline_mode = #tpu.pipeline_mode<synchronous>, transform_indices = @transform_6, window_bounds = array<i64: 1, 128>}, {transform_indices = @transform_7, window_bounds = array<i64: 8, 128>}]} {
    %c0 = arith.constant 0 : index
    %c0_0 = arith.constant 0 : index
    %c0_1 = arith.constant 0 : index
    %0 = vector.load %arg1[%c0, %c0_0, %c0_1] : memref<8x64x64xbf16, #tpu.memory_space<vmem>>, vector<8x64x64xbf16>
    %1 = vector.shape_cast %0 : vector<8x64x64xbf16> to vector<512x64xbf16>
    %c0_2 = arith.constant 0 : index
    %c0_3 = arith.constant 0 : index
    %2 = vector.load %arg2[%c0_2, %c0_3] : memref<64x64xbf16, #tpu.memory_space<vmem>>, vector<64x64xbf16>
    %cst = arith.constant dense<0.000000e+00> : vector<512x64xf32>
    %3 = tpu.matmul %1, %2, %cst {dimension_numbers = #tpu.dot_dimension_numbers<[1], [0], [0], [1], [0, 0, 1, 1], [], []>} : vector<512x64xbf16>, vector<64x64xbf16>, vector<512x64xf32> -> vector<512x64xf32>
    %4 = vector.shape_cast %3 : vector<512x64xf32> to vector<8x64x64xf32>
    %c0_4 = arith.constant 0 : index
    %c0_5 = arith.constant 0 : index
    %5 = vector.load %arg3[%c0_4, %c0_5] : memref<64x64xf32, #tpu.memory_space<vmem>>, vector<64x64xf32>
    %6 = vector.shape_cast %5 : vector<64x64xf32> to vector<1x64x64xf32>
    %7 = vector.broadcast %6 : vector<1x64x64xf32> to vector<8x64x64xf32>
    %8 = arith.addf %4, %7 : vector<8x64x64xf32>
    %9 = vector.shape_cast %8 : vector<8x64x64xf32> to vector<512x64xf32>
    %10 = arith.truncf %9 : vector<512x64xf32> to vector<512x64xbf16>
    %c0_6 = arith.constant 0 : index
    %c0_7 = arith.constant 0 : index
    %c0_8 = arith.constant 0 : index
    %c0_9 = arith.constant 0 : index
    %11 = vector.load %arg4[%c0_6, %c0_7, %c0_8, %c0_9] : memref<3x2x64x32xbf16, #tpu.memory_space<vmem>>, vector<1x1x64x32xbf16>
    %12 = vector.shape_cast %11 : vector<1x1x64x32xbf16> to vector<64x32xbf16>
    %cst_10 = arith.constant dense<0.000000e+00> : vector<512x32xf32>
    %13 = tpu.matmul %10, %12, %cst_10 {dimension_numbers = #tpu.dot_dimension_numbers<[1], [0], [0], [1], [0, 0, 1, 1], [], []>} : vector<512x64xbf16>, vector<64x32xbf16>, vector<512x32xf32> -> vector<512x32xf32>
    %c0_11 = arith.constant 0 : index
    %c0_12 = arith.constant 0 : index
    %c0_13 = arith.constant 0 : index
    %c0_14 = arith.constant 0 : index
    %14 = vector.load %arg5[%c0_11, %c0_12, %c0_13, %c0_14] : memref<3x2x1x32xf32, #tpu.memory_space<vmem>>, vector<1x1x1x32xf32>
    %15 = vector.shape_cast %14 : vector<1x1x1x32xf32> to vector<1x32xf32>
    %16 = vector.broadcast %15 : vector<1x32xf32> to vector<512x32xf32>
    %17 = arith.addf %13, %16 : vector<512x32xf32>
    %18 = arith.truncf %17 : vector<512x32xf32> to vector<512x32xbf16>
    %19 = vector.shape_cast %18 : vector<512x32xbf16> to vector<8x64x32xbf16>
    %c1 = arith.constant 1 : index
    %c0_15 = arith.constant 0 : index
    %c0_16 = arith.constant 0 : index
    %c0_17 = arith.constant 0 : index
    %20 = vector.load %arg4[%c1, %c0_15, %c0_16, %c0_17] : memref<3x2x64x32xbf16, #tpu.memory_space<vmem>>, vector<1x1x64x32xbf16>
    %21 = vector.shape_cast %20 : vector<1x1x64x32xbf16> to vector<64x32xbf16>
    %cst_18 = arith.constant dense<0.000000e+00> : vector<512x32xf32>
    %22 = tpu.matmul %10, %21, %cst_18 {dimension_numbers = #tpu.dot_dimension_numbers<[1], [0], [0], [1], [0, 0, 1, 1], [], []>} : vector<512x64xbf16>, vector<64x32xbf16>, vector<512x32xf32> -> vector<512x32xf32>
    %c1_19 = arith.constant 1 : index
    %c0_20 = arith.constant 0 : index
    %c0_21 = arith.constant 0 : index
    %c0_22 = arith.constant 0 : index
    %23 = vector.load %arg5[%c1_19, %c0_20, %c0_21, %c0_22] : memref<3x2x1x32xf32, #tpu.memory_space<vmem>>, vector<1x1x1x32xf32>
    %24 = vector.shape_cast %23 : vector<1x1x1x32xf32> to vector<1x32xf32>
    %25 = vector.broadcast %24 : vector<1x32xf32> to vector<512x32xf32>
    %26 = arith.addf %22, %25 : vector<512x32xf32>
    %27 = arith.truncf %26 : vector<512x32xf32> to vector<512x32xbf16>
    %28 = vector.shape_cast %27 : vector<512x32xbf16> to vector<8x64x32xbf16>
    %c2 = arith.constant 2 : index
    %c0_23 = arith.constant 0 : index
    %c0_24 = arith.constant 0 : index
    %c0_25 = arith.constant 0 : index
    %29 = vector.load %arg4[%c2, %c0_23, %c0_24, %c0_25] : memref<3x2x64x32xbf16, #tpu.memory_space<vmem>>, vector<1x1x64x32xbf16>
    %30 = vector.shape_cast %29 : vector<1x1x64x32xbf16> to vector<64x32xbf16>
    %cst_26 = arith.constant dense<0.000000e+00> : vector<512x32xf32>
    %31 = tpu.matmul %10, %30, %cst_26 {dimension_numbers = #tpu.dot_dimension_numbers<[1], [0], [0], [1], [0, 0, 1, 1], [], []>} : vector<512x64xbf16>, vector<64x32xbf16>, vector<512x32xf32> -> vector<512x32xf32>
    %c2_27 = arith.constant 2 : index
    %c0_28 = arith.constant 0 : index
    %c0_29 = arith.constant 0 : index
    %c0_30 = arith.constant 0 : index
    %32 = vector.load %arg5[%c2_27, %c0_28, %c0_29, %c0_30] : memref<3x2x1x32xf32, #tpu.memory_space<vmem>>, vector<1x1x1x32xf32>
    %33 = vector.shape_cast %32 : vector<1x1x1x32xf32> to vector<1x32xf32>
    %34 = vector.broadcast %33 : vector<1x32xf32> to vector<512x32xf32>
    %35 = arith.addf %31, %34 : vector<512x32xf32>
    %36 = arith.truncf %35 : vector<512x32xf32> to vector<512x32xbf16>
    %37 = vector.shape_cast %36 : vector<512x32xbf16> to vector<8x64x32xbf16>
    "tpu.trace_start"() <{level = 10 : i32, message = "bqd,bkd->bqk"}> : () -> ()
    %cst_31 = arith.constant dense<0.000000e+00> : vector<8x64x64xf32>
    %38 = tpu.matmul %19, %28, %cst_31 {dimension_numbers = #tpu.dot_dimension_numbers<[2], [2], [1], [1], [0, 0, 0, 1, 1, 1], [0], [0]>} : vector<8x64x32xbf16>, vector<8x64x32xbf16>, vector<8x64x64xf32> -> vector<8x64x64xf32>
    "tpu.trace_stop"() : () -> ()
    %cst_32 = arith.constant dense<0xFF800000> : vector<8x64xf32>
    %39 = vector.multi_reduction <maximumf>, %38, %cst_32 [2] : vector<8x64x64xf32> to vector<8x64xf32>
    %40 = vector.shape_cast %39 : vector<8x64xf32> to vector<8x64x1xf32>
    %41 = vector.broadcast %40 : vector<8x64x1xf32> to vector<8x64x64xf32>
    %42 = arith.subf %38, %41 : vector<8x64x64xf32>
    %43 = math.exp %42 : vector<8x64x64xf32>
    %cst_33 = arith.constant dense<0.000000e+00> : vector<8x64xf32>
    %44 = vector.multi_reduction <add>, %43, %cst_33 [2] : vector<8x64x64xf32> to vector<8x64xf32>
    %45 = vector.shape_cast %44 : vector<8x64xf32> to vector<8x64x1xf32>
    %46 = tpu.reciprocal %45 {approx = true} : vector<8x64x1xf32> -> vector<8x64x1xf32>
    %47 = arith.truncf %43 : vector<8x64x64xf32> to vector<8x64x64xbf16>
    "tpu.trace_start"() <{level = 10 : i32, message = "bqk,bkd->bqd"}> : () -> ()
    %cst_34 = arith.constant dense<0.000000e+00> : vector<8x64x32xf32>
    %48 = tpu.matmul %47, %37, %cst_34 {dimension_numbers = #tpu.dot_dimension_numbers<[2], [1], [1], [2], [0, 0, 0, 1, 1, 2], [0], [0]>} : vector<8x64x64xbf16>, vector<8x64x32xbf16>, vector<8x64x32xf32> -> vector<8x64x32xf32>
    "tpu.trace_stop"() : () -> ()
    %49 = vector.broadcast %46 : vector<8x64x1xf32> to vector<8x64x32xf32>
    %50 = arith.mulf %48, %49 : vector<8x64x32xf32>
    %cst_35 = arith.constant dense<0.000000e+00> : vector<8x32xf32>
    %51 = vector.multi_reduction <add>, %50, %cst_35 [1] : vector<8x64x32xf32> to vector<8x32xf32>
    %c0_36 = arith.constant 0 : index
    %c0_37 = arith.constant 0 : index
    %c0_38 = arith.constant 0 : index
    %52 = vector.load %arg6[%c0_36, %c0_37, %c0_38] : memref<2x32x128xf32, #tpu.memory_space<vmem>>, vector<1x32x128xf32>
    %53 = vector.shape_cast %52 : vector<1x32x128xf32> to vector<32x128xf32>
    %cst_39 = arith.constant dense<0.000000e+00> : vector<8x128xf32>
    %54 = tpu.matmul %51, %53, %cst_39 {dimension_numbers = #tpu.dot_dimension_numbers<[1], [0], [0], [1], [0, 0, 1, 1], [], []>} : vector<8x32xf32>, vector<32x128xf32>, vector<8x128xf32> -> vector<8x128xf32>
    %c0_40 = arith.constant 0 : index
    %c1_41 = arith.constant 1 : index
    %c0_42 = arith.constant 0 : index
    %c0_43 = arith.constant 0 : index
    %55 = vector.load %arg4[%c0_40, %c1_41, %c0_42, %c0_43] : memref<3x2x64x32xbf16, #tpu.memory_space<vmem>>, vector<1x1x64x32xbf16>
    %56 = vector.shape_cast %55 : vector<1x1x64x32xbf16> to vector<64x32xbf16>
    %cst_44 = arith.constant dense<0.000000e+00> : vector<512x32xf32>
    %57 = tpu.matmul %10, %56, %cst_44 {dimension_numbers = #tpu.dot_dimension_numbers<[1], [0], [0], [1], [0, 0, 1, 1], [], []>} : vector<512x64xbf16>, vector<64x32xbf16>, vector<512x32xf32> -> vector<512x32xf32>
    %c0_45 = arith.constant 0 : index
    %c1_46 = arith.constant 1 : index
    %c0_47 = arith.constant 0 : index
    %c0_48 = arith.constant 0 : index
    %58 = vector.load %arg5[%c0_45, %c1_46, %c0_47, %c0_48] : memref<3x2x1x32xf32, #tpu.memory_space<vmem>>, vector<1x1x1x32xf32>
    %59 = vector.shape_cast %58 : vector<1x1x1x32xf32> to vector<1x32xf32>
    %60 = vector.broadcast %59 : vector<1x32xf32> to vector<512x32xf32>
    %61 = arith.addf %57, %60 : vector<512x32xf32>
    %62 = arith.truncf %61 : vector<512x32xf32> to vector<512x32xbf16>
    %63 = vector.shape_cast %62 : vector<512x32xbf16> to vector<8x64x32xbf16>
    %c1_49 = arith.constant 1 : index
    %c1_50 = arith.constant 1 : index
    %c0_51 = arith.constant 0 : index
    %c0_52 = arith.constant 0 : index
    %64 = vector.load %arg4[%c1_49, %c1_50, %c0_51, %c0_52] : memref<3x2x64x32xbf16, #tpu.memory_space<vmem>>, vector<1x1x64x32xbf16>
    %65 = vector.shape_cast %64 : vector<1x1x64x32xbf16> to vector<64x32xbf16>
    %cst_53 = arith.constant dense<0.000000e+00> : vector<512x32xf32>
    %66 = tpu.matmul %10, %65, %cst_53 {dimension_numbers = #tpu.dot_dimension_numbers<[1], [0], [0], [1], [0, 0, 1, 1], [], []>} : vector<512x64xbf16>, vector<64x32xbf16>, vector<512x32xf32> -> vector<512x32xf32>
    %c1_54 = arith.constant 1 : index
    %c1_55 = arith.constant 1 : index
    %c0_56 = arith.constant 0 : index
    %c0_57 = arith.constant 0 : index
    %67 = vector.load %arg5[%c1_54, %c1_55, %c0_56, %c0_57] : memref<3x2x1x32xf32, #tpu.memory_space<vmem>>, vector<1x1x1x32xf32>
    %68 = vector.shape_cast %67 : vector<1x1x1x32xf32> to vector<1x32xf32>
    %69 = vector.broadcast %68 : vector<1x32xf32> to vector<512x32xf32>
    %70 = arith.addf %66, %69 : vector<512x32xf32>
    %71 = arith.truncf %70 : vector<512x32xf32> to vector<512x32xbf16>
    %72 = vector.shape_cast %71 : vector<512x32xbf16> to vector<8x64x32xbf16>
    %c2_58 = arith.constant 2 : index
    %c1_59 = arith.constant 1 : index
    %c0_60 = arith.constant 0 : index
    %c0_61 = arith.constant 0 : index
    %73 = vector.load %arg4[%c2_58, %c1_59, %c0_60, %c0_61] : memref<3x2x64x32xbf16, #tpu.memory_space<vmem>>, vector<1x1x64x32xbf16>
    %74 = vector.shape_cast %73 : vector<1x1x64x32xbf16> to vector<64x32xbf16>
    %cst_62 = arith.constant dense<0.000000e+00> : vector<512x32xf32>
    %75 = tpu.matmul %10, %74, %cst_62 {dimension_numbers = #tpu.dot_dimension_numbers<[1], [0], [0], [1], [0, 0, 1, 1], [], []>} : vector<512x64xbf16>, vector<64x32xbf16>, vector<512x32xf32> -> vector<512x32xf32>
    %c2_63 = arith.constant 2 : index
    %c1_64 = arith.constant 1 : index
    %c0_65 = arith.constant 0 : index
    %c0_66 = arith.constant 0 : index
    %76 = vector.load %arg5[%c2_63, %c1_64, %c0_65, %c0_66] : memref<3x2x1x32xf32, #tpu.memory_space<vmem>>, vector<1x1x1x32xf32>
    %77 = vector.shape_cast %76 : vector<1x1x1x32xf32> to vector<1x32xf32>
    %78 = vector.broadcast %77 : vector<1x32xf32> to vector<512x32xf32>
    %79 = arith.addf %75, %78 : vector<512x32xf32>
    %80 = arith.truncf %79 : vector<512x32xf32> to vector<512x32xbf16>
    %81 = vector.shape_cast %80 : vector<512x32xbf16> to vector<8x64x32xbf16>
    "tpu.trace_start"() <{level = 10 : i32, message = "bqd,bkd->bqk"}> : () -> ()
    %cst_67 = arith.constant dense<0.000000e+00> : vector<8x64x64xf32>
    %82 = tpu.matmul %63, %72, %cst_67 {dimension_numbers = #tpu.dot_dimension_numbers<[2], [2], [1], [1], [0, 0, 0, 1, 1, 1], [0], [0]>} : vector<8x64x32xbf16>, vector<8x64x32xbf16>, vector<8x64x64xf32> -> vector<8x64x64xf32>
    "tpu.trace_stop"() : () -> ()
    %cst_68 = arith.constant dense<0xFF800000> : vector<8x64xf32>
    %83 = vector.multi_reduction <maximumf>, %82, %cst_68 [2] : vector<8x64x64xf32> to vector<8x64xf32>
    %84 = vector.shape_cast %83 : vector<8x64xf32> to vector<8x64x1xf32>
    %85 = vector.broadcast %84 : vector<8x64x1xf32> to vector<8x64x64xf32>
    %86 = arith.subf %82, %85 : vector<8x64x64xf32>
    %87 = math.exp %86 : vector<8x64x64xf32>
    %cst_69 = arith.constant dense<0.000000e+00> : vector<8x64xf32>
    %88 = vector.multi_reduction <add>, %87, %cst_69 [2] : vector<8x64x64xf32> to vector<8x64xf32>
    %89 = vector.shape_cast %88 : vector<8x64xf32> to vector<8x64x1xf32>
    %90 = tpu.reciprocal %89 {approx = true} : vector<8x64x1xf32> -> vector<8x64x1xf32>
    %91 = arith.truncf %87 : vector<8x64x64xf32> to vector<8x64x64xbf16>
    "tpu.trace_start"() <{level = 10 : i32, message = "bqk,bkd->bqd"}> : () -> ()
    %cst_70 = arith.constant dense<0.000000e+00> : vector<8x64x32xf32>
    %92 = tpu.matmul %91, %81, %cst_70 {dimension_numbers = #tpu.dot_dimension_numbers<[2], [1], [1], [2], [0, 0, 0, 1, 1, 2], [0], [0]>} : vector<8x64x64xbf16>, vector<8x64x32xbf16>, vector<8x64x32xf32> -> vector<8x64x32xf32>
    "tpu.trace_stop"() : () -> ()
    %93 = vector.broadcast %90 : vector<8x64x1xf32> to vector<8x64x32xf32>
    %94 = arith.mulf %92, %93 : vector<8x64x32xf32>
    %cst_71 = arith.constant dense<0.000000e+00> : vector<8x32xf32>
    %95 = vector.multi_reduction <add>, %94, %cst_71 [1] : vector<8x64x32xf32> to vector<8x32xf32>
    %c1_72 = arith.constant 1 : index
    %c0_73 = arith.constant 0 : index
    %c0_74 = arith.constant 0 : index
    %96 = vector.load %arg6[%c1_72, %c0_73, %c0_74] : memref<2x32x128xf32, #tpu.memory_space<vmem>>, vector<1x32x128xf32>
    %97 = vector.shape_cast %96 : vector<1x32x128xf32> to vector<32x128xf32>
    %cst_75 = arith.constant dense<0.000000e+00> : vector<8x128xf32>
    %98 = tpu.matmul %95, %97, %cst_75 {dimension_numbers = #tpu.dot_dimension_numbers<[1], [0], [0], [1], [0, 0, 1, 1], [], []>} : vector<8x32xf32>, vector<32x128xf32>, vector<8x128xf32> -> vector<8x128xf32>
    %99 = arith.addf %54, %98 : vector<8x128xf32>
    %c0_76 = arith.constant 0 : index
    %c0_77 = arith.constant 0 : index
    %100 = vector.load %arg7[%c0_76, %c0_77] : memref<1x128xf32, #tpu.memory_space<vmem>>, vector<1x128xf32>
    %101 = vector.broadcast %100 : vector<1x128xf32> to vector<8x128xf32>
    %102 = arith.addf %99, %101 : vector<8x128xf32>
    %c0_78 = arith.constant 0 : index
    %c0_79 = arith.constant 0 : index
    %103 = vector.load %arg8[%c0_78, %c0_79] : memref<8x128xf32, #tpu.memory_space<vmem>>, vector<8x128xf32>
    tpu.vector_store %arg8[%c0_78, %c0_79], %102 {strides = array<i32>} : memref<8x128xf32, #tpu.memory_space<vmem>>, vector<8x128xf32>,
    return
  }
  func.func @transform_0(%arg0: i32) -> (i32, i32, i32) {
    %c0_i32 = arith.constant 0 : i32
    %c0_i32_0 = arith.constant 0 : i32
    %c0_i32_1 = arith.constant 0 : i32
    return %arg0, %c0_i32, %c0_i32_0 : i32, i32, i32
  }
  func.func @transform_1(%arg0: i32) -> (i32, i32) {
    %c0_i32 = arith.constant 0 : i32
    %c0_i32_0 = arith.constant 0 : i32
    %c0_i32_1 = arith.constant 0 : i32
    return %c0_i32, %c0_i32_0 : i32, i32
  }
  func.func @transform_2(%arg0: i32) -> (i32, i32) {
    %c0_i32 = arith.constant 0 : i32
    %c0_i32_0 = arith.constant 0 : i32
    %c0_i32_1 = arith.constant 0 : i32
    return %c0_i32, %c0_i32_0 : i32, i32
  }
  func.func @transform_3(%arg0: i32) -> (i32, i32, i32, i32) {
    %c0_i32 = arith.constant 0 : i32
    %c0_i32_0 = arith.constant 0 : i32
    %c0_i32_1 = arith.constant 0 : i32
    %c0_i32_2 = arith.constant 0 : i32
    %c0_i32_3 = arith.constant 0 : i32
    return %c0_i32, %c0_i32_0, %c0_i32_1, %c0_i32_2 : i32, i32, i32, i32
  }
  func.func @transform_4(%arg0: i32) -> (i32, i32, i32, i32) {
    %c0_i32 = arith.constant 0 : i32
    %c0_i32_0 = arith.constant 0 : i32
    %c0_i32_1 = arith.constant 0 : i32
    %c0_i32_2 = arith.constant 0 : i32
    %c0_i32_3 = arith.constant 0 : i32
    return %c0_i32, %c0_i32_0, %c0_i32_1, %c0_i32_2 : i32, i32, i32, i32
  }
  func.func @transform_5(%arg0: i32) -> (i32, i32, i32) {
    %c0_i32 = arith.constant 0 : i32
    %c0_i32_0 = arith.constant 0 : i32
    %c0_i32_1 = arith.constant 0 : i32
    %c0_i32_2 = arith.constant 0 : i32
    return %c0_i32, %c0_i32_0, %c0_i32_1 : i32, i32, i32
  }
  func.func @transform_6(%arg0: i32) -> (i32, i32) {
    %c0_i32 = arith.constant 0 : i32
    %c0_i32_0 = arith.constant 0 : i32
    %c0_i32_1 = arith.constant 0 : i32
    return %c0_i32, %c0_i32_0 : i32, i32
  }
  func.func @transform_7(%arg0: i32) -> (i32, i32) {
    %c0_i32 = arith.constant 0 : i32
    %c0_i32_0 = arith.constant 0 : i32
    return %arg0, %c0_i32 : i32, i32
  }
}

</mosaic_0001>

<bundles_post_ra>
// kernel: pyt_transf_forward.1
= control target key start
LH: loop header
LB: loop body
LE: loop exit
PB: predicated region body
PF: predicated region fallthrough
CT: control target
= control target key end

     0   :  { %vm283_vm0 = vcmask 523264   ;;  %vm1953_vm1 = vcmask 261120   ;;  %vm7521_vm2 = vcmask 1041409   ;;  %vm10385_vm3 = vmmov 0   ;;  %s14399_s1 = inlined_call_operand.vmem [shape: bf16[64,64], index: 1, kind: input, shape index: {}]   ;;  %s14400_s0 = inlined_call_operand.vmem [shape: bf16[8,64,64], index: 0, kind: input, shape index: {}]   ;;  %s14401_s3 = inlined_call_operand.vmem [shape: bf16[3,2,64,32], index: 3, kind: input, shape index: {}]   ;;  %s14402_s2 = inlined_call_operand.vmem [shape: f32[64,64], index: 2, kind: input, shape index: {}]   ;;  %s14403_s4 = inlined_call_operand.vmem [shape: f32[3,2,1,32], index: 4, kind: input, shape index: {}]   ;;  %s14404_s5 = inlined_call_operand.vmem [shape: f32[2,32,128], index: 5, kind: input, shape index: {}]   ;;  %s14405_s6 = inlined_call_operand.vmem [shape: f32[1,128], index: 6, kind: input, shape index: {}]   ;;  %s14406_s7 = inlined_call_operand.vmem [shape: f32[8,128], index: 7, kind: output, shape index: {}]  }
   0x1   :  { %v9812_v0 = vld [vmem:[%s14399_s1] sm:$0xff]   ;;  %v9813_v1 = vld [vmem:[%s14399_s1 + $0x8] sm:$0xff]   ;;  %v9814_v2 = vld [vmem:[%s14399_s1 + $0x10] sm:$0xff]   ;;  %vm7523_vm4 = vcmask 1042434   ;;  %vm7525_vm5 = vcmask 1043459   ;;  %vm7527_vm6 = vcmask 1044484  }
   0x2   :  { %8695 = vmatprep.subr.bf16.mxu0 %v9812_v0  ;;  %v9816_v3 = vld [vmem:[%s14400_s0] sm:$0xff]   ;;  %v9815_v4 = vld [vmem:[%s14399_s1 + $0x18] sm:$0xff]   ;;  %v9817_v5 = vld [vmem:[%s14400_s0 + $0x8] sm:$0xff]   ;;  %vm7529_vm7 = vcmask 1045509   ;;  %vm7531_vm8 = vcmask 1046534   ;;  %vm7533_vm9 = vcmask 1047559  }
   0x3   :  { %8696 = vmatpush3.bf16.msra.mxu0 %v9812_v0  ;;  %8703 = vmatprep.mubr.msk.bf16.mxu0 %vm283_vm0, %v9816_v3  ;;  %v9818_v6 = vld [vmem:[%s14400_s0 + $0x10] sm:$0xff]   ;;  %v9819_v7 = vld [vmem:[%s14400_s0 + $0x18] sm:$0xff]   ;;  %v9820_v8 = vld [vmem:[%s14400_s0 + $0x20] sm:$0xff]  }
   0x4   :  { %8697 = vmatprep.subr.bf16.mxu0 %v9813_v1  ;;  %v9821_v9 = vld [vmem:[%s14400_s0 + $0x28] sm:$0xff]   ;;  %v9822_v10 = vld [vmem:[%s14400_s0 + $0x30] sm:$0xff]   ;;  %v9823_v11 = vld [vmem:[%s14400_s0 + $0x38] sm:$0xff]  }
   0x5   :  { %v9848_v12 = vld [vmem:[%s14401_s3 + $0x40] sm:$0xff]   ;;  %v9850_v15 = vld [vmem:[%s14401_s3 + $0x8] sm:$0xff]   ;;  %v9826_v18 = vld [vmem:[%s14400_s0 + $0x50] sm:$0xff]  }
   0x6   :  { %v9824_v13 = vld [vmem:[%s14400_s0 + $0x40] sm:$0xff]   ;;  %v9851_v16 = vld [vmem:[%s14401_s3 + $0x48] sm:$0xff]   ;;  %v9827_v19 = vld [vmem:[%s14400_s0 + $0x58] sm:$0xff]  }
   0x7   :  { %8698 = vmatpush3.bf16.msra.mxu0 %v9813_v1  ;;  %v9849_v14 = vld [vmem:[%s14401_s3] sm:$0xff]   ;;  %v9825_v17 = vld [vmem:[%s14400_s0 + $0x48] sm:$0xff]   ;;  %v9830_v22 = vld [vmem:[%s14400_s0 + $0x70] sm:$0xff]  }
   0x8   :  { %8699 = vmatprep.subr.bf16.mxu0 %v9814_v2  ;;  %8767 = vmatprep.subr.bf16.mxu1 %v9849_v14  ;;  %v9828_v20 = vld [vmem:[%s14400_s0 + $0x60] sm:$0xff]   ;;  %v9829_v21 = vld [vmem:[%s14400_s0 + $0x68] sm:$0xff]   ;;  %v9831_v23 = vld [vmem:[%s14400_s0 + $0x78] sm:$0xff]  }
   0x9   :  { %8768 = vmatpush3.bf16.msra.mxu1 %v9849_v14  ;;  %v9832_v24 = vld [vmem:[%s14400_s0 + $0x80] sm:$0xff]   ;;  %v9833_v25 = vld [vmem:[%s14400_s0 + $0x88] sm:$0xff]   ;;  %v9834_v26 = vld [vmem:[%s14400_s0 + $0x90] sm:$0xff]  }
   0xa   :  { %8769 = vmatprep.subr.bf16.mxu1 %v9850_v15  ;;  %v9835_v27 = vld [vmem:[%s14400_s0 + $0x98] sm:$0xff]   ;;  %v9836_v28 = vld [vmem:[%s14400_s0 + $0xa0] sm:$0xff]   ;;  %v9837_v29 = vld [vmem:[%s14400_s0 + $0xa8] sm:$0xff]  }
   0xb   :  { %8700 = vmatpush3.bf16.msra.mxu0 %v9814_v2  ;;  %v9838_v30 = vld [vmem:[%s14400_s0 + $0xb0] sm:$0xff]   ;;  %v9839_v33 = vld [vmem:[%s14400_s0 + $0xb8] sm:$0xff]   ;;  %v9840_v34 = vld [vmem:[%s14400_s0 + $0xc0] sm:$0xff]  }
   0xc   :  { %8701 = vmatprep.subr.bf16.mxu0 %v9815_v4  ;;  %v9852_v31 = vld [vmem:[%s14401_s3 + $0x10] sm:$0xff]   ;;  %v9854_v35 = vld [vmem:[%s14401_s3 + $0x18] sm:$0xff]   ;;  %v9841_v37 = vld [vmem:[%s14400_s0 + $0xc8] sm:$0xff]  }
   0xd   :  { %8770 = vmatpush3.bf16.msra.mxu1 %v9850_v15  ;;  %v9853_v32 = vld [vmem:[%s14401_s3 + $0x50] sm:$0xff]   ;;  %v9855_v36 = vld [vmem:[%s14401_s3 + $0x58] sm:$0xff]   ;;  %v9844_v40 = vld [vmem:[%s14400_s0 + $0xe0] sm:$0xff]  }
   0xe   :  { %8771 = vmatprep.subr.bf16.mxu1 %v9852_v31  ;;  %v9842_v38 = vld [vmem:[%s14400_s0 + $0xd0] sm:$0xff]   ;;  %v9843_v39 = vld [vmem:[%s14400_s0 + $0xd8] sm:$0xff]   ;;  %v9845_v41 = vld [vmem:[%s14400_s0 + $0xe8] sm:$0xff]  }
   0xf   :  { %8702 = vmatpush3.bf16.msra.mxu0 %v9815_v4  ;;  %v9846_v42 = vld [vmem:[%s14400_s0 + $0xf0] sm:$0xff]   ;;  %v9847_v43 = vld [vmem:[%s14400_s0 + $0xf8] sm:$0xff]   ;;  %v9856_v44 = vld [vmem:[%s14401_s3 + $0x80] sm:$0xff]  }
  0x10   :  { %8839 = vmatprep.subr.bf16.mxu0 %v9848_v12  ;;  %v10597_v46 = vld [vmem:[%s14402_s2 + $0x10] sm:$0xff]  ;;  %v10602_v47 = vld [vmem:[%s14402_s2 + $0x18] sm:$0xff]  ;;  %v10607_v49 = vld [vmem:[%s14402_s2] sm:$0xff] }
  0x11   :  { %8772 = vmatpush3.bf16.msra.mxu1 %v9852_v31  ;;  %v10612_v50 = vld [vmem:[%s14402_s2 + $0x8] sm:$0xff]  ;;  %v10628_v61 = vld [vmem:[%s14402_s2 + $0x30] sm:$0xff]  ;;  %v10637_v62 = vld [vmem:[%s14402_s2 + $0x38] sm:$0xff] }
  0x12   :  { %8704 = vmatmul.mubr.msk.bf16.vlgmr.msra.gmra.mrb[0].mxu0 %vm283_vm0, %v9817_v5  ;;  %8773 = vmatprep.subr.bf16.mxu1 %v9854_v35  ;;  %v9857_v59 = vld [vmem:[%s14401_s3 + $0x88] sm:$0xff]   ;;  %v10642_v0 = vld [vmem:[%s14402_s2 + $0x20] sm:$0xff] }
  0x13   :  { %8707 = vmatprep.mubr.msk.bf16.mxu0 %vm283_vm0, %v9818_v6  ;;  %8840 = vmatpush3.bf16.msra.mxu0 %v9848_v12  ;;  %v10651_v1 = vld [vmem:[%s14402_s2 + $0x28] sm:$0xff]  ;;  %v9858_v6 = vld [vmem:[%s14401_s3 + $0x90] sm:$0xff]  }
  0x14   :  { %8841 = vmatprep.subr.bf16.mxu0 %v9851_v16 }
  0x15   :  { %8774 = vmatpush3.bf16.msra.mxu1 %v9854_v35 }
  0x16   :  { %8911 = vmatprep.subr.bf16.mxu1 %v9856_v44 }
  0x17   :  { %8842 = vmatpush3.bf16.msra.mxu0 %v9851_v16 }
  0x18   :  { %8843 = vmatprep.subr.bf16.mxu0 %v9853_v32 }
  0x1a   :  { %8708 = vmatmul.mubr.msk.bf16.gmra.mrb[4].mxu0 %vm283_vm0, %v9819_v7 }
  0x1b   :  { %8711 = vmatprep.mubr.msk.bf16.mxu0 %vm283_vm0, %v9820_v8  ;;  %8844 = vmatpush3.bf16.msra.mxu0 %v9853_v32 }
  0x1c   :  { %8845 = vmatprep.subr.bf16.mxu0 %v9855_v36 }
  0x1f   :  { %8846 = vmatpush3.bf16.msra.mxu0 %v9855_v36 }
  0x22   :  { %8712 = vmatmul.mubr.msk.bf16.gmra.mrb[8].mxu0 %vm283_vm0, %v9821_v9 }
  0x23   :  { %8715 = vmatprep.mubr.msk.bf16.mxu0 %vm283_vm0, %v9822_v10 }
  0x2a   :  { %8716 = vmatmul.mubr.msk.bf16.gmra.mrb[12].mxu0 %vm283_vm0, %v9823_v11  ;;  %v9859_v11 = vld [vmem:[%s14401_s3 + $0x98] sm:$0xff]  }
  0x2b   :  { %8719 = vmatprep.mubr.msk.bf16.mxu0 %vm283_vm0, %v9824_v13 }
  0x32   :  { %8720 = vmatmul.mubr.msk.bf16.gmra.mrb[16].mxu0 %vm283_vm0, %v9825_v17 }
  0x33   :  { %8723 = vmatprep.mubr.msk.bf16.mxu0 %vm283_vm0, %v9826_v18 }
  0x3a   :  { %8724 = vmatmul.mubr.msk.bf16.gmra.mrb[20].mxu0 %vm283_vm0, %v9827_v19 }
  0x3b   :  { %8727 = vmatprep.mubr.msk.bf16.mxu0 %vm283_vm0, %v9828_v20 }
  0x42   :  { %8728 = vmatmul.mubr.msk.bf16.gmra.mrb[24].mxu0 %vm283_vm0, %v9829_v21 }
  0x43   :  { %8731 = vmatprep.mubr.msk.bf16.mxu0 %vm283_vm0, %v9830_v22 }
  0x4a   :  { %8732 = vmatmul.mubr.msk.bf16.gmra.mrb[28].mxu0 %vm283_vm0, %v9831_v23 }
  0x4b   :  { %8735 = vmatprep.mubr.msk.bf16.mxu0 %vm283_vm0, %v9832_v24 }
  0x52   :  { %8736 = vmatmul.mubr.msk.bf16.gmra.mrb[32].mxu0 %vm283_vm0, %v9833_v25 }
  0x53   :  { %8739 = vmatprep.mubr.msk.bf16.mxu0 %vm283_vm0, %v9834_v26 }
  0x5a   :  { %8740 = vmatmul.mubr.msk.bf16.gmra.mrb[36].mxu0 %vm283_vm0, %v9835_v27 }
  0x5b   :  { %8743 = vmatprep.mubr.msk.bf16.mxu0 %vm283_vm0, %v9836_v28 }
  0x62   :  { %8744 = vmatmul.mubr.msk.bf16.gmra.mrb[40].mxu0 %vm283_vm0, %v9837_v29 }
  0x63   :  { %8747 = vmatprep.mubr.msk.bf16.mxu0 %vm283_vm0, %v9838_v30 }
  0x6a   :  { %8748 = vmatmul.mubr.msk.bf16.gmra.mrb[44].mxu0 %vm283_vm0, %v9839_v33 }
  0x6b   :  { %8751 = vmatprep.mubr.msk.bf16.mxu0 %vm283_vm0, %v9840_v34 }
  0x72   :  { %8752 = vmatmul.mubr.msk.bf16.gmra.mrb[48].mxu0 %vm283_vm0, %v9841_v37 }
  0x73   :  { %8755 = vmatprep.mubr.msk.bf16.mxu0 %vm283_vm0, %v9842_v38 }
  0x7a   :  { %8756 = vmatmul.mubr.msk.bf16.gmra.mrb[52].mxu0 %vm283_vm0, %v9843_v39 }
  0x7b   :  { %8759 = vmatprep.mubr.msk.bf16.mxu0 %vm283_vm0, %v9844_v40 }
  0x82   :  { %8760 = vmatmul.mubr.msk.bf16.gmra.mrb[56].mxu0 %vm283_vm0, %v9845_v41 }
  0x83   :  { %8763 = vmatprep.mubr.msk.bf16.mxu0 %vm283_vm0, %v9846_v42 }
  0x8a   :  { %8764 = vmatmul.mubr.msk.bf16.gmra.mrb[60].mxu0 %vm283_vm0, %v9847_v43 }
  0xe5   :  { %v8705_v45 = vpop.f32.mrb[0].mxu0 }
  0xe6   :  { %v414_v48 = vpop.f32.mrb[1].mxu0  ;;  %v679_v52 = vadd.f32 %v8705_v45, %v10597_v46 }
  0xe7   :  { %v8706_v51 = vpop.f32.mrb[2].mxu0  ;;  %v677_v55 = vadd.f32 %v10607_v49, %v414_v48 }
  0xe8   :  { %v680_v53 = vadd.f32 %v8706_v51, %v10602_v47  ;;  %v417_v54 = vpop.f32.mrb[3].mxu0 }
  0xe9   :  { %v678_v56 = vadd.f32 %v10612_v50, %v417_v54 }
  0xea   :  { %v10618_v57 = vpack.c.bf16 %v680_v53, %v679_v52 }
  0xeb   :  { %v10620_v58 = vpack.c.bf16 %v678_v56, %v677_v55 }
  0xec   :  { %14592 = vst [vmem:[#allocation2_spill] sm:$0xff] %v10618_v57 }
  0xed   :  { %14593 = vst [vmem:[#allocation3_spill] sm:$0xff] %v10620_v58  ;;  %v8709_v60 = vpop.f32.mrb[4].mxu0  ;;  %8775 = vmatprep.mubr.msk.bf16.mxu1 %vm283_vm0, %v10620_v58  ;;  %8847 = vmatprep.mubr.msk.bf16.mxu0 %vm283_vm0, %v10620_v58 }
  0xee   :  { %v430_v63 = vpop.f32.mrb[5].mxu0  ;;  %8776 = vmatmul.mubr.msk.bf16.vlgmr.msra.gmra.mrb[0].mxu1 %vm283_vm0, %v10618_v57  ;;  %8848 = vmatmul.mubr.msk.bf16.vlgmr.msra.gmra.mrb[64].mxu0 %vm283_vm0, %v10618_v57  ;;  %v683_v3 = vadd.f32 %v8709_v60, %v10628_v61 }
  0xef   :  { %v8710_v2 = vpop.f32.mrb[6].mxu0  ;;  %8912 = vmatpush3.bf16.msra.mxu1 %v9856_v44  ;;  %v681_v7 = vadd.f32 %v10642_v0, %v430_v63 }
  0xf0   :  { %v684_v4 = vadd.f32 %v8710_v2, %v10637_v62  ;;  %v433_v5 = vpop.f32.mrb[7].mxu0  ;;  %8913 = vmatprep.subr.bf16.mxu1 %v9857_v59 }
  0xf1   :  { %v682_v8 = vadd.f32 %v10651_v1, %v433_v5 }
  0xf2   :  { %v10660_v9 = vpack.c.bf16 %v684_v4, %v683_v3 }
  0xf3   :  { %v10662_v10 = vpack.c.bf16 %v682_v8, %v681_v7  ;;  %8914 = vmatpush3.bf16.msra.mxu1 %v9857_v59 }
  0xf4   :  { %14594 = vst [vmem:[#allocation4_spill] sm:$0xff] %v10660_v9  ;;  %8915 = vmatprep.subr.bf16.mxu1 %v9858_v6 }
  0xf5   :  { %14595 = vst [vmem:[#allocation5_spill] sm:$0xff] %v10662_v10  ;;  %v8713_v12 = vpop.f32.mrb[8].mxu0  ;;  %8779 = vmatprep.mubr.msk.bf16.mxu1 %vm283_vm0, %v10662_v10  ;;  %8851 = vmatprep.mubr.msk.bf16.mxu0 %vm283_vm0, %v10662_v10 }
  0xf6   :  { %v446_v13 = vpop.f32.mrb[9].mxu0  ;;  %8780 = vmatmul.mubr.msk.bf16.gmra.mrb[4].mxu1 %vm283_vm0, %v10660_v9  ;;  %8852 = vmatmul.mubr.msk.bf16.gmra.mrb[68].mxu0 %vm283_vm0, %v10660_v9  ;;  %v687_v15 = vadd.f32 %v8713_v12, %v10597_v46 }
  0xf7   :  { %v8714_v14 = vpop.f32.mrb[10].mxu0  ;;  %8916 = vmatpush3.bf16.msra.mxu1 %v9858_v6  ;;  %v685_v18 = vadd.f32 %v10607_v49, %v446_v13 }
  0xf8   :  { %v688_v16 = vadd.f32 %v8714_v14, %v10602_v47  ;;  %v449_v17 = vpop.f32.mrb[11].mxu0  ;;  %8917 = vmatprep.subr.bf16.mxu1 %v9859_v11 }
  0xf9   :  { %v686_v19 = vadd.f32 %v10612_v50, %v449_v17 }
  0xfa   :  { %v10679_v20 = vpack.c.bf16 %v688_v16, %v687_v15 }
  0xfb   :  { %v10681_v21 = vpack.c.bf16 %v686_v19, %v685_v18  ;;  %8918 = vmatpush3.bf16.msra.mxu1 %v9859_v11 }
  0xfc   :  { %14596 = vst [vmem:[#allocation6_spill] sm:$0xff] %v10679_v20 }
  0xfd   :  { %14597 = vst [vmem:[#allocation7_spill] sm:$0xff] %v10681_v21  ;;  %v8717_v22 = vpop.f32.mrb[12].mxu0  ;;  %8783 = vmatprep.mubr.msk.bf16.mxu1 %vm283_vm0, %v10681_v21  ;;  %8855 = vmatprep.mubr.msk.bf16.mxu0 %vm283_vm0, %v10681_v21 }
  0xfe   :  { %v462_v23 = vpop.f32.mrb[13].mxu0  ;;  %8784 = vmatmul.mubr.msk.bf16.gmra.mrb[8].mxu1 %vm283_vm0, %v10679_v20  ;;  %8856 = vmatmul.mubr.msk.bf16.gmra.mrb[72].mxu0 %vm283_vm0, %v10679_v20  ;;  %v691_v25 = vadd.f32 %v8717_v22, %v10628_v61 }
  0xff   :  { %v8718_v24 = vpop.f32.mrb[14].mxu0  ;;  %v689_v28 = vadd.f32 %v10642_v0, %v462_v23 }
 0x100   :  { %v692_v26 = vadd.f32 %v8718_v24, %v10637_v62  ;;  %v465_v27 = vpop.f32.mrb[15].mxu0 }
 0x101   :  { %v690_v29 = vadd.f32 %v10651_v1, %v465_v27 }
 0x102   :  { %v10695_v30 = vpack.c.bf16 %v692_v26, %v691_v25 }
 0x103   :  { %v10697_v31 = vpack.c.bf16 %v690_v29, %v689_v28 }
 0x104   :  { %14598 = vst [vmem:[#allocation8_spill] sm:$0xff] %v10695_v30 }
 0x105   :  { %14599 = vst [vmem:[#allocation9_spill] sm:$0xff] %v10697_v31  ;;  %v8721_v32 = vpop.f32.mrb[16].mxu0  ;;  %8787 = vmatprep.mubr.msk.bf16.mxu1 %vm283_vm0, %v10697_v31  ;;  %8859 = vmatprep.mubr.msk.bf16.mxu0 %vm283_vm0, %v10697_v31 }
 0x106   :  { %v478_v33 = vpop.f32.mrb[17].mxu0  ;;  %8788 = vmatmul.mubr.msk.bf16.gmra.mrb[12].mxu1 %vm283_vm0, %v10695_v30  ;;  %8860 = vmatmul.mubr.msk.bf16.gmra.mrb[76].mxu0 %vm283_vm0, %v10695_v30  ;;  %v695_v35 = vadd.f32 %v8721_v32, %v10597_v46 }
 0x107   :  { %v8722_v34 = vpop.f32.mrb[18].mxu0  ;;  %v693_v38 = vadd.f32 %v10607_v49, %v478_v33 }
 0x108   :  { %v696_v36 = vadd.f32 %v8722_v34, %v10602_v47  ;;  %v481_v37 = vpop.f32.mrb[19].mxu0 }
 0x109   :  { %v694_v39 = vadd.f32 %v10612_v50, %v481_v37 }
 0x10a   :  { %v10711_v40 = vpack.c.bf16 %v696_v36, %v695_v35 }
 0x10b   :  { %v10713_v41 = vpack.c.bf16 %v694_v39, %v693_v38 }
 0x10c   :  { %14600 = vst [vmem:[#allocation10_spill] sm:$0xff] %v10711_v40 }
 0x10d   :  { %14601 = vst [vmem:[#allocation11_spill] sm:$0xff] %v10713_v41  ;;  %v8725_v42 = vpop.f32.mrb[20].mxu0  ;;  %8791 = vmatprep.mubr.msk.bf16.mxu1 %vm283_vm0, %v10713_v41  ;;  %8863 = vmatprep.mubr.msk.bf16.mxu0 %vm283_vm0, %v10713_v41 }
 0x10e   :  { %v494_v43 = vpop.f32.mrb[21].mxu0  ;;  %8792 = vmatmul.mubr.msk.bf16.gmra.mrb[16].mxu1 %vm283_vm0, %v10711_v40  ;;  %8864 = vmatmul.mubr.msk.bf16.gmra.mrb[80].mxu0 %vm283_vm0, %v10711_v40  ;;  %v699_v45 = vadd.f32 %v8725_v42, %v10628_v61 }
 0x10f   :  { %v8726_v44 = vpop.f32.mrb[22].mxu0  ;;  %v697_v52 = vadd.f32 %v10642_v0, %v494_v43 }
 0x110   :  { %v700_v48 = vadd.f32 %v8726_v44, %v10637_v62  ;;  %v497_v51 = vpop.f32.mrb[23].mxu0 }
 0x111   :  { %v698_v53 = vadd.f32 %v10651_v1, %v497_v51 }
 0x112   :  { %v10727_v54 = vpack.c.bf16 %v700_v48, %v699_v45 }
 0x113   :  { %v10729_v55 = vpack.c.bf16 %v698_v53, %v697_v52 }
 0x114   :  { %14602 = vst [vmem:[#allocation12_spill] sm:$0xff] %v10727_v54 }
 0x115   :  { %14603 = vst [vmem:[#allocation13_spill] sm:$0xff] %v10729_v55  ;;  %v8729_v56 = vpop.f32.mrb[24].mxu0  ;;  %8795 = vmatprep.mubr.msk.bf16.mxu1 %vm283_vm0, %v10729_v55  ;;  %8867 = vmatprep.mubr.msk.bf16.mxu0 %vm283_vm0, %v10729_v55 }
 0x116   :  { %v510_v59 = vpop.f32.mrb[25].mxu0  ;;  %8796 = vmatmul.mubr.msk.bf16.gmra.mrb[20].mxu1 %vm283_vm0, %v10727_v54  ;;  %8868 = vmatmul.mubr.msk.bf16.gmra.mrb[84].mxu0 %vm283_vm0, %v10727_v54  ;;  %v703_v63 = vadd.f32 %v8729_v56, %v10597_v46 }
 0x117   :  { %v8730_v60 = vpop.f32.mrb[26].mxu0  ;;  %v701_v4 = vadd.f32 %v10607_v49, %v510_v59 }
 0x118   :  { %v704_v2 = vadd.f32 %v8730_v60, %v10602_v47  ;;  %v513_v3 = vpop.f32.mrb[27].mxu0 }
 0x119   :  { %v702_v5 = vadd.f32 %v10612_v50, %v513_v3 }
 0x11a   :  { %v10743_v6 = vpack.c.bf16 %v704_v2, %v703_v63 }
 0x11b   :  { %v10745_v7 = vpack.c.bf16 %v702_v5, %v701_v4 }
 0x11c   :  { %14604 = vst [vmem:[#allocation14_spill] sm:$0xff] %v10743_v6 }
 0x11d   :  { %14605 = vst [vmem:[#allocation15_spill] sm:$0xff] %v10745_v7  ;;  %v8733_v8 = vpop.f32.mrb[28].mxu0  ;;  %8799 = vmatprep.mubr.msk.bf16.mxu1 %vm283_vm0, %v10745_v7  ;;  %8871 = vmatprep.mubr.msk.bf16.mxu0 %vm283_vm0, %v10745_v7 }
 0x11e   :  { %v526_v11 = vpop.f32.mrb[29].mxu0  ;;  %8800 = vmatmul.mubr.msk.bf16.gmra.mrb[24].mxu1 %vm283_vm0, %v10743_v6  ;;  %8872 = vmatmul.mubr.msk.bf16.gmra.mrb[88].mxu0 %vm283_vm0, %v10743_v6  ;;  %v707_v13 = vadd.f32 %v8733_v8, %v10628_v61 }
 0x11f   :  { %v8734_v12 = vpop.f32.mrb[30].mxu0  ;;  %v705_v16 = vadd.f32 %v10642_v0, %v526_v11 }
 0x120   :  { %v708_v14 = vadd.f32 %v8734_v12, %v10637_v62  ;;  %v529_v15 = vpop.f32.mrb[31].mxu0 }
 0x121   :  { %v706_v17 = vadd.f32 %v10651_v1, %v529_v15 }
 0x122   :  { %v10759_v18 = vpack.c.bf16 %v708_v14, %v707_v13 }
 0x123   :  { %v10761_v19 = vpack.c.bf16 %v706_v17, %v705_v16 }
 0x124   :  { %14606 = vst [vmem:[#allocation16_spill] sm:$0xff] %v10759_v18 }
 0x125   :  { %14607 = vst [vmem:[#allocation17_spill] sm:$0xff] %v10761_v19  ;;  %v8737_v22 = vpop.f32.mrb[32].mxu0  ;;  %8803 = vmatprep.mubr.msk.bf16.mxu1 %vm283_vm0, %v10761_v19  ;;  %8875 = vmatprep.mubr.msk.bf16.mxu0 %vm283_vm0, %v10761_v19 }
 0x126   :  { %v542_v23 = vpop.f32.mrb[33].mxu0  ;;  %8804 = vmatmul.mubr.msk.bf16.gmra.mrb[28].mxu1 %vm283_vm0, %v10759_v18  ;;  %8876 = vmatmul.mubr.msk.bf16.gmra.mrb[92].mxu0 %vm283_vm0, %v10759_v18  ;;  %v711_v25 = vadd.f32 %v8737_v22, %v10597_v46 }
 0x127   :  { %v8738_v24 = vpop.f32.mrb[34].mxu0  ;;  %v709_v28 = vadd.f32 %v10607_v49, %v542_v23 }
 0x128   :  { %v712_v26 = vadd.f32 %v8738_v24, %v10602_v47  ;;  %v545_v27 = vpop.f32.mrb[35].mxu0 }
 0x129   :  { %v710_v29 = vadd.f32 %v10612_v50, %v545_v27 }
 0x12a   :  { %v10775_v32 = vpack.c.bf16 %v712_v26, %v711_v25 }
 0x12b   :  { %v10777_v33 = vpack.c.bf16 %v710_v29, %v709_v28 }
 0x12c   :  { %14608 = vst [vmem:[#allocation18_spill] sm:$0xff] %v10775_v32 }
 0x12d   :  { %14609 = vst [vmem:[#allocation19_spill] sm:$0xff] %v10777_v33  ;;  %v8741_v34 = vpop.f32.mrb[36].mxu0  ;;  %8807 = vmatprep.mubr.msk.bf16.mxu1 %vm283_vm0, %v10777_v33  ;;  %8879 = vmatprep.mubr.msk.bf16.mxu0 %vm283_vm0, %v10777_v33 }
 0x12e   :  { %v558_v35 = vpop.f32.mrb[37].mxu0  ;;  %8808 = vmatmul.mubr.msk.bf16.gmra.mrb[32].mxu1 %vm283_vm0, %v10775_v32  ;;  %8880 = vmatmul.mubr.msk.bf16.gmra.mrb[96].mxu0 %vm283_vm0, %v10775_v32  ;;  %v715_v37 = vadd.f32 %v8741_v34, %v10628_v61 }
 0x12f   :  { %v8742_v36 = vpop.f32.mrb[38].mxu0  ;;  %v713_v42 = vadd.f32 %v10642_v0, %v558_v35 }
 0x130   :  { %v716_v38 = vadd.f32 %v8742_v36, %v10637_v62  ;;  %v561_v39 = vpop.f32.mrb[39].mxu0 }
 0x131   :  { %v714_v43 = vadd.f32 %v10651_v1, %v561_v39 }
 0x132   :  { %v10791_v44 = vpack.c.bf16 %v716_v38, %v715_v37 }
 0x133   :  { %v10793_v45 = vpack.c.bf16 %v714_v43, %v713_v42 }
 0x134   :  { %14610 = vst [vmem:[#allocation20_spill] sm:$0xff] %v10791_v44 }
 0x135   :  { %14611 = vst [vmem:[#allocation21_spill] sm:$0xff] %v10793_v45  ;;  %v8745_v48 = vpop.f32.mrb[40].mxu0  ;;  %8811 = vmatprep.mubr.msk.bf16.mxu1 %vm283_vm0, %v10793_v45  ;;  %8883 = vmatprep.mubr.msk.bf16.mxu0 %vm283_vm0, %v10793_v45 }
 0x136   :  { %v574_v51 = vpop.f32.mrb[41].mxu0  ;;  %8812 = vmatmul.mubr.msk.bf16.gmra.mrb[36].mxu1 %vm283_vm0, %v10791_v44  ;;  %8884 = vmatmul.mubr.msk.bf16.gmra.mrb[100].mxu0 %vm283_vm0, %v10791_v44  ;;  %v719_v53 = vadd.f32 %v8745_v48, %v10597_v46 }
 0x137   :  { %v8746_v52 = vpop.f32.mrb[42].mxu0  ;;  %v717_v60 = vadd.f32 %v10607_v49, %v574_v51 }
 0x138   :  { %v720_v56 = vadd.f32 %v8746_v52, %v10602_v47  ;;  %v577_v59 = vpop.f32.mrb[43].mxu0 }
 0x139   :  { %v718_v63 = vadd.f32 %v10612_v50, %v577_v59 }
 0x13a   :  { %v10807_v2 = vpack.c.bf16 %v720_v56, %v719_v53 }
 0x13b   :  { %v10809_v3 = vpack.c.bf16 %v718_v63, %v717_v60 }
 0x13c   :  { %14612 = vst [vmem:[#allocation22_spill] sm:$0xff] %v10807_v2 }
 0x13d   :  { %14613 = vst [vmem:[#allocation23_spill] sm:$0xff] %v10809_v3  ;;  %v8749_v4 = vpop.f32.mrb[44].mxu0  ;;  %8815 = vmatprep.mubr.msk.bf16.mxu1 %vm283_vm0, %v10809_v3  ;;  %8887 = vmatprep.mubr.msk.bf16.mxu0 %vm283_vm0, %v10809_v3 }
 0x13e   :  { %v590_v5 = vpop.f32.mrb[45].mxu0  ;;  %8816 = vmatmul.mubr.msk.bf16.gmra.mrb[40].mxu1 %vm283_vm0, %v10807_v2  ;;  %8888 = vmatmul.mubr.msk.bf16.gmra.mrb[104].mxu0 %vm283_vm0, %v10807_v2  ;;  %v723_v11 = vadd.f32 %v8749_v4, %v10628_v61 }
 0x13f   :  { %v8750_v8 = vpop.f32.mrb[46].mxu0  ;;  %v721_v14 = vadd.f32 %v10642_v0, %v590_v5 }
 0x140   :  { %v724_v12 = vadd.f32 %v8750_v8, %v10637_v62  ;;  %v593_v13 = vpop.f32.mrb[47].mxu0 }
 0x141   :  { %v722_v15 = vadd.f32 %v10651_v1, %v593_v13 }
 0x142   :  { %v10823_v16 = vpack.c.bf16 %v724_v12, %v723_v11 }
 0x143   :  { %v10825_v17 = vpack.c.bf16 %v722_v15, %v721_v14 }
 0x144   :  { %14614 = vst [vmem:[#allocation24_spill] sm:$0xff] %v10823_v16 }
 0x145   :  { %14615 = vst [vmem:[#allocation25_spill] sm:$0xff] %v10825_v17  ;;  %v8753_v22 = vpop.f32.mrb[48].mxu0  ;;  %8819 = vmatprep.mubr.msk.bf16.mxu1 %vm283_vm0, %v10825_v17  ;;  %8891 = vmatprep.mubr.msk.bf16.mxu0 %vm283_vm0, %v10825_v17 }
 0x146   :  { %v606_v23 = vpop.f32.mrb[49].mxu0  ;;  %8820 = vmatmul.mubr.msk.bf16.gmra.mrb[44].mxu1 %vm283_vm0, %v10823_v16  ;;  %8892 = vmatmul.mubr.msk.bf16.gmra.mrb[108].mxu0 %vm283_vm0, %v10823_v16  ;;  %v727_v25 = vadd.f32 %v8753_v22, %v10597_v46 }
 0x147   :  { %v8754_v24 = vpop.f32.mrb[50].mxu0  ;;  %v725_v28 = vadd.f32 %v10607_v49, %v606_v23 }
 0x148   :  { %v728_v26 = vadd.f32 %v8754_v24, %v10602_v47  ;;  %v609_v27 = vpop.f32.mrb[51].mxu0 }
 0x149   :  { %v726_v29 = vadd.f32 %v10612_v50, %v609_v27 }
 0x14a   :  { %v10839_v34 = vpack.c.bf16 %v728_v26, %v727_v25 }
 0x14b   :  { %v10841_v35 = vpack.c.bf16 %v726_v29, %v725_v28 }
 0x14c   :  { %14616 = vst [vmem:[#allocation26_spill] sm:$0xff] %v10839_v34 }
 0x14d   :  { %14617 = vst [vmem:[#allocation27_spill] sm:$0xff] %v10841_v35  ;;  %v8757_v36 = vpop.f32.mrb[52].mxu0  ;;  %8823 = vmatprep.mubr.msk.bf16.mxu1 %vm283_vm0, %v10841_v35  ;;  %8895 = vmatprep.mubr.msk.bf16.mxu0 %vm283_vm0, %v10841_v35 }
 0x14e   :  { %v622_v37 = vpop.f32.mrb[53].mxu0  ;;  %8824 = vmatmul.mubr.msk.bf16.gmra.mrb[48].mxu1 %vm283_vm0, %v10839_v34  ;;  %8896 = vmatmul.mubr.msk.bf16.gmra.mrb[112].mxu0 %vm283_vm0, %v10839_v34  ;;  %v731_v39 = vadd.f32 %v8757_v36, %v10628_v61 }
 0x14f   :  { %v8758_v38 = vpop.f32.mrb[54].mxu0  ;;  %v729_v48 = vadd.f32 %v10642_v0, %v622_v37 }
 0x150   :  { %v732_v42 = vadd.f32 %v8758_v38, %v10637_v62  ;;  %v625_v43 = vpop.f32.mrb[55].mxu0 }
 0x151   :  { %v730_v51 = vadd.f32 %v10651_v1, %v625_v43 }
 0x152   :  { %v10855_v52 = vpack.c.bf16 %v732_v42, %v731_v39 }
 0x153   :  { %v10857_v53 = vpack.c.bf16 %v730_v51, %v729_v48 }
 0x154   :  { %14618 = vst [vmem:[#allocation28_spill] sm:$0xff] %v10855_v52 }
 0x155   :  { %14619 = vst [vmem:[#allocation29_spill] sm:$0xff] %v10857_v53  ;;  %v8761_v56 = vpop.f32.mrb[56].mxu0  ;;  %8827 = vmatprep.mubr.msk.bf16.mxu1 %vm283_vm0, %v10857_v53  ;;  %8899 = vmatprep.mubr.msk.bf16.mxu0 %vm283_vm0, %v10857_v53 }
 0x156   :  { %v638_v59 = vpop.f32.mrb[57].mxu0  ;;  %8828 = vmatmul.mubr.msk.bf16.gmra.mrb[52].mxu1 %vm283_vm0, %v10855_v52  ;;  %8900 = vmatmul.mubr.msk.bf16.gmra.mrb[116].mxu0 %vm283_vm0, %v10855_v52  ;;  %v735_v63 = vadd.f32 %v8761_v56, %v10597_v46 }
 0x157   :  { %v8762_v60 = vpop.f32.mrb[58].mxu0  ;;  %v733_v8 = vadd.f32 %v10607_v49, %v638_v59 }
 0x158   :  { %v736_v4 = vadd.f32 %v8762_v60, %v10602_v47  ;;  %v641_v5 = vpop.f32.mrb[59].mxu0 }
 0x159   :  { %v734_v11 = vadd.f32 %v10612_v50, %v641_v5 }
 0x15a   :  { %v10871_v12 = vpack.c.bf16 %v736_v4, %v735_v63 }
 0x15b   :  { %v10873_v13 = vpack.c.bf16 %v734_v11, %v733_v8 }
 0x15c   :  { %14620 = vst [vmem:[#allocation30_spill] sm:$0xff] %v10871_v12 }
 0x15d   :  { %14621 = vst [vmem:[#allocation31_spill] sm:$0xff] %v10873_v13  ;;  %v8765_v14 = vpop.f32.mrb[60].mxu0  ;;  %8831 = vmatprep.mubr.msk.bf16.mxu1 %vm283_vm0, %v10873_v13  ;;  %8903 = vmatprep.mubr.msk.bf16.mxu0 %vm283_vm0, %v10873_v13 }
 0x15e   :  { %v739_v46 = vadd.f32 %v8765_v14, %v10628_v61  ;;  %v654_v15 = vpop.f32.mrb[61].mxu0  ;;  %8832 = vmatmul.mubr.msk.bf16.gmra.mrb[56].mxu1 %vm283_vm0, %v10871_v12  ;;  %8904 = vmatmul.mubr.msk.bf16.gmra.mrb[120].mxu0 %vm283_vm0, %v10871_v12 }
 0x15f   :  { %v737_v47 = vadd.f32 %v10642_v0, %v654_v15  ;;  %v8766_v49 = vpop.f32.mrb[62].mxu0 }
 0x160   :  { %v740_v50 = vadd.f32 %v8766_v49, %v10637_v62  ;;  %v657_v22 = vpop.f32.mrb[63].mxu0  ;;  %v10948_v62 = vld [vmem:[%s14403_s4] ss:$0 sm:$0xff] }
 0x161   :  { %v738_v23 = vadd.f32 %v10651_v1, %v657_v22  ;;  %v10953_v1 = vld [vmem:[%s14403_s4 + $0x2] ss:$0 sm:$0xff] }
 0x162   :  { %v10887_v24 = vpack.c.bf16 %v740_v50, %v739_v46 }
 0x163   :  { %v10889_v25 = vpack.c.bf16 %v738_v23, %v737_v47 }
 0x164   :  { %14622 = vst [vmem:[#allocation32_spill] sm:$0xff] %v10887_v24 }
 0x165   :  { %14623 = vst [vmem:[#allocation33_spill] sm:$0xff] %v10889_v25  ;;  %8835 = vmatprep.mubr.msk.bf16.mxu1 %vm283_vm0, %v10889_v25  ;;  %8907 = vmatprep.mubr.msk.bf16.mxu0 %vm283_vm0, %v10889_v25 }
 0x166   :  { %8836 = vmatmul.mubr.msk.bf16.gmra.mrb[60].mxu1 %vm283_vm0, %v10887_v24  ;;  %8908 = vmatmul.mubr.msk.bf16.gmra.mrb[124].mxu0 %vm283_vm0, %v10887_v24 }
 0x167   :  { %8919 = vmatprep.mubr.msk.bf16.mxu1 %vm283_vm0, %v10620_v58 }
 0x16e   :  { %8920 = vmatmul.mubr.msk.bf16.vlgmr.msra.gmra.mrb[64].mxu1 %vm283_vm0, %v10618_v57 }
 0x16f   :  { %8923 = vmatprep.mubr.msk.bf16.mxu1 %vm283_vm0, %v10662_v10 }
 0x176   :  { %8924 = vmatmul.mubr.msk.bf16.gmra.mrb[68].mxu1 %vm283_vm0, %v10660_v9 }
 0x177   :  { %8927 = vmatprep.mubr.msk.bf16.mxu1 %vm283_vm0, %v10681_v21 }
 0x17e   :  { %8928 = vmatmul.mubr.msk.bf16.gmra.mrb[72].mxu1 %vm283_vm0, %v10679_v20 }
 0x17f   :  { %8931 = vmatprep.mubr.msk.bf16.mxu1 %vm283_vm0, %v10697_v31 }
 0x186   :  { %8932 = vmatmul.mubr.msk.bf16.gmra.mrb[76].mxu1 %vm283_vm0, %v10695_v30 }
 0x187   :  { %8935 = vmatprep.mubr.msk.bf16.mxu1 %vm283_vm0, %v10713_v41 }
 0x18e   :  { %8936 = vmatmul.mubr.msk.bf16.gmra.mrb[80].mxu1 %vm283_vm0, %v10711_v40 }
 0x18f   :  { %8939 = vmatprep.mubr.msk.bf16.mxu1 %vm283_vm0, %v10729_v55 }
 0x196   :  { %8940 = vmatmul.mubr.msk.bf16.gmra.mrb[84].mxu1 %vm283_vm0, %v10727_v54 }
 0x197   :  { %8943 = vmatprep.mubr.msk.bf16.mxu1 %vm283_vm0, %v10745_v7 }
 0x19e   :  { %8944 = vmatmul.mubr.msk.bf16.gmra.mrb[88].mxu1 %vm283_vm0, %v10743_v6 }
 0x19f   :  { %8947 = vmatprep.mubr.msk.bf16.mxu1 %vm283_vm0, %v10761_v19 }
 0x1a6   :  { %8948 = vmatmul.mubr.msk.bf16.gmra.mrb[92].mxu1 %vm283_vm0, %v10759_v18 }
 0x1a7   :  { %8951 = vmatprep.mubr.msk.bf16.mxu1 %vm283_vm0, %v10777_v33 }
 0x1ae   :  { %8952 = vmatmul.mubr.msk.bf16.gmra.mrb[96].mxu1 %vm283_vm0, %v10775_v32 }
 0x1af   :  { %8955 = vmatprep.mubr.msk.bf16.mxu1 %vm283_vm0, %v10793_v45 }
 0x1b6   :  { %8956 = vmatmul.mubr.msk.bf16.gmra.mrb[100].mxu1 %vm283_vm0, %v10791_v44 }
 0x1b7   :  { %8959 = vmatprep.mubr.msk.bf16.mxu1 %vm283_vm0, %v10809_v3 }
 0x1be   :  { %8960 = vmatmul.mubr.msk.bf16.gmra.mrb[104].mxu1 %vm283_vm0, %v10807_v2 }
 0x1bf   :  { %8963 = vmatprep.mubr.msk.bf16.mxu1 %vm283_vm0, %v10825_v17 }
 0x1c1   :  { %v8777_v61 = vpop.f32.mrb[0].mxu1  ;;  %v8849_v0 = vpop.f32.mrb[64].mxu0 }
 0x1c2   :  { %v942_v26 = vpop.f32.mrb[1].mxu1  ;;  %v1304_v27 = vpop.f32.mrb[65].mxu0  ;;  %v10956_v36 = vadd.f32 %v8777_v61, %v10948_v62  ;;  %v1313_v37 = vadd.f32 %v8849_v0, %v10953_v1 }
 0x1c3   :  { %v8778_v28 = vpop.f32.mrb[2].mxu1  ;;  %v8850_v29 = vpop.f32.mrb[66].mxu0  ;;  %v943_v48 = vadd.f32 %v10948_v62, %v942_v26  ;;  %v1305_v51 = vadd.f32 %v10953_v1, %v1304_v27 }
 0x1c4   :  { %v10960_v38 = vadd.f32 %v8778_v28, %v10948_v62  ;;  %v1316_v39 = vadd.f32 %v8850_v29, %v10953_v1  ;;  %v945_v42 = vpop.f32.mrb[3].mxu1  ;;  %v1307_v43 = vpop.f32.mrb[67].mxu0 }
 0x1c5   :  { %v946_v56 = vadd.f32 %v10948_v62, %v945_v42  ;;  %v1308_v59 = vadd.f32 %v10953_v1, %v1307_v43 }
 0x1c6   :  { %v1560_v63 = vpack.c.bf16 %v1316_v39, %v1313_v37  ;;  %8964 = vmatmul.mubr.msk.bf16.gmra.mrb[108].mxu1 %vm283_vm0, %v10823_v16 }
 0x1c7   :  { %v1197_v4 = vpack.c.bf16 %v946_v56, %v943_v48  ;;  %v1559_v5 = vpack.c.bf16 %v1308_v59, %v1305_v51  ;;  %8967 = vmatprep.mubr.msk.bf16.mxu1 %vm283_vm0, %v10841_v35 }
 0x1c8   :  { %v1970_v59 = vsel %vm1953_vm1, %v1560_v63, 0 }
 0x1c9   :  { %v8781_v8 = vpop.f32.mrb[4].mxu1  ;;  %v8853_v11 = vpop.f32.mrb[68].mxu0  ;;  %9745 = vmatprep.subr.msk.bf16.mxu0 %vm1953_vm1, %v1559_v5  ;;  %8991 = vmatprep.mubr.msk.bf16.mxu0 %vm1953_vm1, %v1197_v4  ;;  %v1967_v14 = vsel %vm1953_vm1, %v1559_v5, 0 }
 0x1ca   :  { %v958_v46 = vpop.f32.mrb[5].mxu1  ;;  %v1320_v15 = vpop.f32.mrb[69].mxu0  ;;  %8984 = vmatpush3.bf16.xpose.msra.mxu0 %v1967_v14  ;;  %v10978_v50 = vadd.f32 %v8781_v8, %v10948_v62  ;;  %v1329_v22 = vadd.f32 %v8853_v11, %v10953_v1 }
 0x1cb   :  { %v8782_v47 = vpop.f32.mrb[6].mxu1  ;;  %v8854_v49 = vpop.f32.mrb[70].mxu0  ;;  %9746 = vmatprep.subr.msk.bf16.mxu0 %vm1953_vm1, %v1560_v63  ;;  %v10986_v27 = vadd.f32 %v10948_v62, %v958_v46  ;;  %v1321_v28 = vadd.f32 %v10953_v1, %v1320_v15 }
 0x1cc   :  { %v10982_v23 = vadd.f32 %v8782_v47, %v10948_v62  ;;  %v1332_v61 = vadd.f32 %v8854_v49, %v10953_v1  ;;  %v961_v0 = vpop.f32.mrb[7].mxu1  ;;  %v1323_v26 = vpop.f32.mrb[71].mxu0 }
 0x1cd   :  { %v10990_v29 = vadd.f32 %v10948_v62, %v961_v0  ;;  %v1324_v37 = vadd.f32 %v10953_v1, %v1323_v26 }
 0x1ce   :  { %v1562_v42 = vpack.c.bf16 %v1332_v61, %v1329_v22  ;;  %8968 = vmatmul.mubr.msk.bf16.gmra.mrb[112].mxu1 %vm283_vm0, %v10839_v34 }
 0x1cf   :  { %v1561_v48 = vpack.c.bf16 %v1324_v37, %v1321_v28  ;;  %8971 = vmatprep.mubr.msk.bf16.mxu1 %vm283_vm0, %v10857_v53 }
 0x1d1   :  { %v8785_v51 = vpop.f32.mrb[8].mxu1  ;;  %v8857_v56 = vpop.f32.mrb[72].mxu0 }
 0x1d2   :  { %v974_v4 = vpop.f32.mrb[9].mxu1  ;;  %v1336_v5 = vpop.f32.mrb[73].mxu0  ;;  %8986 = vmatpush3.bf16.xpose.msra.mxu0 %v1970_v59  ;;  %v11004_v14 = vadd.f32 %v8785_v51, %v10948_v62  ;;  %v1345_v46 = vadd.f32 %v8857_v56, %v10953_v1 }
 0x1d3   :  { %v8786_v8 = vpop.f32.mrb[10].mxu1  ;;  %v8858_v11 = vpop.f32.mrb[74].mxu0  ;;  %9747 = vmatprep.subr.msk.bf16.mxu0 %vm1953_vm1, %v1561_v48  ;;  %v11012_v63 = vadd.f32 %v10948_v62, %v974_v4  ;;  %v1337_v61 = vadd.f32 %v10953_v1, %v1336_v5  ;;  %v1973_v5 = vsel %vm1953_vm1, %v1561_v48, 0 }
 0x1d4   :  { %v11008_v15 = vadd.f32 %v8786_v8, %v10948_v62  ;;  %v1348_v47 = vadd.f32 %v8858_v11, %v10953_v1  ;;  %v977_v49 = vpop.f32.mrb[11].mxu1  ;;  %v1339_v22 = vpop.f32.mrb[75].mxu0 }
 0x1d5   :  { %v11016_v0 = vadd.f32 %v10948_v62, %v977_v49  ;;  %v1340_v26 = vadd.f32 %v10953_v1, %v1339_v22 }
 0x1d6   :  { %v1564_v37 = vpack.c.bf16 %v1348_v47, %v1345_v46  ;;  %8972 = vmatmul.mubr.msk.bf16.gmra.mrb[116].mxu1 %vm283_vm0, %v10855_v52 }
 0x1d7   :  { %v1201_v51 = vpack.c.bf16 %v11016_v0, %v11012_v63  ;;  %v1563_v56 = vpack.c.bf16 %v1340_v26, %v1337_v61  ;;  %8975 = vmatprep.mubr.msk.bf16.mxu1 %vm283_vm0, %v10873_v13 }
 0x1d9   :  { %v8789_v59 = vpop.f32.mrb[12].mxu1  ;;  %v8861_v4 = vpop.f32.mrb[76].mxu0  ;;  %9749 = vmatprep.subr.msk.bf16.mxu1 %vm1953_vm1, %v1563_v56  ;;  %v2056_v8 = vsel %vm1953_vm1, %v1563_v56, 0 }
 0x1da   :  { %v990_v11 = vpop.f32.mrb[13].mxu1  ;;  %v1352_v46 = vpop.f32.mrb[77].mxu0  ;;  %8988 = vmatpush3.bf16.xpose.msra.mxu0 %v1973_v5  ;;  %9000 = vmatpush3.bf16.xpose.msra.mxu1 %v2056_v8  ;;  %v11033_v22 = vadd.f32 %v8789_v59, %v10948_v62  ;;  %v1361_v63 = vadd.f32 %v8861_v4, %v10953_v1 }
 0x1db   :  { %v8790_v47 = vpop.f32.mrb[14].mxu1  ;;  %v8862_v49 = vpop.f32.mrb[78].mxu0  ;;  %9748 = vmatprep.subr.msk.bf16.mxu0 %vm1953_vm1, %v1562_v42  ;;  %9750 = vmatprep.subr.msk.bf16.mxu1 %vm1953_vm1, %v1564_v37  ;;  %v11041_v56 = vadd.f32 %v10948_v62, %v990_v11  ;;  %v1353_v5 = vadd.f32 %v10953_v1, %v1352_v46 }
 0x1dc   :  { %v11037_v61 = vadd.f32 %v8790_v47, %v10948_v62  ;;  %v1364_v48 = vadd.f32 %v8862_v49, %v10953_v1  ;;  %v993_v0 = vpop.f32.mrb[15].mxu1  ;;  %v1355_v26 = vpop.f32.mrb[79].mxu0 }
 0x1dd   :  { %v11045_v8 = vadd.f32 %v10948_v62, %v993_v0  ;;  %v1356_v59 = vadd.f32 %v10953_v1, %v1355_v26  ;;  %v1976_v0 = vsel %vm1953_vm1, %v1562_v42, 0  ;;  %v2059_v26 = vsel %vm1953_vm1, %v1564_v37, 0 }
 0x1de   :  { %v11050_v28 = vpack.c.bf16 %v1364_v48, %v1361_v63  ;;  %8976 = vmatmul.mubr.msk.bf16.gmra.mrb[120].mxu1 %vm283_vm0, %v10871_v12 }
 0x1df   :  { %v1565_v11 = vpack.c.bf16 %v1356_v59, %v1353_v5  ;;  %8979 = vmatprep.mubr.msk.bf16.mxu1 %vm283_vm0, %v10889_v25 }
 0x1e1   :  { %v8793_v46 = vpop.f32.mrb[16].mxu1  ;;  %v8865_v49 = vpop.f32.mrb[80].mxu0 }
 0x1e2   :  { %v1006_v39 = vpop.f32.mrb[17].mxu1  ;;  %v1368_v4 = vpop.f32.mrb[81].mxu0  ;;  %8990 = vmatpush3.bf16.xpose.msra.mxu0 %v1976_v0  ;;  %9002 = vmatpush3.bf16.xpose.msra.mxu1 %v2059_v26  ;;  %v11062_v47 = vadd.f32 %v8793_v46, %v10948_v62  ;;  %v1377_v5 = vadd.f32 %v8865_v49, %v10953_v1  ;;  %v14627_v46 = vpack.c.bf16 %v11008_v15, %v11004_v14 }
 0x1e3   :  { %v8794_v63 = vpop.f32.mrb[18].mxu1  ;;  %v8866_v48 = vpop.f32.mrb[82].mxu0  ;;  %9751 = vmatprep.subr.msk.bf16.mxu1 %vm1953_vm1, %v1565_v11  ;;  %v1007_v60 = vadd.f32 %v10948_v62, %v1006_v39  ;;  %v1369_v0 = vadd.f32 %v10953_v1, %v1368_v4  ;;  %v14624_v39 = vpack.c.bf16 %v10960_v38, %v10956_v36 }
 0x1e4   :  { %v11066_v59 = vadd.f32 %v8794_v63, %v10948_v62  ;;  %v1380_v42 = vadd.f32 %v8866_v48, %v10953_v1  ;;  %v1009_v43 = vpop.f32.mrb[19].mxu1  ;;  %v1371_v37 = vpop.f32.mrb[83].mxu0 }
 0x1e5   :  { %v1010_v26 = vadd.f32 %v10948_v62, %v1009_v43  ;;  %v1372_v25 = vadd.f32 %v10953_v1, %v1371_v37  ;;  %v2062_v43 = vsel %vm1953_vm1, %v1565_v11, 0 }
 0x1e6   :  { %v1568_v12 = vpack.c.bf16 %v1380_v42, %v1377_v5  ;;  %8980 = vmatmul.mubr.msk.bf16.gmra.mrb[124].mxu1 %vm283_vm0, %v10887_v24 }
 0x1e7   :  { %v1205_v49 = vpack.c.bf16 %v1010_v26, %v1007_v60  ;;  %v1567_v63 = vpack.c.bf16 %v1372_v25, %v1369_v0  ;;  %9007 = vmatprep.mubr.msk.bf16.mxu1 %vm1953_vm1, %v1201_v51  ;;  %v14625_v25 = vpack.c.bf16 %v10990_v29, %v10986_v27 }
 0x1e9   :  { %v8797_v48 = vpop.f32.mrb[20].mxu1  ;;  %v8869_v13 = vpop.f32.mrb[84].mxu0  ;;  %8992 = vmatmul.mubr.msk.bf16.vlgmr.msra.gmra.mrb[128].mxu0 %vm1953_vm1, %v14624_v39  ;;  %9753 = vmatprep.subr.msk.bf16.mxu0 %vm1953_vm1, %v1567_v63  ;;  %v2145_v4 = vsel %vm1953_vm1, %v1567_v63, 0 }
 0x1ea   :  { %v1022_v5 = vpop.f32.mrb[21].mxu1  ;;  %v1384_v42 = vpop.f32.mrb[85].mxu0  ;;  %8995 = vmatprep.mubr.msk.bf16.mxu0 %vm1953_vm1, %v14625_v25  ;;  %9004 = vmatpush3.bf16.xpose.msra.mxu1 %v2062_v43  ;;  %v11092_v36 = vadd.f32 %v8797_v48, %v10948_v62  ;;  %v1393_v38 = vadd.f32 %v8869_v13, %v10953_v1 }
 0x1eb   :  { %9016 = vmatpush3.bf16.xpose.msra.mxu0 %v2145_v4  ;;  %v8798_v60 = vpop.f32.mrb[22].mxu1  ;;  %v8870_v51 = vpop.f32.mrb[86].mxu0  ;;  %9752 = vmatprep.subr.msk.bf16.mxu1 %vm1953_vm1, %v11050_v28  ;;  %v11101_v0 = vadd.f32 %v10948_v62, %v1022_v5  ;;  %v1385_v26 = vadd.f32 %v10953_v1, %v1384_v42  ;;  %v14626_v5 = vpack.c.bf16 %v10982_v23, %v10978_v50  ;;  %v2065_v42 = vsel %vm1953_vm1, %v11050_v28, 0 }
 0x1ec   :  { %v11096_v11 = vadd.f32 %v8798_v60, %v10948_v62  ;;  %v1396_v37 = vadd.f32 %v8870_v51, %v10953_v1  ;;  %9754 = vmatprep.subr.msk.bf16.mxu0 %vm1953_vm1, %v1568_v12  ;;  %v1025_v27 = vpop.f32.mrb[23].mxu1  ;;  %v1387_v29 = vpop.f32.mrb[87].mxu0 }
 0x1ed   :  { %v11105_v63 = vadd.f32 %v10948_v62, %v1025_v27  ;;  %v1388_v48 = vadd.f32 %v10953_v1, %v1387_v29 }
 0x1ee   :  { %v11110_v39 = vpack.c.bf16 %v1396_v37, %v1393_v38  ;;  %v2148_v38 = vsel %vm1953_vm1, %v1568_v12, 0 }
 0x1ef   :  { %v1569_v4 = vpack.c.bf16 %v1388_v48, %v1385_v26 }
 0x1f1   :  { %v8801_v25 = vpop.f32.mrb[24].mxu1  ;;  %v8873_v60 = vpop.f32.mrb[88].mxu0  ;;  %8996 = vmatmul.mubr.msk.bf16.gmra.mrb[132].mxu0 %vm1953_vm1, %v14626_v5 }
 0x1f2   :  { %v1038_v51 = vpop.f32.mrb[25].mxu1  ;;  %v1400_v27 = vpop.f32.mrb[89].mxu0  ;;  %9006 = vmatpush3.bf16.xpose.msra.mxu1 %v2065_v42  ;;  %9023 = vmatprep.mubr.msk.bf16.mxu0 %vm1953_vm1, %v1205_v49  ;;  %v11123_v26 = vadd.f32 %v8801_v25, %v10948_v62  ;;  %v1409_v50 = vadd.f32 %v8873_v60, %v10953_v1 }
 0x1f3   :  { %9018 = vmatpush3.bf16.xpose.msra.mxu0 %v2148_v38  ;;  %v8802_v37 = vpop.f32.mrb[26].mxu1  ;;  %v8874_v29 = vpop.f32.mrb[90].mxu0  ;;  %v1039_v12 = vadd.f32 %v10948_v62, %v1038_v51  ;;  %v1401_v49 = vadd.f32 %v10953_v1, %v1400_v27 }
 0x1f4   :  { %v11127_v23 = vadd.f32 %v8802_v37, %v10948_v62  ;;  %v1412_v28 = vadd.f32 %v8874_v29, %v10953_v1  ;;  %9755 = vmatprep.subr.msk.bf16.mxu0 %vm1953_vm1, %v1569_v4  ;;  %v1041_v48 = vpop.f32.mrb[27].mxu1  ;;  %v1403_v5 = vpop.f32.mrb[91].mxu0 }
 0x1f5   :  { %v1042_v42 = vadd.f32 %v10948_v62, %v1041_v48  ;;  %v1404_v25 = vadd.f32 %v10953_v1, %v1403_v5  ;;  %v14628_v5 = vpack.c.bf16 %v11045_v8, %v11041_v56 }
 0x1f6   :  { %v1572_v38 = vpack.c.bf16 %v1412_v28, %v1409_v50  ;;  %v2151_v50 = vsel %vm1953_vm1, %v1569_v4, 0 }
 0x1f7   :  { %v1209_v37 = vpack.c.bf16 %v1042_v42, %v1039_v12  ;;  %v1571_v13 = vpack.c.bf16 %v1404_v25, %v1401_v49 }
 0x1f9   :  { %v8805_v43 = vpop.f32.mrb[28].mxu1  ;;  %v8877_v29 = vpop.f32.mrb[92].mxu0  ;;  %9008 = vmatmul.mubr.msk.bf16.vlgmr.msra.gmra.mrb[128].mxu1 %vm1953_vm1, %v14627_v46  ;;  %9757 = vmatprep.subr.msk.bf16.mxu1 %vm1953_vm1, %v1571_v13  ;;  %v2234_v51 = vsel %vm1953_vm1, %v1571_v13, 0 }
 0x1fa   :  { %v1054_v27 = vpop.f32.mrb[29].mxu1  ;;  %v1416_v48 = vpop.f32.mrb[93].mxu0  ;;  %9011 = vmatprep.mubr.msk.bf16.mxu1 %vm1953_vm1, %v14628_v5  ;;  %9032 = vmatpush3.bf16.xpose.msra.mxu1 %v2234_v51  ;;  %v11150_v14 = vadd.f32 %v8805_v43, %v10948_v62  ;;  %v1425_v15 = vadd.f32 %v8877_v29, %v10953_v1 }
 0x1fb   :  { %9020 = vmatpush3.bf16.xpose.msra.mxu0 %v2151_v50  ;;  %v8806_v28 = vpop.f32.mrb[30].mxu1  ;;  %v8878_v12 = vpop.f32.mrb[94].mxu0  ;;  %9758 = vmatprep.subr.msk.bf16.mxu1 %vm1953_vm1, %v1572_v38  ;;  %v11160_v4 = vadd.f32 %v10948_v62, %v1054_v27  ;;  %v1417_v49 = vadd.f32 %v10953_v1, %v1416_v48  ;;  %v14629_v27 = vpack.c.bf16 %v11037_v61, %v11033_v22  ;;  %v2237_v48 = vsel %vm1953_vm1, %v1572_v38, 0 }
 0x1fc   :  { %v11154_v46 = vadd.f32 %v8806_v28, %v10948_v62  ;;  %v1428_v56 = vadd.f32 %v8878_v12, %v10953_v1  ;;  %9756 = vmatprep.subr.msk.bf16.mxu0 %vm1953_vm1, %v11110_v39  ;;  %v1057_v8 = vpop.f32.mrb[31].mxu1  ;;  %v1419_v13 = vpop.f32.mrb[95].mxu0 }
 0x1fd   :  { %v11164_v43 = vadd.f32 %v10948_v62, %v1057_v8  ;;  %v1420_v42 = vadd.f32 %v10953_v1, %v1419_v13  ;;  %v2154_v13 = vsel %vm1953_vm1, %v11110_v39, 0 }
 0x1fe   :  { %v1574_v29 = vpack.c.bf16 %v1428_v56, %v1425_v15 }
 0x1ff   :  { %v1573_v5 = vpack.c.bf16 %v1420_v42, %v1417_v49 }
 0x201   :  { %v8809_v50 = vpop.f32.mrb[32].mxu1  ;;  %v8881_v28 = vpop.f32.mrb[96].mxu0  ;;  %9012 = vmatmul.mubr.msk.bf16.gmra.mrb[132].mxu1 %vm1953_vm1, %v14629_v27 }
 0x202   :  { %v1070_v12 = vpop.f32.mrb[33].mxu1  ;;  %v1432_v8 = vpop.f32.mrb[97].mxu0  ;;  %9034 = vmatpush3.bf16.xpose.msra.mxu1 %v2237_v48  ;;  %9039 = vmatprep.mubr.msk.bf16.mxu1 %vm1953_vm1, %v1209_v37  ;;  %v11181_v49 = vadd.f32 %v8809_v50, %v10948_v62  ;;  %v1441_v22 = vadd.f32 %v8881_v28, %v10953_v1  ;;  %v14633_v50 = vpack.c.bf16 %v11127_v23, %v11123_v26 }
 0x203   :  { %9022 = vmatpush3.bf16.xpose.msra.mxu0 %v2154_v13  ;;  %v8810_v15 = vpop.f32.mrb[34].mxu1  ;;  %v8882_v56 = vpop.f32.mrb[98].mxu0  ;;  %9759 = vmatprep.subr.msk.bf16.mxu1 %vm1953_vm1, %v1573_v5  ;;  %v1071_v27 = vadd.f32 %v10948_v62, %v1070_v12  ;;  %v1433_v37 = vadd.f32 %v10953_v1, %v1432_v8  ;;  %v14630_v8 = vpack.c.bf16 %v11066_v59, %v11062_v47 }
 0x204   :  { %v11185_v61 = vadd.f32 %v8810_v15, %v10948_v62  ;;  %v1444_v38 = vadd.f32 %v8882_v56, %v10953_v1  ;;  %v1073_v42 = vpop.f32.mrb[35].mxu1  ;;  %v1435_v39 = vpop.f32.mrb[99].mxu0  ;;  %v2240_v56 = vsel %vm1953_vm1, %v1573_v5, 0 }
 0x205   :  { %v1074_v48 = vadd.f32 %v10948_v62, %v1073_v42  ;;  %v1436_v13 = vadd.f32 %v10953_v1, %v1435_v39 }
 0x206   :  { %v1576_v25 = vpack.c.bf16 %v1444_v38, %v1441_v22  ;;  %v14631_v38 = vpack.c.bf16 %v11105_v63, %v11101_v0 }
 0x207   :  { %v1213_v28 = vpack.c.bf16 %v1074_v48, %v1071_v27  ;;  %v1575_v51 = vpack.c.bf16 %v1436_v13, %v1433_v37 }
 0x209   :  { %v8813_v15 = vpop.f32.mrb[36].mxu1  ;;  %v8885_v60 = vpop.f32.mrb[100].mxu0  ;;  %9761 = vmatprep.subr.msk.bf16.mxu0 %vm1953_vm1, %v1575_v51  ;;  %v2323_v12 = vsel %vm1953_vm1, %v1575_v51, 0 }
 0x20a   :  { %9024 = vmatmul.mubr.msk.bf16.vlgmr.msra.gmra.mrb[136].mxu0 %vm1953_vm1, %v14630_v8  ;;  %v1086_v42 = vpop.f32.mrb[37].mxu1  ;;  %v1448_v39 = vpop.f32.mrb[101].mxu0  ;;  %9036 = vmatpush3.bf16.xpose.msra.mxu1 %v2240_v56  ;;  %v11202_v22 = vadd.f32 %v8813_v15, %v10948_v62  ;;  %v1457_v51 = vadd.f32 %v8885_v60, %v10953_v1 }
 0x20b   :  { %9027 = vmatprep.mubr.msk.bf16.mxu0 %vm1953_vm1, %v14631_v38  ;;  %9048 = vmatpush3.bf16.xpose.msra.mxu0 %v2323_v12  ;;  %v8814_v5 = vpop.f32.mrb[38].mxu1  ;;  %v8886_v27 = vpop.f32.mrb[102].mxu0  ;;  %v11216_v0 = vadd.f32 %v10948_v62, %v1086_v42  ;;  %v1449_v63 = vadd.f32 %v10953_v1, %v1448_v39  ;;  %v2243_v42 = vsel %vm1953_vm1, %v1574_v29, 0  ;;  %v14632_v39 = vpack.c.bf16 %v11096_v11, %v11092_v36 }
 0x20c   :  { %v11210_v47 = vadd.f32 %v8814_v5, %v10948_v62  ;;  %v1460_v59 = vadd.f32 %v8886_v27, %v10953_v1  ;;  %9760 = vmatprep.subr.msk.bf16.mxu1 %vm1953_vm1, %v1574_v29  ;;  %9762 = vmatprep.subr.msk.bf16.mxu0 %vm1953_vm1, %v1576_v25  ;;  %v1089_v37 = vpop.f32.mrb[39].mxu1  ;;  %v1451_v48 = vpop.f32.mrb[103].mxu0 }
 0x20d   :  { %v11220_v13 = vadd.f32 %v10948_v62, %v1089_v37  ;;  %v1452_v60 = vadd.f32 %v10953_v1, %v1451_v48  ;;  %v2326_v48 = vsel %vm1953_vm1, %v1576_v25, 0 }
 0x20e   :  { %v11225_v56 = vpack.c.bf16 %v1460_v59, %v1457_v51 }
 0x20f   :  { %v1577_v8 = vpack.c.bf16 %v1452_v60, %v1449_v63 }
 0x211   :  { %v8817_v38 = vpop.f32.mrb[40].mxu1  ;;  %v8889_v5 = vpop.f32.mrb[104].mxu0 }
 0x212   :  { %9028 = vmatmul.mubr.msk.bf16.gmra.mrb[140].mxu0 %vm1953_vm1, %v14632_v39  ;;  %v1102_v27 = vpop.f32.mrb[41].mxu1  ;;  %v1464_v37 = vpop.f32.mrb[105].mxu0  ;;  %9038 = vmatpush3.bf16.xpose.msra.mxu1 %v2243_v42  ;;  %v11237_v63 = vadd.f32 %v8817_v38, %v10948_v62  ;;  %v1473_v29 = vadd.f32 %v8889_v5, %v10953_v1 }
 0x213   :  { %9050 = vmatpush3.bf16.xpose.msra.mxu0 %v2326_v48  ;;  %9055 = vmatprep.mubr.msk.bf16.mxu0 %vm1953_vm1, %v1213_v28  ;;  %v8818_v51 = vpop.f32.mrb[42].mxu1  ;;  %v8890_v59 = vpop.f32.mrb[106].mxu0  ;;  %v1103_v25 = vadd.f32 %v10948_v62, %v1102_v27  ;;  %v1465_v28 = vadd.f32 %v10953_v1, %v1464_v37 }
 0x214   :  { %v11241_v60 = vadd.f32 %v8818_v51, %v10948_v62  ;;  %v1476_v36 = vadd.f32 %v8890_v59, %v10953_v1  ;;  %9763 = vmatprep.subr.msk.bf16.mxu0 %vm1953_vm1, %v1577_v8  ;;  %v1105_v11 = vpop.f32.mrb[43].mxu1  ;;  %v1467_v42 = vpop.f32.mrb[107].mxu0 }
 0x215   :  { %v1106_v39 = vadd.f32 %v10948_v62, %v1105_v11  ;;  %v1468_v38 = vadd.f32 %v10953_v1, %v1467_v42  ;;  %v14634_v42 = vpack.c.bf16 %v11164_v43, %v11160_v4 }
 0x216   :  { %v1580_v48 = vpack.c.bf16 %v1476_v36, %v1473_v29  ;;  %v2329_v29 = vsel %vm1953_vm1, %v1577_v8, 0 }
 0x217   :  { %v1217_v51 = vpack.c.bf16 %v1106_v39, %v1103_v25  ;;  %v1579_v15 = vpack.c.bf16 %v1468_v38, %v1465_v28 }
 0x219   :  { %v8821_v12 = vpop.f32.mrb[44].mxu1  ;;  %v8893_v59 = vpop.f32.mrb[108].mxu0  ;;  %9040 = vmatmul.mubr.msk.bf16.vlgmr.msra.gmra.mrb[136].mxu1 %vm1953_vm1, %v14633_v50  ;;  %9765 = vmatprep.subr.msk.bf16.mxu1 %vm1953_vm1, %v1579_v15  ;;  %v2412_v27 = vsel %vm1953_vm1, %v1579_v15, 0 }
 0x21a   :  { %v1118_v37 = vpop.f32.mrb[45].mxu1  ;;  %v1480_v11 = vpop.f32.mrb[109].mxu0  ;;  %9043 = vmatprep.mubr.msk.bf16.mxu1 %vm1953_vm1, %v14634_v42  ;;  %9064 = vmatpush3.bf16.xpose.msra.mxu1 %v2412_v27  ;;  %v11264_v26 = vadd.f32 %v8821_v12, %v10948_v62  ;;  %v1489_v23 = vadd.f32 %v8893_v59, %v10953_v1 }
 0x21b   :  { %9052 = vmatpush3.bf16.xpose.msra.mxu0 %v2329_v29  ;;  %v8822_v36 = vpop.f32.mrb[46].mxu1  ;;  %v8894_v25 = vpop.f32.mrb[110].mxu0  ;;  %9766 = vmatprep.subr.msk.bf16.mxu1 %vm1953_vm1, %v1580_v48  ;;  %v11274_v8 = vadd.f32 %v10948_v62, %v1118_v37  ;;  %v1481_v28 = vadd.f32 %v10953_v1, %v1480_v11  ;;  %v14635_v37 = vpack.c.bf16 %v11154_v46, %v11150_v14  ;;  %v2415_v11 = vsel %vm1953_vm1, %v1580_v48, 0 }
 0x21c   :  { %v11268_v50 = vadd.f32 %v8822_v36, %v10948_v62  ;;  %v1492_v4 = vadd.f32 %v8894_v25, %v10953_v1  ;;  %9764 = vmatprep.subr.msk.bf16.mxu0 %vm1953_vm1, %v11225_v56  ;;  %v1121_v43 = vpop.f32.mrb[47].mxu1  ;;  %v1483_v15 = vpop.f32.mrb[111].mxu0 }
 0x21d   :  { %v11278_v12 = vadd.f32 %v10948_v62, %v1121_v43  ;;  %v1484_v39 = vadd.f32 %v10953_v1, %v1483_v15  ;;  %v2332_v15 = vsel %vm1953_vm1, %v11225_v56, 0 }
 0x21e   :  { %v1582_v59 = vpack.c.bf16 %v1492_v4, %v1489_v23 }
 0x21f   :  { %v1581_v42 = vpack.c.bf16 %v1484_v39, %v1481_v28 }
 0x221   :  { %v8825_v29 = vpop.f32.mrb[48].mxu1  ;;  %v8897_v36 = vpop.f32.mrb[112].mxu0  ;;  %9044 = vmatmul.mubr.msk.bf16.gmra.mrb[140].mxu1 %vm1953_vm1, %v14635_v37 }
 0x222   :  { %v1134_v25 = vpop.f32.mrb[49].mxu1  ;;  %v1496_v43 = vpop.f32.mrb[113].mxu0  ;;  %9066 = vmatpush3.bf16.xpose.msra.mxu1 %v2415_v11  ;;  %9071 = vmatprep.mubr.msk.bf16.mxu1 %vm1953_vm1, %v1217_v51  ;;  %v11295_v28 = vadd.f32 %v8825_v29, %v10948_v62  ;;  %v1505_v14 = vadd.f32 %v8897_v36, %v10953_v1 }
 0x223   :  { %9054 = vmatpush3.bf16.xpose.msra.mxu0 %v2332_v15  ;;  %v8826_v23 = vpop.f32.mrb[50].mxu1  ;;  %v8898_v4 = vpop.f32.mrb[114].mxu0  ;;  %9767 = vmatprep.subr.msk.bf16.mxu1 %vm1953_vm1, %v1581_v42  ;;  %v1135_v37 = vadd.f32 %v10948_v62, %v1134_v25  ;;  %v1497_v51 = vadd.f32 %v10953_v1, %v1496_v43  ;;  %v14636_v43 = vpack.c.bf16 %v11185_v61, %v11181_v49 }
 0x224   :  { %v11299_v46 = vadd.f32 %v8826_v23, %v10948_v62  ;;  %v1508_v48 = vadd.f32 %v8898_v4, %v10953_v1  ;;  %v1137_v39 = vpop.f32.mrb[51].mxu1  ;;  %v1499_v56 = vpop.f32.mrb[115].mxu0  ;;  %v2418_v4 = vsel %vm1953_vm1, %v1581_v42, 0 }
 0x225   :  { %v1138_v11 = vadd.f32 %v10948_v62, %v1137_v39  ;;  %v1500_v15 = vadd.f32 %v10953_v1, %v1499_v56 }
 0x226   :  { %v1222_v29 = vpack.c.bf16 %v11299_v46, %v11295_v28  ;;  %v1584_v38 = vpack.c.bf16 %v1508_v48, %v1505_v14  ;;  %v14637_v48 = vpack.c.bf16 %v11220_v13, %v11216_v0 }
 0x227   :  { %v1221_v36 = vpack.c.bf16 %v1138_v11, %v1135_v37  ;;  %v1583_v27 = vpack.c.bf16 %v1500_v15, %v1497_v51 }
 0x229   :  { %v8829_v23 = vpop.f32.mrb[52].mxu1  ;;  %v8901_v5 = vpop.f32.mrb[116].mxu0  ;;  %9769 = vmatprep.subr.msk.bf16.mxu0 %vm1953_vm1, %v1583_v27  ;;  %v2501_v25 = vsel %vm1953_vm1, %v1583_v27, 0 }
 0x22a   :  { %9056 = vmatmul.mubr.msk.bf16.vlgmr.msra.gmra.mrb[144].mxu0 %vm1953_vm1, %v14636_v43  ;;  %v1150_v39 = vpop.f32.mrb[53].mxu1  ;;  %v1512_v56 = vpop.f32.mrb[117].mxu0  ;;  %9068 = vmatpush3.bf16.xpose.msra.mxu1 %v2418_v4  ;;  %v11316_v14 = vadd.f32 %v8829_v23, %v10948_v62  ;;  %v1521_v27 = vadd.f32 %v8901_v5, %v10953_v1 }
 0x22b   :  { %9059 = vmatprep.mubr.msk.bf16.mxu0 %vm1953_vm1, %v14637_v48  ;;  %9080 = vmatpush3.bf16.xpose.msra.mxu0 %v2501_v25  ;;  %v8830_v42 = vpop.f32.mrb[54].mxu1  ;;  %v8902_v37 = vpop.f32.mrb[118].mxu0  ;;  %v11330_v0 = vadd.f32 %v10948_v62, %v1150_v39  ;;  %v1513_v13 = vadd.f32 %v10953_v1, %v1512_v56  ;;  %v2421_v39 = vsel %vm1953_vm1, %v1582_v59, 0  ;;  %v14638_v56 = vpack.c.bf16 %v11210_v47, %v11202_v22 }
 0x22c   :  { %v11324_v49 = vadd.f32 %v8830_v42, %v10948_v62  ;;  %v1524_v61 = vadd.f32 %v8902_v37, %v10953_v1  ;;  %9768 = vmatprep.subr.msk.bf16.mxu1 %vm1953_vm1, %v1582_v59  ;;  %9770 = vmatprep.subr.msk.bf16.mxu0 %vm1953_vm1, %v1584_v38  ;;  %v1153_v51 = vpop.f32.mrb[55].mxu1  ;;  %v1515_v11 = vpop.f32.mrb[119].mxu0 }
 0x22d   :  { %v11334_v15 = vadd.f32 %v10948_v62, %v1153_v51  ;;  %v1516_v5 = vadd.f32 %v10953_v1, %v1515_v11  ;;  %v2504_v11 = vsel %vm1953_vm1, %v1584_v38, 0 }
 0x22e   :  { %v11339_v4 = vpack.c.bf16 %v1524_v61, %v1521_v27 }
 0x22f   :  { %v1585_v43 = vpack.c.bf16 %v1516_v5, %v1513_v13 }
 0x231   :  { %v8833_v48 = vpop.f32.mrb[56].mxu1  ;;  %v8905_v42 = vpop.f32.mrb[120].mxu0 }
 0x232   :  { %9060 = vmatmul.mubr.msk.bf16.gmra.mrb[148].mxu0 %vm1953_vm1, %v14638_v56  ;;  %v1166_v37 = vpop.f32.mrb[57].mxu1  ;;  %v1528_v51 = vpop.f32.mrb[121].mxu0  ;;  %9070 = vmatpush3.bf16.xpose.msra.mxu1 %v2421_v39  ;;  %v11351_v13 = vadd.f32 %v8833_v48, %v10948_v62  ;;  %v1537_v59 = vadd.f32 %v8905_v42, %v10953_v1 }
 0x233   :  { %9082 = vmatpush3.bf16.xpose.msra.mxu0 %v2504_v11  ;;  %9087 = vmatprep.mubr.msk.bf16.mxu0 %vm1953_vm1, %v1221_v36  ;;  %v8834_v27 = vpop.f32.mrb[58].mxu1  ;;  %v8906_v61 = vpop.f32.mrb[122].mxu0  ;;  %v1167_v38 = vadd.f32 %v10948_v62, %v1166_v37  ;;  %v1529_v36 = vadd.f32 %v10953_v1, %v1528_v51 }
 0x234   :  { %v11355_v5 = vadd.f32 %v8834_v27, %v10948_v62  ;;  %v1540_v22 = vadd.f32 %v8906_v61, %v10953_v1  ;;  %9771 = vmatprep.subr.msk.bf16.mxu0 %vm1953_vm1, %v1585_v43  ;;  %v1169_v47 = vpop.f32.mrb[59].mxu1  ;;  %v1531_v39 = vpop.f32.mrb[123].mxu0  ;;  %v14639_v61 = vpack.c.bf16 %v11241_v60, %v11237_v63  ;;  %v2507_v63 = vsel %vm1953_vm1, %v1585_v43, 0 }
 0x235   :  { %v1170_v56 = vadd.f32 %v10948_v62, %v1169_v47  ;;  %v1532_v48 = vadd.f32 %v10953_v1, %v1531_v39 }
 0x236   :  { %v1226_v42 = vpack.c.bf16 %v11355_v5, %v11351_v13  ;;  %v1588_v11 = vpack.c.bf16 %v1540_v22, %v1537_v59  ;;  %v14640_v59 = vpack.c.bf16 %v11278_v12, %v11274_v8 }
 0x237   :  { %v1225_v27 = vpack.c.bf16 %v1170_v56, %v1167_v38  ;;  %v1587_v23 = vpack.c.bf16 %v1532_v48, %v1529_v36 }
 0x239   :  { %9072 = vmatmul.mubr.msk.bf16.vlgmr.msra.gmra.mrb[144].mxu1 %vm1953_vm1, %v14639_v61  ;;  %9773 = vmatprep.subr.msk.bf16.mxu1 %vm1953_vm1, %v1587_v23  ;;  %v8837_v37 = vpop.f32.mrb[60].mxu1  ;;  %v8909_v25 = vpop.f32.mrb[124].mxu0  ;;  %v2590_v51 = vsel %vm1953_vm1, %v1587_v23, 0 }
 0x23a   :  { %v11372_v47 = vadd.f32 %v8837_v37, %v10948_v62  ;;  %v1553_v39 = vadd.f32 %v8909_v25, %v10953_v1  ;;  %9075 = vmatprep.mubr.msk.bf16.mxu1 %vm1953_vm1, %v14640_v59  ;;  %9096 = vmatpush3.bf16.xpose.msra.mxu1 %v2590_v51  ;;  %v1182_v60 = vpop.f32.mrb[61].mxu1  ;;  %v1544_v22 = vpop.f32.mrb[125].mxu0 }
 0x23b   :  { %9084 = vmatpush3.bf16.xpose.msra.mxu0 %v2507_v63  ;;  %v11381_v38 = vadd.f32 %v10948_v62, %v1182_v60  ;;  %v1545_v23 = vadd.f32 %v10953_v1, %v1544_v22  ;;  %9774 = vmatprep.subr.msk.bf16.mxu1 %vm1953_vm1, %v1588_v11  ;;  %v8838_v36 = vpop.f32.mrb[62].mxu1  ;;  %v8910_v25 = vpop.f32.mrb[126].mxu0  ;;  %v11402_v22 = vld [vmem:[%s14403_s4 + $0x4] ss:$0 sm:$0xff] }
 0x23c   :  { %9772 = vmatprep.subr.msk.bf16.mxu0 %vm1953_vm1, %v11339_v4  ;;  %v11388_v8 = vadd.f32 %v8838_v36, %v10948_v62  ;;  %v1556_v12 = vadd.f32 %v8910_v25, %v10953_v1  ;;  %v1185_v43 = vpop.f32.mrb[63].mxu1  ;;  %v1547_v56 = vpop.f32.mrb[127].mxu0 }
 0x23d   :  { %v11392_v48 = vadd.f32 %v10948_v62, %v1185_v43  ;;  %v1548_v61 = vadd.f32 %v10953_v1, %v1547_v56  ;;  %v14641_v62 = vpack.c.bf16 %v11268_v50, %v11264_v26  ;;  %v2593_v1 = vsel %vm1953_vm1, %v1588_v11, 0 }
 0x23e   :  { %v1228_v37 = vpack.c.bf16 %v11388_v8, %v11372_v47  ;;  %v1590_v51 = vpack.c.bf16 %v1556_v12, %v1553_v39  ;;  %v2510_v39 = vsel %vm1953_vm1, %v11339_v4, 0 }
 0x23f   :  { %v1227_v59 = vpack.c.bf16 %v11392_v48, %v11381_v38  ;;  %v1589_v63 = vpack.c.bf16 %v1548_v61, %v1545_v23  ;;  %v14642_v48 = vpack.c.bf16 %v11334_v15, %v11330_v0 }
 0x240   :  { %v2599_v15 = vsel %vm1953_vm1, %v1590_v51, 0 }
 0x241   :  { %v8921_v60 = vpop.f32.mrb[64].mxu1  ;;  %9076 = vmatmul.mubr.msk.bf16.gmra.mrb[148].mxu1 %vm1953_vm1, %v14641_v62  ;;  %v2596_v4 = vsel %vm1953_vm1, %v1589_v63, 0 }
 0x242   :  { %v1666_v36 = vpop.f32.mrb[65].mxu1  ;;  %9098 = vmatpush3.bf16.xpose.msra.mxu1 %v2593_v1  ;;  %9103 = vmatprep.mubr.msk.bf16.mxu1 %vm1953_vm1, %v1225_v27  ;;  %v1675_v23 = vadd.f32 %v8921_v60, %v11402_v22 }
 0x243   :  { %9086 = vmatpush3.bf16.xpose.msra.mxu0 %v2510_v39  ;;  %v8922_v38 = vpop.f32.mrb[66].mxu1  ;;  %9775 = vmatprep.subr.msk.bf16.mxu1 %vm1953_vm1, %v1589_v63  ;;  %v1667_v50 = vadd.f32 %v11402_v22, %v1666_v36  ;;  %v14643_v36 = vpack.c.bf16 %v11324_v49, %v11316_v14 }
 0x244   :  { %v1678_v25 = vadd.f32 %v8922_v38, %v11402_v22  ;;  %v1669_v26 = vpop.f32.mrb[67].mxu1 }
 0x245   :  { %v1670_v11 = vadd.f32 %v11402_v22, %v1669_v26 }
 0x246   :  { %v1922_v12 = vpack.c.bf16 %v1678_v25, %v1675_v23 }
 0x247   :  { %v1921_v43 = vpack.c.bf16 %v1670_v11, %v1667_v50 }
 0x249   :  { %v8925_v56 = vpop.f32.mrb[68].mxu1  ;;  %9111 = vmatprep.subr.bf16.mxu0 %v1921_v43 }
 0x24a   :  { %9088 = vmatmul.mubr.msk.bf16.vlgmr.msra.gmra.mrb[152].mxu0 %vm1953_vm1, %v1222_v29  ;;  %v1682_v27 = vpop.f32.mrb[69].mxu1  ;;  %9100 = vmatpush3.bf16.xpose.msra.mxu1 %v2596_v4  ;;  %v1691_v60 = vadd.f32 %v8925_v56, %v11402_v22 }
 0x24b   :  { %9091 = vmatprep.mubr.msk.bf16.mxu0 %vm1953_vm1, %v14642_v48  ;;  %9112 = vmatpush3.bf16.msra.mxu0 %v1921_v43  ;;  %v8926_v61 = vpop.f32.mrb[70].mxu1  ;;  %v1683_v28 = vadd.f32 %v11402_v22, %v1682_v27 }
 0x24c   :  { %v1694_v62 = vadd.f32 %v8926_v61, %v11402_v22  ;;  %9776 = vmatprep.subr.msk.bf16.mxu1 %vm1953_vm1, %v1590_v51  ;;  %9113 = vmatprep.subr.bf16.mxu0 %v1922_v12  ;;  %v1685_v63 = vpop.f32.mrb[71].mxu1 }
 0x24d   :  { %v1686_v46 = vadd.f32 %v11402_v22, %v1685_v63 }
 0x24e   :  { %v1924_v29 = vpack.c.bf16 %v1694_v62, %v1691_v60 }
 0x24f   :  { %9114 = vmatpush3.bf16.msra.mxu0 %v1922_v12  ;;  %v1923_v1 = vpack.c.bf16 %v1686_v46, %v1683_v28 }
 0x251   :  { %v8929_v0 = vpop.f32.mrb[72].mxu1  ;;  %9115 = vmatprep.subr.bf16.mxu0 %v1923_v1 }
 0x252   :  { %9092 = vmatmul.mubr.msk.bf16.gmra.mrb[156].mxu0 %vm1953_vm1, %v14643_v36  ;;  %v1698_v39 = vpop.f32.mrb[73].mxu1  ;;  %9102 = vmatpush3.bf16.xpose.msra.mxu1 %v2599_v15  ;;  %v1707_v23 = vadd.f32 %v8929_v0, %v11402_v22 }
 0x253   :  { %9116 = vmatpush3.bf16.msra.mxu0 %v1923_v1  ;;  %v8930_v38 = vpop.f32.mrb[74].mxu1  ;;  %v1699_v50 = vadd.f32 %v11402_v22, %v1698_v39 }
 0x254   :  { %v1710_v25 = vadd.f32 %v8930_v38, %v11402_v22  ;;  %9117 = vmatprep.subr.bf16.mxu0 %v1924_v29  ;;  %v1701_v26 = vpop.f32.mrb[75].mxu1 }
 0x255   :  { %v1702_v11 = vadd.f32 %v11402_v22, %v1701_v26 }
 0x256   :  { %v1926_v51 = vpack.c.bf16 %v1710_v25, %v1707_v23 }
 0x257   :  { %9118 = vmatpush3.bf16.msra.mxu0 %v1924_v29  ;;  %v1925_v12 = vpack.c.bf16 %v1702_v11, %v1699_v50 }
 0x259   :  { %v8933_v14 = vpop.f32.mrb[76].mxu1  ;;  %9104 = vmatmul.mubr.msk.bf16.vlgmr.msra.gmra.mrb[152].mxu1 %vm1953_vm1, %v1226_v42  ;;  %9127 = vmatprep.subr.bf16.mxu1 %v1925_v12 }
 0x25a   :  { %v1714_v49 = vpop.f32.mrb[77].mxu1  ;;  %9107 = vmatprep.mubr.msk.bf16.mxu1 %vm1953_vm1, %v1227_v59  ;;  %9128 = vmatpush3.bf16.msra.mxu1 %v1925_v12  ;;  %v1723_v56 = vadd.f32 %v8933_v14, %v11402_v22 }
 0x25b   :  { %v8934_v43 = vpop.f32.mrb[78].mxu1  ;;  %9129 = vmatprep.subr.bf16.mxu1 %v1926_v51  ;;  %v1715_v48 = vadd.f32 %v11402_v22, %v1714_v49 }
 0x25c   :  { %v1726_v4 = vadd.f32 %v8934_v43, %v11402_v22  ;;  %v1717_v27 = vpop.f32.mrb[79].mxu1 }
 0x25d   :  { %v1718_v61 = vadd.f32 %v11402_v22, %v1717_v27 }
 0x25e   :  { %9130 = vmatpush3.bf16.msra.mxu1 %v1926_v51  ;;  %v1928_v13 = vpack.c.bf16 %v1726_v4, %v1723_v56 }
 0x25f   :  { %v1927_v5 = vpack.c.bf16 %v1718_v61, %v1715_v48 }
 0x261   :  { %v8937_v42 = vpop.f32.mrb[80].mxu1  ;;  %9108 = vmatmul.mubr.msk.bf16.gmra.mrb[156].mxu1 %vm1953_vm1, %v1228_v37  ;;  %9131 = vmatprep.subr.bf16.mxu1 %v1927_v5 }
 0x262   :  { %v1730_v59 = vpop.f32.mrb[81].mxu1  ;;  %9132 = vmatpush3.bf16.msra.mxu1 %v1927_v5  ;;  %v1739_v62 = vadd.f32 %v8937_v42, %v11402_v22 }
 0x263   :  { %v8938_v60 = vpop.f32.mrb[82].mxu1  ;;  %9133 = vmatprep.subr.bf16.mxu1 %v1928_v13  ;;  %v1731_v46 = vadd.f32 %v11402_v22, %v1730_v59 }
 0x264   :  { %v1742_v63 = vadd.f32 %v8938_v60, %v11402_v22  ;;  %v1733_v28 = vpop.f32.mrb[83].mxu1 }
 0x265   :  { %v1734_v29 = vadd.f32 %v11402_v22, %v1733_v28 }
 0x266   :  { %v11457_v1 = vpack.c.bf16 %v1742_v63, %v1739_v62  ;;  %9134 = vmatpush3.bf16.msra.mxu1 %v1928_v13 }
 0x267   :  { %v11459_v47 = vpack.c.bf16 %v1734_v29, %v1731_v46 }
 0x269   :  { %v8941_v8 = vpop.f32.mrb[84].mxu1  ;;  %9143 = vmatprep.subr.bf16.mxu0 %v11459_v47 }
 0x26a   :  { %v1746_v37 = vpop.f32.mrb[85].mxu1  ;;  %v1755_v15 = vadd.f32 %v8941_v8, %v11402_v22 }
 0x26b   :  { %v8942_v0 = vpop.f32.mrb[86].mxu1  ;;  %v1747_v38 = vadd.f32 %v11402_v22, %v1746_v37 }
 0x26c   :  { %v1758_v36 = vadd.f32 %v8942_v0, %v11402_v22  ;;  %v1749_v39 = vpop.f32.mrb[87].mxu1 }
 0x26d   :  { %v1750_v23 = vadd.f32 %v11402_v22, %v1749_v39 }
 0x26e   :  { %v11466_v25 = vpack.c.bf16 %v1758_v36, %v1755_v15 }
 0x26f   :  { %v11468_v26 = vpack.c.bf16 %v1750_v23, %v1747_v38 }
 0x271   :  { %v8945_v50 = vpop.f32.mrb[88].mxu1 }
 0x272   :  { %v1762_v11 = vpop.f32.mrb[89].mxu1  ;;  %v1771_v12 = vadd.f32 %v8945_v50, %v11402_v22 }
 0x273   :  { %v8946_v51 = vpop.f32.mrb[90].mxu1  ;;  %v1763_v43 = vadd.f32 %v11402_v22, %v1762_v11 }
 0x274   :  { %v1774_v14 = vadd.f32 %v8946_v51, %v11402_v22  ;;  %v1765_v49 = vpop.f32.mrb[91].mxu1 }
 0x275   :  { %v1766_v56 = vadd.f32 %v11402_v22, %v1765_v49 }
 0x276   :  { %v11474_v4 = vpack.c.bf16 %v1774_v14, %v1771_v12 }
 0x277   :  { %v11476_v27 = vpack.c.bf16 %v1766_v56, %v1763_v43 }
 0x279   :  { %v8949_v48 = vpop.f32.mrb[92].mxu1  ;;  %9159 = vmatprep.subr.bf16.mxu1 %v11476_v27 }
 0x27a   :  { %v1778_v61 = vpop.f32.mrb[93].mxu1  ;;  %v1787_v5 = vadd.f32 %v8949_v48, %v11402_v22 }
 0x27b   :  { %v8950_v13 = vpop.f32.mrb[94].mxu1  ;;  %v1779_v60 = vadd.f32 %v11402_v22, %v1778_v61 }
 0x27c   :  { %v1790_v42 = vadd.f32 %v8950_v13, %v11402_v22  ;;  %v1781_v59 = vpop.f32.mrb[95].mxu1 }
 0x27d   :  { %v1782_v62 = vadd.f32 %v11402_v22, %v1781_v59 }
 0x27e   :  { %v11483_v63 = vpack.c.bf16 %v1790_v42, %v1787_v5 }
 0x27f   :  { %v11485_v28 = vpack.c.bf16 %v1782_v62, %v1779_v60 }
 0x281   :  { %v8953_v46 = vpop.f32.mrb[96].mxu1 }
 0x282   :  { %v1794_v29 = vpop.f32.mrb[97].mxu1  ;;  %v1803_v37 = vadd.f32 %v8953_v46, %v11402_v22 }
 0x283   :  { %v8954_v8 = vpop.f32.mrb[98].mxu1  ;;  %v1795_v36 = vadd.f32 %v11402_v22, %v1794_v29 }
 0x284   :  { %v1806_v0 = vadd.f32 %v8954_v8, %v11402_v22  ;;  %v1797_v15 = vpop.f32.mrb[99].mxu1 }
 0x285   :  { %v1798_v39 = vadd.f32 %v11402_v22, %v1797_v15 }
 0x286   :  { %v11491_v38 = vpack.c.bf16 %v1806_v0, %v1803_v37 }
 0x287   :  { %v11493_v23 = vpack.c.bf16 %v1798_v39, %v1795_v36 }
 0x288   :  { %14644 = vst [vmem:[#allocation34_spill] sm:$0xff] %v11491_v38 }
 0x289   :  { %v8957_v50 = vpop.f32.mrb[100].mxu1 }
 0x28a   :  { %v1810_v11 = vpop.f32.mrb[101].mxu1  ;;  %v1819_v12 = vadd.f32 %v8957_v50, %v11402_v22 }
 0x28b   :  { %v8958_v51 = vpop.f32.mrb[102].mxu1  ;;  %v1811_v43 = vadd.f32 %v11402_v22, %v1810_v11 }
 0x28c   :  { %v1822_v14 = vadd.f32 %v8958_v51, %v11402_v22  ;;  %v1813_v49 = vpop.f32.mrb[103].mxu1 }
 0x28d   :  { %v1814_v56 = vadd.f32 %v11402_v22, %v1813_v49 }
 0x28e   :  { %v11499_v48 = vpack.c.bf16 %v1822_v14, %v1819_v12 }
 0x28f   :  { %v11501_v61 = vpack.c.bf16 %v1814_v56, %v1811_v43 }
 0x290   :  { %14645 = vst [vmem:[#allocation35_spill] sm:$0xff] %v11499_v48 }
 0x291   :  { %14646 = vst [vmem:[#allocation36_spill] sm:$0xff] %v11501_v61  ;;  %v8961_v13 = vpop.f32.mrb[104].mxu1 }
 0x292   :  { %v1826_v5 = vpop.f32.mrb[105].mxu1  ;;  %v1835_v59 = vadd.f32 %v8961_v13, %v11402_v22 }
 0x293   :  { %v8962_v42 = vpop.f32.mrb[106].mxu1  ;;  %v1827_v46 = vadd.f32 %v11402_v22, %v1826_v5 }
 0x294   :  { %v1838_v60 = vadd.f32 %v8962_v42, %v11402_v22  ;;  %v1829_v62 = vpop.f32.mrb[107].mxu1 }
 0x295   :  { %v1830_v29 = vadd.f32 %v11402_v22, %v1829_v62 }
 0x296   :  { %v11507_v8 = vpack.c.bf16 %v1838_v60, %v1835_v59 }
 0x297   :  { %v11509_v37 = vpack.c.bf16 %v1830_v29, %v1827_v46 }
 0x298   :  { %14647 = vst [vmem:[#allocation37_spill] sm:$0xff] %v11507_v8 }
 0x299   :  { %v8965_v0 = vpop.f32.mrb[108].mxu1 }
 0x29a   :  { %v1842_v15 = vpop.f32.mrb[109].mxu1  ;;  %v1851_v39 = vadd.f32 %v8965_v0, %v11402_v22 }
 0x29b   :  { %v8966_v36 = vpop.f32.mrb[110].mxu1  ;;  %v1843_v51 = vadd.f32 %v11402_v22, %v1842_v15 }
 0x29c   :  { %v1854_v50 = vadd.f32 %v8966_v36, %v11402_v22  ;;  %v1845_v11 = vpop.f32.mrb[111].mxu1 }
 0x29d   :  { %v1846_v12 = vadd.f32 %v11402_v22, %v1845_v11 }
 0x29e   :  { %v11515_v14 = vpack.c.bf16 %v1854_v50, %v1851_v39 }
 0x29f   :  { %v11517_v49 = vpack.c.bf16 %v1846_v12, %v1843_v51 }
 0x2a0   :  { %14648 = vst [vmem:[#allocation38_spill] sm:$0xff] %v11515_v14 }
 0x2a1   :  { %14649 = vst [vmem:[#allocation39_spill] sm:$0xff] %v11517_v49  ;;  %v8969_v43 = vpop.f32.mrb[112].mxu1 }
 0x2a2   :  { %v1858_v56 = vpop.f32.mrb[113].mxu1  ;;  %v1867_v5 = vadd.f32 %v8969_v43, %v11402_v22 }
 0x2a3   :  { %v8970_v13 = vpop.f32.mrb[114].mxu1  ;;  %v1859_v60 = vadd.f32 %v11402_v22, %v1858_v56 }
 0x2a4   :  { %v1870_v42 = vadd.f32 %v8970_v13, %v11402_v22  ;;  %v1861_v59 = vpop.f32.mrb[115].mxu1 }
 0x2a5   :  { %v1862_v62 = vadd.f32 %v11402_v22, %v1861_v59 }
 0x2a6   :  { %v11523_v46 = vpack.c.bf16 %v1870_v42, %v1867_v5 }
 0x2a7   :  { %v11525_v29 = vpack.c.bf16 %v1862_v62, %v1859_v60 }
 0x2a8   :  { %14650 = vst [vmem:[#allocation40_spill] sm:$0xff] %v11523_v46 }
 0x2a9   :  { %14651 = vst [vmem:[#allocation41_spill] sm:$0xff] %v11525_v29  ;;  %v8973_v0 = vpop.f32.mrb[116].mxu1 }
 0x2aa   :  { %v1874_v15 = vpop.f32.mrb[117].mxu1  ;;  %v1883_v39 = vadd.f32 %v8973_v0, %v11402_v22 }
 0x2ab   :  { %v8974_v36 = vpop.f32.mrb[118].mxu1  ;;  %v1875_v51 = vadd.f32 %v11402_v22, %v1874_v15 }
 0x2ac   :  { %v1886_v50 = vadd.f32 %v8974_v36, %v11402_v22  ;;  %v1877_v11 = vpop.f32.mrb[119].mxu1 }
 0x2ad   :  { %v1878_v12 = vadd.f32 %v11402_v22, %v1877_v11 }
 0x2ae   :  { %v11531_v43 = vpack.c.bf16 %v1886_v50, %v1883_v39 }
 0x2af   :  { %v11533_v56 = vpack.c.bf16 %v1878_v12, %v1875_v51 }
 0x2b0   :  { %14652 = vst [vmem:[#allocation42_spill] sm:$0xff] %v11531_v43 }
 0x2b1   :  { %14653 = vst [vmem:[#allocation43_spill] sm:$0xff] %v11533_v56  ;;  %v8977_v13 = vpop.f32.mrb[120].mxu1 }
 0x2b2   :  { %v1890_v5 = vpop.f32.mrb[121].mxu1  ;;  %v1899_v59 = vadd.f32 %v8977_v13, %v11402_v22 }
 0x2b3   :  { %v8978_v42 = vpop.f32.mrb[122].mxu1  ;;  %v1891_v0 = vadd.f32 %v11402_v22, %v1890_v5 }
 0x2b4   :  { %v1902_v60 = vadd.f32 %v8978_v42, %v11402_v22  ;;  %v1893_v62 = vpop.f32.mrb[123].mxu1 }
 0x2b5   :  { %v1894_v36 = vadd.f32 %v11402_v22, %v1893_v62 }
 0x2b6   :  { %v11539_v24 = vpack.c.bf16 %v1902_v60, %v1899_v59 }
 0x2b7   :  { %v11541_v15 = vpack.c.bf16 %v1894_v36, %v1891_v0 }
 0x2b8   :  { %14654 = vst [vmem:[#allocation44_spill] sm:$0xff] %v11539_v24 }
 0x2b9   :  { %14655 = vst [vmem:[#allocation45_spill] sm:$0xff] %v11541_v15  ;;  %v8981_v39 = vpop.f32.mrb[124].mxu1 }
 0x2ba   :  { %v1906_v50 = vpop.f32.mrb[125].mxu1  ;;  %v1915_v51 = vadd.f32 %v8981_v39, %v11402_v22 }
 0x2bb   :  { %v8982_v11 = vpop.f32.mrb[126].mxu1  ;;  %v1907_v42 = vadd.f32 %v11402_v22, %v1906_v50 }
 0x2bc   :  { %v1918_v12 = vadd.f32 %v8982_v11, %v11402_v22  ;;  %v1909_v52 = vpop.f32.mrb[127].mxu1  ;;  %v11545_v13 = vpop.f32.mrb[128].mxu0 }
 0x2bd   :  { %v1910_v5 = vadd.f32 %v11402_v22, %v1909_v52  ;;  %v11549_v53 = vpop.f32.mrb[129].mxu0  ;;  %v2672_v59 = vsel %vm283_vm0, %v11545_v13, -inf }
 0x2be   :  { %v11553_v60 = vpack.c.bf16 %v1918_v12, %v1915_v51  ;;  %2673 = vmax.xlane.f32.xlu0 %v2672_v59  ;;  %v11555_v62 = vpop.f32.mrb[130].mxu0  ;;  %v2666_v52 = vsel %vm283_vm0, %v11549_v53, -inf }
 0x2bf   :  { %v11557_v0 = vpack.c.bf16 %v1910_v5, %v1907_v42  ;;  %v11559_v36 = vpop.f32.mrb[131].mxu0  ;;  %v2675_v39 = vsel %vm283_vm0, %v11555_v62, -inf }
 0x2c0   :  { %14656 = vst [vmem:[#allocation46_spill] sm:$0xff] %v11553_v60  ;;  %2676 = vmax.xlane.f32.xlu1 %v2675_v39  ;;  %v2669_v22 = vsel %vm283_vm0, %v11559_v36, -inf }
 0x2c1   :  { %14657 = vst [vmem:[#allocation47_spill] sm:$0xff] %v11557_v0 }
 0x2c2   :  { %2667 = vmax.xlane.f32.xlu0 %v2666_v52 }
 0x2c4   :  { %2670 = vmax.xlane.f32.xlu1 %v2669_v22  ;;  %v11567_v50 = vpop.f32.mrb[132].mxu0 }
 0x2c5   :  { %v11569_v11 = vpop.f32.mrb[133].mxu0  ;;  %v2684_v51 = vsel %vm283_vm0, %v11567_v50, -inf }
 0x2c6   :  { %2685 = vmax.xlane.f32.xlu0 %v2684_v51  ;;  %v11573_v12 = vpop.f32.mrb[134].mxu0  ;;  %v2678_v59 = vsel %vm283_vm0, %v11569_v11, -inf }
 0x2c7   :  { %v11575_v42 = vpop.f32.mrb[135].mxu0  ;;  %v2687_v5 = vsel %vm283_vm0, %v11573_v12, -inf }
 0x2c8   :  { %2688 = vmax.xlane.f32.xlu1 %v2687_v5  ;;  %v2681_v39 = vsel %vm283_vm0, %v11575_v42, -inf }
 0x2ca   :  { %2679 = vmax.xlane.f32.xlu0 %v2678_v59 }
 0x2cc   :  { %2682 = vmax.xlane.f32.xlu1 %v2681_v39  ;;  %v11583_v52 = vpop.f32.mrb[128].mxu1 }
 0x2cd   :  { %v11585_v22 = vpop.f32.mrb[129].mxu1  ;;  %v2696_v5 = vsel %vm283_vm0, %v11583_v52, -inf }
 0x2ce   :  { %v11587_v51 = vpop.f32.mrb[130].mxu1  ;;  %v2690_v34 = vsel %vm283_vm0, %v11585_v22, -inf }
 0x2cf   :  { %2691 = vmax.xlane.f32.xlu0 %v2690_v34  ;;  %v11591_v35 = vpop.f32.mrb[131].mxu1  ;;  %v2699_v39 = vsel %vm283_vm0, %v11587_v51, -inf }
 0x2d0   :  { %2697 = vmax.xlane.f32.xlu1 %v2696_v5  ;;  %v2693_v59 = vsel %vm283_vm0, %v11591_v35, -inf }
 0x2d3   :  { %2694 = vmax.xlane.f32.xlu0 %v2693_v59 }
 0x2d4   :  { %2700 = vmax.xlane.f32.xlu1 %v2699_v39  ;;  %v11599_v16 = vpop.f32.mrb[132].mxu1 }
 0x2d5   :  { %v11601_v17 = vpop.f32.mrb[133].mxu1  ;;  %v2708_v34 = vsel %vm283_vm0, %v11599_v16, -inf }
 0x2d6   :  { %v11605_v2 = vpop.f32.mrb[134].mxu1  ;;  %v2702_v59 = vsel %vm283_vm0, %v11601_v17, -inf }
 0x2d7   :  { %2709 = vmax.xlane.f32.xlu0 %v2708_v34  ;;  %v11607_v3 = vpop.f32.mrb[135].mxu1  ;;  %v2711_v5 = vsel %vm283_vm0, %v11605_v2, -inf }
 0x2d8   :  { %2712 = vmax.xlane.f32.xlu1 %v2711_v5  ;;  %v2705_v39 = vsel %vm283_vm0, %v11607_v3, -inf }
 0x2db   :  { %2703 = vmax.xlane.f32.xlu0 %v2702_v59 }
 0x2dc   :  { %2706 = vmax.xlane.f32.xlu1 %v2705_v39 }
 0x2dd   :  { %v11615_v44 = vpop.f32.mrb[136].mxu0 }
 0x2de   :  { %v11617_v45 = vpop.f32.mrb[137].mxu0  ;;  %v2720_v34 = vsel %vm283_vm0, %v11615_v44, -inf }
 0x2df   :  { %v11621_v32 = vpop.f32.mrb[138].mxu0  ;;  %2721 = vmax.xlane.f32.xlu0 %v2720_v34  ;;  %v2714_v59 = vsel %vm283_vm0, %v11617_v45, -inf }
 0x2e0   :  { %v11623_v33 = vpop.f32.mrb[139].mxu0  ;;  %v2723_v5 = vsel %vm283_vm0, %v11621_v32, -inf }
 0x2e1   :  { %2724 = vmax.xlane.f32.xlu1 %v2723_v5  ;;  %v2717_v39 = vsel %vm283_vm0, %v11623_v33, -inf }
 0x2e3   :  { %2715 = vmax.xlane.f32.xlu0 %v2714_v59 }
 0x2e5   :  { %v11631_v18 = vpop.f32.mrb[140].mxu0  ;;  %2718 = vmax.xlane.f32.xlu1 %v2717_v39 }
 0x2e6   :  { %14658 = vst [vmem:[#allocation48_spill] sm:$0xff] %v11631_v18  ;;  %v11633_v19 = vpop.f32.mrb[141].mxu0 }
 0x2e7   :  { %v11635_v6 = vpop.f32.mrb[142].mxu0  ;;  %v2726_v34 = vsel %vm283_vm0, %v11633_v19, -inf }
 0x2e8   :  { %14659 = vst [vmem:[#allocation49_spill] sm:$0xff] %v11635_v6  ;;  %v11639_v7 = vpop.f32.mrb[143].mxu0  ;;  %2727 = vmax.xlane.f32.xlu0 %v2726_v34 }
 0x2e9   :  { %v2729_v5 = vsel %vm283_vm0, %v11639_v7, -inf }
 0x2ea   :  { %2730 = vmax.xlane.f32.xlu1 %v2729_v5 }
 0x2ec   :  { %v11643_v59 = vpop.f32.mrb[136].mxu1 }
 0x2ed   :  { %v11645_v54 = vpop.f32.mrb[137].mxu1  ;;  %v2744_v39 = vsel %vm283_vm0, %v11643_v59, -inf }
 0x2ee   :  { %2745 = vmax.xlane.f32.xlu0 %v2744_v39  ;;  %v11649_v55 = vpop.f32.mrb[138].mxu1  ;;  %v2738_v34 = vsel %vm283_vm0, %v11645_v54, -inf }
 0x2ef   :  { %v11651_v40 = vpop.f32.mrb[139].mxu1  ;;  %v2747_v41 = vsel %vm283_vm0, %v11649_v55, -inf }
 0x2f0   :  { %2748 = vmax.xlane.f32.xlu1 %v2747_v41  ;;  %v2741_v5 = vsel %vm283_vm0, %v11651_v40, -inf }
 0x2f2   :  { %2739 = vmax.xlane.f32.xlu0 %v2738_v34 }
 0x2f4   :  { %2742 = vmax.xlane.f32.xlu1 %v2741_v5  ;;  %v11659_v30 = vpop.f32.mrb[140].mxu1 }
 0x2f5   :  { %14660 = vst [vmem:[#allocation50_spill] sm:$0xff] %v11659_v30  ;;  %v11661_v31 = vpop.f32.mrb[141].mxu1  ;;  %v2756_v39 = vsel %vm283_vm0, %v11659_v30, -inf }
 0x2f6   :  { %14661 = vst [vmem:[#allocation51_spill] sm:$0xff] %v11661_v31  ;;  %2757 = vmax.xlane.f32.xlu0 %v2756_v39  ;;  %v11665_v20 = vpop.f32.mrb[142].mxu1  ;;  %v2750_v34 = vsel %vm283_vm0, %v11661_v31, -inf }
 0x2f7   :  { %14662 = vst [vmem:[#allocation52_spill] sm:$0xff] %v11665_v20  ;;  %v11667_v43 = vpop.f32.mrb[143].mxu1  ;;  %v2759_v41 = vsel %vm283_vm0, %v11665_v20, -inf }
 0x2f8   :  { %14663 = vst [vmem:[#allocation53_spill] sm:$0xff] %v11667_v43  ;;  %2760 = vmax.xlane.f32.xlu1 %v2759_v41  ;;  %v2753_v5 = vsel %vm283_vm0, %v11667_v43, -inf }
 0x2fa   :  { %2751 = vmax.xlane.f32.xlu0 %v2750_v34 }
 0x2fc   :  { %2754 = vmax.xlane.f32.xlu1 %v2753_v5 }
 0x2fd   :  { %v11675_v21 = vpop.f32.mrb[144].mxu0 }
 0x2fe   :  { %14664 = vst [vmem:[#allocation54_spill] sm:$0xff] %v11675_v21  ;;  %v11677_v9 = vpop.f32.mrb[145].mxu0 }
 0x2ff   :  { %14665 = vst [vmem:[#allocation55_spill] sm:$0xff] %v11677_v9  ;;  %v11679_v39 = vpop.f32.mrb[146].mxu0 }
 0x300   :  { %14666 = vst [vmem:[#allocation56_spill] sm:$0xff] %v11679_v39  ;;  %v11681_v56 = vpop.f32.mrb[147].mxu0 }
 0x301   :  { %14667 = vst [vmem:[#allocation57_spill] sm:$0xff] %v11681_v56 }
 0x305   :  { %v11683_v46 = vpop.f32.mrb[148].mxu0 }
 0x306   :  { %v11685_v10 = vpop.f32.mrb[149].mxu0 }
 0x307   :  { %14668 = vst [vmem:[#allocation58_spill] sm:$0xff] %v11685_v10  ;;  %v11687_v41 = vpop.f32.mrb[150].mxu0 }
 0x308   :  { %v11689_v57 = vpop.f32.mrb[151].mxu0 }
 0x309   :  { %14669 = vst [vmem:[#allocation59_spill] sm:$0xff] %v11689_v57 }
 0x30c   :  { %v11691_v34 = vpop.f32.mrb[144].mxu1 }
 0x30d   :  { %14670 = vst [vmem:[#allocation60_spill] sm:$0xff] %v11691_v34  ;;  %v11693_v58 = vpop.f32.mrb[145].mxu1  ;;  %v2792_v5 = vsel %vm283_vm0, %v11691_v34, -inf }
 0x30e   :  { %14671 = vst [vmem:[#allocation61_spill] sm:$0xff] %v11693_v58  ;;  %2793 = vmax.xlane.f32.xlu0 %v2792_v5  ;;  %v11697_v60 = vpop.f32.mrb[146].mxu1  ;;  %v2786_v15 = vsel %vm283_vm0, %v11693_v58, -inf }
 0x30f   :  { %14672 = vst [vmem:[#allocation62_spill] sm:$0xff] %v11697_v60  ;;  %v11699_v0 = vpop.f32.mrb[147].mxu1  ;;  %v2795_v24 = vsel %vm283_vm0, %v11697_v60, -inf }
 0x310   :  { %14673 = vst [vmem:[#allocation63_spill] sm:$0xff] %v11699_v0  ;;  %2796 = vmax.xlane.f32.xlu1 %v2795_v24  ;;  %v2789_v14 = vsel %vm283_vm0, %v11699_v0, -inf }
 0x312   :  { %2787 = vmax.xlane.f32.xlu0 %v2786_v15 }
 0x314   :  { %2790 = vmax.xlane.f32.xlu1 %v2789_v14  ;;  %v11707_v49 = vpop.f32.mrb[148].mxu1 }
 0x315   :  { %14674 = vst [vmem:[#allocation64_spill] sm:$0xff] %v11707_v49  ;;  %v11709_v34 = vpop.f32.mrb[149].mxu1  ;;  %v2804_v5 = vsel %vm283_vm0, %v11707_v49, -inf }
 0x316   :  { %14675 = vst [vmem:[#allocation65_spill] sm:$0xff] %v11709_v34  ;;  %2805 = vmax.xlane.f32.xlu0 %v2804_v5  ;;  %v11713_v8 = vpop.f32.mrb[150].mxu1  ;;  %v2798_v15 = vsel %vm283_vm0, %v11709_v34, -inf }
 0x317   :  { %14676 = vst [vmem:[#allocation66_spill] sm:$0xff] %v11713_v8  ;;  %v11715_v60 = vpop.f32.mrb[151].mxu1  ;;  %v2807_v24 = vsel %vm283_vm0, %v11713_v8, -inf }
 0x318   :  { %14677 = vst [vmem:[#allocation67_spill] sm:$0xff] %v11715_v60  ;;  %2808 = vmax.xlane.f32.xlu1 %v2807_v24  ;;  %v2801_v14 = vsel %vm283_vm0, %v11715_v60, -inf }
 0x31a   :  { %2799 = vmax.xlane.f32.xlu0 %v2798_v15 }
 0x31c   :  { %2802 = vmax.xlane.f32.xlu1 %v2801_v14 }
 0x31d   :  { %v11723_v0 = vpop.f32.mrb[152].mxu0 }
 0x31e   :  { %v11725_v49 = vpop.f32.mrb[153].mxu0 }
 0x31f   :  { %v11727_v5 = vpop.f32.mrb[154].mxu0 }
 0x320   :  { %v11729_v58 = vpop.f32.mrb[155].mxu0 }
 0x325   :  { %v11731_v29 = vpop.f32.mrb[156].mxu0 }
 0x326   :  { %v11733_v8 = vpop.f32.mrb[157].mxu0 }
 0x327   :  { %v11735_v24 = vpop.f32.mrb[158].mxu0 }
 0x328   :  { %v11737_v34 = vpop.f32.mrb[159].mxu0 }
 0x32c   :  { %v11739_v15 = vpop.f32.mrb[152].mxu1 }
 0x32d   :  { %14678 = vst [vmem:[#allocation68_spill] sm:$0xff] %v11739_v15  ;;  %v11741_v60 = vpop.f32.mrb[153].mxu1  ;;  %v2840_v14 = vsel %vm283_vm0, %v11739_v15, -inf }
 0x32e   :  { %2841 = vmax.xlane.f32.xlu0 %v2840_v14  ;;  %v11745_v48 = vpop.f32.mrb[154].mxu1  ;;  %v2834_v31 = vsel %vm283_vm0, %v11741_v60, -inf  ;;  %v2732_v14 = vsel %vm283_vm0, %v11631_v18, -inf }
 0x32f   :  { %14679 = vst [vmem:[#allocation69_spill] sm:$0xff] %v11745_v48  ;;  %v11747_v61 = vpop.f32.mrb[155].mxu1  ;;  %v2843_v43 = vsel %vm283_vm0, %v11745_v48, -inf }
 0x330   :  { %2844 = vmax.xlane.f32.xlu1 %v2843_v43  ;;  %v2837_v38 = vsel %vm283_vm0, %v11747_v61, -inf  ;;  %v2735_v43 = vsel %vm283_vm0, %v11635_v6, -inf  ;;  %v2762_v6 = vsel %vm283_vm0, %v11677_v9, -inf }
 0x332   :  { %2835 = vmax.xlane.f32.xlu0 %v2834_v31 }
 0x334   :  { %2838 = vmax.xlane.f32.xlu1 %v2837_v38  ;;  %v11755_v20 = vpop.f32.mrb[156].mxu1 }
 0x335   :  { %v11757_v15 = vpop.f32.mrb[157].mxu1  ;;  %v2852_v18 = vsel %vm283_vm0, %v11755_v20, -inf }
 0x336   :  { %2733 = vmax.xlane.f32.xlu0 %v2732_v14  ;;  %v11761_v30 = vpop.f32.mrb[158].mxu1  ;;  %v2846_v31 = vsel %vm283_vm0, %v11757_v15, -inf }
 0x337   :  { %v11763_v48 = vpop.f32.mrb[159].mxu1  ;;  %v2855_v14 = vsel %vm283_vm0, %v11761_v30, -inf }
 0x338   :  { %2736 = vmax.xlane.f32.xlu1 %v2735_v43  ;;  %v2849_v38 = vsel %vm283_vm0, %v11763_v48, -inf  ;;  %v2765_v43 = vsel %vm283_vm0, %v11681_v56, -inf }
 0x33a   :  { %2847 = vmax.xlane.f32.xlu0 %v2846_v31  ;;  %v2768_v31 = vsel %vm283_vm0, %v11675_v21, -inf  ;;  %v2780_v21 = vsel %vm283_vm0, %v11683_v46, -inf }
 0x33c   :  { %2850 = vmax.xlane.f32.xlu1 %v2849_v38  ;;  %v2771_v38 = vsel %vm283_vm0, %v11679_v39, -inf }
 0x33e   :  { %2853 = vmax.xlane.f32.xlu0 %v2852_v18  ;;  %v2774_v18 = vsel %vm283_vm0, %v11685_v10, -inf  ;;  %v2783_v10 = vsel %vm283_vm0, %v11687_v41, -inf }
 0x340   :  { %2856 = vmax.xlane.f32.xlu1 %v2855_v14 }
 0x342   :  { %2763 = vmax.xlane.f32.xlu0 %v2762_v6  ;;  %v2777_v6 = vsel %vm283_vm0, %v11689_v57, -inf }
 0x344   :  { %2766 = vmax.xlane.f32.xlu1 %v2765_v43 }
 0x346   :  { %2769 = vmax.xlane.f32.xlu0 %v2768_v31 }
 0x348   :  { %2772 = vmax.xlane.f32.xlu1 %v2771_v38 }
 0x34a   :  { %2775 = vmax.xlane.f32.xlu0 %v2774_v18 }
 0x34b   :  { %v2674_v14 = vpop.xlane.xlu0 %2673 }
 0x34c   :  { %v2860_v9 = vsub.f32 %v11545_v13, %v2674_v14  ;;  %2778 = vmax.xlane.f32.xlu1 %v2777_v6  ;;  %v2810_v13 = vsel %vm283_vm0, %v11725_v49, -inf }
 0x34d   :  { %v2677_v43 = vpop.xlane.xlu1 %2676 }
 0x34e   :  { %v2926_v31 = vmul.f32 1.442695, %v2860_v9  ;;  %v2861_v56 = vsub.f32 %v11555_v62, %v2677_v43  ;;  %2781 = vmax.xlane.f32.xlu0 %v2780_v21  ;;  %v2813_v21 = vsel %vm283_vm0, %v11729_v58, -inf }
 0x34f   :  { %v2668_v38 = vpop.xlane.xlu0 %2667 }
 0x350   :  { %v2928_v18 = vmul.f32 1.442695, %v2861_v56  ;;  %v2858_v39 = vsub.f32 %v11549_v53, %v2668_v38  ;;  %2784 = vmax.xlane.f32.xlu1 %v2783_v10  ;;  %9872 = vpow2.f32 %v2926_v31  ;;  %v2816_v53 = vsel %vm283_vm0, %v11723_v0, -inf }
 0x351   :  { %v2671_v57 = vpop.xlane.xlu1 %2670 }
 0x352   :  { %9874 = vpow2.f32 %v2928_v18  ;;  %v2922_v14 = vmul.f32 1.442695, %v2858_v39  ;;  %v2859_v9 = vsub.f32 %v11559_v36, %v2671_v57  ;;  %2811 = vmax.xlane.f32.xlu0 %v2810_v13  ;;  %v2819_v36 = vsel %vm283_vm0, %v11727_v5, -inf }
 0x353   :  { %v2686_v62 = vpop.xlane.xlu0 %2685  ;;  %v2822_v18 = vsel %vm283_vm0, %v11733_v8, -inf }
 0x354   :  { %v2924_v6 = vmul.f32 1.442695, %v2859_v9  ;;  %v2864_v56 = vsub.f32 %v11567_v50, %v2686_v62  ;;  %2814 = vmax.xlane.f32.xlu1 %v2813_v21  ;;  %9876 = vpow2.f32 %v2922_v14  ;;  %v2825_v9 = vsel %vm283_vm0, %v11737_v34, -inf }
 0x355   :  { %v2689_v10 = vpop.xlane.xlu1 %2688 }
 0x356   :  { %9878 = vpow2.f32 %v2924_v6  ;;  %v2934_v43 = vmul.f32 1.442695, %v2864_v56  ;;  %v2865_v39 = vsub.f32 %v11573_v12, %v2689_v10  ;;  %2817 = vmax.xlane.f32.xlu0 %v2816_v53  ;;  %v2828_v53 = vsel %vm283_vm0, %v11731_v29, -inf }
 0x357   :  { %v2680_v57 = vpop.xlane.xlu0 %2679 }
 0x358   :  { %v2936_v31 = vmul.f32 1.442695, %v2865_v39  ;;  %v2862_v38 = vsub.f32 %v11569_v11, %v2680_v57  ;;  %2820 = vmax.xlane.f32.xlu1 %v2819_v36  ;;  %9880 = vpow2.f32 %v2934_v43  ;;  %v2831_v57 = vsel %vm283_vm0, %v11735_v24, -inf }
 0x359   :  { %v2683_v50 = vpop.xlane.xlu1 %2682 }
 0x35a   :  { %9882 = vpow2.f32 %v2936_v31  ;;  %v2930_v13 = vmul.f32 1.442695, %v2862_v38  ;;  %v2863_v14 = vsub.f32 %v11575_v42, %v2683_v50  ;;  %2823 = vmax.xlane.f32.xlu0 %v2822_v18  ;;  %v9873_v12 = vpop.eup %9872 }
 0x35b   :  { %v3056_v18 = vsel %vm283_vm0, %v9873_v12, 0.0 }
 0x35c   :  { %v11811_v62 = vpop.eup %9874  ;;  %v2932_v21 = vmul.f32 1.442695, %v2863_v14  ;;  %v2692_v6 = vpop.xlane.xlu0 %2691  ;;  %2826 = vmax.xlane.f32.xlu1 %v2825_v9  ;;  %9884 = vpow2.f32 %v2930_v13 }
 0x35d   :  { %v3307_v11 = vpack.c.bf16 %v11811_v62, %v9873_v12  ;;  %v2866_v56 = vsub.f32 %v11585_v22, %v2692_v6  ;;  %v2698_v10 = vpop.xlane.xlu1 %2697 }
 0x35e   :  { %9886 = vpow2.f32 %v2932_v21  ;;  %v2868_v42 = vsub.f32 %v11583_v52, %v2698_v10  ;;  %2829 = vmax.xlane.f32.xlu0 %v2828_v53  ;;  %v9877_v43 = vpop.eup %9876 }
 0x35f   :  { %v2938_v39 = vmul.f32 1.442695, %v2866_v56  ;;  %v3050_v12 = vsel %vm283_vm0, %v9877_v43, 0.0 }
 0x360   :  { %v9879_v36 = vpop.eup %9878  ;;  %v2942_v31 = vmul.f32 1.442695, %v2868_v42  ;;  %v2695_v38 = vpop.xlane.xlu0 %2694  ;;  %2832 = vmax.xlane.f32.xlu1 %v2831_v57 }
 0x361   :  { %9888 = vpow2.f32 %v2938_v39  ;;  %v2867_v22 = vsub.f32 %v11591_v35, %v2695_v38  ;;  %v2701_v50 = vpop.xlane.xlu1 %2700  ;;  %v3306_v13 = vpack.c.bf16 %v9879_v36, %v9877_v43  ;;  %v3053_v21 = vsel %vm283_vm0, %v9879_v36, 0.0 }
 0x362   :  { %9890 = vpow2.f32 %v2942_v31  ;;  %v2869_v52 = vsub.f32 %v11587_v51, %v2701_v50  ;;  %3057 = vadd.xlane.f32.xlu0 %v3056_v18  ;;  %v11823_v14 = vpop.eup %9880 }
 0x363   :  { %14680 = vst [vmem:[#allocation70_spill] sm:$0xff] %v11823_v14  ;;  %v2940_v9 = vmul.f32 1.442695, %v2867_v22  ;;  %9119 = vmatprep.mubr.msk.bf16.mxu0 %vm283_vm0, %v3306_v13 }
 0x364   :  { %v11827_v6 = vpop.eup %9882  ;;  %v2944_v56 = vmul.f32 1.442695, %v2869_v52  ;;  %v2710_v10 = vpop.xlane.xlu0 %2709  ;;  %9120 = vmatmul.mubr.msk.bf16.vlgmr.msra.gmra.mrb[160].mxu0 %vm283_vm0, %v3307_v11  ;;  %3054 = vadd.xlane.f32.xlu1 %v3053_v21 }
 0x365   :  { %14681 = vst [vmem:[#allocation71_spill] sm:$0xff] %v11827_v6  ;;  %9892 = vpow2.f32 %v2940_v9  ;;  %v2872_v35 = vsub.f32 %v11599_v16, %v2710_v10  ;;  %9144 = vmatpush3.bf16.msra.mxu0 %v11459_v47  ;;  %v2713_v51 = vpop.xlane.xlu1 %2712  ;;  %v3309_v53 = vpack.c.bf16 %v11827_v6, %v11823_v14  ;;  %v14772_v6 = vld [vmem:[#allocation20_spill] sm:$0xff] }
 0x366   :  { %9894 = vpow2.f32 %v2944_v56  ;;  %v2873_v42 = vsub.f32 %v11605_v2, %v2713_v51  ;;  %9145 = vmatprep.subr.bf16.mxu0 %v11457_v1  ;;  %3051 = vadd.xlane.f32.xlu0 %v3050_v12  ;;  %v11837_v39 = vpop.eup %9884 }
 0x367   :  { %v2950_v11 = vmul.f32 1.442695, %v2872_v35 }
 0x368   :  { %v11839_v57 = vpop.eup %9886  ;;  %v2952_v16 = vmul.f32 1.442695, %v2873_v42  ;;  %v2704_v36 = vpop.xlane.xlu0 %2703 }
 0x369   :  { %14682 = vst [vmem:[#allocation72_spill] sm:$0xff] %v11839_v57  ;;  %9896 = vpow2.f32 %v2950_v11  ;;  %v2870_v47 = vsub.f32 %v11601_v17, %v2704_v36  ;;  %9146 = vmatpush3.bf16.msra.mxu0 %v11457_v1  ;;  %v2707_v43 = vpop.xlane.xlu1 %2706  ;;  %v3308_v31 = vpack.c.bf16 %v11839_v57, %v11837_v39 }
 0x36a   :  { %9898 = vpow2.f32 %v2952_v16  ;;  %v2871_v2 = vsub.f32 %v11607_v3, %v2707_v43  ;;  %9147 = vmatprep.subr.bf16.mxu0 %v11468_v26 }
 0x36b   :  { %v9889_v38 = vpop.eup %9888  ;;  %v2946_v22 = vmul.f32 1.442695, %v2870_v47  ;;  %9123 = vmatprep.mubr.msk.bf16.mxu0 %vm283_vm0, %v3308_v31 }
 0x36c   :  { %v9891_v50 = vpop.eup %9890  ;;  %v2948_v18 = vmul.f32 1.442695, %v2871_v2  ;;  %v2722_v13 = vpop.xlane.xlu0 %2721  ;;  %9124 = vmatmul.mubr.msk.bf16.gmra.mrb[164].mxu0 %vm283_vm0, %v3309_v53  ;;  %v3074_v17 = vsel %vm283_vm0, %v9889_v38, 0.0 }
 0x36d   :  { %9900 = vpow2.f32 %v2946_v22  ;;  %v2876_v1 = vsub.f32 %v11615_v44, %v2722_v13  ;;  %9148 = vmatpush3.bf16.msra.mxu0 %v11468_v26  ;;  %3075 = vadd.xlane.f32.xlu0 %v3074_v17  ;;  %v3080_v3 = vsel %vm283_vm0, %v9891_v50, 0.0 }
 0x36e   :  { %9902 = vpow2.f32 %v2948_v18  ;;  %v2725_v52 = vpop.xlane.xlu1 %2724  ;;  %9149 = vmatprep.subr.bf16.mxu0 %v11466_v25  ;;  %3081 = vadd.xlane.f32.xlu1 %v3080_v3 }
 0x36f   :  { %v9893_v9 = vpop.eup %9892  ;;  %v2958_v21 = vmul.f32 1.442695, %v2876_v1  ;;  %v2877_v56 = vsub.f32 %v11621_v32, %v2725_v52 }
 0x370   :  { %v11855_v10 = vpop.eup %9894  ;;  %v2716_v35 = vpop.xlane.xlu0 %2715  ;;  %v3310_v51 = vpack.c.bf16 %v9893_v9, %v9889_v38  ;;  %v3077_v44 = vsel %vm283_vm0, %v9893_v9, 0.0 }
 0x371   :  { %v3311_v26 = vpack.c.bf16 %v11855_v10, %v9891_v50  ;;  %9904 = vpow2.f32 %v2958_v21  ;;  %v2960_v12 = vmul.f32 1.442695, %v2877_v56  ;;  %v2874_v53 = vsub.f32 %v11617_v45, %v2716_v35  ;;  %9150 = vmatpush3.bf16.msra.mxu0 %v11466_v25 }
 0x372   :  { %v2719_v42 = vpop.xlane.xlu1 %2718  ;;  %9175 = vmatprep.subr.bf16.mxu0 %v11493_v23  ;;  %9135 = vmatprep.mubr.msk.bf16.mxu1 %vm283_vm0, %v3310_v51 }
 0x373   :  { %v11863_v32 = vpop.eup %9896  ;;  %9906 = vpow2.f32 %v2960_v12  ;;  %v2954_v11 = vmul.f32 1.442695, %v2874_v53  ;;  %v2875_v16 = vsub.f32 %v11623_v33, %v2719_v42  ;;  %3078 = vadd.xlane.f32.xlu1 %v3077_v44  ;;  %9136 = vmatmul.mubr.msk.bf16.vlgmr.msra.gmra.mrb[160].mxu1 %vm283_vm0, %v3311_v26 }
 0x374   :  { %14683 = vst [vmem:[#allocation73_spill] sm:$0xff] %v11863_v32  ;;  %v11867_v36 = vpop.eup %9898  ;;  %9160 = vmatpush3.bf16.msra.mxu1 %v11476_v27 }
 0x375   :  { %14684 = vst [vmem:[#allocation74_spill] sm:$0xff] %v11867_v36  ;;  %9908 = vpow2.f32 %v2954_v11  ;;  %v2956_v45 = vmul.f32 1.442695, %v2875_v16  ;;  %v2728_v25 = vpop.xlane.xlu0 %2727  ;;  %9161 = vmatprep.subr.bf16.mxu1 %v11474_v4  ;;  %v3313_v47 = vpack.c.bf16 %v11867_v36, %v11863_v32 }
 0x376   :  { %v2878_v43 = vsub.f32 %v11633_v19, %v2728_v25 }
 0x377   :  { %v11874_v31 = vpop.eup %9900  ;;  %9910 = vpow2.f32 %v2956_v45  ;;  %v2731_v33 = vpop.xlane.xlu1 %2730 }
 0x378   :  { %v11876_v2 = vpop.eup %9902  ;;  %v2962_v38 = vmul.f32 1.442695, %v2878_v43  ;;  %v2879_v22 = vsub.f32 %v11639_v7, %v2731_v33  ;;  %9162 = vmatpush3.bf16.msra.mxu1 %v11474_v4 }
 0x379   :  { %14685 = vst [vmem:[#allocation75_spill] sm:$0xff] %v11876_v2  ;;  %9163 = vmatprep.subr.bf16.mxu1 %v11485_v28  ;;  %v3312_v27 = vpack.c.bf16 %v11876_v2, %v11874_v31 }
 0x37a   :  { %v2964_v50 = vmul.f32 1.442695, %v2879_v22  ;;  %9912 = vpow2.f32 %v2962_v38  ;;  %v14690_v38 = vld [vmem:[#allocation34_spill] sm:$0xff]  ;;  %v14691_v22 = vld [vmem:[#allocation51_spill] sm:$0xff] }
 0x37b   :  { %v11883_v18 = vpop.eup %9904  ;;  %v2746_v19 = vpop.xlane.xlu0 %2745  ;;  %9139 = vmatprep.mubr.msk.bf16.mxu1 %vm283_vm0, %v3312_v27 }
 0x37c   :  { %9914 = vpow2.f32 %v2964_v50  ;;  %v2884_v13 = vsub.f32 %v11643_v59, %v2746_v19  ;;  %9164 = vmatpush3.bf16.msra.mxu1 %v11485_v28 }
 0x37d   :  { %v11888_v7 = vpop.eup %9906  ;;  %9140 = vmatmul.mubr.msk.bf16.gmra.mrb[164].mxu1 %vm283_vm0, %v3313_v47  ;;  %9165 = vmatprep.subr.bf16.mxu1 %v11483_v63  ;;  %v2749_v4 = vpop.xlane.xlu1 %2748 }
 0x37e   :  { %v3315_v17 = vpack.c.bf16 %v11888_v7, %v11883_v18  ;;  %v2974_v1 = vmul.f32 1.442695, %v2884_v13  ;;  %v2885_v3 = vsub.f32 %v11649_v55, %v2749_v4  ;;  %v14692_v13 = vld [vmem:[#allocation53_spill] sm:$0xff] }
 0x37f   :  { %v9909_v52 = vpop.eup %9908  ;;  %v2740_v9 = vpop.xlane.xlu0 %2739 }
 0x380   :  { %v2976_v21 = vmul.f32 1.442695, %v2885_v3  ;;  %v2882_v59 = vsub.f32 %v11645_v54, %v2740_v9  ;;  %9166 = vmatpush3.bf16.msra.mxu1 %v11483_v63  ;;  %v3098_v28 = vsel %vm283_vm0, %v9909_v52, 0.0  ;;  %9916 = vpow2.f32 %v2974_v1  ;;  %v14686_v63 = vld [vmem:[#allocation50_spill] sm:$0xff]  ;;  %v14693_v3 = vld [vmem:[#allocation36_spill] sm:$0xff] }
 0x381   :  { %v9911_v56 = vpop.eup %9910  ;;  %9191 = vmatprep.subr.bf16.mxu1 %v11509_v37  ;;  %v2743_v35 = vpop.xlane.xlu1 %2742  ;;  %3099 = vadd.xlane.f32.xlu0 %v3098_v28  ;;  %v14694_v28 = vld [vmem:[#allocation35_spill] sm:$0xff] }
 0x382   :  { %9918 = vpow2.f32 %v2976_v21  ;;  %v2970_v51 = vmul.f32 1.442695, %v2882_v59  ;;  %v2883_v44 = vsub.f32 %v11651_v40, %v2743_v35  ;;  %v3101_v55 = vsel %vm283_vm0, %v9911_v56, 0.0  ;;  %v14689_v40 = vld [vmem:[#allocation52_spill] sm:$0xff] }
 0x383   :  { %3102 = vadd.xlane.f32.xlu1 %v3101_v55  ;;  %v2758_v26 = vpop.xlane.xlu0 %2757  ;;  %v3314_v12 = vpack.c.bf16 %v9911_v56, %v9909_v52  ;;  %v14697_v55 = vld [vmem:[#allocation41_spill] sm:$0xff] }
 0x384   :  { %9920 = vpow2.f32 %v2970_v51  ;;  %v2972_v54 = vmul.f32 1.442695, %v2883_v44  ;;  %v2888_v53 = vsub.f32 %v14686_v63, %v2758_v26  ;;  %v11902_v42 = vpop.eup %9912 }
 0x385   :  { %14687 = vst [vmem:[#allocation50_spill] sm:$0xff] %v11902_v42  ;;  %9151 = vmatprep.mubr.msk.bf16.mxu0 %vm283_vm0, %v3314_v12  ;;  %v2761_v11 = vpop.xlane.xlu1 %2760  ;;  %v14698_v12 = vld [vmem:[#allocation37_spill] sm:$0xff] }
 0x386   :  { %v11905_v16 = vpop.eup %9914  ;;  %9922 = vpow2.f32 %v2972_v54  ;;  %v2982_v45 = vmul.f32 1.442695, %v2888_v53  ;;  %9152 = vmatmul.mubr.msk.bf16.vlgmr.msra.gmra.mrb[168].mxu0 %vm283_vm0, %v3315_v17  ;;  %v2889_v25 = vsub.f32 %v14689_v40, %v2761_v11  ;;  %v14701_v11 = vld [vmem:[#allocation39_spill] sm:$0xff] }
 0x387   :  { %14688 = vst [vmem:[#allocation76_spill] sm:$0xff] %v11905_v16  ;;  %9176 = vmatpush3.bf16.msra.mxu0 %v11493_v23  ;;  %v2752_v47 = vpop.xlane.xlu0 %2751  ;;  %v3316_v43 = vpack.c.bf16 %v11905_v16, %v11902_v42  ;;  %v14798_v42 = vld [vmem:[#allocation32_spill] sm:$0xff] }
 0x388   :  { %v2984_v33 = vmul.f32 1.442695, %v2889_v25  ;;  %9177 = vmatprep.subr.bf16.mxu0 %v14690_v38  ;;  %v2886_v27 = vsub.f32 %v14691_v22, %v2752_v47  ;;  %9924 = vpow2.f32 %v2982_v45 }
 0x389   :  { %9155 = vmatprep.mubr.msk.bf16.mxu0 %vm283_vm0, %v3316_v43  ;;  %v2755_v50 = vpop.xlane.xlu1 %2754  ;;  %v14703_v43 = vld [vmem:[#allocation62_spill] sm:$0xff] }
 0x38a   :  { %9926 = vpow2.f32 %v2984_v33  ;;  %v2978_v19 = vmul.f32 1.442695, %v2886_v27  ;;  %v2887_v4 = vsub.f32 %v14692_v13, %v2755_v50  ;;  %v11916_v17 = vpop.eup %9916  ;;  %v14705_v50 = vld [vmem:[#allocation61_spill] sm:$0xff] }
 0x38b   :  { %9178 = vmatpush3.bf16.msra.mxu0 %v14690_v38  ;;  %v14704_v38 = vld [vmem:[#allocation38_spill] sm:$0xff] }
 0x38c   :  { %v11919_v23 = vpop.eup %9918  ;;  %v2980_v1 = vmul.f32 1.442695, %v2887_v4  ;;  %9179 = vmatprep.subr.bf16.mxu0 %v14693_v3  ;;  %9928 = vpow2.f32 %v2978_v19 }
 0x38d   :  { %v3319_v52 = vpack.c.bf16 %v11919_v23, %v11916_v17 }
 0x38e   :  { %v9921_v9 = vpop.eup %9920  ;;  %9930 = vpow2.f32 %v2980_v1  ;;  %v14706_v1 = vld [vmem:[#allocation63_spill] sm:$0xff] }
 0x38f   :  { %9180 = vmatpush3.bf16.msra.mxu0 %v14693_v3  ;;  %v3122_v21 = vsel %vm283_vm0, %v9921_v9, 0.0 }
 0x390   :  { %v9923_v59 = vpop.eup %9922  ;;  %9181 = vmatprep.subr.bf16.mxu0 %v14694_v28  ;;  %3123 = vadd.xlane.f32.xlu0 %v3122_v21 }
 0x391   :  { %v3125_v56 = vsel %vm283_vm0, %v9923_v59, 0.0  ;;  %v3318_v35 = vpack.c.bf16 %v9923_v59, %v9921_v9  ;;  %v14708_v59 = vld [vmem:[#allocation64_spill] sm:$0xff] }
 0x392   :  { %3126 = vadd.xlane.f32.xlu1 %v3125_v56  ;;  %v11928_v51 = vpop.eup %9924 }
 0x393   :  { %14695 = vst [vmem:[#allocation52_spill] sm:$0xff] %v11928_v51  ;;  %9182 = vmatpush3.bf16.msra.mxu0 %v14694_v28  ;;  %9167 = vmatprep.mubr.msk.bf16.mxu1 %vm283_vm0, %v3318_v35 }
 0x394   :  { %v11932_v44 = vpop.eup %9926  ;;  %9207 = vmatprep.subr.bf16.mxu0 %v14697_v55  ;;  %9168 = vmatmul.mubr.msk.bf16.vlgmr.msra.gmra.mrb[168].mxu1 %vm283_vm0, %v3319_v52  ;;  %v14707_v52 = vld [vmem:[#allocation45_spill] sm:$0xff] }
 0x395   :  { %14696 = vst [vmem:[#allocation34_spill] sm:$0xff] %v11932_v44  ;;  %9192 = vmatpush3.bf16.msra.mxu1 %v11509_v37  ;;  %v3321_v26 = vpack.c.bf16 %v11932_v44, %v11928_v51  ;;  %v14702_v37 = vld [vmem:[#allocation60_spill] sm:$0xff] }
 0x396   :  { %9193 = vmatprep.subr.bf16.mxu1 %v14698_v12  ;;  %v11940_v54 = vpop.eup %9928  ;;  %v14764_v44 = vld [vmem:[#allocation12_spill] sm:$0xff] }
 0x397   :  { %14699 = vst [vmem:[#allocation51_spill] sm:$0xff] %v11940_v54 }
 0x398   :  { %v11942_v63 = vpop.eup %9930 }
 0x399   :  { %14700 = vst [vmem:[#allocation53_spill] sm:$0xff] %v11942_v63  ;;  %9194 = vmatpush3.bf16.msra.mxu1 %v14698_v12  ;;  %v3320_v53 = vpack.c.bf16 %v11942_v63, %v11940_v54 }
 0x39a   :  { %9195 = vmatprep.subr.bf16.mxu1 %v14701_v11 }
 0x39b   :  { %v2794_v45 = vpop.xlane.xlu0 %2793  ;;  %9171 = vmatprep.mubr.msk.bf16.mxu1 %vm283_vm0, %v3320_v53 }
 0x39c   :  { %v2900_v40 = vsub.f32 %v14702_v37, %v2794_v45  ;;  %9172 = vmatmul.mubr.msk.bf16.gmra.mrb[172].mxu1 %vm283_vm0, %v3321_v26  ;;  %v14709_v26 = vld [vmem:[#allocation66_spill] sm:$0xff]  ;;  %v14710_v45 = vld [vmem:[#allocation65_spill] sm:$0xff] }
 0x39d   :  { %9196 = vmatpush3.bf16.msra.mxu1 %v14701_v11  ;;  %v2797_v25 = vpop.xlane.xlu1 %2796 }
 0x39e   :  { %v3006_v47 = vmul.f32 1.442695, %v2900_v40  ;;  %v2901_v33 = vsub.f32 %v14703_v43, %v2797_v25  ;;  %9197 = vmatprep.subr.bf16.mxu1 %v14704_v38 }
 0x39f   :  { %v2788_v22 = vpop.xlane.xlu0 %2787 }
 0x3a0   :  { %v3008_v27 = vmul.f32 1.442695, %v2901_v33  ;;  %v2898_v19 = vsub.f32 %v14705_v50, %v2788_v22  ;;  %9932 = vpow2.f32 %v3006_v47  ;;  %v14711_v47 = vld [vmem:[#allocation67_spill] sm:$0xff] }
 0x3a1   :  { %9198 = vmatpush3.bf16.msra.mxu1 %v14704_v38  ;;  %v2791_v13 = vpop.xlane.xlu1 %2790 }
 0x3a2   :  { %9934 = vpow2.f32 %v3008_v27  ;;  %v3002_v4 = vmul.f32 1.442695, %v2898_v19  ;;  %v2899_v3 = vsub.f32 %v14706_v1, %v2791_v13  ;;  %9223 = vmatprep.subr.bf16.mxu1 %v14707_v52 }
 0x3a3   :  { %v2806_v9 = vpop.xlane.xlu0 %2805 }
 0x3a4   :  { %v3004_v21 = vmul.f32 1.442695, %v2899_v3  ;;  %v2904_v28 = vsub.f32 %v14708_v59, %v2806_v9  ;;  %9936 = vpow2.f32 %v3002_v4  ;;  %v14715_v9 = vld [vmem:[#allocation44_spill] sm:$0xff] }
 0x3a5   :  { %v2809_v56 = vpop.xlane.xlu1 %2808 }
 0x3a6   :  { %9938 = vpow2.f32 %v3004_v21  ;;  %v3014_v35 = vmul.f32 1.442695, %v2904_v28  ;;  %v2905_v12 = vsub.f32 %v14709_v26, %v2809_v56  ;;  %v14718_v56 = vld [vmem:[#allocation47_spill] sm:$0xff] }
 0x3a7   :  { %v2800_v53 = vpop.xlane.xlu0 %2799 }
 0x3a8   :  { %v3016_v11 = vmul.f32 1.442695, %v2905_v12  ;;  %v2902_v37 = vsub.f32 %v14710_v45, %v2800_v53  ;;  %9940 = vpow2.f32 %v3014_v35 }
 0x3a9   :  { %v2803_v40 = vpop.xlane.xlu1 %2802 }
 0x3aa   :  { %9942 = vpow2.f32 %v3016_v11  ;;  %v3010_v25 = vmul.f32 1.442695, %v2902_v37  ;;  %v2903_v43 = vsub.f32 %v14711_v47, %v2803_v40  ;;  %v11962_v33 = vpop.eup %9932  ;;  %v14720_v11 = vld [vmem:[#allocation69_spill] sm:$0xff]  ;;  %v14721_v37 = vld [vmem:[#allocation46_spill] sm:$0xff] }
 0x3ab   :  { %v9860_v40 = vld [vmem:[%s14401_s3 + $0x60] sm:$0xff]  }
 0x3ac   :  { %v11964_v38 = vpop.eup %9934  ;;  %v3012_v22 = vmul.f32 1.442695, %v2903_v43  ;;  %9944 = vpow2.f32 %v3010_v25 }
 0x3ad   :  { %14712 = vst [vmem:[#allocation36_spill] sm:$0xff] %v11964_v38  ;;  %v3327_v27 = vpack.c.bf16 %v11964_v38, %v11962_v33 }
 0x3ae   :  { %9946 = vpow2.f32 %v3012_v22  ;;  %v11968_v50 = vpop.eup %9936 }
 0x3b0   :  { %v11970_v19 = vpop.eup %9938 }
 0x3b1   :  { %v3326_v13 = vpack.c.bf16 %v11970_v19, %v11968_v50 }
 0x3b2   :  { %v11974_v4 = vpop.eup %9940 }
 0x3b3   :  { %14713 = vst [vmem:[#allocation35_spill] sm:$0xff] %v11974_v4  ;;  %9199 = vmatprep.mubr.msk.bf16.mxu1 %vm283_vm0, %v3326_v13 }
 0x3b4   :  { %v11977_v1 = vpop.eup %9942  ;;  %9200 = vmatmul.mubr.msk.bf16.vlgmr.msra.gmra.mrb[176].mxu1 %vm283_vm0, %v3327_v27 }
 0x3b5   :  { %14714 = vst [vmem:[#allocation41_spill] sm:$0xff] %v11977_v1  ;;  %9224 = vmatpush3.bf16.msra.mxu1 %v14707_v52  ;;  %v3329_v3 = vpack.c.bf16 %v11977_v1, %v11974_v4  ;;  %v14719_v52 = vld [vmem:[#allocation68_spill] sm:$0xff]  ;;  %v9867_v1 = vld [vmem:[%s14401_s3 + $0x38] sm:$0xff]   ;;  %v14773_v4 = vld [vmem:[#allocation23_spill] sm:$0xff] }
 0x3b6   :  { %9225 = vmatprep.subr.bf16.mxu1 %v14715_v9  ;;  %v11984_v21 = vpop.eup %9944 }
 0x3b7   :  { %14716 = vst [vmem:[#allocation37_spill] sm:$0xff] %v11984_v21 }
 0x3b8   :  { %v11986_v59 = vpop.eup %9946 }
 0x3b9   :  { %14717 = vst [vmem:[#allocation39_spill] sm:$0xff] %v11986_v59  ;;  %9226 = vmatpush3.bf16.msra.mxu1 %v14715_v9  ;;  %v3328_v28 = vpack.c.bf16 %v11986_v59, %v11984_v21 }
 0x3ba   :  { %9227 = vmatprep.subr.bf16.mxu1 %v14718_v56 }
 0x3bb   :  { %v2842_v35 = vpop.xlane.xlu0 %2841  ;;  %9203 = vmatprep.mubr.msk.bf16.mxu1 %vm283_vm0, %v3328_v28  ;;  %v14722_v28 = vld [vmem:[#allocation48_spill] sm:$0xff] }
 0x3bc   :  { %v2916_v26 = vsub.f32 %v14719_v52, %v2842_v35  ;;  %9204 = vmatmul.mubr.msk.bf16.gmra.mrb[180].mxu1 %vm283_vm0, %v3329_v3 }
 0x3bd   :  { %9228 = vmatpush3.bf16.msra.mxu1 %v14718_v56  ;;  %v2845_v12 = vpop.xlane.xlu1 %2844 }
 0x3be   :  { %v3038_v53 = vmul.f32 1.442695, %v2916_v26  ;;  %v2917_v45 = vsub.f32 %v14720_v11, %v2845_v12  ;;  %9229 = vmatprep.subr.bf16.mxu1 %v14721_v37  ;;  %v14723_v26 = vld [vmem:[#allocation49_spill] sm:$0xff] }
 0x3bf   :  { %v2836_v25 = vpop.xlane.xlu0 %2835 }
 0x3c0   :  { %v3040_v47 = vmul.f32 1.442695, %v2917_v45  ;;  %v2914_v43 = vsub.f32 %v11741_v60, %v2836_v25  ;;  %9948 = vpow2.f32 %v3038_v53 }
 0x3c1   :  { %9230 = vmatpush3.bf16.msra.mxu1 %v14721_v37  ;;  %v2839_v22 = vpop.xlane.xlu1 %2838 }
 0x3c2   :  { %9950 = vpow2.f32 %v3040_v47  ;;  %v3034_v27 = vmul.f32 1.442695, %v2914_v43  ;;  %v2915_v13 = vsub.f32 %v11747_v61, %v2839_v22  ;;  %9311 = vmatprep.subr.bf16.mxu1 %v9860_v40 }
 0x3c3   :  { %v2734_v3 = vpop.xlane.xlu0 %2733 }
 0x3c4   :  { %v3036_v9 = vmul.f32 1.442695, %v2915_v13  ;;  %v2880_v56 = vsub.f32 %v14722_v28, %v2734_v3  ;;  %9952 = vpow2.f32 %v3034_v27 }
 0x3c5   :  { %v2737_v35 = vpop.xlane.xlu1 %2736 }
 0x3c6   :  { %9954 = vpow2.f32 %v3036_v9  ;;  %v2966_v52 = vmul.f32 1.442695, %v2880_v56  ;;  %v2881_v12 = vsub.f32 %v14723_v26, %v2737_v35 }
 0x3c7   :  { %v2848_v60 = vpop.xlane.xlu0 %2847 }
 0x3c8   :  { %v2968_v53 = vmul.f32 1.442695, %v2881_v12  ;;  %v2918_v11 = vsub.f32 %v11757_v15, %v2848_v60  ;;  %9956 = vpow2.f32 %v2966_v52  ;;  %v14727_v52 = vld [vmem:[#allocation55_spill] sm:$0xff] }
 0x3c9   :  { %v2851_v45 = vpop.xlane.xlu1 %2850 }
 0x3ca   :  { %9958 = vpow2.f32 %v2968_v53  ;;  %v3042_v37 = vmul.f32 1.442695, %v2918_v11  ;;  %v2919_v61 = vsub.f32 %v11763_v48, %v2851_v45  ;;  %v12008_v25 = vpop.eup %9948  ;;  %v14728_v53 = vld [vmem:[#allocation57_spill] sm:$0xff] }
 0x3cb   :  { %14724 = vst [vmem:[#allocation60_spill] sm:$0xff] %v12008_v25  ;;  %v2854_v47 = vpop.xlane.xlu0 %2853 }
 0x3cc   :  { %v12010_v43 = vpop.eup %9950  ;;  %v3044_v22 = vmul.f32 1.442695, %v2919_v61  ;;  %v2920_v27 = vsub.f32 %v11755_v20, %v2854_v47  ;;  %9960 = vpow2.f32 %v3042_v37 }
 0x3cd   :  { %14725 = vst [vmem:[#allocation62_spill] sm:$0xff] %v12010_v43  ;;  %v3335_v13 = vpack.c.bf16 %v12010_v43, %v12008_v25  ;;  %v2857_v3 = vpop.xlane.xlu1 %2856 }
 0x3ce   :  { %9962 = vpow2.f32 %v3044_v22  ;;  %v3046_v15 = vmul.f32 1.442695, %v2920_v27  ;;  %v2921_v9 = vsub.f32 %v11761_v30, %v2857_v3  ;;  %v12016_v28 = vpop.eup %9952  ;;  %v9861_v30 = vld [vmem:[%s14401_s3 + $0x68] sm:$0xff]   ;;  %v14731_v22 = vld [vmem:[#allocation54_spill] sm:$0xff] }
 0x3cf   :  { %14726 = vst [vmem:[#allocation38_spill] sm:$0xff] %v12016_v28  ;;  %v2764_v48 = vpop.xlane.xlu0 %2763 }
 0x3d0   :  { %v12018_v56 = vpop.eup %9954  ;;  %v3048_v35 = vmul.f32 1.442695, %v2921_v9  ;;  %v2890_v26 = vsub.f32 %v14727_v52, %v2764_v48  ;;  %9964 = vpow2.f32 %v3046_v15  ;;  %v14732_v48 = vld [vmem:[#allocation56_spill] sm:$0xff] }
 0x3d1   :  { %v2767_v12 = vpop.xlane.xlu1 %2766  ;;  %v3334_v20 = vpack.c.bf16 %v12018_v56, %v12016_v28  ;;  %v9862_v52 = vld [vmem:[%s14401_s3 + $0x70] sm:$0xff]  }
 0x3d2   :  { %9966 = vpow2.f32 %v3048_v35  ;;  %v2986_v60 = vmul.f32 1.442695, %v2890_v26  ;;  %v2891_v11 = vsub.f32 %v14728_v53, %v2767_v12  ;;  %v12027_v45 = vpop.eup %9956 }
 0x3d3   :  { %14729 = vst [vmem:[#allocation61_spill] sm:$0xff] %v12027_v45  ;;  %9231 = vmatprep.mubr.msk.bf16.mxu1 %vm283_vm0, %v3334_v20  ;;  %v2770_v37 = vpop.xlane.xlu0 %2769 }
 0x3d4   :  { %v12030_v61 = vpop.eup %9958  ;;  %v2988_v47 = vmul.f32 1.442695, %v2891_v11  ;;  %v2892_v27 = vsub.f32 %v14731_v22, %v2770_v37  ;;  %9232 = vmatmul.mubr.msk.bf16.vlgmr.msra.gmra.mrb[184].mxu1 %vm283_vm0, %v3335_v13  ;;  %9968 = vpow2.f32 %v2986_v60  ;;  %v14735_v60 = vld [vmem:[#allocation58_spill] sm:$0xff] }
 0x3d5   :  { %14730 = vst [vmem:[#allocation63_spill] sm:$0xff] %v12030_v61  ;;  %v2773_v3 = vpop.xlane.xlu1 %2772  ;;  %v3317_v15 = vpack.c.bf16 %v12030_v61, %v12027_v45  ;;  %9312 = vmatpush3.bf16.msra.mxu1 %v9860_v40  ;;  %v14768_v61 = vld [vmem:[#allocation16_spill] sm:$0xff] }
 0x3d6   :  { %9970 = vpow2.f32 %v2988_v47  ;;  %v2990_v9 = vmul.f32 1.442695, %v2892_v27  ;;  %v2893_v35 = vsub.f32 %v14732_v48, %v2773_v3  ;;  %9313 = vmatprep.subr.bf16.mxu1 %v9861_v30  ;;  %v12040_v26 = vpop.eup %9960  ;;  %v14736_v47 = vld [vmem:[#allocation59_spill] sm:$0xff]  ;;  %v9863_v27 = vld [vmem:[%s14401_s3 + $0x78] sm:$0xff]  }
 0x3d7   :  { %14733 = vst [vmem:[#allocation45_spill] sm:$0xff] %v12040_v26  ;;  %9156 = vmatmul.mubr.msk.bf16.gmra.mrb[172].mxu0 %vm283_vm0, %v3317_v15  ;;  %v2776_v13 = vpop.xlane.xlu0 %2775 }
 0x3d8   :  { %v12043_v12 = vpop.eup %9962  ;;  %v2992_v20 = vmul.f32 1.442695, %v2893_v35  ;;  %v2894_v53 = vsub.f32 %v14735_v60, %v2776_v13  ;;  %9972 = vpow2.f32 %v2990_v9 }
 0x3d9   :  { %14734 = vst [vmem:[#allocation64_spill] sm:$0xff] %v12043_v12  ;;  %v2779_v40 = vpop.xlane.xlu1 %2778  ;;  %v3336_v11 = vpack.c.bf16 %v12043_v12, %v12040_v26  ;;  %9314 = vmatpush3.bf16.msra.mxu1 %v9861_v30  ;;  %v9871_v12 = vld [vmem:[%s14401_s3 + $0xb8] sm:$0xff]   ;;  %v14770_v26 = vld [vmem:[#allocation18_spill] sm:$0xff] }
 0x3da   :  { %9974 = vpow2.f32 %v2992_v20  ;;  %v2994_v37 = vmul.f32 1.442695, %v2894_v53  ;;  %v2895_v22 = vsub.f32 %v14736_v47, %v2779_v40  ;;  %9315 = vmatprep.subr.bf16.mxu1 %v9862_v52  ;;  %v12052_v3 = vpop.eup %9964 }
 0x3db   :  { %14737 = vst [vmem:[#allocation66_spill] sm:$0xff] %v12052_v3  ;;  %v2782_v15 = vpop.xlane.xlu0 %2781  ;;  %9235 = vmatprep.mubr.msk.bf16.mxu1 %vm283_vm0, %v3336_v11 }
 0x3dc   :  { %v12055_v9 = vpop.eup %9966  ;;  %v2996_v48 = vmul.f32 1.442695, %v2895_v22  ;;  %v2896_v35 = vsub.f32 %v11683_v46, %v2782_v15  ;;  %9976 = vpow2.f32 %v2994_v37  ;;  %v14739_v37 = vld [vmem:[#allocation3_spill] sm:$0xff] }
 0x3dd   :  { %14738 = vst [vmem:[#allocation65_spill] sm:$0xff] %v12055_v9  ;;  %v2785_v30 = vpop.xlane.xlu1 %2784  ;;  %v3337_v13 = vpack.c.bf16 %v12055_v9, %v12052_v3  ;;  %9316 = vmatpush3.bf16.msra.mxu1 %v9862_v52  ;;  %v14771_v3 = vld [vmem:[#allocation21_spill] sm:$0xff] }
 0x3de   :  { %9978 = vpow2.f32 %v2996_v48  ;;  %v2998_v20 = vmul.f32 1.442695, %v2896_v35  ;;  %v2897_v60 = vsub.f32 %v11687_v41, %v2785_v30  ;;  %9317 = vmatprep.subr.bf16.mxu1 %v9863_v27  ;;  %v12061_v53 = vpop.eup %9968 }
 0x3df   :  { %v2812_v40 = vpop.xlane.xlu0 %2811  ;;  %9236 = vmatmul.mubr.msk.bf16.gmra.mrb[188].mxu1 %vm283_vm0, %v3337_v13 }
 0x3e0   :  { %v12064_v11 = vpop.eup %9970  ;;  %v3000_v47 = vmul.f32 1.442695, %v2897_v60  ;;  %v2906_v46 = vsub.f32 %v11725_v49, %v2812_v40  ;;  %9319 = vmatprep.mubr.msk.bf16.mxu1 %vm283_vm0, %v14739_v37  ;;  %9980 = vpow2.f32 %v2998_v20 }
 0x3e1   :  { %v2815_v52 = vpop.xlane.xlu1 %2814  ;;  %v3322_v22 = vpack.c.bf16 %v12064_v11, %v12061_v53  ;;  %9318 = vmatpush3.bf16.msra.mxu1 %v9863_v27 }
 0x3e2   :  { %9982 = vpow2.f32 %v3000_v47  ;;  %v3018_v41 = vmul.f32 1.442695, %v2906_v46  ;;  %v2907_v15 = vsub.f32 %v11729_v58, %v2815_v52  ;;  %v12072_v48 = vpop.eup %9972  ;;  %v14742_v46 = vld [vmem:[#allocation2_spill] sm:$0xff] }
 0x3e3   :  { %v2818_v35 = vpop.xlane.xlu0 %2817  ;;  %9183 = vmatprep.mubr.msk.bf16.mxu0 %vm283_vm0, %v3322_v22 }
 0x3e4   :  { %v12075_v30 = vpop.eup %9974  ;;  %v3020_v49 = vmul.f32 1.442695, %v2907_v15  ;;  %v2908_v13 = vsub.f32 %v11723_v0, %v2818_v35  ;;  %9984 = vpow2.f32 %v3018_v41  ;;  %v14744_v41 = vld [vmem:[#allocation5_spill] sm:$0xff] }
 0x3e5   :  { %14740 = vst [vmem:[#allocation67_spill] sm:$0xff] %v12075_v30  ;;  %v3323_v20 = vpack.c.bf16 %v12075_v30, %v12072_v48  ;;  %v2821_v60 = vpop.xlane.xlu1 %2820 }
 0x3e6   :  { %9986 = vpow2.f32 %v3020_v49  ;;  %v3022_v27 = vmul.f32 1.442695, %v2908_v13  ;;  %v2909_v40 = vsub.f32 %v11727_v5, %v2821_v60  ;;  %v12081_v58 = vpop.eup %9976  ;;  %v14745_v5 = vld [vmem:[#allocation40_spill] sm:$0xff] }
 0x3e7   :  { %14741 = vst [vmem:[#allocation44_spill] sm:$0xff] %v12081_v58  ;;  %v2824_v47 = vpop.xlane.xlu0 %2823  ;;  %9184 = vmatmul.mubr.msk.bf16.vlgmr.msra.gmra.mrb[176].mxu0 %vm283_vm0, %v3323_v20  ;;  %9320 = vmatmul.mubr.msk.bf16.vlgmr.msra.gmra.mrb[192].mxu1 %vm283_vm0, %v14742_v46 }
 0x3e8   :  { %v12086_v52 = vpop.eup %9978  ;;  %v3024_v0 = vmul.f32 1.442695, %v2909_v40  ;;  %v2910_v22 = vsub.f32 %v11733_v8, %v2824_v47  ;;  %9208 = vmatpush3.bf16.msra.mxu0 %v14697_v55  ;;  %9323 = vmatprep.mubr.msk.bf16.mxu1 %vm283_vm0, %v14744_v41  ;;  %9988 = vpow2.f32 %v3022_v27  ;;  %v14748_v40 = vld [vmem:[#allocation43_spill] sm:$0xff] }
 0x3e9   :  { %14743 = vst [vmem:[#allocation47_spill] sm:$0xff] %v12086_v52  ;;  %9209 = vmatprep.subr.bf16.mxu0 %v14745_v5  ;;  %v2827_v15 = vpop.xlane.xlu1 %2826  ;;  %v3324_v35 = vpack.c.bf16 %v12086_v52, %v12081_v58 }
 0x3ea   :  { %9990 = vpow2.f32 %v3024_v0  ;;  %v3026_v49 = vmul.f32 1.442695, %v2910_v22  ;;  %v2911_v13 = vsub.f32 %v11737_v34, %v2827_v15  ;;  %v12096_v20 = vpop.eup %9980 }
 0x3eb   :  { %14746 = vst [vmem:[#allocation68_spill] sm:$0xff] %v12096_v20  ;;  %v2830_v60 = vpop.xlane.xlu0 %2829  ;;  %9187 = vmatprep.mubr.msk.bf16.mxu0 %vm283_vm0, %v3324_v35  ;;  %v14749_v35 = vld [vmem:[#allocation4_spill] sm:$0xff] }
 0x3ec   :  { %v12099_v8 = vpop.eup %9982  ;;  %v3028_v55 = vmul.f32 1.442695, %v2911_v13  ;;  %v2912_v27 = vsub.f32 %v11731_v29, %v2830_v60  ;;  %9210 = vmatpush3.bf16.msra.mxu0 %v14745_v5  ;;  %9992 = vpow2.f32 %v3026_v49  ;;  %v14750_v49 = vld [vmem:[#allocation7_spill] sm:$0xff]  ;;  %v14751_v13 = vld [vmem:[#allocation42_spill] sm:$0xff] }
 0x3ed   :  { %14747 = vst [vmem:[#allocation69_spill] sm:$0xff] %v12099_v8  ;;  %9211 = vmatprep.subr.bf16.mxu0 %v14748_v40  ;;  %v2833_v47 = vpop.xlane.xlu1 %2832  ;;  %v3325_v0 = vpack.c.bf16 %v12099_v8, %v12096_v20  ;;  %v9864_v60 = vld [vmem:[%s14401_s3 + $0x20] sm:$0xff]   ;;  %v14760_v8 = vld [vmem:[#allocation8_spill] sm:$0xff] }
 0x3ee   :  { %9994 = vpow2.f32 %v3028_v55  ;;  %v3030_v34 = vmul.f32 1.442695, %v2912_v27  ;;  %v2913_v22 = vsub.f32 %v11735_v24, %v2833_v47  ;;  %v12107_v15 = vpop.eup %9984  ;;  %v9865_v47 = vld [vmem:[%s14401_s3 + $0x28] sm:$0xff]  }
 0x3ef   :  { %9188 = vmatmul.mubr.msk.bf16.gmra.mrb[180].mxu0 %vm283_vm0, %v3325_v0  ;;  %9324 = vmatmul.mubr.msk.bf16.gmra.mrb[196].mxu1 %vm283_vm0, %v14749_v35 }
 0x3f0   :  { %v12112_v29 = vpop.eup %9986  ;;  %v3032_v5 = vmul.f32 1.442695, %v2913_v22  ;;  %9212 = vmatpush3.bf16.msra.mxu0 %v14748_v40  ;;  %9327 = vmatprep.mubr.msk.bf16.mxu1 %vm283_vm0, %v14750_v49  ;;  %9996 = vpow2.f32 %v3030_v34  ;;  %v14755_v34 = vld [vmem:[#allocation6_spill] sm:$0xff] }
 0x3f1   :  { %9213 = vmatprep.subr.bf16.mxu0 %v14751_v13  ;;  %v3330_v24 = vpack.c.bf16 %v12112_v29, %v12107_v15 }
 0x3f2   :  { %9998 = vpow2.f32 %v3032_v5  ;;  %v12123_v55 = vpop.eup %9988  ;;  %v14757_v5 = vld [vmem:[#allocation9_spill] sm:$0xff] }
 0x3f3   :  { %14752 = vst [vmem:[#allocation46_spill] sm:$0xff] %v12123_v55  ;;  %9215 = vmatprep.mubr.msk.bf16.mxu0 %vm283_vm0, %v3330_v24  ;;  %v9866_v24 = vld [vmem:[%s14401_s3 + $0x30] sm:$0xff]  }
 0x3f4   :  { %v12126_v27 = vpop.eup %9990  ;;  %9214 = vmatpush3.bf16.msra.mxu0 %v14751_v13 }
 0x3f5   :  { %14753 = vst [vmem:[#allocation48_spill] sm:$0xff] %v12126_v27  ;;  %v3331_v40 = vpack.c.bf16 %v12126_v27, %v12123_v55  ;;  %9239 = vmatprep.subr.bf16.mxu0 %v9864_v60  ;;  %v14788_v55 = vld [vmem:[#allocation28_spill] sm:$0xff] }
 0x3f6   :  { %v12134_v0 = vpop.eup %9992 }
 0x3f7   :  { %14754 = vst [vmem:[#allocation49_spill] sm:$0xff] %v12134_v0  ;;  %9216 = vmatmul.mubr.msk.bf16.vlgmr.msra.gmra.mrb[184].mxu0 %vm283_vm0, %v3331_v40  ;;  %9328 = vmatmul.mubr.msk.bf16.gmra.mrb[200].mxu1 %vm283_vm0, %v14755_v34 }
 0x3f8   :  { %v12139_v22 = vpop.eup %9994  ;;  %9240 = vmatpush3.bf16.msra.mxu0 %v9864_v60  ;;  %9331 = vmatprep.mubr.msk.bf16.mxu1 %vm283_vm0, %v14757_v5 }
 0x3f9   :  { %14756 = vst [vmem:[#allocation55_spill] sm:$0xff] %v12139_v22  ;;  %v3332_v13 = vpack.c.bf16 %v12139_v22, %v12134_v0  ;;  %9241 = vmatprep.subr.bf16.mxu0 %v9865_v47  ;;  %v14767_v22 = vld [vmem:[#allocation17_spill] sm:$0xff] }
 0x3fa   :  { %v12148_v9 = vpop.eup %9996 }
 0x3fb   :  { %14758 = vst [vmem:[#allocation57_spill] sm:$0xff] %v12148_v9  ;;  %9219 = vmatprep.mubr.msk.bf16.mxu0 %vm283_vm0, %v3332_v13  ;;  %v14761_v13 = vld [vmem:[#allocation11_spill] sm:$0xff] }
 0x3fc   :  { %v12151_v40 = vpop.eup %9998  ;;  %9242 = vmatpush3.bf16.msra.mxu0 %v9865_v47  ;;  %v9868_v47 = vld [vmem:[%s14401_s3 + $0xa0] sm:$0xff]  }
 0x3fd   :  { %14759 = vst [vmem:[#allocation54_spill] sm:$0xff] %v12151_v40  ;;  %v3333_v60 = vpack.c.bf16 %v12151_v40, %v12148_v9  ;;  %9243 = vmatprep.subr.bf16.mxu0 %v9866_v24  ;;  %v14763_v40 = vld [vmem:[#allocation13_spill] sm:$0xff]  ;;  %v3055_v9 = vpop.xlane.xlu1 %3054 }
 0x3ff   :  { %9220 = vmatmul.mubr.msk.bf16.gmra.mrb[188].mxu0 %vm283_vm0, %v3333_v60  ;;  %9332 = vmatmul.mubr.msk.bf16.gmra.mrb[204].mxu1 %vm283_vm0, %v14760_v8  ;;  %v9869_v60 = vld [vmem:[%s14401_s3 + $0xa8] sm:$0xff]  }
 0x400   :  { %9244 = vmatpush3.bf16.msra.mxu0 %v9866_v24  ;;  %9247 = vmatprep.mubr.msk.bf16.mxu0 %vm283_vm0, %v14739_v37  ;;  %v14762_v24 = vld [vmem:[#allocation10_spill] sm:$0xff] }
 0x401   :  { %9335 = vmatprep.mubr.msk.bf16.mxu1 %vm283_vm0, %v14761_v13  ;;  %9245 = vmatprep.subr.bf16.mxu0 %v9867_v1  ;;  %v3082_v0 = vpop.xlane.xlu1 %3081 }
 0x404   :  { %9246 = vmatpush3.bf16.msra.mxu0 %v9867_v1  ;;  %v9870_v1 = vld [vmem:[%s14401_s3 + $0xb0] sm:$0xff]  }
 0x405   :  { %9383 = vmatprep.subr.bf16.mxu0 %v9868_v47  ;;  %v3079_v21 = vpop.xlane.xlu1 %3078 }
 0x407   :  { %9248 = vmatmul.mubr.msk.bf16.vlgmr.msra.gmra.mrb[192].mxu0 %vm283_vm0, %v14742_v46  ;;  %9336 = vmatmul.mubr.msk.bf16.gmra.mrb[208].mxu1 %vm283_vm0, %v14762_v24 }
 0x408   :  { %9251 = vmatprep.mubr.msk.bf16.mxu0 %vm283_vm0, %v14744_v41  ;;  %9339 = vmatprep.mubr.msk.bf16.mxu1 %vm283_vm0, %v14763_v40 }
 0x409   :  { %9384 = vmatpush3.bf16.msra.mxu0 %v9868_v47  ;;  %v14765_v47 = vld [vmem:[#allocation15_spill] sm:$0xff] }
 0x40a   :  { %9385 = vmatprep.subr.bf16.mxu0 %v9869_v60 }
 0x40d   :  { %9386 = vmatpush3.bf16.msra.mxu0 %v9869_v60  ;;  %v14766_v60 = vld [vmem:[#allocation14_spill] sm:$0xff] }
 0x40e   :  { %9387 = vmatprep.subr.bf16.mxu0 %v9870_v1 }
 0x40f   :  { %9252 = vmatmul.mubr.msk.bf16.gmra.mrb[196].mxu0 %vm283_vm0, %v14749_v35  ;;  %9340 = vmatmul.mubr.msk.bf16.gmra.mrb[212].mxu1 %vm283_vm0, %v14764_v44 }
 0x410   :  { %9255 = vmatprep.mubr.msk.bf16.mxu0 %vm283_vm0, %v14750_v49  ;;  %9343 = vmatprep.mubr.msk.bf16.mxu1 %vm283_vm0, %v14765_v47 }
 0x411   :  { %9388 = vmatpush3.bf16.msra.mxu0 %v9870_v1  ;;  %v3058_v1 = vpop.xlane.xlu0 %3057 }
 0x412   :  { %9389 = vmatprep.subr.bf16.mxu0 %v9871_v12 }
 0x415   :  { %9390 = vmatpush3.bf16.msra.mxu0 %v9871_v12  ;;  %v14769_v12 = vld [vmem:[#allocation19_spill] sm:$0xff]  ;;  %v3052_v51 = vpop.xlane.xlu0 %3051 }
 0x416   :  { %10000 = vrcp.f32 %v3052_v51  ;;  %v14774_v51 = vld [vmem:[#allocation22_spill] sm:$0xff] }
 0x417   :  { %9256 = vmatmul.mubr.msk.bf16.gmra.mrb[200].mxu0 %vm283_vm0, %v14755_v34  ;;  %9344 = vmatmul.mubr.msk.bf16.gmra.mrb[216].mxu1 %vm283_vm0, %v14766_v60  ;;  %10002 = vrcp.f32 %v3058_v1 }
 0x418   :  { %9259 = vmatprep.mubr.msk.bf16.mxu0 %vm283_vm0, %v14757_v5  ;;  %9347 = vmatprep.mubr.msk.bf16.mxu1 %vm283_vm0, %v14767_v22  ;;  %10004 = vrcp.f32 %v3055_v9  ;;  %v14775_v9 = vld [vmem:[#allocation25_spill] sm:$0xff] }
 0x419   :  { %v3076_v14 = vpop.xlane.xlu0 %3075 }
 0x41a   :  { %10006 = vrcp.f32 %v3076_v14 }
 0x41b   :  { %10008 = vrcp.f32 %v3082_v0 }
 0x41c   :  { %10010 = vrcp.f32 %v3079_v21 }
 0x41f   :  { %9260 = vmatmul.mubr.msk.bf16.gmra.mrb[204].mxu0 %vm283_vm0, %v14760_v8  ;;  %9348 = vmatmul.mubr.msk.bf16.gmra.mrb[220].mxu1 %vm283_vm0, %v14768_v61 }
 0x420   :  { %9263 = vmatprep.mubr.msk.bf16.mxu0 %vm283_vm0, %v14761_v13  ;;  %9351 = vmatprep.mubr.msk.bf16.mxu1 %vm283_vm0, %v14769_v12  ;;  %v10001_v1 = vpop.eup %10000 }
 0x421   :  { %v10003_v43 = vpop.eup %10002 }
 0x422   :  { %v10005_v36 = vpop.eup %10004 }
 0x427   :  { %9264 = vmatmul.mubr.msk.bf16.gmra.mrb[208].mxu0 %vm283_vm0, %v14762_v24  ;;  %9352 = vmatmul.mubr.msk.bf16.gmra.mrb[224].mxu1 %vm283_vm0, %v14770_v26 }
 0x428   :  { %9267 = vmatprep.mubr.msk.bf16.mxu0 %vm283_vm0, %v14763_v40  ;;  %9355 = vmatprep.mubr.msk.bf16.mxu1 %vm283_vm0, %v14771_v3 }
 0x42f   :  { %9268 = vmatmul.mubr.msk.bf16.gmra.mrb[212].mxu0 %vm283_vm0, %v14764_v44  ;;  %9356 = vmatmul.mubr.msk.bf16.gmra.mrb[228].mxu1 %vm283_vm0, %v14772_v6 }
 0x430   :  { %9271 = vmatprep.mubr.msk.bf16.mxu0 %vm283_vm0, %v14765_v47  ;;  %9359 = vmatprep.mubr.msk.bf16.mxu1 %vm283_vm0, %v14773_v4 }
 0x437   :  { %v9121_v20 = vpop.f32.mrb[160].mxu0  ;;  %9272 = vmatmul.mubr.msk.bf16.gmra.mrb[216].mxu0 %vm283_vm0, %v14766_v60  ;;  %9360 = vmatmul.mubr.msk.bf16.gmra.mrb[232].mxu1 %vm283_vm0, %v14774_v51 }
 0x438   :  { %v3384_v45 = vpop.f32.mrb[161].mxu0  ;;  %9275 = vmatprep.mubr.msk.bf16.mxu0 %vm283_vm0, %v14767_v22  ;;  %9363 = vmatprep.mubr.msk.bf16.mxu1 %vm283_vm0, %v14775_v9  ;;  %v3956_v27 = vmul.f32 %v10003_v43, %v9121_v20 }
 0x439   :  { %v3954_v59 = vmul.f32 %v10001_v1, %v3384_v45  ;;  %v12233_v63 = vpop.f32.mrb[162].mxu0  ;;  %v14778_v45 = vld [vmem:[#allocation24_spill] sm:$0xff] }
 0x43a   :  { %14776 = vst [vmem:[#allocation56_spill] sm:$0xff] %v12233_v63  ;;  %v3387_v52 = vpop.f32.mrb[163].mxu0  ;;  %v4021_v58 = vsel %vm1953_vm1, %v3956_v27, 0.0  ;;  %v14786_v27 = vld [vmem:[#allocation29_spill] sm:$0xff] }
 0x43b   :  { %v3955_v16 = vmul.f32 %v10005_v36, %v3387_v52  ;;  %v4018_v25 = vsel %vm1953_vm1, %v3954_v59, 0.0 }
 0x43d   :  { %v4019_v32 = vsel %vm1953_vm1, %v3955_v16, 0.0  ;;  %v14781_v16 = vld [vmem:[#allocation27_spill] sm:$0xff] }
 0x43e   :  { %v4020_v54 = vadd.f32 %v4019_v32, %v4018_v25  ;;  %v10007_v25 = vpop.eup %10006 }
 0x43f   :  { %v12238_v57 = vpop.f32.mrb[164].mxu0  ;;  %9276 = vmatmul.mubr.msk.bf16.gmra.mrb[220].mxu0 %vm283_vm0, %v14768_v61  ;;  %9364 = vmatmul.mubr.msk.bf16.gmra.mrb[236].mxu1 %vm283_vm0, %v14778_v45 }
 0x440   :  { %14777 = vst [vmem:[#allocation58_spill] sm:$0xff] %v12238_v57  ;;  %v12244_v36 = vadd.f32 %v4021_v58, %v4020_v54  ;;  %v12246_v14 = vpop.f32.mrb[165].mxu0  ;;  %9279 = vmatprep.mubr.msk.bf16.mxu0 %vm283_vm0, %v14769_v12  ;;  %9367 = vmatprep.mubr.msk.bf16.mxu1 %vm283_vm0, %v14781_v16  ;;  %v14784_v54 = vld [vmem:[#allocation26_spill] sm:$0xff]  ;;  %v10009_v58 = vpop.eup %10008 }
 0x441   :  { %14780 = vst [vmem:[#allocation3_spill] sm:$0xff] %v12246_v14  ;;  %v12252_v32 = vpop.f32.mrb[166].mxu0  ;;  %v10011_v0 = vpop.eup %10010 }
 0x442   :  { %14779 = vst [vmem:[#allocation59_spill] sm:$0xff] %v12244_v36  ;;  %14782 = vst [vmem:[#allocation2_spill] sm:$0xff] %v12252_v32  ;;  %v12254_v21 = vpop.f32.mrb[167].mxu0  ;;  %v3100_v36 = vpop.xlane.xlu0 %3099 }
 0x443   :  { %14783 = vst [vmem:[#allocation5_spill] sm:$0xff] %v12254_v21  ;;  %10012 = vrcp.f32 %v3100_v36  ;;  %v14795_v36 = vld [vmem:[#allocation33_spill] sm:$0xff] }
 0x446   :  { %v9137_v59 = vpop.f32.mrb[160].mxu1 }
 0x447   :  { %v3461_v43 = vpop.f32.mrb[161].mxu1  ;;  %9280 = vmatmul.mubr.msk.bf16.gmra.mrb[224].mxu0 %vm283_vm0, %v14770_v26  ;;  %9368 = vmatmul.mubr.msk.bf16.gmra.mrb[240].mxu1 %vm283_vm0, %v14784_v54  ;;  %v3964_v32 = vmul.f32 %v10009_v58, %v9137_v59 }
 0x448   :  { %v3962_v52 = vmul.f32 %v10007_v25, %v3461_v43  ;;  %v12260_v20 = vpop.f32.mrb[162].mxu1  ;;  %9283 = vmatprep.mubr.msk.bf16.mxu0 %vm283_vm0, %v14771_v3  ;;  %9371 = vmatprep.mubr.msk.bf16.mxu1 %vm283_vm0, %v14786_v27  ;;  %v3103_v43 = vpop.xlane.xlu1 %3102 }
 0x449   :  { %14785 = vst [vmem:[#allocation40_spill] sm:$0xff] %v12260_v20  ;;  %v3464_v1 = vpop.f32.mrb[163].mxu1  ;;  %v4042_v25 = vsel %vm1953_vm1, %v3964_v32, 0.0  ;;  %10014 = vrcp.f32 %v3103_v43 }
 0x44a   :  { %v3963_v57 = vmul.f32 %v10011_v0, %v3464_v1  ;;  %v4039_v21 = vsel %vm1953_vm1, %v3962_v52, 0.0  ;;  %v3124_v1 = vpop.xlane.xlu0 %3123 }
 0x44b   :  { %10016 = vrcp.f32 %v3124_v1 }
 0x44c   :  { %v4040_v14 = vsel %vm1953_vm1, %v3963_v57, 0.0  ;;  %v14790_v57 = vld [vmem:[#allocation31_spill] sm:$0xff] }
 0x44d   :  { %v4041_v63 = vadd.f32 %v4040_v14, %v4039_v21  ;;  %v14794_v21 = vld [vmem:[#allocation30_spill] sm:$0xff]  ;;  %v10013_v52 = vpop.eup %10012 }
 0x44f   :  { %v12269_v20 = vadd.f32 %v4042_v25, %v4041_v63  ;;  %9284 = vmatmul.mubr.msk.bf16.gmra.mrb[228].mxu0 %vm283_vm0, %v14772_v6  ;;  %9372 = vmatmul.mubr.msk.bf16.gmra.mrb[244].mxu1 %vm283_vm0, %v14788_v55 }
 0x450   :  { %v12275_v59 = vpop.f32.mrb[164].mxu1  ;;  %9287 = vmatprep.mubr.msk.bf16.mxu0 %vm283_vm0, %v14773_v4  ;;  %9375 = vmatprep.mubr.msk.bf16.mxu1 %vm283_vm0, %v14790_v57 }
 0x451   :  { %14787 = vst [vmem:[#allocation43_spill] sm:$0xff] %v12269_v20  ;;  %14789 = vst [vmem:[#allocation4_spill] sm:$0xff] %v12275_v59  ;;  %v12281_v14 = vpop.f32.mrb[165].mxu1 }
 0x452   :  { %14791 = vst [vmem:[#allocation7_spill] sm:$0xff] %v12281_v14  ;;  %v12283_v63 = vpop.f32.mrb[166].mxu1 }
 0x453   :  { %14792 = vst [vmem:[#allocation42_spill] sm:$0xff] %v12283_v63  ;;  %v12285_v32 = vpop.f32.mrb[167].mxu1  ;;  %v10015_v63 = vpop.eup %10014 }
 0x454   :  { %14793 = vst [vmem:[#allocation6_spill] sm:$0xff] %v12285_v32  ;;  %v3127_v32 = vpop.xlane.xlu1 %3126 }
 0x455   :  { %10018 = vrcp.f32 %v3127_v32 }
 0x457   :  { %9288 = vmatmul.mubr.msk.bf16.gmra.mrb[232].mxu0 %vm283_vm0, %v14774_v51  ;;  %9376 = vmatmul.mubr.msk.bf16.gmra.mrb[248].mxu1 %vm283_vm0, %v14794_v21 }
 0x458   :  { %9291 = vmatprep.mubr.msk.bf16.mxu0 %vm283_vm0, %v14775_v9  ;;  %9379 = vmatprep.mubr.msk.bf16.mxu1 %vm283_vm0, %v14795_v36 }
 0x459   :  { %v12295_v58 = vpop.f32.mrb[168].mxu0 }
 0x45a   :  { %14796 = vst [vmem:[#allocation9_spill] sm:$0xff] %v12295_v58  ;;  %v3538_v0 = vpop.f32.mrb[169].mxu0 }
 0x45b   :  { %v3970_v25 = vmul.f32 %v10013_v52, %v3538_v0  ;;  %v12297_v43 = vpop.f32.mrb[170].mxu0 }
 0x45c   :  { %14797 = vst [vmem:[#allocation8_spill] sm:$0xff] %v12297_v43  ;;  %v3541_v59 = vpop.f32.mrb[171].mxu0 }
 0x45d   :  { %v3971_v14 = vmul.f32 %v10015_v63, %v3541_v59  ;;  %v4060_v20 = vsel %vm1953_vm1, %v3970_v25, 0.0  ;;  %v10017_v59 = vpop.eup %10016 }
 0x45f   :  { %v4061_v38 = vsel %vm1953_vm1, %v3971_v14, 0.0  ;;  %9292 = vmatmul.mubr.msk.bf16.gmra.mrb[236].mxu0 %vm283_vm0, %v14778_v45  ;;  %9380 = vmatmul.mubr.msk.bf16.gmra.mrb[252].mxu1 %vm283_vm0, %v14798_v42  ;;  %v10019_v1 = vpop.eup %10018 }
 0x460   :  { %v12305_v58 = vadd.f32 %v4061_v38, %v4060_v20  ;;  %9295 = vmatprep.mubr.msk.bf16.mxu0 %vm283_vm0, %v14781_v16 }
 0x462   :  { %14799 = vst [vmem:[#allocation11_spill] sm:$0xff] %v12305_v58 }
 0x467   :  { %v12309_v52 = vpop.f32.mrb[168].mxu1  ;;  %9296 = vmatmul.mubr.msk.bf16.gmra.mrb[240].mxu0 %vm283_vm0, %v14784_v54 }
 0x468   :  { %14800 = vst [vmem:[#allocation10_spill] sm:$0xff] %v12309_v52  ;;  %v3615_v63 = vpop.f32.mrb[169].mxu1  ;;  %9299 = vmatprep.mubr.msk.bf16.mxu0 %vm283_vm0, %v14786_v27 }
 0x469   :  { %v3978_v14 = vmul.f32 %v10017_v59, %v3615_v63  ;;  %v12315_v0 = vpop.f32.mrb[170].mxu1 }
 0x46a   :  { %14801 = vst [vmem:[#allocation13_spill] sm:$0xff] %v12315_v0  ;;  %v3618_v32 = vpop.f32.mrb[171].mxu1 }
 0x46b   :  { %v3979_v38 = vmul.f32 %v10019_v1, %v3618_v32  ;;  %v4081_v20 = vsel %vm1953_vm1, %v3978_v14, 0.0 }
 0x46d   :  { %v4082_v25 = vsel %vm1953_vm1, %v3979_v38, 0.0 }
 0x46e   :  { %v12319_v43 = vadd.f32 %v4082_v25, %v4081_v20 }
 0x46f   :  { %v12321_v52 = vpop.f32.mrb[172].mxu1  ;;  %9300 = vmatmul.mubr.msk.bf16.gmra.mrb[244].mxu0 %vm283_vm0, %v14788_v55 }
 0x470   :  { %14802 = vst [vmem:[#allocation12_spill] sm:$0xff] %v12319_v43  ;;  %14803 = vst [vmem:[#allocation15_spill] sm:$0xff] %v12321_v52  ;;  %v12325_v58 = vpop.f32.mrb[173].mxu1  ;;  %9303 = vmatprep.mubr.msk.bf16.mxu0 %vm283_vm0, %v14790_v57 }
 0x471   :  { %14804 = vst [vmem:[#allocation14_spill] sm:$0xff] %v12325_v58  ;;  %v12329_v59 = vpop.f32.mrb[174].mxu1 }
 0x472   :  { %14805 = vst [vmem:[#allocation17_spill] sm:$0xff] %v12329_v59  ;;  %v12331_v63 = vpop.f32.mrb[175].mxu1 }
 0x473   :  { %14806 = vst [vmem:[#allocation16_spill] sm:$0xff] %v12331_v63 }
 0x477   :  { %9304 = vmatmul.mubr.msk.bf16.gmra.mrb[248].mxu0 %vm283_vm0, %v14794_v21 }
 0x478   :  { %9307 = vmatprep.mubr.msk.bf16.mxu0 %vm283_vm0, %v14795_v36 }
 0x47f   :  { %9308 = vmatmul.mubr.msk.bf16.gmra.mrb[252].mxu0 %vm283_vm0, %v14798_v42 }
 0x480   :  { %9391 = vmatprep.mubr.msk.bf16.mxu0 %vm283_vm0, %v14739_v37 }
 0x487   :  { %v12341_v14 = vpop.f32.mrb[176].mxu1  ;;  %9392 = vmatmul.mubr.msk.bf16.vlgmr.msra.gmra.mrb[0].mxu0 %vm283_vm0, %v14742_v46 }
 0x488   :  { %14807 = vst [vmem:[#allocation19_spill] sm:$0xff] %v12341_v14  ;;  %v12345_v1 = vpop.f32.mrb[177].mxu1  ;;  %9395 = vmatprep.mubr.msk.bf16.mxu0 %vm283_vm0, %v14744_v41 }
 0x489   :  { %14808 = vst [vmem:[#allocation18_spill] sm:$0xff] %v12345_v1  ;;  %v12349_v32 = vpop.f32.mrb[178].mxu1 }
 0x48a   :  { %14809 = vst [vmem:[#allocation21_spill] sm:$0xff] %v12349_v32  ;;  %v12351_v38 = vpop.f32.mrb[179].mxu1 }
 0x48b   :  { %14810 = vst [vmem:[#allocation20_spill] sm:$0xff] %v12351_v38 }
 0x48f   :  { %v12353_v20 = vpop.f32.mrb[180].mxu1  ;;  %9396 = vmatmul.mubr.msk.bf16.gmra.mrb[4].mxu0 %vm283_vm0, %v14749_v35 }
 0x490   :  { %14811 = vst [vmem:[#allocation23_spill] sm:$0xff] %v12353_v20  ;;  %v12357_v37 = vpop.f32.mrb[181].mxu1  ;;  %9399 = vmatprep.mubr.msk.bf16.mxu0 %vm283_vm0, %v14750_v49 }
 0x491   :  { %14812 = vst [vmem:[#allocation22_spill] sm:$0xff] %v12357_v37  ;;  %v12361_v46 = vpop.f32.mrb[182].mxu1 }
 0x492   :  { %14813 = vst [vmem:[#allocation25_spill] sm:$0xff] %v12361_v46  ;;  %v12363_v25 = vpop.f32.mrb[183].mxu1 }
 0x493   :  { %14814 = vst [vmem:[#allocation24_spill] sm:$0xff] %v12363_v25 }
 0x497   :  { %9400 = vmatmul.mubr.msk.bf16.gmra.mrb[8].mxu0 %vm283_vm0, %v14755_v34 }
 0x498   :  { %9403 = vmatprep.mubr.msk.bf16.mxu0 %vm283_vm0, %v14757_v5 }
 0x49f   :  { %9404 = vmatmul.mubr.msk.bf16.gmra.mrb[12].mxu0 %vm283_vm0, %v14760_v8 }
 0x4a0   :  { %9407 = vmatprep.mubr.msk.bf16.mxu0 %vm283_vm0, %v14761_v13 }
 0x4a7   :  { %v12373_v41 = vpop.f32.mrb[184].mxu1  ;;  %9408 = vmatmul.mubr.msk.bf16.gmra.mrb[16].mxu0 %vm283_vm0, %v14762_v24 }
 0x4a8   :  { %14815 = vst [vmem:[#allocation27_spill] sm:$0xff] %v12373_v41  ;;  %v12377_v35 = vpop.f32.mrb[185].mxu1  ;;  %9411 = vmatprep.mubr.msk.bf16.mxu0 %vm283_vm0, %v14763_v40 }
 0x4a9   :  { %14816 = vst [vmem:[#allocation26_spill] sm:$0xff] %v12377_v35  ;;  %v12381_v49 = vpop.f32.mrb[186].mxu1 }
 0x4aa   :  { %14817 = vst [vmem:[#allocation29_spill] sm:$0xff] %v12381_v49  ;;  %v12383_v34 = vpop.f32.mrb[172].mxu0  ;;  %v12385_v5 = vpop.f32.mrb[187].mxu1 }
 0x4ab   :  { %14818 = vst [vmem:[#allocation28_spill] sm:$0xff] %v12383_v34  ;;  %14819 = vst [vmem:[#allocation31_spill] sm:$0xff] %v12385_v5  ;;  %v12387_v8 = vpop.f32.mrb[173].mxu0 }
 0x4ac   :  { %14820 = vst [vmem:[#allocation30_spill] sm:$0xff] %v12387_v8  ;;  %v12389_v46 = vpop.f32.mrb[174].mxu0 }
 0x4ad   :  { %14821 = vst [vmem:[#allocation33_spill] sm:$0xff] %v12389_v46  ;;  %v12391_v13 = vpop.f32.mrb[175].mxu0 }
 0x4ae   :  { %14822 = vst [vmem:[#allocation32_spill] sm:$0xff] %v12391_v13 }
 0x4af   :  { %9412 = vmatmul.mubr.msk.bf16.gmra.mrb[20].mxu0 %vm283_vm0, %v14764_v44 }
 0x4b0   :  { %9415 = vmatprep.mubr.msk.bf16.mxu0 %vm283_vm0, %v14765_v47  ;;  %v12414_v47 = vld [vmem:[%s14403_s4 + $0x3] ss:$0 sm:$0xff] }
 0x4b2   :  { %v12397_v24 = vpop.f32.mrb[188].mxu1 }
 0x4b3   :  { %14823 = vst [vmem:[#allocation77_spill] sm:$0xff] %v12397_v24  ;;  %v12399_v40 = vpop.f32.mrb[189].mxu1 }
 0x4b4   :  { %14824 = vst [vmem:[#allocation78_spill] sm:$0xff] %v12399_v40  ;;  %v12401_v59 = vpop.f32.mrb[190].mxu1 }
 0x4b5   :  { %14825 = vst [vmem:[#allocation79_spill] sm:$0xff] %v12401_v59  ;;  %v12403_v52 = vpop.f32.mrb[191].mxu1 }
 0x4b6   :  { %14826 = vst [vmem:[#allocation80_spill] sm:$0xff] %v12403_v52 }
 0x4b7   :  { %9416 = vmatmul.mubr.msk.bf16.gmra.mrb[24].mxu0 %vm283_vm0, %v14766_v60 }
 0x4b8   :  { %9419 = vmatprep.mubr.msk.bf16.mxu0 %vm283_vm0, %v14767_v22 }
 0x4ba   :  { %v12409_v46 = vpop.f32.mrb[176].mxu0  ;;  %v9321_v44 = vpop.f32.mrb[192].mxu1 }
 0x4bb   :  { %14827 = vst [vmem:[#allocation81_spill] sm:$0xff] %v12409_v46  ;;  %v12416_v24 = vpop.f32.mrb[177].mxu0  ;;  %v4627_v40 = vpop.f32.mrb[193].mxu1  ;;  %v4636_v20 = vadd.f32 %v9321_v44, %v12414_v47 }
 0x4bc   :  { %14828 = vst [vmem:[#allocation82_spill] sm:$0xff] %v12416_v24  ;;  %v12418_v59 = vpop.f32.mrb[178].mxu0  ;;  %v9322_v52 = vpop.f32.mrb[194].mxu1  ;;  %v4628_v49 = vadd.f32 %v12414_v47, %v4627_v40 }
 0x4bd   :  { %14829 = vst [vmem:[#allocation83_spill] sm:$0xff] %v12418_v59  ;;  %v4639_v60 = vadd.f32 %v9322_v52, %v12414_v47  ;;  %v12422_v34 = vpop.f32.mrb[179].mxu0  ;;  %v4630_v22 = vpop.f32.mrb[195].mxu1 }
 0x4be   :  { %14830 = vst [vmem:[#allocation84_spill] sm:$0xff] %v12422_v34  ;;  %v4631_v25 = vadd.f32 %v12414_v47, %v4630_v22 }
 0x4bf   :  { %v4883_v63 = vpack.c.bf16 %v4639_v60, %v4636_v20  ;;  %9420 = vmatmul.mubr.msk.bf16.gmra.mrb[28].mxu0 %vm283_vm0, %v14768_v61 }
 0x4c0   :  { %v4882_v13 = vpack.c.bf16 %v4631_v25, %v4628_v49  ;;  %9423 = vmatprep.mubr.msk.bf16.mxu0 %vm283_vm0, %v14769_v12 }
 0x4c2   :  { %v12430_v37 = vpop.f32.mrb[180].mxu0  ;;  %v9325_v44 = vpop.f32.mrb[196].mxu1  ;;  %9777 = vmatprep.subr.msk.bf16.mxu1 %vm1953_vm1, %v4882_v13  ;;  %v5289_v52 = vsel %vm1953_vm1, %v4882_v13, 0 }
 0x4c3   :  { %14831 = vst [vmem:[#allocation85_spill] sm:$0xff] %v12430_v37  ;;  %v12434_v41 = vpop.f32.mrb[181].mxu0  ;;  %v4643_v40 = vpop.f32.mrb[197].mxu1  ;;  %9456 = vmatpush3.bf16.xpose.msra.mxu1 %v5289_v52  ;;  %v4652_v61 = vadd.f32 %v9325_v44, %v12414_v47 }
 0x4c4   :  { %14832 = vst [vmem:[#allocation86_spill] sm:$0xff] %v12434_v41  ;;  %v12436_v22 = vpop.f32.mrb[182].mxu0  ;;  %v9326_v20 = vpop.f32.mrb[198].mxu1  ;;  %9778 = vmatprep.subr.msk.bf16.mxu1 %vm1953_vm1, %v4883_v63  ;;  %v4644_v60 = vadd.f32 %v12414_v47, %v4643_v40 }
 0x4c5   :  { %14833 = vst [vmem:[#allocation87_spill] sm:$0xff] %v12436_v22  ;;  %v4655_v12 = vadd.f32 %v9326_v20, %v12414_v47  ;;  %v12441_v25 = vpop.f32.mrb[183].mxu0  ;;  %v4646_v49 = vpop.f32.mrb[199].mxu1  ;;  %v5292_v20 = vsel %vm1953_vm1, %v4883_v63, 0 }
 0x4c6   :  { %14834 = vst [vmem:[#allocation88_spill] sm:$0xff] %v12441_v25  ;;  %v4647_v13 = vadd.f32 %v12414_v47, %v4646_v49 }
 0x4c7   :  { %v4885_v37 = vpack.c.bf16 %v4655_v12, %v4652_v61  ;;  %9424 = vmatmul.mubr.msk.bf16.gmra.mrb[32].mxu0 %vm283_vm0, %v14770_v26 }
 0x4c8   :  { %v4884_v52 = vpack.c.bf16 %v4647_v13, %v4644_v60  ;;  %9427 = vmatprep.mubr.msk.bf16.mxu0 %vm283_vm0, %v14771_v3 }
 0x4ca   :  { %v12449_v22 = vpop.f32.mrb[184].mxu0  ;;  %v9329_v44 = vpop.f32.mrb[200].mxu1 }
 0x4cb   :  { %14835 = vst [vmem:[#allocation89_spill] sm:$0xff] %v12449_v22  ;;  %v12452_v58 = vpop.f32.mrb[185].mxu0  ;;  %v4659_v25 = vpop.f32.mrb[201].mxu1  ;;  %9458 = vmatpush3.bf16.xpose.msra.mxu1 %v5292_v20  ;;  %v4668_v26 = vadd.f32 %v9329_v44, %v12414_v47 }
 0x4cc   :  { %14836 = vst [vmem:[#allocation90_spill] sm:$0xff] %v12452_v58  ;;  %v12454_v40 = vpop.f32.mrb[186].mxu0  ;;  %v9330_v49 = vpop.f32.mrb[202].mxu1  ;;  %9779 = vmatprep.subr.msk.bf16.mxu1 %vm1953_vm1, %v4884_v52  ;;  %v4660_v60 = vadd.f32 %v12414_v47, %v4659_v25 }
 0x4cd   :  { %14837 = vst [vmem:[#allocation91_spill] sm:$0xff] %v12454_v40  ;;  %v4671_v61 = vadd.f32 %v9330_v49, %v12414_v47  ;;  %v12459_v12 = vpop.f32.mrb[187].mxu0  ;;  %v4662_v3 = vpop.f32.mrb[203].mxu1  ;;  %v5295_v49 = vsel %vm1953_vm1, %v4884_v52, 0 }
 0x4ce   :  { %14838 = vst [vmem:[#allocation92_spill] sm:$0xff] %v12459_v12  ;;  %v4663_v63 = vadd.f32 %v12414_v47, %v4662_v3 }
 0x4cf   :  { %v12463_v13 = vpack.c.bf16 %v4671_v61, %v4668_v26  ;;  %9428 = vmatmul.mubr.msk.bf16.gmra.mrb[36].mxu0 %vm283_vm0, %v14772_v6 }
 0x4d0   :  { %v4886_v20 = vpack.c.bf16 %v4663_v63, %v4660_v60  ;;  %9431 = vmatprep.mubr.msk.bf16.mxu0 %vm283_vm0, %v14773_v4 }
 0x4d2   :  { %v12469_v40 = vpop.f32.mrb[188].mxu0  ;;  %v9333_v44 = vpop.f32.mrb[204].mxu1 }
 0x4d3   :  { %14839 = vst [vmem:[#allocation93_spill] sm:$0xff] %v12469_v40  ;;  %v12472_v41 = vpop.f32.mrb[189].mxu0  ;;  %v4675_v22 = vpop.f32.mrb[205].mxu1  ;;  %9460 = vmatpush3.bf16.xpose.msra.mxu1 %v5295_v49  ;;  %v4684_v6 = vadd.f32 %v9333_v44, %v12414_v47 }
 0x4d4   :  { %14840 = vst [vmem:[#allocation94_spill] sm:$0xff] %v12472_v41  ;;  %v12474_v25 = vpop.f32.mrb[190].mxu0  ;;  %v9334_v26 = vpop.f32.mrb[206].mxu1  ;;  %9780 = vmatprep.subr.msk.bf16.mxu1 %vm1953_vm1, %v4885_v37  ;;  %v4676_v60 = vadd.f32 %v12414_v47, %v4675_v22  ;;  %v5298_v22 = vsel %vm1953_vm1, %v4885_v37, 0 }
 0x4d5   :  { %14841 = vst [vmem:[#allocation95_spill] sm:$0xff] %v12474_v25  ;;  %v4687_v61 = vadd.f32 %v9334_v26, %v12414_v47  ;;  %v12479_v3 = vpop.f32.mrb[191].mxu0  ;;  %v4678_v4 = vpop.f32.mrb[207].mxu1  ;;  %v12494_v26 = vld [vmem:[%s14403_s4 + $0x1] ss:$0 sm:$0xff] }
 0x4d6   :  { %14842 = vst [vmem:[#allocation96_spill] sm:$0xff] %v12479_v3  ;;  %v4679_v52 = vadd.f32 %v12414_v47, %v4678_v4 }
 0x4d7   :  { %v12483_v63 = vpack.c.bf16 %v4687_v61, %v4684_v6  ;;  %9432 = vmatmul.mubr.msk.bf16.gmra.mrb[40].mxu0 %vm283_vm0, %v14774_v51 }
 0x4d8   :  { %v12487_v49 = vpack.c.bf16 %v4679_v52, %v4676_v60  ;;  %9435 = vmatprep.mubr.msk.bf16.mxu0 %vm283_vm0, %v14775_v9 }
 0x4da   :  { %v9249_v44 = vpop.f32.mrb[192].mxu0  ;;  %v9337_v25 = vpop.f32.mrb[208].mxu1 }
 0x4db   :  { %v4265_v4 = vpop.f32.mrb[193].mxu0  ;;  %v4691_v6 = vpop.f32.mrb[209].mxu1  ;;  %9462 = vmatpush3.bf16.xpose.msra.mxu1 %v5298_v22  ;;  %v4274_v51 = vadd.f32 %v9249_v44, %v12494_v26  ;;  %v4700_v9 = vadd.f32 %v9337_v25, %v12414_v47 }
 0x4dc   :  { %v9250_v61 = vpop.f32.mrb[194].mxu0  ;;  %v9338_v3 = vpop.f32.mrb[210].mxu1  ;;  %9781 = vmatprep.subr.msk.bf16.mxu1 %vm1953_vm1, %v4886_v20  ;;  %v4266_v32 = vadd.f32 %v12494_v26, %v4265_v4  ;;  %v4692_v37 = vadd.f32 %v12414_v47, %v4691_v6 }
 0x4dd   :  { %v4277_v60 = vadd.f32 %v9250_v61, %v12494_v26  ;;  %v4703_v52 = vadd.f32 %v9338_v3, %v12414_v47  ;;  %v4268_v40 = vpop.f32.mrb[195].mxu0  ;;  %v4694_v41 = vpop.f32.mrb[211].mxu1 }
 0x4de   :  { %v4269_v22 = vadd.f32 %v12494_v26, %v4268_v40  ;;  %v4695_v8 = vadd.f32 %v12414_v47, %v4694_v41  ;;  %v5378_v41 = vsel %vm1953_vm1, %v4886_v20, 0 }
 0x4df   :  { %v4521_v59 = vpack.c.bf16 %v4277_v60, %v4274_v51  ;;  %v12506_v35 = vpack.c.bf16 %v4703_v52, %v4700_v9  ;;  %9436 = vmatmul.mubr.msk.bf16.gmra.mrb[44].mxu0 %vm283_vm0, %v14778_v45 }
 0x4e0   :  { %v4520_v25 = vpack.c.bf16 %v4269_v22, %v4266_v32  ;;  %v12510_v44 = vpack.c.bf16 %v4695_v8, %v4692_v37  ;;  %9439 = vmatprep.mubr.msk.bf16.mxu0 %vm283_vm0, %v14781_v16 }
 0x4e2   :  { %v9253_v3 = vpop.f32.mrb[196].mxu0  ;;  %v9341_v4 = vpop.f32.mrb[212].mxu1  ;;  %9463 = vmatprep.mubr.msk.bf16.mxu1 %vm1953_vm1, %v4520_v25 }
 0x4e3   :  { %v4281_v6 = vpop.f32.mrb[197].mxu0  ;;  %v4707_v40 = vpop.f32.mrb[213].mxu1  ;;  %9464 = vmatmul.mubr.msk.bf16.vlgmr.msra.gmra.mrb[0].mxu1 %vm1953_vm1, %v4521_v59  ;;  %v4290_v45 = vadd.f32 %v9253_v3, %v12494_v26  ;;  %v4716_v32 = vadd.f32 %v9341_v4, %v12414_v47 }
 0x4e4   :  { %9472 = vmatpush3.bf16.xpose.msra.mxu1 %v5378_v41  ;;  %v9254_v61 = vpop.f32.mrb[198].mxu0  ;;  %v9342_v51 = vpop.f32.mrb[214].mxu1  ;;  %v4282_v59 = vadd.f32 %v12494_v26, %v4281_v6  ;;  %v4708_v20 = vadd.f32 %v12414_v47, %v4707_v40 }
 0x4e5   :  { %v4293_v8 = vadd.f32 %v9254_v61, %v12494_v26  ;;  %v4719_v16 = vadd.f32 %v9342_v51, %v12414_v47  ;;  %9782 = vmatprep.subr.msk.bf16.mxu1 %vm1953_vm1, %v12463_v13  ;;  %v4284_v9 = vpop.f32.mrb[199].mxu0  ;;  %v4710_v60 = vpop.f32.mrb[215].mxu1  ;;  %v5381_v51 = vsel %vm1953_vm1, %v12463_v13, 0 }
 0x4e6   :  { %v4285_v52 = vadd.f32 %v12494_v26, %v4284_v9  ;;  %v4711_v37 = vadd.f32 %v12414_v47, %v4710_v60 }
 0x4e7   :  { %v4523_v22 = vpack.c.bf16 %v4293_v8, %v4290_v45  ;;  %v12527_v25 = vpack.c.bf16 %v4719_v16, %v4716_v32  ;;  %9440 = vmatmul.mubr.msk.bf16.gmra.mrb[48].mxu0 %vm283_vm0, %v14784_v54 }
 0x4e8   :  { %v4522_v3 = vpack.c.bf16 %v4285_v52, %v4282_v59  ;;  %v12531_v4 = vpack.c.bf16 %v4711_v37, %v4708_v20  ;;  %9443 = vmatprep.mubr.msk.bf16.mxu0 %vm283_vm0, %v14786_v27 }
 0x4ea   :  { %v9257_v41 = vpop.f32.mrb[200].mxu0  ;;  %v9345_v6 = vpop.f32.mrb[216].mxu1  ;;  %9467 = vmatprep.mubr.msk.bf16.mxu1 %vm1953_vm1, %v4522_v3 }
 0x4eb   :  { %v4297_v40 = vpop.f32.mrb[201].mxu0  ;;  %v4723_v61 = vpop.f32.mrb[217].mxu1  ;;  %9468 = vmatmul.mubr.msk.bf16.gmra.mrb[4].mxu1 %vm1953_vm1, %v4523_v22  ;;  %v12540_v32 = vadd.f32 %v9257_v41, %v12494_v26  ;;  %v4732_v8 = vadd.f32 %v9345_v6, %v12414_v47 }
 0x4ec   :  { %9474 = vmatpush3.bf16.xpose.msra.mxu1 %v5381_v51  ;;  %v9258_v45 = vpop.f32.mrb[202].mxu0  ;;  %v9346_v54 = vpop.f32.mrb[218].mxu1  ;;  %v4298_v13 = vadd.f32 %v12494_v26, %v4297_v40  ;;  %v4724_v59 = vadd.f32 %v12414_v47, %v4723_v61 }
 0x4ed   :  { %v12544_v27 = vadd.f32 %v9258_v45, %v12494_v26  ;;  %v4735_v16 = vadd.f32 %v9346_v54, %v12414_v47  ;;  %9783 = vmatprep.subr.msk.bf16.mxu1 %vm1953_vm1, %v12487_v49  ;;  %v4300_v9 = vpop.f32.mrb[203].mxu0  ;;  %v4726_v60 = vpop.f32.mrb[219].mxu1  ;;  %v5384_v45 = vsel %vm1953_vm1, %v12487_v49, 0 }
 0x4ee   :  { %v4301_v20 = vadd.f32 %v12494_v26, %v4300_v9  ;;  %v4727_v52 = vadd.f32 %v12414_v47, %v4726_v60 }
 0x4ef   :  { %v4525_v37 = vpack.c.bf16 %v12544_v27, %v12540_v32  ;;  %v12555_v22 = vpack.c.bf16 %v4735_v16, %v4732_v8  ;;  %9444 = vmatmul.mubr.msk.bf16.gmra.mrb[52].mxu0 %vm283_vm0, %v14788_v55 }
 0x4f0   :  { %v4524_v3 = vpack.c.bf16 %v4301_v20, %v4298_v13  ;;  %v12559_v41 = vpack.c.bf16 %v4727_v52, %v4724_v59  ;;  %9447 = vmatprep.mubr.msk.bf16.mxu0 %vm283_vm0, %v14790_v57 }
 0x4f2   :  { %v9261_v6 = vpop.f32.mrb[204].mxu0  ;;  %v9349_v40 = vpop.f32.mrb[220].mxu1  ;;  %9479 = vmatprep.mubr.msk.bf16.mxu1 %vm1953_vm1, %v4524_v3 }
 0x4f3   :  { %v4313_v61 = vpop.f32.mrb[205].mxu0  ;;  %v4739_v51 = vpop.f32.mrb[221].mxu1  ;;  %v12567_v55 = vadd.f32 %v9261_v6, %v12494_v26  ;;  %v4748_v8 = vadd.f32 %v9349_v40, %v12414_v47 }
 0x4f4   :  { %9476 = vmatpush3.bf16.xpose.msra.mxu1 %v5384_v45  ;;  %v9262_v54 = vpop.f32.mrb[206].mxu0  ;;  %v9350_v32 = vpop.f32.mrb[222].mxu1  ;;  %v4314_v49 = vadd.f32 %v12494_v26, %v4313_v61  ;;  %v4740_v60 = vadd.f32 %v12414_v47, %v4739_v51 }
 0x4f5   :  { %v12571_v27 = vadd.f32 %v9262_v54, %v12494_v26  ;;  %v4751_v57 = vadd.f32 %v9350_v32, %v12414_v47  ;;  %9784 = vmatprep.subr.msk.bf16.mxu1 %vm1953_vm1, %v12483_v63  ;;  %v4316_v16 = vpop.f32.mrb[207].mxu0  ;;  %v4742_v9 = vpop.f32.mrb[223].mxu1  ;;  %v5387_v54 = vsel %vm1953_vm1, %v12483_v63, 0 }
 0x4f6   :  { %v4317_v13 = vadd.f32 %v12494_v26, %v4316_v16  ;;  %v4743_v59 = vadd.f32 %v12414_v47, %v4742_v9 }
 0x4f7   :  { %v4527_v20 = vpack.c.bf16 %v12571_v27, %v12567_v55  ;;  %v12582_v52 = vpack.c.bf16 %v4751_v57, %v4748_v8  ;;  %9448 = vmatmul.mubr.msk.bf16.gmra.mrb[56].mxu0 %vm283_vm0, %v14794_v21 }
 0x4f8   :  { %v4526_v3 = vpack.c.bf16 %v4317_v13, %v4314_v49  ;;  %v12586_v6 = vpack.c.bf16 %v4743_v59, %v4740_v60  ;;  %9451 = vmatprep.mubr.msk.bf16.mxu0 %vm283_vm0, %v14795_v36 }
 0x4fa   :  { %v9265_v40 = vpop.f32.mrb[208].mxu0  ;;  %v9353_v61 = vpop.f32.mrb[224].mxu1 }
 0x4fb   :  { %v4329_v51 = vpop.f32.mrb[209].mxu0  ;;  %v4755_v45 = vpop.f32.mrb[225].mxu1  ;;  %v12593_v8 = vadd.f32 %v9265_v40, %v12494_v26  ;;  %v4764_v21 = vadd.f32 %v9353_v61, %v12414_v47 }
 0x4fc   :  { %9478 = vmatpush3.bf16.xpose.msra.mxu1 %v5387_v54  ;;  %v9266_v32 = vpop.f32.mrb[210].mxu0  ;;  %v9354_v55 = vpop.f32.mrb[226].mxu1  ;;  %v4330_v63 = vadd.f32 %v12494_v26, %v4329_v51  ;;  %v4756_v9 = vadd.f32 %v12414_v47, %v4755_v45 }
 0x4fd   :  { %v12597_v27 = vadd.f32 %v9266_v32, %v12494_v26  ;;  %v4767_v36 = vadd.f32 %v9354_v55, %v12414_v47  ;;  %9785 = vmatprep.subr.msk.bf16.mxu1 %vm1953_vm1, %v12510_v44  ;;  %v4332_v57 = vpop.f32.mrb[211].mxu0  ;;  %v4758_v16 = vpop.f32.mrb[227].mxu1 }
 0x4fe   :  { %v4333_v49 = vadd.f32 %v12494_v26, %v4332_v57  ;;  %v4759_v60 = vadd.f32 %v12414_v47, %v4758_v16  ;;  %v5467_v57 = vsel %vm1953_vm1, %v12510_v44, 0 }
 0x4ff   :  { %v4899_v59 = vpack.c.bf16 %v4767_v36, %v4764_v21  ;;  %9452 = vmatmul.mubr.msk.bf16.gmra.mrb[60].mxu0 %vm283_vm0, %v14798_v42 }
 0x500   :  { %v4528_v40 = vpack.c.bf16 %v4333_v49, %v4330_v63  ;;  %v4898_v61 = vpack.c.bf16 %v4759_v60, %v4756_v9 }
 0x502   :  { %v9269_v54 = vpop.f32.mrb[212].mxu0  ;;  %v9357_v32 = vpop.f32.mrb[228].mxu1  ;;  %9793 = vmatprep.subr.msk.bf16.mxu0 %vm1953_vm1, %v4898_v61  ;;  %v5645_v51 = vsel %vm1953_vm1, %v4898_v61, 0 }
 0x503   :  { %9480 = vmatmul.mubr.msk.bf16.vlgmr.msra.gmra.mrb[8].mxu1 %vm1953_vm1, %v4525_v37  ;;  %v4345_v45 = vpop.f32.mrb[213].mxu0  ;;  %v4771_v55 = vpop.f32.mrb[229].mxu1  ;;  %9520 = vmatpush3.bf16.xpose.msra.mxu0 %v5645_v51  ;;  %v12616_v21 = vadd.f32 %v9269_v54, %v12494_v26  ;;  %v4780_v16 = vadd.f32 %v9357_v32, %v12414_v47 }
 0x504   :  { %9483 = vmatprep.mubr.msk.bf16.mxu1 %vm1953_vm1, %v4526_v3  ;;  %9488 = vmatpush3.bf16.xpose.msra.mxu1 %v5467_v57  ;;  %v9270_v42 = vpop.f32.mrb[214].mxu0  ;;  %v9358_v36 = vpop.f32.mrb[230].mxu1  ;;  %v12628_v49 = vadd.f32 %v12494_v26, %v4345_v45  ;;  %v4772_v3 = vadd.f32 %v12414_v47, %v4771_v55  ;;  %v5648_v45 = vsel %vm1953_vm1, %v4899_v59, 0 }
 0x505   :  { %v12621_v63 = vadd.f32 %v9270_v42, %v12494_v26  ;;  %v4783_v37 = vadd.f32 %v9358_v36, %v12414_v47  ;;  %9786 = vmatprep.subr.msk.bf16.mxu1 %vm1953_vm1, %v12506_v35  ;;  %9794 = vmatprep.subr.msk.bf16.mxu0 %vm1953_vm1, %v4899_v59  ;;  %v4348_v44 = vpop.f32.mrb[215].mxu0  ;;  %v4774_v9 = vpop.f32.mrb[231].mxu1 }
 0x506   :  { %v12632_v60 = vadd.f32 %v12494_v26, %v4348_v44  ;;  %v4775_v61 = vadd.f32 %v12414_v47, %v4774_v9  ;;  %v5470_v44 = vsel %vm1953_vm1, %v12506_v35, 0 }
 0x507   :  { %v4901_v32 = vpack.c.bf16 %v4783_v37, %v4780_v16 }
 0x508   :  { %v4900_v57 = vpack.c.bf16 %v4775_v61, %v4772_v3 }
 0x509   :  { %v5654_v12 = vsel %vm1953_vm1, %v4901_v32, 0 }
 0x50a   :  { %v9273_v42 = vpop.f32.mrb[216].mxu0  ;;  %v9361_v36 = vpop.f32.mrb[232].mxu1  ;;  %v5651_v5 = vsel %vm1953_vm1, %v4900_v57, 0 }
 0x50b   :  { %9484 = vmatmul.mubr.msk.bf16.gmra.mrb[12].mxu1 %vm1953_vm1, %v4527_v20  ;;  %v4361_v55 = vpop.f32.mrb[217].mxu0  ;;  %v4787_v13 = vpop.f32.mrb[233].mxu1  ;;  %9522 = vmatpush3.bf16.xpose.msra.mxu0 %v5648_v45  ;;  %v12644_v9 = vadd.f32 %v9273_v42, %v12494_v26  ;;  %v4796_v3 = vadd.f32 %v9361_v36, %v12414_v47 }
 0x50c   :  { %9490 = vmatpush3.bf16.xpose.msra.mxu1 %v5470_v44  ;;  %9495 = vmatprep.mubr.msk.bf16.mxu1 %vm1953_vm1, %v4528_v40  ;;  %v9274_v16 = vpop.f32.mrb[218].mxu0  ;;  %v9362_v37 = vpop.f32.mrb[234].mxu1  ;;  %v12656_v42 = vadd.f32 %v12494_v26, %v4361_v55  ;;  %v4788_v40 = vadd.f32 %v12414_v47, %v4787_v13 }
 0x50d   :  { %v12649_v59 = vadd.f32 %v9274_v16, %v12494_v26  ;;  %v4799_v20 = vadd.f32 %v9362_v37, %v12414_v47  ;;  %9787 = vmatprep.subr.msk.bf16.mxu1 %vm1953_vm1, %v12531_v4  ;;  %9795 = vmatprep.subr.msk.bf16.mxu0 %vm1953_vm1, %v4900_v57  ;;  %v4364_v35 = vpop.f32.mrb[219].mxu0  ;;  %v4790_v61 = vpop.f32.mrb[235].mxu1 }
 0x50e   :  { %v12660_v45 = vadd.f32 %v12494_v26, %v4364_v35  ;;  %v4791_v36 = vadd.f32 %v12414_v47, %v4790_v61  ;;  %v5473_v35 = vsel %vm1953_vm1, %v12531_v4, 0 }
 0x50f   :  { %v12665_v16 = vpack.c.bf16 %v4799_v20, %v4796_v3 }
 0x510   :  { %v12669_v54 = vpack.c.bf16 %v4791_v36, %v4788_v40 }
 0x512   :  { %v9277_v51 = vpop.f32.mrb[220].mxu0  ;;  %v9365_v55 = vpop.f32.mrb[236].mxu1 }
 0x513   :  { %v4377_v13 = vpop.f32.mrb[221].mxu0  ;;  %v4803_v0 = vpop.f32.mrb[237].mxu1  ;;  %9524 = vmatpush3.bf16.xpose.msra.mxu0 %v5651_v5  ;;  %v12676_v3 = vadd.f32 %v9277_v51, %v12494_v26  ;;  %v4812_v20 = vadd.f32 %v9365_v55, %v12414_v47 }
 0x514   :  { %9492 = vmatpush3.bf16.xpose.msra.mxu1 %v5473_v35  ;;  %v9278_v61 = vpop.f32.mrb[222].mxu0  ;;  %v9366_v44 = vpop.f32.mrb[238].mxu1  ;;  %9796 = vmatprep.subr.msk.bf16.mxu0 %vm1953_vm1, %v4901_v32  ;;  %v12686_v36 = vadd.f32 %v12494_v26, %v4377_v13  ;;  %v4804_v35 = vadd.f32 %v12414_v47, %v4803_v0 }
 0x515   :  { %v12680_v40 = vadd.f32 %v9278_v61, %v12494_v26  ;;  %v4815_v57 = vadd.f32 %v9366_v44, %v12414_v47  ;;  %9788 = vmatprep.subr.msk.bf16.mxu1 %vm1953_vm1, %v12527_v25  ;;  %v4380_v4 = vpop.f32.mrb[223].mxu0  ;;  %v4806_v5 = vpop.f32.mrb[239].mxu1 }
 0x516   :  { %v12690_v51 = vadd.f32 %v12494_v26, %v4380_v4  ;;  %v4807_v55 = vadd.f32 %v12414_v47, %v4806_v5  ;;  %v5476_v4 = vsel %vm1953_vm1, %v12527_v25, 0 }
 0x517   :  { %v12695_v37 = vpack.c.bf16 %v4815_v57, %v4812_v20 }
 0x518   :  { %v12699_v14 = vpack.c.bf16 %v4807_v55, %v4804_v35 }
 0x51a   :  { %v9281_v58 = vpop.f32.mrb[224].mxu0  ;;  %v9369_v13 = vpop.f32.mrb[240].mxu1 }
 0x51b   :  { %v4393_v0 = vpop.f32.mrb[225].mxu0  ;;  %v4819_v46 = vpop.f32.mrb[241].mxu1  ;;  %9526 = vmatpush3.bf16.xpose.msra.mxu0 %v5654_v12  ;;  %v4402_v20 = vadd.f32 %v9281_v58, %v12494_v26  ;;  %v4828_v57 = vadd.f32 %v9369_v13, %v12414_v47 }
 0x51c   :  { %9494 = vmatpush3.bf16.xpose.msra.mxu1 %v5476_v4  ;;  %v9282_v5 = vpop.f32.mrb[226].mxu0  ;;  %v9370_v61 = vpop.f32.mrb[242].mxu1  ;;  %v4394_v38 = vadd.f32 %v12494_v26, %v4393_v0  ;;  %v4820_v12 = vadd.f32 %v12414_v47, %v4819_v46  ;;  %v14843_v0 = vpack.c.bf16 %v12597_v27, %v12593_v8 }
 0x51d   :  { %v4405_v35 = vadd.f32 %v9282_v5, %v12494_v26  ;;  %v4831_v55 = vadd.f32 %v9370_v61, %v12414_v47  ;;  %9789 = vmatprep.subr.msk.bf16.mxu1 %vm1953_vm1, %v12559_v41  ;;  %v4396_v32 = vpop.f32.mrb[227].mxu0  ;;  %v4822_v44 = vpop.f32.mrb[243].mxu1 }
 0x51e   :  { %v4397_v25 = vadd.f32 %v12494_v26, %v4396_v32  ;;  %v4823_v4 = vadd.f32 %v12414_v47, %v4822_v44  ;;  %v5556_v44 = vsel %vm1953_vm1, %v12559_v41, 0 }
 0x51f   :  { %v4537_v58 = vpack.c.bf16 %v4405_v35, %v4402_v20  ;;  %v4907_v43 = vpack.c.bf16 %v4831_v55, %v4828_v57  ;;  %v14844_v20 = vpack.c.bf16 %v12632_v60, %v12628_v49 }
 0x520   :  { %v4536_v13 = vpack.c.bf16 %v4397_v25, %v4394_v38  ;;  %v4906_v1 = vpack.c.bf16 %v4823_v4, %v4820_v12 }
 0x522   :  { %v9285_v5 = vpop.f32.mrb[228].mxu0  ;;  %v9373_v34 = vpop.f32.mrb[244].mxu1  ;;  %9527 = vmatprep.mubr.msk.bf16.mxu0 %vm1953_vm1, %v4536_v13  ;;  %9801 = vmatprep.subr.msk.bf16.mxu0 %vm1953_vm1, %v4906_v1  ;;  %v5823_v61 = vsel %vm1953_vm1, %v4906_v1, 0 }
 0x523   :  { %9496 = vmatmul.mubr.msk.bf16.vlgmr.msra.gmra.mrb[16].mxu1 %vm1953_vm1, %v14843_v0  ;;  %v4409_v46 = vpop.f32.mrb[229].mxu0  ;;  %v4835_v32 = vpop.f32.mrb[245].mxu1  ;;  %9528 = vmatmul.mubr.msk.bf16.vlgmr.msra.gmra.mrb[64].mxu0 %vm1953_vm1, %v4537_v58  ;;  %v4418_v38 = vadd.f32 %v9285_v5, %v12494_v26  ;;  %v4844_v8 = vadd.f32 %v9373_v34, %v12414_v47  ;;  %v14845_v0 = vpack.c.bf16 %v12621_v63, %v12616_v21  ;;  %v5826_v21 = vsel %vm1953_vm1, %v4907_v43, 0 }
 0x524   :  { %9499 = vmatprep.mubr.msk.bf16.mxu1 %vm1953_vm1, %v14844_v20  ;;  %9504 = vmatpush3.bf16.xpose.msra.mxu1 %v5556_v44  ;;  %v9286_v1 = vpop.f32.mrb[230].mxu0  ;;  %v9374_v57 = vpop.f32.mrb[246].mxu1  ;;  %v4410_v12 = vadd.f32 %v12494_v26, %v4409_v46  ;;  %v4836_v49 = vadd.f32 %v12414_v47, %v4835_v32  ;;  %v5559_v44 = vsel %vm1953_vm1, %v12555_v22, 0  ;;  %v14846_v20 = vpack.c.bf16 %v12660_v45, %v12656_v42 }
 0x525   :  { %9552 = vmatpush3.bf16.xpose.msra.mxu0 %v5823_v61  ;;  %v4421_v27 = vadd.f32 %v9286_v1, %v12494_v26  ;;  %v4847_v35 = vadd.f32 %v9374_v57, %v12414_v47  ;;  %9790 = vmatprep.subr.msk.bf16.mxu1 %vm1953_vm1, %v12555_v22  ;;  %v4412_v41 = vpop.f32.mrb[231].mxu0  ;;  %v4838_v55 = vpop.f32.mrb[247].mxu1 }
 0x526   :  { %9802 = vmatprep.subr.msk.bf16.mxu0 %vm1953_vm1, %v4907_v43  ;;  %v4413_v60 = vadd.f32 %v12494_v26, %v4412_v41  ;;  %v4839_v34 = vadd.f32 %v12414_v47, %v4838_v55 }
 0x527   :  { %v4539_v25 = vpack.c.bf16 %v4421_v27, %v4418_v38  ;;  %v12739_v4 = vpack.c.bf16 %v4847_v35, %v4844_v8 }
 0x528   :  { %v4538_v58 = vpack.c.bf16 %v4413_v60, %v4410_v12  ;;  %v4908_v13 = vpack.c.bf16 %v4839_v34, %v4836_v49 }
 0x52a   :  { %v9289_v5 = vpop.f32.mrb[232].mxu0  ;;  %v9377_v61 = vpop.f32.mrb[248].mxu1  ;;  %9531 = vmatprep.mubr.msk.bf16.mxu0 %vm1953_vm1, %v4538_v58 }
 0x52b   :  { %9500 = vmatmul.mubr.msk.bf16.gmra.mrb[20].mxu1 %vm1953_vm1, %v14845_v0  ;;  %v4425_v46 = vpop.f32.mrb[233].mxu0  ;;  %v4851_v32 = vpop.f32.mrb[249].mxu1  ;;  %9532 = vmatmul.mubr.msk.bf16.gmra.mrb[68].mxu0 %vm1953_vm1, %v4539_v25  ;;  %v12750_v38 = vadd.f32 %v9289_v5, %v12494_v26  ;;  %v4860_v57 = vadd.f32 %v9377_v61, %v12414_v47  ;;  %v5562_v61 = vsel %vm1953_vm1, %v12586_v6, 0 }
 0x52c   :  { %9506 = vmatpush3.bf16.xpose.msra.mxu1 %v5559_v44  ;;  %9511 = vmatprep.mubr.msk.bf16.mxu1 %vm1953_vm1, %v14846_v20  ;;  %v9290_v63 = vpop.f32.mrb[234].mxu0  ;;  %v9378_v1 = vpop.f32.mrb[250].mxu1  ;;  %v12765_v42 = vadd.f32 %v12494_v26, %v4425_v46  ;;  %v4852_v43 = vadd.f32 %v12414_v47, %v4851_v32  ;;  %v5829_v46 = vsel %vm1953_vm1, %v4908_v13, 0 }
 0x52d   :  { %9554 = vmatpush3.bf16.xpose.msra.mxu0 %v5826_v21  ;;  %v12759_v22 = vadd.f32 %v9290_v63, %v12494_v26  ;;  %v4863_v8 = vadd.f32 %v9378_v1, %v12414_v47  ;;  %9791 = vmatprep.subr.msk.bf16.mxu1 %vm1953_vm1, %v12586_v6  ;;  %v4428_v27 = vpop.f32.mrb[235].mxu0  ;;  %v4854_v35 = vpop.f32.mrb[251].mxu1 }
 0x52e   :  { %9803 = vmatprep.subr.msk.bf16.mxu0 %vm1953_vm1, %v4908_v13  ;;  %v12770_v45 = vadd.f32 %v12494_v26, %v4428_v27  ;;  %v4855_v41 = vadd.f32 %v12414_v47, %v4854_v35 }
 0x52f   :  { %v4541_v55 = vpack.c.bf16 %v12759_v22, %v12750_v38  ;;  %v12775_v12 = vpack.c.bf16 %v4863_v8, %v4860_v57 }
 0x530   :  { %v4540_v49 = vpack.c.bf16 %v12770_v45, %v12765_v42  ;;  %v12779_v60 = vpack.c.bf16 %v4855_v41, %v4852_v43 }
 0x532   :  { %v9293_v34 = vpop.f32.mrb[236].mxu0  ;;  %v9381_v25 = vpop.f32.mrb[252].mxu1 }
 0x533   :  { %v4441_v58 = vpop.f32.mrb[237].mxu0  ;;  %v4867_v5 = vpop.f32.mrb[253].mxu1  ;;  %v12784_v0 = vadd.f32 %v9293_v34, %v12494_v26  ;;  %v4876_v20 = vadd.f32 %v9381_v25, %v12414_v47 }
 0x534   :  { %9508 = vmatpush3.bf16.xpose.msra.mxu1 %v5562_v61  ;;  %v9294_v32 = vpop.f32.mrb[238].mxu0  ;;  %v9382_v44 = vpop.f32.mrb[254].mxu1  ;;  %v12795_v57 = vadd.f32 %v12494_v26, %v4441_v58  ;;  %v4868_v13 = vadd.f32 %v12414_v47, %v4867_v5  ;;  %v5565_v5 = vsel %vm1953_vm1, %v12582_v52, 0  ;;  %v5832_v61 = vsel %vm1953_vm1, %v12739_v4, 0 }
 0x535   :  { %9556 = vmatpush3.bf16.xpose.msra.mxu0 %v5829_v46  ;;  %v12789_v21 = vadd.f32 %v9294_v32, %v12494_v26  ;;  %v4879_v63 = vadd.f32 %v9382_v44, %v12414_v47  ;;  %9792 = vmatprep.subr.msk.bf16.mxu1 %vm1953_vm1, %v12582_v52  ;;  %v4444_v6 = vpop.f32.mrb[239].mxu0  ;;  %v4870_v1 = vpop.f32.mrb[255].mxu1 }
 0x536   :  { %9804 = vmatprep.subr.msk.bf16.mxu0 %vm1953_vm1, %v12739_v4  ;;  %v12801_v8 = vadd.f32 %v12494_v26, %v4444_v6  ;;  %v4871_v27 = vadd.f32 %v12414_v47, %v4870_v1  ;;  %v14847_v4 = vpack.c.bf16 %v12649_v59, %v12644_v9 }
 0x537   :  { %v4543_v35 = vpack.c.bf16 %v12789_v21, %v12784_v0  ;;  %v12806_v43 = vpack.c.bf16 %v4879_v63, %v4876_v20 }
 0x538   :  { %v4542_v41 = vpack.c.bf16 %v12801_v8, %v12795_v57  ;;  %v12810_v34 = vpack.c.bf16 %v4871_v27, %v4868_v13  ;;  %v5734_v27 = vsel %vm1953_vm1, %v12669_v54, 0 }
 0x53a   :  { %v9297_v25 = vpop.f32.mrb[240].mxu0 }
 0x53b   :  { %v4457_v58 = vpop.f32.mrb[241].mxu0  ;;  %v4466_v46 = vadd.f32 %v9297_v25, %v12494_v26  ;;  %v14848_v25 = vpack.c.bf16 %v12690_v51, %v12686_v36 }
 0x53c   :  { %9510 = vmatpush3.bf16.xpose.msra.mxu1 %v5565_v5  ;;  %v9298_v47 = vpop.f32.mrb[242].mxu0  ;;  %v4458_v20 = vadd.f32 %v12494_v26, %v4457_v58 }
 0x53d   :  { %9558 = vmatpush3.bf16.xpose.msra.mxu0 %v5832_v61  ;;  %v4469_v32 = vadd.f32 %v9298_v47, %v12494_v26  ;;  %9797 = vmatprep.subr.msk.bf16.mxu1 %vm1953_vm1, %v12669_v54  ;;  %v4460_v44 = vpop.f32.mrb[243].mxu0 }
 0x53e   :  { %v4461_v63 = vadd.f32 %v12494_v26, %v4460_v44  ;;  %v5737_v44 = vsel %vm1953_vm1, %v12665_v16, 0 }
 0x53f   :  { %v4545_v6 = vpack.c.bf16 %v4469_v32, %v4466_v46  ;;  %v14849_v46 = vpack.c.bf16 %v12680_v40, %v12676_v3 }
 0x540   :  { %v4544_v52 = vpack.c.bf16 %v4461_v63, %v4458_v20 }
 0x542   :  { %v9301_v1 = vpop.f32.mrb[244].mxu0  ;;  %9559 = vmatprep.mubr.msk.bf16.mxu0 %vm1953_vm1, %v4544_v52 }
 0x543   :  { %9512 = vmatmul.mubr.msk.bf16.vlgmr.msra.gmra.mrb[24].mxu1 %vm1953_vm1, %v14847_v4  ;;  %v4473_v13 = vpop.f32.mrb[245].mxu0  ;;  %v4482_v5 = vadd.f32 %v9301_v1, %v12494_v26  ;;  %v5740_v1 = vsel %vm1953_vm1, %v12699_v14, 0 }
 0x544   :  { %9515 = vmatprep.mubr.msk.bf16.mxu1 %vm1953_vm1, %v14848_v25  ;;  %9536 = vmatpush3.bf16.xpose.msra.mxu1 %v5734_v27  ;;  %v9302_v58 = vpop.f32.mrb[246].mxu0  ;;  %v4474_v59 = vadd.f32 %v12494_v26, %v4473_v13 }
 0x545   :  { %9560 = vmatmul.mubr.msk.bf16.vlgmr.msra.gmra.mrb[72].mxu0 %vm1953_vm1, %v4545_v6  ;;  %v4485_v61 = vadd.f32 %v9302_v58, %v12494_v26  ;;  %9798 = vmatprep.subr.msk.bf16.mxu1 %vm1953_vm1, %v12665_v16  ;;  %v4476_v9 = vpop.f32.mrb[247].mxu0 }
 0x546   :  { %v4477_v54 = vadd.f32 %v12494_v26, %v4476_v9 }
 0x547   :  { %v4547_v47 = vpack.c.bf16 %v4485_v61, %v4482_v5 }
 0x548   :  { %v4546_v36 = vpack.c.bf16 %v4477_v54, %v4474_v59  ;;  %v12887_v59 = vld [vmem:[%s14403_s4 + $0x5] ss:$0 sm:$0xff] }
 0x54a   :  { %v9305_v51 = vpop.f32.mrb[248].mxu0  ;;  %9563 = vmatprep.mubr.msk.bf16.mxu0 %vm1953_vm1, %v4546_v36 }
 0x54b   :  { %9516 = vmatmul.mubr.msk.bf16.gmra.mrb[28].mxu1 %vm1953_vm1, %v14849_v46  ;;  %v4489_v32 = vpop.f32.mrb[249].mxu0  ;;  %v12852_v63 = vadd.f32 %v9305_v51, %v12494_v26 }
 0x54c   :  { %9538 = vmatpush3.bf16.xpose.msra.mxu1 %v5737_v44  ;;  %9543 = vmatprep.mubr.msk.bf16.mxu1 %vm1953_vm1, %v4540_v49  ;;  %v9306_v20 = vpop.f32.mrb[250].mxu0  ;;  %v4490_v16 = vadd.f32 %v12494_v26, %v4489_v32 }
 0x54d   :  { %9564 = vmatmul.mubr.msk.bf16.gmra.mrb[76].mxu0 %vm1953_vm1, %v4547_v47  ;;  %v12856_v3 = vadd.f32 %v9306_v20, %v12494_v26  ;;  %9799 = vmatprep.subr.msk.bf16.mxu1 %vm1953_vm1, %v12699_v14  ;;  %v4492_v40 = vpop.f32.mrb[251].mxu0  ;;  %v5743_v47 = vsel %vm1953_vm1, %v12695_v37, 0 }
 0x54e   :  { %v4493_v6 = vadd.f32 %v12494_v26, %v4492_v40 }
 0x54f   :  { %v4549_v42 = vpack.c.bf16 %v12856_v3, %v12852_v63 }
 0x550   :  { %v4548_v45 = vpack.c.bf16 %v4493_v6, %v4490_v16  ;;  %v5912_v6 = vsel %vm1953_vm1, %v12779_v60, 0 }
 0x552   :  { %v9309_v49 = vpop.f32.mrb[252].mxu0 }
 0x553   :  { %v4505_v52 = vpop.f32.mrb[253].mxu0  ;;  %v12867_v13 = vadd.f32 %v9309_v49, %v12494_v26 }
 0x554   :  { %9540 = vmatpush3.bf16.xpose.msra.mxu1 %v5740_v1  ;;  %v9310_v4 = vpop.f32.mrb[254].mxu0  ;;  %v12875_v58 = vadd.f32 %v12494_v26, %v4505_v52 }
 0x555   :  { %v12870_v27 = vadd.f32 %v9310_v4, %v12494_v26  ;;  %9800 = vmatprep.subr.msk.bf16.mxu1 %vm1953_vm1, %v12695_v37  ;;  %v4508_v25 = vpop.f32.mrb[255].mxu0  ;;  %v5915_v4 = vsel %vm1953_vm1, %v12775_v12, 0 }
 0x556   :  { %v12878_v5 = vadd.f32 %v12494_v26, %v4508_v25 }
 0x557   :  { %v4551_v14 = vpack.c.bf16 %v12870_v27, %v12867_v13 }
 0x558   :  { %v4550_v61 = vpack.c.bf16 %v12878_v5, %v12875_v58 }
 0x55a   :  { %v9393_v9 = vpop.f32.mrb[0].mxu0 }
 0x55b   :  { %v4989_v54 = vpop.f32.mrb[1].mxu0  ;;  %v4998_v26 = vadd.f32 %v9393_v9, %v12887_v59 }
 0x55c   :  { %9542 = vmatpush3.bf16.xpose.msra.mxu1 %v5743_v47  ;;  %v9394_v36 = vpop.f32.mrb[2].mxu0  ;;  %v4990_v32 = vadd.f32 %v12887_v59, %v4989_v54 }
 0x55d   :  { %v5001_v51 = vadd.f32 %v9394_v36, %v12887_v59  ;;  %9805 = vmatprep.subr.msk.bf16.mxu1 %vm1953_vm1, %v12779_v60  ;;  %v4992_v46 = vpop.f32.mrb[3].mxu0 }
 0x55e   :  { %v4993_v44 = vadd.f32 %v12887_v59, %v4992_v46 }
 0x55f   :  { %v5245_v20 = vpack.c.bf16 %v5001_v51, %v4998_v26 }
 0x560   :  { %v5244_v40 = vpack.c.bf16 %v4993_v44, %v4990_v32 }
 0x562   :  { %v9397_v16 = vpop.f32.mrb[4].mxu0  ;;  %9583 = vmatprep.subr.bf16.mxu0 %v5244_v40 }
 0x563   :  { %9544 = vmatmul.mubr.msk.bf16.vlgmr.msra.gmra.mrb[32].mxu1 %vm1953_vm1, %v4541_v55  ;;  %v5005_v37 = vpop.f32.mrb[5].mxu0  ;;  %9584 = vmatpush3.bf16.msra.mxu0 %v5244_v40  ;;  %v5014_v52 = vadd.f32 %v9397_v16, %v12887_v59 }
 0x564   :  { %9547 = vmatprep.mubr.msk.bf16.mxu1 %vm1953_vm1, %v4542_v41  ;;  %9568 = vmatpush3.bf16.xpose.msra.mxu1 %v5912_v6  ;;  %v9398_v49 = vpop.f32.mrb[6].mxu0  ;;  %v5006_v22 = vadd.f32 %v12887_v59, %v5005_v37 }
 0x565   :  { %v5017_v1 = vadd.f32 %v9398_v49, %v12887_v59  ;;  %9806 = vmatprep.subr.msk.bf16.mxu1 %vm1953_vm1, %v12775_v12  ;;  %9585 = vmatprep.subr.bf16.mxu0 %v5245_v20  ;;  %v5008_v38 = vpop.f32.mrb[7].mxu0 }
 0x566   :  { %v5009_v55 = vadd.f32 %v12887_v59, %v5008_v38 }
 0x567   :  { %v5247_v60 = vpack.c.bf16 %v5017_v1, %v5014_v52  ;;  %9586 = vmatpush3.bf16.msra.mxu0 %v5245_v20 }
 0x568   :  { %v5246_v57 = vpack.c.bf16 %v5009_v55, %v5006_v22 }
 0x56a   :  { %v9401_v8 = vpop.f32.mrb[8].mxu0  ;;  %9587 = vmatprep.subr.bf16.mxu0 %v5246_v57 }
 0x56b   :  { %9548 = vmatmul.mubr.msk.bf16.gmra.mrb[36].mxu1 %vm1953_vm1, %v4543_v35  ;;  %v5021_v41 = vpop.f32.mrb[9].mxu0  ;;  %9588 = vmatpush3.bf16.msra.mxu0 %v5246_v57  ;;  %v5030_v9 = vadd.f32 %v9401_v8, %v12887_v59 }
 0x56c   :  { %9570 = vmatpush3.bf16.xpose.msra.mxu1 %v5915_v4  ;;  %9575 = vmatprep.mubr.msk.bf16.mxu1 %vm1953_vm1, %v4548_v45  ;;  %v9402_v25 = vpop.f32.mrb[10].mxu0  ;;  %v5022_v21 = vadd.f32 %v12887_v59, %v5021_v41  ;;  %v5918_v45 = vsel %vm1953_vm1, %v12810_v34, 0 }
 0x56d   :  { %v5033_v54 = vadd.f32 %v9402_v25, %v12887_v59  ;;  %9807 = vmatprep.subr.msk.bf16.mxu1 %vm1953_vm1, %v12810_v34  ;;  %9589 = vmatprep.subr.bf16.mxu0 %v5247_v60  ;;  %v5024_v0 = vpop.f32.mrb[11].mxu0  ;;  %v5921_v34 = vsel %vm1953_vm1, %v12806_v43, 0 }
 0x56e   :  { %v5025_v35 = vadd.f32 %v12887_v59, %v5024_v0 }
 0x56f   :  { %v5249_v47 = vpack.c.bf16 %v5033_v54, %v5030_v9  ;;  %9590 = vmatpush3.bf16.msra.mxu0 %v5247_v60 }
 0x570   :  { %v5248_v12 = vpack.c.bf16 %v5025_v35, %v5022_v21 }
 0x572   :  { %v9405_v36 = vpop.f32.mrb[12].mxu0 }
 0x573   :  { %v5037_v26 = vpop.f32.mrb[13].mxu0  ;;  %v5046_v46 = vadd.f32 %v9405_v36, %v12887_v59 }
 0x574   :  { %9572 = vmatpush3.bf16.xpose.msra.mxu1 %v5918_v45  ;;  %v9406_v51 = vpop.f32.mrb[14].mxu0  ;;  %v5038_v20 = vadd.f32 %v12887_v59, %v5037_v26 }
 0x575   :  { %v5049_v32 = vadd.f32 %v9406_v51, %v12887_v59  ;;  %9808 = vmatprep.subr.msk.bf16.mxu1 %vm1953_vm1, %v12806_v43  ;;  %v5040_v44 = vpop.f32.mrb[15].mxu0 }
 0x576   :  { %v5041_v40 = vadd.f32 %v12887_v59, %v5040_v44 }
 0x577   :  { %v5251_v16 = vpack.c.bf16 %v5049_v32, %v5046_v46 }
 0x578   :  { %v5250_v37 = vpack.c.bf16 %v5041_v40, %v5038_v20 }
 0x57a   :  { %v9409_v6 = vpop.f32.mrb[16].mxu0 }
 0x57b   :  { %v5053_v49 = vpop.f32.mrb[17].mxu0  ;;  %v5062_v1 = vadd.f32 %v9409_v6, %v12887_v59 }
 0x57c   :  { %9574 = vmatpush3.bf16.xpose.msra.mxu1 %v5921_v34  ;;  %v9410_v52 = vpop.f32.mrb[18].mxu0  ;;  %v5054_v55 = vadd.f32 %v12887_v59, %v5053_v49 }
 0x57d   :  { %v5065_v38 = vadd.f32 %v9410_v52, %v12887_v59  ;;  %9599 = vmatprep.subr.bf16.mxu1 %v5248_v12  ;;  %v5056_v22 = vpop.f32.mrb[19].mxu0 }
 0x57e   :  { %v5057_v60 = vadd.f32 %v12887_v59, %v5056_v22 }
 0x57f   :  { %v12940_v57 = vpack.c.bf16 %v5065_v38, %v5062_v1 }
 0x580   :  { %v12942_v8 = vpack.c.bf16 %v5057_v60, %v5054_v55 }
 0x582   :  { %v9413_v41 = vpop.f32.mrb[20].mxu0  ;;  %9615 = vmatprep.subr.bf16.mxu0 %v12942_v8 }
 0x583   :  { %9576 = vmatmul.mubr.msk.bf16.vlgmr.msra.gmra.mrb[40].mxu1 %vm1953_vm1, %v4549_v42  ;;  %v5069_v43 = vpop.f32.mrb[21].mxu0  ;;  %v5078_v25 = vadd.f32 %v9413_v41, %v12887_v59 }
 0x584   :  { %9579 = vmatprep.mubr.msk.bf16.mxu1 %vm1953_vm1, %v4550_v61  ;;  %9600 = vmatpush3.bf16.msra.mxu1 %v5248_v12  ;;  %v9414_v4 = vpop.f32.mrb[22].mxu0  ;;  %v5070_v0 = vadd.f32 %v12887_v59, %v5069_v43 }
 0x585   :  { %v5081_v9 = vadd.f32 %v9414_v4, %v12887_v59  ;;  %9601 = vmatprep.subr.bf16.mxu1 %v5249_v47  ;;  %v5072_v54 = vpop.f32.mrb[23].mxu0 }
 0x586   :  { %v5073_v63 = vadd.f32 %v12887_v59, %v5072_v54 }
 0x587   :  { %v12957_v3 = vpack.c.bf16 %v5081_v9, %v5078_v25 }
 0x588   :  { %v12959_v42 = vpack.c.bf16 %v5073_v63, %v5070_v0  ;;  %9602 = vmatpush3.bf16.msra.mxu1 %v5249_v47 }
 0x589   :  { %9603 = vmatprep.subr.bf16.mxu1 %v5250_v37 }
 0x58a   :  { %v9417_v58 = vpop.f32.mrb[24].mxu0 }
 0x58b   :  { %9580 = vmatmul.mubr.msk.bf16.gmra.mrb[44].mxu1 %vm1953_vm1, %v4551_v14  ;;  %v5085_v5 = vpop.f32.mrb[25].mxu0  ;;  %v5094_v21 = vadd.f32 %v9417_v58, %v12887_v59 }
 0x58c   :  { %9604 = vmatpush3.bf16.msra.mxu1 %v5250_v37  ;;  %v9418_v61 = vpop.f32.mrb[26].mxu0  ;;  %v5086_v36 = vadd.f32 %v12887_v59, %v5085_v5 }
 0x58d   :  { %v5097_v35 = vadd.f32 %v9418_v61, %v12887_v59  ;;  %9605 = vmatprep.subr.bf16.mxu1 %v5251_v16  ;;  %v5088_v12 = vpop.f32.mrb[27].mxu0 }
 0x58e   :  { %v5089_v47 = vadd.f32 %v12887_v59, %v5088_v12 }
 0x58f   :  { %v12969_v26 = vpack.c.bf16 %v5097_v35, %v5094_v21 }
 0x590   :  { %v12971_v45 = vpack.c.bf16 %v5089_v47, %v5086_v36  ;;  %9606 = vmatpush3.bf16.msra.mxu1 %v5251_v16 }
 0x592   :  { %v9421_v13 = vpop.f32.mrb[28].mxu0  ;;  %9631 = vmatprep.subr.bf16.mxu1 %v12971_v45 }
 0x593   :  { %v5101_v27 = vpop.f32.mrb[29].mxu0  ;;  %v5110_v51 = vadd.f32 %v9421_v13, %v12887_v59 }
 0x594   :  { %v9422_v14 = vpop.f32.mrb[30].mxu0  ;;  %v5102_v44 = vadd.f32 %v12887_v59, %v5101_v27 }
 0x595   :  { %v5113_v46 = vadd.f32 %v9422_v14, %v12887_v59  ;;  %v5104_v32 = vpop.f32.mrb[31].mxu0 }
 0x596   :  { %v5105_v20 = vadd.f32 %v12887_v59, %v5104_v32 }
 0x597   :  { %v12978_v40 = vpack.c.bf16 %v5113_v46, %v5110_v51 }
 0x598   :  { %v12980_v37 = vpack.c.bf16 %v5105_v20, %v5102_v44 }
 0x59a   :  { %v9425_v6 = vpop.f32.mrb[32].mxu0 }
 0x59b   :  { %v5117_v16 = vpop.f32.mrb[33].mxu0  ;;  %v5126_v34 = vadd.f32 %v9425_v6, %v12887_v59 }
 0x59c   :  { %v9426_v49 = vpop.f32.mrb[34].mxu0  ;;  %v5118_v38 = vadd.f32 %v12887_v59, %v5117_v16 }
 0x59d   :  { %v5129_v52 = vadd.f32 %v9426_v49, %v12887_v59  ;;  %v5120_v1 = vpop.f32.mrb[35].mxu0 }
 0x59e   :  { %v5121_v22 = vadd.f32 %v12887_v59, %v5120_v1 }
 0x59f   :  { %v12986_v55 = vpack.c.bf16 %v5129_v52, %v5126_v34 }
 0x5a0   :  { %v12988_v60 = vpack.c.bf16 %v5121_v22, %v5118_v38 }
 0x5a1   :  { %14850 = vst [vmem:[#allocation97_spill] sm:$0xff] %v12986_v55 }
 0x5a2   :  { %v9429_v41 = vpop.f32.mrb[36].mxu0 }
 0x5a3   :  { %v5133_v43 = vpop.f32.mrb[37].mxu0  ;;  %v5142_v25 = vadd.f32 %v9429_v41, %v12887_v59 }
 0x5a4   :  { %v9430_v4 = vpop.f32.mrb[38].mxu0  ;;  %v5134_v0 = vadd.f32 %v12887_v59, %v5133_v43 }
 0x5a5   :  { %v5145_v9 = vadd.f32 %v9430_v4, %v12887_v59  ;;  %v5136_v54 = vpop.f32.mrb[39].mxu0 }
 0x5a6   :  { %v5137_v63 = vadd.f32 %v12887_v59, %v5136_v54 }
 0x5a7   :  { %v12994_v58 = vpack.c.bf16 %v5145_v9, %v5142_v25 }
 0x5a8   :  { %v12996_v5 = vpack.c.bf16 %v5137_v63, %v5134_v0 }
 0x5a9   :  { %14851 = vst [vmem:[#allocation98_spill] sm:$0xff] %v12994_v58 }
 0x5aa   :  { %14852 = vst [vmem:[#allocation99_spill] sm:$0xff] %v12996_v5  ;;  %v9433_v61 = vpop.f32.mrb[40].mxu0 }
 0x5ab   :  { %v5149_v21 = vpop.f32.mrb[41].mxu0  ;;  %v5158_v12 = vadd.f32 %v9433_v61, %v12887_v59 }
 0x5ac   :  { %v9434_v35 = vpop.f32.mrb[42].mxu0  ;;  %v5150_v13 = vadd.f32 %v12887_v59, %v5149_v21 }
 0x5ad   :  { %v5161_v36 = vadd.f32 %v9434_v35, %v12887_v59  ;;  %v5152_v47 = vpop.f32.mrb[43].mxu0 }
 0x5ae   :  { %v5153_v27 = vadd.f32 %v12887_v59, %v5152_v47 }
 0x5af   :  { %v13002_v14 = vpack.c.bf16 %v5161_v36, %v5158_v12 }
 0x5b0   :  { %v13004_v51 = vpack.c.bf16 %v5153_v27, %v5150_v13 }
 0x5b1   :  { %14853 = vst [vmem:[#allocation100_spill] sm:$0xff] %v13002_v14 }
 0x5b2   :  { %v9437_v46 = vpop.f32.mrb[44].mxu0 }
 0x5b3   :  { %v5165_v32 = vpop.f32.mrb[45].mxu0  ;;  %v5174_v20 = vadd.f32 %v9437_v46, %v12887_v59 }
 0x5b4   :  { %v9438_v44 = vpop.f32.mrb[46].mxu0  ;;  %v5166_v49 = vadd.f32 %v12887_v59, %v5165_v32 }
 0x5b5   :  { %v5177_v6 = vadd.f32 %v9438_v44, %v12887_v59  ;;  %v5168_v16 = vpop.f32.mrb[47].mxu0 }
 0x5b6   :  { %v5169_v34 = vadd.f32 %v12887_v59, %v5168_v16  ;;  %v13010_v52 = vpop.f32.mrb[0].mxu1 }
 0x5b7   :  { %v13012_v1 = vpack.c.bf16 %v5177_v6, %v5174_v20  ;;  %v13014_v38 = vpop.f32.mrb[1].mxu1  ;;  %v5994_v22 = vsel %vm283_vm0, %v13010_v52, -inf }
 0x5b8   :  { %v13018_v41 = vpack.c.bf16 %v5169_v34, %v5166_v49  ;;  %5995 = vmax.xlane.f32.xlu0 %v5994_v22  ;;  %v13020_v43 = vpop.f32.mrb[2].mxu1  ;;  %v5988_v0 = vsel %vm283_vm0, %v13014_v38, -inf }
 0x5b9   :  { %14854 = vst [vmem:[#allocation101_spill] sm:$0xff] %v13012_v1  ;;  %v13022_v4 = vpop.f32.mrb[3].mxu1  ;;  %v5997_v25 = vsel %vm283_vm0, %v13020_v43, -inf }
 0x5ba   :  { %14855 = vst [vmem:[#allocation102_spill] sm:$0xff] %v13018_v41  ;;  %v9441_v9 = vpop.f32.mrb[48].mxu0  ;;  %5998 = vmax.xlane.f32.xlu1 %v5997_v25  ;;  %v5991_v12 = vsel %vm283_vm0, %v13022_v4, -inf }
 0x5bb   :  { %v5181_v54 = vpop.f32.mrb[49].mxu0  ;;  %v5190_v61 = vadd.f32 %v9441_v9, %v12887_v59 }
 0x5bc   :  { %v9442_v63 = vpop.f32.mrb[50].mxu0  ;;  %5989 = vmax.xlane.f32.xlu0 %v5988_v0  ;;  %v5182_v36 = vadd.f32 %v12887_v59, %v5181_v54 }
 0x5bd   :  { %v5193_v21 = vadd.f32 %v9442_v63, %v12887_v59  ;;  %v5184_v35 = vpop.f32.mrb[51].mxu0 }
 0x5be   :  { %v5185_v47 = vadd.f32 %v12887_v59, %v5184_v35  ;;  %5992 = vmax.xlane.f32.xlu1 %v5991_v12  ;;  %v13034_v13 = vpop.f32.mrb[4].mxu1 }
 0x5bf   :  { %v13036_v27 = vpack.c.bf16 %v5193_v21, %v5190_v61  ;;  %v13038_v46 = vpop.f32.mrb[5].mxu1  ;;  %v6006_v32 = vsel %vm283_vm0, %v13034_v13, -inf }
 0x5c0   :  { %v13042_v44 = vpack.c.bf16 %v5185_v47, %v5182_v36  ;;  %6007 = vmax.xlane.f32.xlu0 %v6006_v32  ;;  %v13044_v20 = vpop.f32.mrb[6].mxu1  ;;  %v6000_v22 = vsel %vm283_vm0, %v13038_v46, -inf }
 0x5c1   :  { %14856 = vst [vmem:[#allocation103_spill] sm:$0xff] %v13036_v27  ;;  %v13046_v6 = vpop.f32.mrb[7].mxu1  ;;  %v6009_v16 = vsel %vm283_vm0, %v13044_v20, -inf }
 0x5c2   :  { %14857 = vst [vmem:[#allocation104_spill] sm:$0xff] %v13042_v44  ;;  %v9445_v49 = vpop.f32.mrb[52].mxu0  ;;  %6010 = vmax.xlane.f32.xlu1 %v6009_v16  ;;  %v6003_v63 = vsel %vm283_vm0, %v13046_v6, -inf }
 0x5c3   :  { %v5197_v34 = vpop.f32.mrb[53].mxu0  ;;  %v5206_v9 = vadd.f32 %v9445_v49, %v12887_v59 }
 0x5c4   :  { %v9446_v25 = vpop.f32.mrb[54].mxu0  ;;  %6001 = vmax.xlane.f32.xlu0 %v6000_v22  ;;  %v5198_v61 = vadd.f32 %v12887_v59, %v5197_v34 }
 0x5c5   :  { %v5209_v54 = vadd.f32 %v9446_v25, %v12887_v59  ;;  %v5200_v0 = vpop.f32.mrb[55].mxu0 }
 0x5c6   :  { %v5201_v21 = vadd.f32 %v12887_v59, %v5200_v0  ;;  %6004 = vmax.xlane.f32.xlu1 %v6003_v63 }
 0x5c7   :  { %v13058_v35 = vpack.c.bf16 %v5209_v54, %v5206_v9 }
 0x5c8   :  { %v13060_v12 = vpack.c.bf16 %v5201_v21, %v5198_v61 }
 0x5c9   :  { %14858 = vst [vmem:[#allocation105_spill] sm:$0xff] %v13058_v35 }
 0x5ca   :  { %14859 = vst [vmem:[#allocation106_spill] sm:$0xff] %v13060_v12  ;;  %v9449_v36 = vpop.f32.mrb[56].mxu0 }
 0x5cb   :  { %v5213_v47 = vpop.f32.mrb[57].mxu0  ;;  %v5222_v16 = vadd.f32 %v9449_v36, %v12887_v59 }
 0x5cc   :  { %v9450_v32 = vpop.f32.mrb[58].mxu0  ;;  %v5214_v25 = vadd.f32 %v12887_v59, %v5213_v47 }
 0x5cd   :  { %v5225_v49 = vadd.f32 %v9450_v32, %v12887_v59  ;;  %v5216_v22 = vpop.f32.mrb[59].mxu0 }
 0x5ce   :  { %v5217_v24 = vadd.f32 %v12887_v59, %v5216_v22 }
 0x5cf   :  { %v13066_v34 = vpack.c.bf16 %v5225_v49, %v5222_v16 }
 0x5d0   :  { %v13068_v0 = vpack.c.bf16 %v5217_v24, %v5214_v25 }
 0x5d1   :  { %14860 = vst [vmem:[#allocation107_spill] sm:$0xff] %v13066_v34 }
 0x5d2   :  { %14861 = vst [vmem:[#allocation108_spill] sm:$0xff] %v13068_v0  ;;  %v9453_v9 = vpop.f32.mrb[60].mxu0 }
 0x5d3   :  { %v5229_v54 = vpop.f32.mrb[61].mxu0  ;;  %v5238_v61 = vadd.f32 %v9453_v9, %v12887_v59 }
 0x5d4   :  { %v9454_v63 = vpop.f32.mrb[62].mxu0  ;;  %v5230_v36 = vadd.f32 %v12887_v59, %v5229_v54 }
 0x5d5   :  { %v5241_v21 = vadd.f32 %v9454_v63, %v12887_v59  ;;  %v5232_v1 = vpop.f32.mrb[63].mxu0 }
 0x5d6   :  { %v5233_v32 = vadd.f32 %v12887_v59, %v5232_v1  ;;  %v13074_v41 = vpop.f32.mrb[8].mxu1 }
 0x5d7   :  { %v13076_v47 = vpack.c.bf16 %v5241_v21, %v5238_v61  ;;  %v13078_v16 = vpop.f32.mrb[9].mxu1  ;;  %v6018_v24 = vsel %vm283_vm0, %v13074_v41, -inf }
 0x5d8   :  { %v13082_v49 = vpack.c.bf16 %v5233_v32, %v5230_v36  ;;  %6019 = vmax.xlane.f32.xlu0 %v6018_v24  ;;  %v13084_v22 = vpop.f32.mrb[10].mxu1  ;;  %v6012_v59 = vsel %vm283_vm0, %v13078_v16, -inf }
 0x5d9   :  { %14862 = vst [vmem:[#allocation109_spill] sm:$0xff] %v13076_v47  ;;  %v13086_v25 = vpop.f32.mrb[11].mxu1  ;;  %v6021_v9 = vsel %vm283_vm0, %v13084_v22, -inf }
 0x5da   :  { %14863 = vst [vmem:[#allocation110_spill] sm:$0xff] %v13082_v49  ;;  %6022 = vmax.xlane.f32.xlu1 %v6021_v9  ;;  %v6015_v1 = vsel %vm283_vm0, %v13086_v25, -inf }
 0x5dc   :  { %6013 = vmax.xlane.f32.xlu0 %v6012_v59 }
 0x5de   :  { %6016 = vmax.xlane.f32.xlu1 %v6015_v1  ;;  %v13094_v54 = vpop.f32.mrb[12].mxu1 }
 0x5df   :  { %v13096_v63 = vpop.f32.mrb[13].mxu1  ;;  %v6030_v61 = vsel %vm283_vm0, %v13094_v54, -inf }
 0x5e0   :  { %6031 = vmax.xlane.f32.xlu0 %v6030_v61  ;;  %v13100_v21 = vpop.f32.mrb[14].mxu1  ;;  %v6024_v24 = vsel %vm283_vm0, %v13096_v63, -inf }
 0x5e1   :  { %v13102_v36 = vpop.f32.mrb[15].mxu1  ;;  %v6033_v32 = vsel %vm283_vm0, %v13100_v21, -inf }
 0x5e2   :  { %6034 = vmax.xlane.f32.xlu1 %v6033_v32  ;;  %v6027_v9 = vsel %vm283_vm0, %v13102_v36, -inf }
 0x5e4   :  { %6025 = vmax.xlane.f32.xlu0 %v6024_v24 }
 0x5e6   :  { %6028 = vmax.xlane.f32.xlu1 %v6027_v9 }
 0x5f6   :  { %v13110_v59 = vpop.f32.mrb[16].mxu1  ;;  %v13112_v1 = vpop.f32.mrb[64].mxu0 }
 0x5f7   :  { %v13114_v61 = vpop.f32.mrb[17].mxu1  ;;  %v13116_v47 = vpop.f32.mrb[65].mxu0  ;;  %v6042_v49 = vsel %vm283_vm0, %v13110_v59, -inf  ;;  %v6090_v35 = vsel %vm283_vm0, %v13112_v1, -inf }
 0x5f8   :  { %6043 = vmax.xlane.f32.xlu0 %v6042_v49  ;;  %v13120_v32 = vpop.f32.mrb[18].mxu1  ;;  %v13122_v34 = vpop.f32.mrb[66].mxu0  ;;  %v6036_v58 = vsel %vm283_vm0, %v13114_v61, -inf  ;;  %v6084_v2 = vsel %vm283_vm0, %v13116_v47, -inf }
 0x5f9   :  { %v13124_v24 = vpop.f32.mrb[19].mxu1  ;;  %v13126_v0 = vpop.f32.mrb[67].mxu0  ;;  %v6045_v9 = vsel %vm283_vm0, %v13120_v32, -inf  ;;  %v6093_v14 = vsel %vm283_vm0, %v13122_v34, -inf }
 0x5fa   :  { %14864 = vst [vmem:[#allocation111_spill] sm:$0xff] %v13124_v24  ;;  %14865 = vst [vmem:[#allocation112_spill] sm:$0xff] %v13126_v0  ;;  %6046 = vmax.xlane.f32.xlu1 %v6045_v9  ;;  %v6087_v30 = vsel %vm283_vm0, %v13126_v0, -inf }
 0x5fc   :  { %6091 = vmax.xlane.f32.xlu0 %v6090_v35 }
 0x5fe   :  { %6094 = vmax.xlane.f32.xlu1 %v6093_v14  ;;  %v13134_v49 = vpop.f32.mrb[20].mxu1  ;;  %v13136_v12 = vpop.f32.mrb[68].mxu0  ;;  %v6039_v14 = vsel %vm283_vm0, %v13124_v24, -inf }
 0x5ff   :  { %14866 = vst [vmem:[#allocation113_spill] sm:$0xff] %v13134_v49  ;;  %14867 = vst [vmem:[#allocation114_spill] sm:$0xff] %v13136_v12  ;;  %v13138_v27 = vpop.f32.mrb[21].mxu1  ;;  %v13140_v44 = vpop.f32.mrb[69].mxu0  ;;  %v6102_v24 = vsel %vm283_vm0, %v13136_v12, -inf }
 0x600   :  { %14868 = vst [vmem:[#allocation115_spill] sm:$0xff] %v13138_v27  ;;  %14869 = vst [vmem:[#allocation116_spill] sm:$0xff] %v13140_v44  ;;  %6037 = vmax.xlane.f32.xlu0 %v6036_v58  ;;  %v13144_v9 = vpop.f32.mrb[22].mxu1  ;;  %v13146_v5 = vpop.f32.mrb[70].mxu0  ;;  %v6054_v58 = vsel %vm283_vm0, %v13134_v49, -inf }
 0x601   :  { %14870 = vst [vmem:[#allocation117_spill] sm:$0xff] %v13144_v9  ;;  %14871 = vst [vmem:[#allocation118_spill] sm:$0xff] %v13146_v5  ;;  %v13148_v35 = vpop.f32.mrb[23].mxu1  ;;  %v13150_v55 = vpop.f32.mrb[71].mxu0  ;;  %v6057_v28 = vsel %vm283_vm0, %v13144_v9, -inf }
 0x602   :  { %14872 = vst [vmem:[#allocation119_spill] sm:$0xff] %v13148_v35  ;;  %14873 = vst [vmem:[#allocation120_spill] sm:$0xff] %v13150_v55  ;;  %6040 = vmax.xlane.f32.xlu1 %v6039_v14  ;;  %v6105_v14 = vsel %vm283_vm0, %v13146_v5, -inf }
 0x604   :  { %6085 = vmax.xlane.f32.xlu0 %v6084_v2  ;;  %v6048_v2 = vsel %vm283_vm0, %v13138_v27, -inf }
 0x606   :  { %6088 = vmax.xlane.f32.xlu1 %v6087_v30  ;;  %v6051_v30 = vsel %vm283_vm0, %v13148_v35, -inf }
 0x608   :  { %6055 = vmax.xlane.f32.xlu0 %v6054_v58  ;;  %v6096_v58 = vsel %vm283_vm0, %v13140_v44, -inf }
 0x60a   :  { %6058 = vmax.xlane.f32.xlu1 %v6057_v28  ;;  %v6099_v28 = vsel %vm283_vm0, %v13150_v55, -inf }
 0x60c   :  { %6103 = vmax.xlane.f32.xlu0 %v6102_v24 }
 0x60e   :  { %6106 = vmax.xlane.f32.xlu1 %v6105_v14 }
 0x610   :  { %6049 = vmax.xlane.f32.xlu0 %v6048_v2 }
 0x612   :  { %6052 = vmax.xlane.f32.xlu1 %v6051_v30 }
 0x614   :  { %6097 = vmax.xlane.f32.xlu0 %v6096_v58 }
 0x616   :  { %6100 = vmax.xlane.f32.xlu1 %v6099_v28  ;;  %v13174_v24 = vpop.f32.mrb[24].mxu1 }
 0x617   :  { %14874 = vst [vmem:[#allocation121_spill] sm:$0xff] %v13174_v24  ;;  %v13176_v5 = vpop.f32.mrb[25].mxu1  ;;  %v6066_v14 = vsel %vm283_vm0, %v13174_v24, -inf }
 0x618   :  { %14875 = vst [vmem:[#allocation122_spill] sm:$0xff] %v13176_v5  ;;  %v13180_v2 = vpop.f32.mrb[72].mxu0  ;;  %6067 = vmax.xlane.f32.xlu0 %v6066_v14  ;;  %v13182_v35 = vpop.f32.mrb[26].mxu1 }
 0x619   :  { %14876 = vst [vmem:[#allocation123_spill] sm:$0xff] %v13180_v2  ;;  %14877 = vst [vmem:[#allocation124_spill] sm:$0xff] %v13182_v35  ;;  %v13184_v30 = vpop.f32.mrb[73].mxu0  ;;  %v13186_v44 = vpop.f32.mrb[27].mxu1  ;;  %v6069_v58 = vsel %vm283_vm0, %v13182_v35, -inf  ;;  %v6138_v24 = vsel %vm283_vm0, %v13180_v2, -inf }
 0x61a   :  { %14878 = vst [vmem:[#allocation125_spill] sm:$0xff] %v13184_v30  ;;  %14879 = vst [vmem:[#allocation126_spill] sm:$0xff] %v13186_v44  ;;  %v13190_v28 = vpop.f32.mrb[74].mxu0  ;;  %6070 = vmax.xlane.f32.xlu1 %v6069_v58  ;;  %v6060_v35 = vsel %vm283_vm0, %v13176_v5, -inf  ;;  %v6132_v5 = vsel %vm283_vm0, %v13184_v30, -inf }
 0x61b   :  { %14880 = vst [vmem:[#allocation127_spill] sm:$0xff] %v13190_v28  ;;  %v13192_v55 = vpop.f32.mrb[75].mxu0  ;;  %v6141_v14 = vsel %vm283_vm0, %v13190_v28, -inf }
 0x61c   :  { %6139 = vmax.xlane.f32.xlu0 %v6138_v24  ;;  %v6063_v24 = vsel %vm283_vm0, %v13186_v44, -inf }
 0x61e   :  { %6142 = vmax.xlane.f32.xlu1 %v6141_v14  ;;  %v13198_v27 = vpop.f32.mrb[28].mxu1 }
 0x61f   :  { %14881 = vst [vmem:[#allocation128_spill] sm:$0xff] %v13198_v27  ;;  %v13200_v12 = vpop.f32.mrb[29].mxu1  ;;  %v6078_v0 = vsel %vm283_vm0, %v13198_v27, -inf }
 0x620   :  { %14882 = vst [vmem:[#allocation129_spill] sm:$0xff] %v13200_v12  ;;  %v13204_v9 = vpop.f32.mrb[76].mxu0  ;;  %6061 = vmax.xlane.f32.xlu0 %v6060_v35  ;;  %v13206_v58 = vpop.f32.mrb[30].mxu1  ;;  %v6135_v35 = vsel %vm283_vm0, %v13192_v55, -inf }
 0x621   :  { %14883 = vst [vmem:[#allocation130_spill] sm:$0xff] %v13204_v9  ;;  %14884 = vst [vmem:[#allocation131_spill] sm:$0xff] %v13206_v58  ;;  %v13208_v49 = vpop.f32.mrb[77].mxu0  ;;  %v13210_v2 = vpop.f32.mrb[31].mxu1  ;;  %v6081_v44 = vsel %vm283_vm0, %v13206_v58, -inf }
 0x622   :  { %14885 = vst [vmem:[#allocation132_spill] sm:$0xff] %v13208_v49  ;;  %14886 = vst [vmem:[#allocation133_spill] sm:$0xff] %v13210_v2  ;;  %v13214_v14 = vpop.f32.mrb[78].mxu0  ;;  %6064 = vmax.xlane.f32.xlu1 %v6063_v24  ;;  %v6150_v24 = vsel %vm283_vm0, %v13204_v9, -inf }
 0x623   :  { %14887 = vst [vmem:[#allocation134_spill] sm:$0xff] %v13214_v14  ;;  %v13216_v28 = vpop.f32.mrb[79].mxu0  ;;  %v6153_v30 = vsel %vm283_vm0, %v13214_v14, -inf }
 0x624   :  { %14888 = vst [vmem:[#allocation135_spill] sm:$0xff] %v13216_v28  ;;  %6133 = vmax.xlane.f32.xlu0 %v6132_v5  ;;  %v6072_v5 = vsel %vm283_vm0, %v13200_v12, -inf }
 0x626   :  { %6136 = vmax.xlane.f32.xlu1 %v6135_v35  ;;  %v6075_v35 = vsel %vm283_vm0, %v13210_v2, -inf }
 0x628   :  { %6079 = vmax.xlane.f32.xlu0 %v6078_v0  ;;  %v6144_v0 = vsel %vm283_vm0, %v13208_v49, -inf }
 0x62a   :  { %6082 = vmax.xlane.f32.xlu1 %v6081_v44  ;;  %v6147_v44 = vsel %vm283_vm0, %v13216_v28, -inf }
 0x62c   :  { %6151 = vmax.xlane.f32.xlu0 %v6150_v24 }
 0x62e   :  { %6154 = vmax.xlane.f32.xlu1 %v6153_v30 }
 0x630   :  { %6073 = vmax.xlane.f32.xlu0 %v6072_v5 }
 0x632   :  { %6076 = vmax.xlane.f32.xlu1 %v6075_v35 }
 0x634   :  { %6145 = vmax.xlane.f32.xlu0 %v6144_v0 }
 0x636   :  { %6148 = vmax.xlane.f32.xlu1 %v6147_v44  ;;  %v13238_v24 = vpop.f32.mrb[32].mxu1 }
 0x637   :  { %14889 = vst [vmem:[#allocation136_spill] sm:$0xff] %v13238_v24  ;;  %v13240_v14 = vpop.f32.mrb[33].mxu1  ;;  %v6114_v30 = vsel %vm283_vm0, %v13238_v24, -inf }
 0x638   :  { %14890 = vst [vmem:[#allocation137_spill] sm:$0xff] %v13240_v14  ;;  %6115 = vmax.xlane.f32.xlu0 %v6114_v30  ;;  %v13244_v5 = vpop.f32.mrb[34].mxu1  ;;  %v6108_v0 = vsel %vm283_vm0, %v13240_v14, -inf }
 0x639   :  { %14891 = vst [vmem:[#allocation138_spill] sm:$0xff] %v13244_v5  ;;  %v13246_v2 = vpop.f32.mrb[35].mxu1  ;;  %v6117_v35 = vsel %vm283_vm0, %v13244_v5, -inf }
 0x63a   :  { %14892 = vst [vmem:[#allocation139_spill] sm:$0xff] %v13246_v2  ;;  %6118 = vmax.xlane.f32.xlu1 %v6117_v35  ;;  %v6111_v44 = vsel %vm283_vm0, %v13246_v2, -inf }
 0x63c   :  { %6109 = vmax.xlane.f32.xlu0 %v6108_v0 }
 0x63e   :  { %6112 = vmax.xlane.f32.xlu1 %v6111_v44  ;;  %v13254_v28 = vpop.f32.mrb[36].mxu1 }
 0x63f   :  { %14893 = vst [vmem:[#allocation140_spill] sm:$0xff] %v13254_v28  ;;  %v13256_v24 = vpop.f32.mrb[37].mxu1  ;;  %v6126_v30 = vsel %vm283_vm0, %v13254_v28, -inf }
 0x640   :  { %14894 = vst [vmem:[#allocation141_spill] sm:$0xff] %v13256_v24  ;;  %6127 = vmax.xlane.f32.xlu0 %v6126_v30  ;;  %v13260_v49 = vpop.f32.mrb[38].mxu1  ;;  %v6120_v0 = vsel %vm283_vm0, %v13256_v24, -inf }
 0x641   :  { %14895 = vst [vmem:[#allocation142_spill] sm:$0xff] %v13260_v49  ;;  %v13262_v5 = vpop.f32.mrb[39].mxu1  ;;  %v6129_v35 = vsel %vm283_vm0, %v13260_v49, -inf }
 0x642   :  { %14896 = vst [vmem:[#allocation143_spill] sm:$0xff] %v13262_v5  ;;  %6130 = vmax.xlane.f32.xlu1 %v6129_v35  ;;  %v6123_v2 = vsel %vm283_vm0, %v13262_v5, -inf }
 0x644   :  { %6121 = vmax.xlane.f32.xlu0 %v6120_v0 }
 0x645   :  { %v5996_v44 = vpop.xlane.xlu0 %5995 }
 0x646   :  { %v6182_v14 = vsub.f32 %v13010_v52, %v5996_v44  ;;  %6124 = vmax.xlane.f32.xlu1 %v6123_v2 }
 0x647   :  { %v5999_v30 = vpop.xlane.xlu1 %5998 }
 0x648   :  { %v6248_v28 = vmul.f32 1.442695, %v6182_v14  ;;  %v6183_v12 = vsub.f32 %v13020_v43, %v5999_v30 }
 0x649   :  { %v5990_v9 = vpop.xlane.xlu0 %5989 }
 0x64a   :  { %10020 = vpow2.f32 %v6248_v28  ;;  %v6250_v58 = vmul.f32 1.442695, %v6183_v12  ;;  %v6180_v35 = vsub.f32 %v13014_v38, %v5990_v9 }
 0x64b   :  { %v5993_v49 = vpop.xlane.xlu1 %5992 }
 0x64c   :  { %10022 = vpow2.f32 %v6250_v58  ;;  %v6244_v24 = vmul.f32 1.442695, %v6180_v35  ;;  %v6181_v0 = vsub.f32 %v13022_v4, %v5993_v49 }
 0x64d   :  { %v6008_v27 = vpop.xlane.xlu0 %6007 }
 0x64e   :  { %10024 = vpow2.f32 %v6244_v24  ;;  %v6246_v5 = vmul.f32 1.442695, %v6181_v0  ;;  %v6186_v52 = vsub.f32 %v13034_v13, %v6008_v27 }
 0x64f   :  { %v6011_v2 = vpop.xlane.xlu1 %6010 }
 0x650   :  { %10026 = vpow2.f32 %v6246_v5  ;;  %v6256_v14 = vmul.f32 1.442695, %v6186_v52  ;;  %v6187_v43 = vsub.f32 %v13044_v20, %v6011_v2 }
 0x651   :  { %v6002_v44 = vpop.xlane.xlu0 %6001 }
 0x652   :  { %v6258_v28 = vmul.f32 1.442695, %v6187_v43  ;;  %v6184_v12 = vsub.f32 %v13038_v46, %v6002_v44  ;;  %10028 = vpow2.f32 %v6256_v14 }
 0x653   :  { %v6005_v38 = vpop.xlane.xlu1 %6004 }
 0x654   :  { %v10021_v9 = vpop.eup %10020  ;;  %10030 = vpow2.f32 %v6258_v28  ;;  %v6252_v58 = vmul.f32 1.442695, %v6184_v12  ;;  %v6185_v4 = vsub.f32 %v13046_v6, %v6005_v38 }
 0x655   :  { %v6378_v49 = vsel %vm283_vm0, %v10021_v9, 0.0 }
 0x656   :  { %v13279_v24 = vpop.eup %10022  ;;  %v6254_v13 = vmul.f32 1.442695, %v6185_v4  ;;  %v13281_v27 = vpop.f32.mrb[40].mxu1  ;;  %6379 = vadd.xlane.f32.xlu0 %v6378_v49  ;;  %10032 = vpow2.f32 %v6252_v58 }
 0x657   :  { %v6629_v20 = vpack.c.bf16 %v13279_v24, %v10021_v9  ;;  %v13284_v5 = vpop.f32.mrb[41].mxu1  ;;  %v6162_v43 = vsel %vm283_vm0, %v13281_v27, -inf }
 0x658   :  { %v10025_v46 = vpop.eup %10024  ;;  %10034 = vpow2.f32 %v6254_v13  ;;  %v13286_v30 = vpop.f32.mrb[42].mxu1  ;;  %v6156_v13 = vsel %vm283_vm0, %v13284_v5, -inf }
 0x659   :  { %v13288_v35 = vpop.f32.mrb[43].mxu1  ;;  %v6372_v6 = vsel %vm283_vm0, %v10025_v46, 0.0  ;;  %v6165_v9 = vsel %vm283_vm0, %v13286_v30, -inf }
 0x65a   :  { %v10027_v0 = vpop.eup %10026  ;;  %6373 = vadd.xlane.f32.xlu0 %v6372_v6 }
 0x65b   :  { %v6375_v52 = vsel %vm283_vm0, %v10027_v0, 0.0  ;;  %v6628_v2 = vpack.c.bf16 %v10027_v0, %v10025_v46 }
 0x65c   :  { %6376 = vadd.xlane.f32.xlu1 %v6375_v52  ;;  %v13292_v14 = vpop.eup %10028 }
 0x65d   :  { %9591 = vmatprep.mubr.msk.bf16.mxu0 %vm283_vm0, %v6628_v2  ;;  %v3146_v2 = vsel %vm283_vm0, %v12061_v53, 0.0 }
 0x65e   :  { %v13297_v44 = vpop.eup %10030  ;;  %v13299_v28 = vpop.f32.mrb[44].mxu1  ;;  %6163 = vmax.xlane.f32.xlu0 %v6162_v43  ;;  %9592 = vmatmul.mubr.msk.bf16.vlgmr.msra.gmra.mrb[80].mxu0 %vm283_vm0, %v6629_v20 }
 0x65f   :  { %v6631_v12 = vpack.c.bf16 %v13297_v44, %v13292_v14  ;;  %v13304_v38 = vpop.f32.mrb[45].mxu1  ;;  %9616 = vmatpush3.bf16.msra.mxu0 %v12942_v8  ;;  %v6159_v8 = vsel %vm283_vm0, %v13288_v35, -inf  ;;  %v6174_v0 = vsel %vm283_vm0, %v13299_v28, -inf }
 0x660   :  { %v13309_v58 = vpop.f32.mrb[46].mxu1  ;;  %9617 = vmatprep.subr.bf16.mxu0 %v12940_v57  ;;  %6166 = vmax.xlane.f32.xlu1 %v6165_v9  ;;  %v13312_v4 = vpop.eup %10032 }
 0x661   :  { %v13314_v49 = vpop.f32.mrb[47].mxu1  ;;  %v6177_v53 = vsel %vm283_vm0, %v13309_v58, -inf }
 0x662   :  { %v13318_v20 = vpop.eup %10034  ;;  %6157 = vmax.xlane.f32.xlu0 %v6156_v13 }
 0x663   :  { %9618 = vmatpush3.bf16.msra.mxu0 %v12940_v57  ;;  %v6630_v46 = vpack.c.bf16 %v13318_v20, %v13312_v4 }
 0x664   :  { %9619 = vmatprep.subr.bf16.mxu0 %v12959_v42  ;;  %6160 = vmax.xlane.f32.xlu1 %v6159_v8  ;;  %v6168_v8 = vsel %vm283_vm0, %v13304_v38, -inf }
 0x665   :  { %v6020_v6 = vpop.xlane.xlu0 %6019  ;;  %9595 = vmatprep.mubr.msk.bf16.mxu0 %vm283_vm0, %v6630_v46 }
 0x666   :  { %v6190_v52 = vsub.f32 %v13074_v41, %v6020_v6  ;;  %6175 = vmax.xlane.f32.xlu0 %v6174_v0  ;;  %9596 = vmatmul.mubr.msk.bf16.gmra.mrb[84].mxu0 %vm283_vm0, %v6631_v12  ;;  %v3104_v0 = vsel %vm283_vm0, %v11883_v18, 0.0 }
 0x667   :  { %9620 = vmatpush3.bf16.msra.mxu0 %v12959_v42  ;;  %v6023_v57 = vpop.xlane.xlu1 %6022 }
 0x668   :  { %v6264_v43 = vmul.f32 1.442695, %v6190_v52  ;;  %v6191_v9 = vsub.f32 %v13084_v22, %v6023_v57  ;;  %9621 = vmatprep.subr.bf16.mxu0 %v12957_v3  ;;  %3147 = vadd.xlane.f32.xlu1 %v3146_v2  ;;  %v6171_v57 = vsel %vm283_vm0, %v13314_v49, -inf }
 0x669   :  { %v6014_v13 = vpop.xlane.xlu0 %6013 }
 0x66a   :  { %v6266_v41 = vmul.f32 1.442695, %v6191_v9  ;;  %v6188_v46 = vsub.f32 %v13078_v16, %v6014_v13  ;;  %6169 = vmax.xlane.f32.xlu0 %v6168_v8  ;;  %10036 = vpow2.f32 %v6264_v43  ;;  %v3149_v9 = vsel %vm283_vm0, %v12064_v11, 0.0 }
 0x66b   :  { %9622 = vmatpush3.bf16.msra.mxu0 %v12957_v3  ;;  %v6017_v42 = vpop.xlane.xlu1 %6016  ;;  %v3083_v8 = vsel %vm283_vm0, %v11855_v10, 0.0  ;;  %v3170_v10 = vsel %vm283_vm0, %v11968_v50, 0.0  ;;  %v3173_v50 = vsel %vm283_vm0, %v11970_v19, 0.0  ;;  %v3107_v19 = vsel %vm283_vm0, %v11888_v7, 0.0 }
 0x66c   :  { %10038 = vpow2.f32 %v6266_v41  ;;  %v6260_v22 = vmul.f32 1.442695, %v6188_v46  ;;  %v6189_v12 = vsub.f32 %v13086_v25, %v6017_v42  ;;  %9647 = vmatprep.subr.bf16.mxu0 %v12988_v60  ;;  %6178 = vmax.xlane.f32.xlu1 %v6177_v53  ;;  %v3059_v42 = vsel %vm283_vm0, %v11811_v62, 0.0 }
 0x66d   :  { %v6032_v6 = vpop.xlane.xlu0 %6031  ;;  %v6381_v62 = vsel %vm283_vm0, %v13279_v24, 0.0  ;;  %v3152_v24 = vsel %vm283_vm0, %v12072_v48, 0.0  ;;  %v3194_v7 = vsel %vm283_vm0, %v12107_v15, 0.0  ;;  %v3062_v15 = vsel %vm283_vm0, %v11837_v39, 0.0 }
 0x66e   :  { %v6262_v16 = vmul.f32 1.442695, %v6189_v12  ;;  %v6194_v52 = vsub.f32 %v13094_v54, %v6032_v6  ;;  %3105 = vadd.xlane.f32.xlu0 %v3104_v0  ;;  %10040 = vpow2.f32 %v6260_v22  ;;  %v3128_v22 = vsel %vm283_vm0, %v11916_v17, 0.0 }
 0x66f   :  { %v6035_v3 = vpop.xlane.xlu1 %6034  ;;  %v3131_v39 = vsel %vm283_vm0, %v11919_v23, 0.0 }
 0x670   :  { %10042 = vpow2.f32 %v6262_v16  ;;  %v6272_v2 = vmul.f32 1.442695, %v6194_v52  ;;  %v6195_v25 = vsub.f32 %v13100_v21, %v6035_v3  ;;  %6172 = vmax.xlane.f32.xlu1 %v6171_v57  ;;  %v3197_v57 = vsel %vm283_vm0, %v12112_v29, 0.0 }
 0x671   :  { %v6026_v43 = vpop.xlane.xlu0 %6025 }
 0x672   :  { %v6274_v13 = vmul.f32 1.442695, %v6195_v25  ;;  %v6192_v18 = vsub.f32 %v13096_v63, %v6026_v43  ;;  %3150 = vadd.xlane.f32.xlu0 %v3149_v9  ;;  %10044 = vpow2.f32 %v6272_v2 }
 0x673   :  { %v6029_v54 = vpop.xlane.xlu1 %6028 }
 0x674   :  { %10046 = vpow2.f32 %v6274_v13  ;;  %v6268_v41 = vmul.f32 1.442695, %v6192_v18  ;;  %v6193_v46 = vsub.f32 %v13102_v36, %v6029_v54  ;;  %3084 = vadd.xlane.f32.xlu1 %v3083_v8  ;;  %v13356_v21 = vpop.eup %10036 }
 0x676   :  { %v13360_v11 = vpop.eup %10038  ;;  %v6270_v53 = vmul.f32 1.442695, %v6193_v46  ;;  %3060 = vadd.xlane.f32.xlu0 %v3059_v42  ;;  %10048 = vpow2.f32 %v6268_v41  ;;  %v14897_v46 = vld [vmem:[#allocation111_spill] sm:$0xff] }
 0x677   :  { %v6633_v63 = vpack.c.bf16 %v13360_v11, %v13356_v21 }
 0x678   :  { %10050 = vpow2.f32 %v6270_v53  ;;  %3171 = vadd.xlane.f32.xlu1 %v3170_v10  ;;  %v13366_v36 = vpop.eup %10040  ;;  %v14898_v53 = vld [vmem:[#allocation38_spill] sm:$0xff] }
 0x67a   :  { %v13370_v12 = vpop.eup %10042  ;;  %3129 = vadd.xlane.f32.xlu0 %v3128_v22  ;;  %v14899_v22 = vld [vmem:[#allocation67_spill] sm:$0xff] }
 0x67b   :  { %v6632_v6 = vpack.c.bf16 %v13370_v12, %v13366_v36 }
 0x67c   :  { %6382 = vadd.xlane.f32.xlu1 %v6381_v62  ;;  %v13376_v0 = vpop.eup %10044  ;;  %v3155_v62 = vsel %vm283_vm0, %v14899_v22, 0.0 }
 0x67d   :  { %9607 = vmatprep.mubr.msk.bf16.mxu1 %vm283_vm0, %v6632_v6  ;;  %v14900_v6 = vld [vmem:[#allocation112_spill] sm:$0xff] }
 0x67e   :  { %v13381_v16 = vpop.eup %10046  ;;  %9608 = vmatmul.mubr.msk.bf16.vlgmr.msra.gmra.mrb[48].mxu1 %vm283_vm0, %v6633_v63  ;;  %3174 = vadd.xlane.f32.xlu0 %v3173_v50  ;;  %v3218_v63 = vsel %vm283_vm0, %v14898_v53, 0.0 }
 0x67f   :  { %v6635_v17 = vpack.c.bf16 %v13381_v16, %v13376_v0  ;;  %9632 = vmatpush3.bf16.msra.mxu1 %v12971_v45 }
 0x680   :  { %9633 = vmatprep.subr.bf16.mxu1 %v12969_v26  ;;  %3153 = vadd.xlane.f32.xlu1 %v3152_v24  ;;  %v13390_v52 = vpop.eup %10048 }
 0x682   :  { %v13394_v3 = vpop.eup %10050  ;;  %3108 = vadd.xlane.f32.xlu0 %v3107_v19  ;;  %v6384_v19 = vsel %vm283_vm0, %v13312_v4, 0.0 }
 0x683   :  { %9634 = vmatpush3.bf16.msra.mxu1 %v12969_v26  ;;  %v6634_v45 = vpack.c.bf16 %v13394_v3, %v13390_v52  ;;  %v3086_v26 = vsel %vm283_vm0, %v11874_v31, 0.0  ;;  %v3176_v31 = vsel %vm283_vm0, %v11962_v33, 0.0  ;;  %v3221_v33 = vsel %vm283_vm0, %v12018_v56, 0.0 }
 0x684   :  { %9635 = vmatprep.subr.bf16.mxu1 %v12980_v37  ;;  %3198 = vadd.xlane.f32.xlu1 %v3197_v57 }
 0x685   :  { %v6044_v48 = vpop.xlane.xlu0 %6043  ;;  %9611 = vmatprep.mubr.msk.bf16.mxu1 %vm283_vm0, %v6634_v45  ;;  %v14901_v45 = vld [vmem:[#allocation113_spill] sm:$0xff] }
 0x686   :  { %v6198_v2 = vsub.f32 %v13110_v59, %v6044_v48  ;;  %9612 = vmatmul.mubr.msk.bf16.gmra.mrb[52].mxu1 %vm283_vm0, %v6635_v17  ;;  %3195 = vadd.xlane.f32.xlu0 %v3194_v7 }
 0x687   :  { %9636 = vmatpush3.bf16.msra.mxu1 %v12980_v37  ;;  %v6047_v29 = vpop.xlane.xlu1 %6046 }
 0x688   :  { %v6280_v25 = vmul.f32 1.442695, %v6198_v2  ;;  %9637 = vmatprep.subr.bf16.mxu1 %v12978_v40  ;;  %v6199_v43 = vsub.f32 %v13120_v32, %v6047_v29  ;;  %3087 = vadd.xlane.f32.xlu1 %v3086_v26  ;;  %v14902_v29 = vld [vmem:[#allocation75_spill] sm:$0xff] }
 0x689   :  { %v6092_v9 = vpop.xlane.xlu0 %6091  ;;  %v3089_v26 = vsel %vm283_vm0, %v14902_v29, 0.0 }
 0x68a   :  { %v6282_v59 = vmul.f32 1.442695, %v6199_v43  ;;  %v6214_v13 = vsub.f32 %v13112_v1, %v6092_v9  ;;  %3063 = vadd.xlane.f32.xlu0 %v3062_v15  ;;  %10052 = vpow2.f32 %v6280_v25  ;;  %v14903_v43 = vld [vmem:[#allocation117_spill] sm:$0xff] }
 0x68b   :  { %9638 = vmatpush3.bf16.msra.mxu1 %v12978_v40  ;;  %v6095_v37 = vpop.xlane.xlu1 %6094 }
 0x68c   :  { %10054 = vpow2.f32 %v6282_v59  ;;  %v6312_v18 = vmul.f32 1.442695, %v6214_v13  ;;  %9663 = vmatprep.subr.bf16.mxu1 %v13004_v51  ;;  %v6215_v32 = vsub.f32 %v13122_v34, %v6095_v37  ;;  %3177 = vadd.xlane.f32.xlu1 %v3176_v31  ;;  %v14904_v59 = vld [vmem:[#allocation50_spill] sm:$0xff] }
 0x68d   :  { %v6038_v54 = vpop.xlane.xlu0 %6037  ;;  %v3110_v13 = vsel %vm283_vm0, %v14904_v59, 0.0 }
 0x68e   :  { %v6314_v1 = vmul.f32 1.442695, %v6215_v32  ;;  %v6196_v8 = vsub.f32 %v13114_v61, %v6038_v54  ;;  %3132 = vadd.xlane.f32.xlu0 %v3131_v39  ;;  %10056 = vpow2.f32 %v6312_v18  ;;  %v14905_v18 = vld [vmem:[#allocation114_spill] sm:$0xff] }
 0x68f   :  { %v6041_v40 = vpop.xlane.xlu1 %6040 }
 0x690   :  { %10058 = vpow2.f32 %v6314_v1  ;;  %v6276_v41 = vmul.f32 1.442695, %v6196_v8  ;;  %v6197_v42 = vsub.f32 %v14897_v46, %v6041_v40  ;;  %3222 = vadd.xlane.f32.xlu1 %v3221_v33  ;;  %v14906_v1 = vld [vmem:[#allocation36_spill] sm:$0xff]  ;;  %v14907_v33 = vld [vmem:[#allocation118_spill] sm:$0xff] }
 0x691   :  { %v6086_v34 = vpop.xlane.xlu0 %6085  ;;  %v3179_v8 = vsel %vm283_vm0, %v14906_v1, 0.0 }
 0x692   :  { %v6278_v10 = vmul.f32 1.442695, %v6197_v42  ;;  %v6212_v23 = vsub.f32 %v13116_v47, %v6086_v34  ;;  %3219 = vadd.xlane.f32.xlu0 %v3218_v63  ;;  %10060 = vpow2.f32 %v6276_v41  ;;  %v14908_v34 = vld [vmem:[#allocation46_spill] sm:$0xff] }
 0x693   :  { %v6089_v61 = vpop.xlane.xlu1 %6088  ;;  %v3200_v53 = vsel %vm283_vm0, %v14908_v34, 0.0  ;;  %v14918_v34 = vld [vmem:[#allocation73_spill] sm:$0xff] }
 0x694   :  { %10062 = vpow2.f32 %v6278_v10  ;;  %v6308_v56 = vmul.f32 1.442695, %v6212_v23  ;;  %v6213_v50 = vsub.f32 %v14900_v6, %v6089_v61  ;;  %3156 = vadd.xlane.f32.xlu1 %v3155_v62  ;;  %v13432_v17 = vpop.eup %10052  ;;  %v14909_v23 = vld [vmem:[#allocation115_spill] sm:$0xff]  ;;  %v6387_v62 = vsel %vm283_vm0, %v13318_v20, 0.0  ;;  %v14912_v20 = vld [vmem:[#allocation116_spill] sm:$0xff] }
 0x695   :  { %v6056_v24 = vpop.xlane.xlu0 %6055 }
 0x696   :  { %v13436_v57 = vpop.eup %10054  ;;  %v6310_v47 = vmul.f32 1.442695, %v6213_v50  ;;  %v6202_v48 = vsub.f32 %v14901_v45, %v6056_v24  ;;  %6385 = vadd.xlane.f32.xlu0 %v6384_v19  ;;  %10064 = vpow2.f32 %v6308_v56  ;;  %v14910_v50 = vld [vmem:[#allocation119_spill] sm:$0xff]  ;;  %v14911_v45 = vld [vmem:[#allocation72_spill] sm:$0xff] }
 0x697   :  { %v6637_v7 = vpack.c.bf16 %v13436_v57, %v13432_v17  ;;  %v6059_v2 = vpop.xlane.xlu1 %6058 }
 0x698   :  { %10066 = vpow2.f32 %v6310_v47  ;;  %v6288_v25 = vmul.f32 1.442695, %v6202_v48  ;;  %v6203_v9 = vsub.f32 %v14903_v43, %v6059_v2  ;;  %3090 = vadd.xlane.f32.xlu1 %v3089_v26  ;;  %v13444_v4 = vpop.eup %10056  ;;  %v3065_v48 = vsel %vm283_vm0, %v14911_v45, 0.0  ;;  %v14913_v43 = vld [vmem:[#allocation44_spill] sm:$0xff]  ;;  %v14922_v45 = vld [vmem:[#allocation123_spill] sm:$0xff] }
 0x699   :  { %v6104_v15 = vpop.xlane.xlu0 %6103 }
 0x69a   :  { %v13448_v37 = vpop.eup %10058  ;;  %v6290_v31 = vmul.f32 1.442695, %v6203_v9  ;;  %v6218_v32 = vsub.f32 %v14905_v18, %v6104_v15  ;;  %3111 = vadd.xlane.f32.xlu0 %v3110_v13  ;;  %10068 = vpow2.f32 %v6288_v25  ;;  %v3158_v9 = vsel %vm283_vm0, %v14913_v43, 0.0  ;;  %v14914_v13 = vld [vmem:[#allocation97_spill] sm:$0xff] }
 0x69b   :  { %v6645_v54 = vpack.c.bf16 %v13448_v37, %v13444_v4  ;;  %v6107_v39 = vpop.xlane.xlu1 %6106 }
 0x69c   :  { %10070 = vpow2.f32 %v6290_v31  ;;  %v6320_v40 = vmul.f32 1.442695, %v6218_v32  ;;  %v6219_v41 = vsub.f32 %v14907_v33, %v6107_v39  ;;  %3180 = vadd.xlane.f32.xlu1 %v3179_v8  ;;  %v13456_v46 = vpop.eup %10060  ;;  %v14915_v31 = vld [vmem:[#allocation120_spill] sm:$0xff]  ;;  %v14916_v39 = vld [vmem:[#allocation51_spill] sm:$0xff] }
 0x69d   :  { %v6050_v42 = vpop.xlane.xlu0 %6049 }
 0x69e   :  { %v13460_v63 = vpop.eup %10062  ;;  %v6322_v10 = vmul.f32 1.442695, %v6219_v41  ;;  %v6200_v61 = vsub.f32 %v14909_v23, %v6050_v42  ;;  %3201 = vadd.xlane.f32.xlu0 %v3200_v53  ;;  %10072 = vpow2.f32 %v6320_v40  ;;  %v14917_v40 = vld [vmem:[#allocation121_spill] sm:$0xff]  ;;  %v3092_v53 = vsel %vm283_vm0, %v14918_v34, 0.0  ;;  %v14919_v23 = vld [vmem:[#allocation99_spill] sm:$0xff] }
 0x69f   :  { %v6053_v22 = vpop.xlane.xlu1 %6052  ;;  %v6636_v56 = vpack.c.bf16 %v13460_v63, %v13456_v46  ;;  %v6390_v34 = vsel %vm283_vm0, %v13292_v14, 0.0 }
 0x6a0   :  { %10074 = vpow2.f32 %v6322_v10  ;;  %v6284_v6 = vmul.f32 1.442695, %v6200_v61  ;;  %v6201_v24 = vsub.f32 %v14910_v50, %v6053_v22  ;;  %6388 = vadd.xlane.f32.xlu1 %v6387_v62  ;;  %v13468_v19 = vpop.eup %10064  ;;  %v14920_v61 = vld [vmem:[#allocation124_spill] sm:$0xff] }
 0x6a1   :  { %v6098_v47 = vpop.xlane.xlu0 %6097  ;;  %9623 = vmatprep.mubr.msk.bf16.mxu0 %vm283_vm0, %v6636_v56 }
 0x6a2   :  { %v13473_v2 = vpop.eup %10066  ;;  %v6286_v29 = vmul.f32 1.442695, %v6201_v24  ;;  %v6216_v26 = vsub.f32 %v14912_v20, %v6098_v47  ;;  %9624 = vmatmul.mubr.msk.bf16.vlgmr.msra.gmra.mrb[88].mxu0 %vm283_vm0, %v6637_v7  ;;  %3066 = vadd.xlane.f32.xlu0 %v3065_v48  ;;  %10076 = vpow2.f32 %v6284_v6  ;;  %v14921_v6 = vld [vmem:[#allocation60_spill] sm:$0xff] }
 0x6a3   :  { %9648 = vmatpush3.bf16.msra.mxu0 %v12988_v60  ;;  %v6101_v25 = vpop.xlane.xlu1 %6100  ;;  %v6644_v15 = vpack.c.bf16 %v13473_v2, %v13468_v19  ;;  %v3134_v60 = vsel %vm283_vm0, %v14916_v39, 0.0  ;;  %v3224_v50 = vsel %vm283_vm0, %v14921_v6, 0.0 }
 0x6a4   :  { %10078 = vpow2.f32 %v6286_v29  ;;  %v6316_v59 = vmul.f32 1.442695, %v6216_v26  ;;  %9649 = vmatprep.subr.bf16.mxu0 %v14914_v13  ;;  %v6217_v18 = vsub.f32 %v14915_v31, %v6101_v25  ;;  %3159 = vadd.xlane.f32.xlu1 %v3158_v9  ;;  %v13484_v32 = vpop.eup %10068  ;;  %v14923_v26 = vld [vmem:[#allocation37_spill] sm:$0xff]  ;;  %v14924_v9 = vld [vmem:[#allocation98_spill] sm:$0xff] }
 0x6a5   :  { %v6068_v7 = vpop.xlane.xlu0 %6067  ;;  %v3182_v25 = vsel %vm283_vm0, %v14923_v26, 0.0 }
 0x6a6   :  { %v13488_v1 = vpop.eup %10070  ;;  %v6318_v8 = vmul.f32 1.442695, %v6217_v18  ;;  %v6206_v33 = vsub.f32 %v14917_v40, %v6068_v7  ;;  %3135 = vadd.xlane.f32.xlu0 %v3134_v60  ;;  %10080 = vpow2.f32 %v6316_v59  ;;  %v14925_v59 = vld [vmem:[#allocation127_spill] sm:$0xff]  ;;  %v14926_v7 = vld [vmem:[#allocation76_spill] sm:$0xff]  ;;  %v14927_v40 = vld [vmem:[#allocation122_spill] sm:$0xff] }
 0x6a7   :  { %v6639_v41 = vpack.c.bf16 %v13488_v1, %v13484_v32  ;;  %9650 = vmatpush3.bf16.msra.mxu0 %v14914_v13  ;;  %v6071_v42 = vpop.xlane.xlu1 %6070  ;;  %v3113_v39 = vsel %vm283_vm0, %v14926_v7, 0.0  ;;  %v14933_v7 = vld [vmem:[#allocation70_spill] sm:$0xff] }
 0x6a8   :  { %10082 = vpow2.f32 %v6318_v8  ;;  %v6296_v10 = vmul.f32 1.442695, %v6206_v33  ;;  %9651 = vmatprep.subr.bf16.mxu0 %v14919_v23  ;;  %v6207_v22 = vsub.f32 %v14920_v61, %v6071_v42  ;;  %3093 = vadd.xlane.f32.xlu1 %v3092_v53  ;;  %v13498_v62 = vpop.eup %10072  ;;  %v14929_v61 = vld [vmem:[#allocation126_spill] sm:$0xff] }
 0x6a9   :  { %v6140_v56 = vpop.xlane.xlu0 %6139 }
 0x6aa   :  { %v13502_v24 = vpop.eup %10074  ;;  %v6298_v47 = vmul.f32 1.442695, %v6207_v22  ;;  %v6230_v48 = vsub.f32 %v14922_v45, %v6140_v56  ;;  %3225 = vadd.xlane.f32.xlu0 %v3224_v50  ;;  %10084 = vpow2.f32 %v6296_v10  ;;  %v14930_v50 = vld [vmem:[#allocation48_spill] sm:$0xff] }
 0x6ab   :  { %v6647_v29 = vpack.c.bf16 %v13502_v24, %v13498_v62  ;;  %9652 = vmatpush3.bf16.msra.mxu0 %v14919_v23  ;;  %v6143_v20 = vpop.xlane.xlu1 %6142  ;;  %v14928_v23 = vld [vmem:[#allocation104_spill] sm:$0xff] }
 0x6ac   :  { %10086 = vpow2.f32 %v6298_v47  ;;  %v6344_v43 = vmul.f32 1.442695, %v6230_v48  ;;  %9653 = vmatprep.subr.bf16.mxu0 %v14924_v9  ;;  %v6231_v13 = vsub.f32 %v14925_v59, %v6143_v20  ;;  %3183 = vadd.xlane.f32.xlu1 %v3182_v25  ;;  %v13512_v31 = vpop.eup %10076  ;;  %v3203_v47 = vsel %vm283_vm0, %v14930_v50, 0.0  ;;  %v14931_v48 = vld [vmem:[#allocation125_spill] sm:$0xff]  ;;  %v14932_v25 = vld [vmem:[#allocation47_spill] sm:$0xff] }
 0x6ad   :  { %v6062_v18 = vpop.xlane.xlu0 %6061 }
 0x6ae   :  { %v13516_v60 = vpop.eup %10078  ;;  %v6346_v8 = vmul.f32 1.442695, %v6231_v13  ;;  %v6204_v33 = vsub.f32 %v14927_v40, %v6062_v18  ;;  %3114 = vadd.xlane.f32.xlu0 %v3113_v39  ;;  %10088 = vpow2.f32 %v6344_v43  ;;  %v3161_v43 = vsel %vm283_vm0, %v14932_v25, 0.0  ;;  %v14934_v40 = vld [vmem:[#allocation128_spill] sm:$0xff] }
 0x6af   :  { %9654 = vmatpush3.bf16.msra.mxu0 %v14924_v9  ;;  %v6065_v42 = vpop.xlane.xlu1 %6064  ;;  %v6638_v53 = vpack.c.bf16 %v13516_v60, %v13512_v31  ;;  %v3068_v39 = vsel %vm283_vm0, %v14933_v7, 0.0 }
 0x6b0   :  { %10090 = vpow2.f32 %v6346_v8  ;;  %v6292_v10 = vmul.f32 1.442695, %v6204_v33  ;;  %9679 = vmatprep.subr.bf16.mxu0 %v14928_v23  ;;  %v6205_v22 = vsub.f32 %v14929_v61, %v6065_v42  ;;  %6391 = vadd.xlane.f32.xlu1 %v6390_v34  ;;  %v13526_v56 = vpop.eup %10080  ;;  %v14936_v61 = vld [vmem:[#allocation131_spill] sm:$0xff] }
 0x6b1   :  { %v6134_v6 = vpop.xlane.xlu0 %6133  ;;  %9627 = vmatprep.mubr.msk.bf16.mxu0 %vm283_vm0, %v6638_v53  ;;  %v14935_v53 = vld [vmem:[#allocation74_spill] sm:$0xff] }
 0x6b2   :  { %v13531_v45 = vpop.eup %10082  ;;  %v6294_v14 = vmul.f32 1.442695, %v6205_v22  ;;  %v6228_v20 = vsub.f32 %v14931_v48, %v6134_v6  ;;  %9628 = vmatmul.mubr.msk.bf16.gmra.mrb[92].mxu0 %vm283_vm0, %v6639_v41  ;;  %3204 = vadd.xlane.f32.xlu0 %v3203_v47  ;;  %10092 = vpow2.f32 %v6292_v10  ;;  %v14937_v47 = vld [vmem:[#allocation53_spill] sm:$0xff] }
 0x6b3   :  { %9655 = vmatprep.mubr.msk.bf16.mxu0 %vm283_vm0, %v6644_v15  ;;  %v6137_v26 = vpop.xlane.xlu1 %6136  ;;  %v6646_v9 = vpack.c.bf16 %v13531_v45, %v13526_v56 }
 0x6b4   :  { %10094 = vpow2.f32 %v6294_v14  ;;  %v6340_v59 = vmul.f32 1.442695, %v6228_v20  ;;  %v6229_v13 = vsub.f32 %v13192_v55, %v6137_v26  ;;  %3162 = vadd.xlane.f32.xlu1 %v3161_v43  ;;  %v13544_v41 = vpop.eup %10084  ;;  %v3095_v55 = vsel %vm283_vm0, %v14935_v53, 0.0  ;;  %v14938_v26 = vld [vmem:[#allocation130_spill] sm:$0xff] }
 0x6b5   :  { %v6080_v18 = vpop.xlane.xlu0 %6079  ;;  %v3137_v14 = vsel %vm283_vm0, %v14937_v47, 0.0 }
 0x6b6   :  { %v13548_v8 = vpop.eup %10086  ;;  %v6342_v15 = vmul.f32 1.442695, %v6229_v13  ;;  %v6210_v33 = vsub.f32 %v14934_v40, %v6080_v18  ;;  %3069 = vadd.xlane.f32.xlu0 %v3068_v39  ;;  %10096 = vpow2.f32 %v6340_v59  ;;  %v14939_v13 = vld [vmem:[#allocation39_spill] sm:$0xff] }
 0x6b7   :  { %v6641_v42 = vpack.c.bf16 %v13548_v8, %v13544_v41  ;;  %v6083_v34 = vpop.xlane.xlu1 %6082  ;;  %v3185_v18 = vsel %vm283_vm0, %v14939_v13, 0.0  ;;  %v14940_v39 = vld [vmem:[#allocation103_spill] sm:$0xff] }
 0x6b8   :  { %10098 = vpow2.f32 %v6342_v15  ;;  %v6304_v10 = vmul.f32 1.442695, %v6210_v33  ;;  %v6211_v22 = vsub.f32 %v14936_v61, %v6083_v34  ;;  %3096 = vadd.xlane.f32.xlu1 %v3095_v55  ;;  %v13556_v6 = vpop.eup %10088  ;;  %v14941_v15 = vld [vmem:[#allocation134_spill] sm:$0xff]  ;;  %v14943_v55 = vld [vmem:[#allocation129_spill] sm:$0xff] }
 0x6b9   :  { %v6152_v50 = vpop.xlane.xlu0 %6151  ;;  %v14942_v34 = vld [vmem:[#allocation62_spill] sm:$0xff] }
 0x6ba   :  { %v13560_v48 = vpop.eup %10090  ;;  %v6306_v20 = vmul.f32 1.442695, %v6211_v22  ;;  %v6234_v25 = vsub.f32 %v14938_v26, %v6152_v50  ;;  %9656 = vmatmul.mubr.msk.bf16.vlgmr.msra.gmra.mrb[96].mxu0 %vm283_vm0, %v6645_v54  ;;  %3138 = vadd.xlane.f32.xlu0 %v3137_v14  ;;  %10100 = vpow2.f32 %v6304_v10  ;;  %v3227_v53 = vsel %vm283_vm0, %v14942_v34, 0.0  ;;  %v14944_v14 = vld [vmem:[#allocation106_spill] sm:$0xff] }
 0x6bb   :  { %v6653_v43 = vpack.c.bf16 %v13560_v48, %v13556_v6  ;;  %9680 = vmatpush3.bf16.msra.mxu0 %v14928_v23  ;;  %9659 = vmatprep.mubr.msk.bf16.mxu0 %vm283_vm0, %v6646_v9  ;;  %v6155_v59 = vpop.xlane.xlu1 %6154  ;;  %v6393_v22 = vsel %vm283_vm0, %v13297_v44, 0.0 }
 0x6bc   :  { %10102 = vpow2.f32 %v6306_v20  ;;  %v6352_v7 = vmul.f32 1.442695, %v6234_v25  ;;  %9681 = vmatprep.subr.bf16.mxu0 %v14940_v39  ;;  %v6235_v40 = vsub.f32 %v14941_v15, %v6155_v59  ;;  %3186 = vadd.xlane.f32.xlu1 %v3185_v18  ;;  %v13575_v54 = vpop.eup %10092  ;;  %v14945_v20 = vld [vmem:[#allocation133_spill] sm:$0xff] }
 0x6bd   :  { %v6074_v33 = vpop.xlane.xlu0 %6073 }
 0x6be   :  { %v13579_v23 = vpop.eup %10094  ;;  %v6354_v9 = vmul.f32 1.442695, %v6235_v40  ;;  %v6208_v10 = vsub.f32 %v14943_v55, %v6074_v33  ;;  %3228 = vadd.xlane.f32.xlu0 %v3227_v53  ;;  %10104 = vpow2.f32 %v6352_v7  ;;  %v14946_v7 = vld [vmem:[#allocation132_spill] sm:$0xff]  ;;  %v14949_v53 = vld [vmem:[#allocation135_spill] sm:$0xff] }
 0x6bf   :  { %9682 = vmatpush3.bf16.msra.mxu0 %v14940_v39  ;;  %v6077_v61 = vpop.xlane.xlu1 %6076  ;;  %v6640_v50 = vpack.c.bf16 %v13579_v23, %v13575_v54  ;;  %v14947_v39 = vld [vmem:[#allocation61_spill] sm:$0xff] }
 0x6c0   :  { %10106 = vpow2.f32 %v6354_v9  ;;  %v6300_v47 = vmul.f32 1.442695, %v6208_v10  ;;  %9683 = vmatprep.subr.bf16.mxu0 %v14944_v14  ;;  %v6209_v26 = vsub.f32 %v14945_v20, %v6077_v61  ;;  %6394 = vadd.xlane.f32.xlu1 %v6393_v22  ;;  %v13589_v25 = vpop.eup %10096  ;;  %v3116_v15 = vsel %vm283_vm0, %v14947_v39, 0.0  ;;  %v14951_v10 = vld [vmem:[#allocation105_spill] sm:$0xff]  ;;  %v14955_v39 = vld [vmem:[#allocation138_spill] sm:$0xff] }
 0x6c1   :  { %v6146_v59 = vpop.xlane.xlu0 %6145  ;;  %9639 = vmatprep.mubr.msk.bf16.mxu1 %vm283_vm0, %v6640_v50 }
 0x6c2   :  { %v13592_v13 = vpop.eup %10098  ;;  %v6302_v18 = vmul.f32 1.442695, %v6209_v26  ;;  %v6232_v44 = vsub.f32 %v14946_v7, %v6146_v59  ;;  %9640 = vmatmul.mubr.msk.bf16.vlgmr.msra.gmra.mrb[56].mxu1 %vm283_vm0, %v6641_v42  ;;  %9660 = vmatmul.mubr.msk.bf16.gmra.mrb[100].mxu0 %vm283_vm0, %v6647_v29  ;;  %10108 = vpow2.f32 %v6300_v47  ;;  %v14948_v42 = vld [vmem:[#allocation100_spill] sm:$0xff]  ;;  %v14953_v26 = vld [vmem:[#allocation49_spill] sm:$0xff] }
 0x6c3   :  { %9664 = vmatpush3.bf16.msra.mxu1 %v13004_v51  ;;  %9684 = vmatpush3.bf16.msra.mxu0 %v14944_v14  ;;  %v6149_v40 = vpop.xlane.xlu1 %6148  ;;  %v6652_v33 = vpack.c.bf16 %v13592_v13, %v13589_v25  ;;  %v14950_v29 = vld [vmem:[#allocation68_spill] sm:$0xff]  ;;  %v3206_v59 = vsel %vm283_vm0, %v14953_v26, 0.0  ;;  %v14960_v26 = vld [vmem:[#allocation101_spill] sm:$0xff] }
 0x6c4   :  { %10110 = vpow2.f32 %v6302_v18  ;;  %v6348_v34 = vmul.f32 1.442695, %v6232_v44  ;;  %3117 = vadd.xlane.f32.xlu0 %v3116_v15  ;;  %9665 = vmatprep.subr.bf16.mxu1 %v14948_v42  ;;  %v6233_v9 = vsub.f32 %v14949_v53, %v6149_v40  ;;  %v3164_v55 = vsel %vm283_vm0, %v14950_v29, 0.0  ;;  %v13610_v51 = vpop.eup %10100  ;;  %v14952_v47 = vld [vmem:[#allocation136_spill] sm:$0xff]  ;;  %v14954_v44 = vld [vmem:[#allocation102_spill] sm:$0xff]  ;;  %v14956_v40 = vld [vmem:[#allocation35_spill] sm:$0xff] }
 0x6c5   :  { %9685 = vmatprep.subr.bf16.mxu0 %v14951_v10  ;;  %v6116_v61 = vpop.xlane.xlu0 %6115  ;;  %3165 = vadd.xlane.f32.xlu1 %v3164_v55  ;;  %v14958_v29 = vld [vmem:[#allocation137_spill] sm:$0xff] }
 0x6c6   :  { %v13613_v22 = vpop.eup %10102  ;;  %v6350_v50 = vmul.f32 1.442695, %v6233_v9  ;;  %v6222_v14 = vsub.f32 %v14952_v47, %v6116_v61  ;;  %9687 = vmatprep.mubr.msk.bf16.mxu0 %vm283_vm0, %v6652_v33  ;;  %10112 = vpow2.f32 %v6348_v34  ;;  %v3188_v33 = vsel %vm283_vm0, %v14956_v40, 0.0  ;;  %v14959_v61 = vld [vmem:[#allocation71_spill] sm:$0xff] }
 0x6c7   :  { %v6643_v20 = vpack.c.bf16 %v13613_v22, %v13610_v51  ;;  %9666 = vmatpush3.bf16.msra.mxu1 %v14948_v42  ;;  %9686 = vmatpush3.bf16.msra.mxu0 %v14951_v10  ;;  %v6119_v18 = vpop.xlane.xlu1 %6118 }
 0x6c8   :  { %10114 = vpow2.f32 %v6350_v50  ;;  %v6328_v7 = vmul.f32 1.442695, %v6222_v14  ;;  %3207 = vadd.xlane.f32.xlu0 %v3206_v59  ;;  %9667 = vmatprep.subr.bf16.mxu1 %v14954_v44  ;;  %v6223_v15 = vsub.f32 %v14955_v39, %v6119_v18  ;;  %v13627_v53 = vpop.eup %10104  ;;  %v3071_v50 = vsel %vm283_vm0, %v14959_v61, 0.0  ;;  %v14961_v59 = vld [vmem:[#allocation139_spill] sm:$0xff]  ;;  %v14962_v39 = vld [vmem:[#allocation57_spill] sm:$0xff] }
 0x6c9   :  { %v6110_v34 = vpop.xlane.xlu0 %6109  ;;  %3189 = vadd.xlane.f32.xlu1 %v3188_v33  ;;  %v14963_v33 = vld [vmem:[#allocation140_spill] sm:$0xff] }
 0x6ca   :  { %v13629_v42 = vpop.eup %10106  ;;  %v6330_v9 = vmul.f32 1.442695, %v6223_v15  ;;  %v6220_v55 = vsub.f32 %v14958_v29, %v6110_v34  ;;  %9688 = vmatmul.mubr.msk.bf16.vlgmr.msra.gmra.mrb[104].mxu0 %vm283_vm0, %v6653_v43  ;;  %10116 = vpow2.f32 %v6328_v7  ;;  %v3212_v43 = vsel %vm283_vm0, %v14962_v39, 0.0 }
 0x6cb   :  { %14957 = vst [vmem:[#allocation111_spill] sm:$0xff] %v13629_v42  ;;  %v6655_v10 = vpack.c.bf16 %v13629_v42, %v13627_v53  ;;  %9668 = vmatpush3.bf16.msra.mxu1 %v14954_v44  ;;  %v6113_v47 = vpop.xlane.xlu1 %6112 }
 0x6cc   :  { %10118 = vpow2.f32 %v6330_v9  ;;  %v6324_v14 = vmul.f32 1.442695, %v6220_v55  ;;  %3072 = vadd.xlane.f32.xlu0 %v3071_v50  ;;  %9669 = vmatprep.subr.bf16.mxu1 %v14960_v26  ;;  %v6221_v18 = vsub.f32 %v14961_v59, %v6113_v47  ;;  %v13645_v15 = vpop.eup %10108  ;;  %v14964_v9 = vld [vmem:[#allocation52_spill] sm:$0xff]  ;;  %v14966_v59 = vld [vmem:[#allocation142_spill] sm:$0xff] }
 0x6cd   :  { %v6128_v40 = vpop.xlane.xlu0 %6127  ;;  %3213 = vadd.xlane.f32.xlu1 %v3212_v43  ;;  %v3140_v29 = vsel %vm283_vm0, %v14964_v9, 0.0  ;;  %v14965_v47 = vld [vmem:[#allocation108_spill] sm:$0xff]  ;;  %v14968_v9 = vld [vmem:[#allocation141_spill] sm:$0xff] }
 0x6ce   :  { %v13647_v7 = vpop.eup %10110  ;;  %v6326_v44 = vmul.f32 1.442695, %v6221_v18  ;;  %v6226_v34 = vsub.f32 %v14963_v33, %v6128_v40  ;;  %10120 = vpow2.f32 %v6324_v14  ;;  %v14967_v18 = vld [vmem:[#allocation66_spill] sm:$0xff] }
 0x6cf   :  { %9670 = vmatpush3.bf16.msra.mxu1 %v14960_v26  ;;  %v6131_v55 = vpop.xlane.xlu1 %6130  ;;  %v6642_v61 = vpack.c.bf16 %v13647_v7, %v13645_v15  ;;  %v3236_v43 = vsel %vm283_vm0, %v14967_v18, 0.0 }
 0x6d0   :  { %10122 = vpow2.f32 %v6326_v44  ;;  %v6336_v50 = vmul.f32 1.442695, %v6226_v34  ;;  %3141 = vadd.xlane.f32.xlu0 %v3140_v29  ;;  %9695 = vmatprep.subr.bf16.mxu1 %v14965_v47  ;;  %v6227_v39 = vsub.f32 %v14966_v59, %v6131_v55  ;;  %v13659_v14 = vpop.eup %10112  ;;  %v14969_v34 = vld [vmem:[#allocation45_spill] sm:$0xff] }
 0x6d1   :  { %v6122_v26 = vpop.xlane.xlu0 %6121  ;;  %3237 = vadd.xlane.f32.xlu1 %v3236_v43  ;;  %9643 = vmatprep.mubr.msk.bf16.mxu1 %vm283_vm0, %v6642_v61  ;;  %v3230_v29 = vsel %vm283_vm0, %v14969_v34, 0.0  ;;  %v14970_v43 = vld [vmem:[#allocation143_spill] sm:$0xff] }
 0x6d2   :  { %v13662_v40 = vpop.eup %10114  ;;  %v6338_v33 = vmul.f32 1.442695, %v6227_v39  ;;  %v6224_v44 = vsub.f32 %v14968_v9, %v6122_v26  ;;  %9644 = vmatmul.mubr.msk.bf16.gmra.mrb[60].mxu1 %vm283_vm0, %v6643_v20  ;;  %10124 = vpow2.f32 %v6336_v50  ;;  %v6402_v39 = vsel %vm283_vm0, %v13356_v21, 0.0 }
 0x6d3   :  { %v6125_v55 = vpop.xlane.xlu1 %6124  ;;  %v6654_v59 = vpack.c.bf16 %v13662_v40, %v13659_v14  ;;  %v6399_v21 = vsel %vm283_vm0, %v13370_v12, 0.0 }
 0x6d4   :  { %10126 = vpow2.f32 %v6338_v33  ;;  %v6332_v18 = vmul.f32 1.442695, %v6224_v44  ;;  %3231 = vadd.xlane.f32.xlu0 %v3230_v29  ;;  %v6225_v61 = vsub.f32 %v14970_v43, %v6125_v55  ;;  %v13673_v42 = vpop.eup %10116  ;;  %v14971_v33 = vld [vmem:[#allocation63_spill] sm:$0xff] }
 0x6d5   :  { %6403 = vadd.xlane.f32.xlu1 %v6402_v39  ;;  %9691 = vmatprep.mubr.msk.bf16.mxu0 %vm283_vm0, %v6654_v59  ;;  %v3119_v9 = vsel %vm283_vm0, %v14971_v33, 0.0  ;;  %v14972_v29 = vld [vmem:[#allocation55_spill] sm:$0xff]  ;;  %v6408_v59 = vsel %vm283_vm0, %v13390_v52, 0.0  ;;  %v6426_v52 = vsel %vm283_vm0, %v13432_v17, 0.0  ;;  %v6474_v17 = vsel %vm283_vm0, %v13444_v4, 0.0 }
 0x6d6   :  { %v13676_v20 = vpop.eup %10118  ;;  %v6334_v50 = vmul.f32 1.442695, %v6225_v61  ;;  %9692 = vmatmul.mubr.msk.bf16.gmra.mrb[108].mxu0 %vm283_vm0, %v6655_v10  ;;  %10128 = vpow2.f32 %v6332_v18  ;;  %v3209_v10 = vsel %vm283_vm0, %v14972_v29, 0.0  ;;  %v14973_v61 = vld [vmem:[#allocation34_spill] sm:$0xff] }
 0x6d7   :  { %v6649_v26 = vpack.c.bf16 %v13676_v20, %v13673_v42  ;;  %v3143_v39 = vsel %vm283_vm0, %v14973_v61, 0.0 }
 0x6d8   :  { %10130 = vpow2.f32 %v6334_v50  ;;  %3120 = vadd.xlane.f32.xlu0 %v3119_v9  ;;  %v13685_v44 = vpop.eup %10120  ;;  %v14974_v50 = vld [vmem:[#allocation107_spill] sm:$0xff] }
 0x6d9   :  { %6400 = vadd.xlane.f32.xlu1 %v6399_v21 }
 0x6da   :  { %v13687_v34 = vpop.eup %10122 }
 0x6db   :  { %v6648_v55 = vpack.c.bf16 %v13687_v34, %v13685_v44 }
 0x6dc   :  { %3210 = vadd.xlane.f32.xlu0 %v3209_v10  ;;  %v13695_v18 = vpop.eup %10124  ;;  %v14976_v10 = vld [vmem:[#allocation110_spill] sm:$0xff] }
 0x6dd   :  { %6409 = vadd.xlane.f32.xlu1 %v6408_v59  ;;  %9671 = vmatprep.mubr.msk.bf16.mxu1 %vm283_vm0, %v6648_v55  ;;  %v14977_v55 = vld [vmem:[#allocation69_spill] sm:$0xff] }
 0x6de   :  { %v13698_v12 = vpop.eup %10126  ;;  %9672 = vmatmul.mubr.msk.bf16.vlgmr.msra.gmra.mrb[64].mxu1 %vm283_vm0, %v6649_v26  ;;  %v14975_v26 = vld [vmem:[#allocation64_spill] sm:$0xff]  ;;  %v3167_v59 = vsel %vm283_vm0, %v14977_v55, 0.0  ;;  %v6396_v55 = vsel %vm283_vm0, %v13366_v36, 0.0 }
 0x6df   :  { %v6651_v43 = vpack.c.bf16 %v13698_v12, %v13695_v18  ;;  %9696 = vmatpush3.bf16.msra.mxu1 %v14965_v47  ;;  %v3233_v21 = vsel %vm283_vm0, %v14975_v26, 0.0 }
 0x6e0   :  { %3144 = vadd.xlane.f32.xlu0 %v3143_v39  ;;  %9697 = vmatprep.subr.bf16.mxu1 %v14974_v50  ;;  %v13709_v33 = vpop.eup %10128  ;;  %v14978_v39 = vld [vmem:[#allocation109_spill] sm:$0xff] }
 0x6e1   :  { %6427 = vadd.xlane.f32.xlu1 %v6426_v52  ;;  %v14979_v52 = vld [vmem:[#allocation41_spill] sm:$0xff] }
 0x6e2   :  { %v13711_v9 = vpop.eup %10130 }
 0x6e3   :  { %9698 = vmatpush3.bf16.msra.mxu1 %v14974_v50  ;;  %v13716_v47 = vpop.xlane.xlu0 %6379  ;;  %v6650_v29 = vpack.c.bf16 %v13711_v9, %v13709_v33  ;;  %v6423_v50 = vsel %vm283_vm0, %v13460_v63, 0.0 }
 0x6e4   :  { %3234 = vadd.xlane.f32.xlu0 %v3233_v21  ;;  %9699 = vmatprep.subr.bf16.mxu1 %v14976_v10 }
 0x6e5   :  { %6475 = vadd.xlane.f32.xlu1 %v6474_v17  ;;  %9675 = vmatprep.mubr.msk.bf16.mxu1 %vm283_vm0, %v6650_v29  ;;  %v6471_v29 = vsel %vm283_vm0, %v13473_v2, 0.0 }
 0x6e6   :  { %9676 = vmatmul.mubr.msk.bf16.gmra.mrb[68].mxu1 %vm283_vm0, %v6651_v43  ;;  %v3191_v43 = vsel %vm283_vm0, %v14979_v52, 0.0  ;;  %v6438_v52 = vsel %vm283_vm0, %v13484_v32, 0.0 }
 0x6e7   :  { %9700 = vmatpush3.bf16.msra.mxu1 %v14976_v10  ;;  %v13728_v61 = vpop.xlane.xlu0 %6373 }
 0x6e8   :  { %3168 = vadd.xlane.f32.xlu0 %v3167_v59  ;;  %9701 = vmatprep.subr.bf16.mxu1 %v14978_v39 }
 0x6e9   :  { %6424 = vadd.xlane.f32.xlu1 %v6423_v50  ;;  %v13733_v4 = vpop.xlane.xlu1 %6376 }
 0x6eb   :  { %9702 = vmatpush3.bf16.msra.mxu1 %v14978_v39  ;;  %v6164_v26 = vpop.xlane.xlu0 %6163 }
 0x6ec   :  { %3192 = vadd.xlane.f32.xlu0 %v3191_v43  ;;  %v6238_v21 = vsub.f32 %v13281_v27, %v6164_v26 }
 0x6ed   :  { %6472 = vadd.xlane.f32.xlu1 %v6471_v29  ;;  %v6167_v10 = vpop.xlane.xlu1 %6166  ;;  %v6414_v29 = vsel %vm283_vm0, %v13376_v0, 0.0 }
 0x6ee   :  { %v6360_v17 = vmul.f32 1.442695, %v6238_v21  ;;  %v6239_v63 = vsub.f32 %v13286_v30, %v6167_v10  ;;  %v6405_v30 = vsel %vm283_vm0, %v13360_v11, 0.0  ;;  %v6441_v11 = vsel %vm283_vm0, %v13488_v1, 0.0 }
 0x6ef   :  { %v6158_v59 = vpop.xlane.xlu0 %6157  ;;  %v6435_v1 = vsel %vm283_vm0, %v13516_v60, 0.0  ;;  %v6450_v60 = vsel %vm283_vm0, %v13544_v41, 0.0  ;;  %v6522_v41 = vsel %vm283_vm0, %v13556_v6, 0.0  ;;  %v6525_v6 = vsel %vm283_vm0, %v13560_v48, 0.0 }
 0x6f0   :  { %v6362_v39 = vmul.f32 1.442695, %v6239_v63  ;;  %6397 = vadd.xlane.f32.xlu0 %v6396_v55  ;;  %v6236_v50 = vsub.f32 %v13284_v5, %v6158_v59  ;;  %10132 = vpow2.f32 %v6360_v17  ;;  %v6432_v5 = vsel %vm283_vm0, %v13512_v31, 0.0 }
 0x6f1   :  { %6439 = vadd.xlane.f32.xlu1 %v6438_v52  ;;  %v6161_v27 = vpop.xlane.xlu1 %6160  ;;  %v6417_v55 = vsel %vm283_vm0, %v13381_v16, 0.0 }
 0x6f2   :  { %10134 = vpow2.f32 %v6362_v39  ;;  %v6356_v2 = vmul.f32 1.442695, %v6236_v50  ;;  %v6237_v43 = vsub.f32 %v13288_v35, %v6161_v27  ;;  %v6411_v27 = vsel %vm283_vm0, %v13394_v3, 0.0 }
 0x6f3   :  { %v6176_v26 = vpop.xlane.xlu0 %6175  ;;  %v6420_v3 = vsel %vm283_vm0, %v13456_v46, 0.0 }
 0x6f4   :  { %v6358_v36 = vmul.f32 1.442695, %v6237_v43  ;;  %6406 = vadd.xlane.f32.xlu0 %v6405_v30  ;;  %v6242_v21 = vsub.f32 %v13299_v28, %v6176_v26  ;;  %10136 = vpow2.f32 %v6356_v2 }
 0x6f5   :  { %6433 = vadd.xlane.f32.xlu1 %v6432_v5  ;;  %v3148_v32 = vpop.xlane.xlu1 %3147 }
 0x6f6   :  { %10138 = vpow2.f32 %v6358_v36  ;;  %v6368_v10 = vmul.f32 1.442695, %v6242_v21  ;;  %v14980_v21 = vld [vmem:[#allocation82_spill] sm:$0xff] }
 0x6f7   :  { %10140 = vrcp.f32 %v3148_v32  ;;  %v6170_v35 = vpop.xlane.xlu0 %6169 }
 0x6f8   :  { %6415 = vadd.xlane.f32.xlu0 %v6414_v29  ;;  %v6240_v17 = vsub.f32 %v13304_v38, %v6170_v35  ;;  %10142 = vpow2.f32 %v6368_v10 }
 0x6f9   :  { %6442 = vadd.xlane.f32.xlu1 %v6441_v11  ;;  %v6179_v28 = vpop.xlane.xlu1 %6178  ;;  %v6468_v11 = vsel %vm283_vm0, %v13468_v19, 0.0 }
 0x6fa   :  { %v6243_v31 = vsub.f32 %v13309_v58, %v6179_v28  ;;  %v13759_v63 = vpop.eup %10132  ;;  %v6364_v50 = vmul.f32 1.442695, %v6240_v17  ;;  %v14981_v28 = vld [vmem:[#allocation9_spill] sm:$0xff] }
 0x6fb   :  { %v3106_v59 = vpop.xlane.xlu0 %3105 }
 0x6fc   :  { %v13763_v39 = vpop.eup %10134  ;;  %v6370_v0 = vmul.f32 1.442695, %v6243_v31  ;;  %6418 = vadd.xlane.f32.xlu0 %v6417_v55  ;;  %10144 = vrcp.f32 %v3106_v59 }
 0x6fd   :  { %v6657_v38 = vpack.c.bf16 %v13763_v39, %v13759_v63  ;;  %6436 = vadd.xlane.f32.xlu1 %v6435_v1  ;;  %v6173_v58 = vpop.xlane.xlu1 %6172 }
 0x6fe   :  { %10146 = vpow2.f32 %v6370_v0  ;;  %v6241_v52 = vsub.f32 %v13314_v49, %v6173_v58  ;;  %v13770_v16 = vpop.eup %10136  ;;  %v14983_v58 = vld [vmem:[#allocation84_spill] sm:$0xff] }
 0x6ff   :  { %v3151_v2 = vpop.xlane.xlu0 %3150 }
 0x700   :  { %v13774_v43 = vpop.eup %10138  ;;  %v6366_v30 = vmul.f32 1.442695, %v6241_v52  ;;  %6412 = vadd.xlane.f32.xlu0 %v6411_v27  ;;  %10148 = vrcp.f32 %v3151_v2  ;;  %v6429_v27 = vsel %vm283_vm0, %v13436_v57, 0.0 }
 0x701   :  { %v10141_v26 = vpop.eup %10140  ;;  %10150 = vpow2.f32 %v6364_v50  ;;  %6451 = vadd.xlane.f32.xlu1 %v6450_v60  ;;  %v3085_v36 = vpop.xlane.xlu1 %3084  ;;  %v6656_v49 = vpack.c.bf16 %v13774_v43, %v13770_v16 }
 0x702   :  { %v3986_v5 = vmul.f32 %v10141_v26, %v14980_v21  ;;  %10152 = vpow2.f32 %v6366_v30  ;;  %v13787_v35 = vpop.eup %10142  ;;  %v6447_v30 = vsel %vm283_vm0, %v13579_v23, 0.0  ;;  %v6477_v23 = vsel %vm283_vm0, %v13448_v37, 0.0 }
 0x703   :  { %10154 = vrcp.f32 %v3085_v36  ;;  %v3061_v32 = vpop.xlane.xlu0 %3060  ;;  %9703 = vmatprep.mubr.msk.bf16.mxu1 %vm283_vm0, %v6656_v49 }
 0x704   :  { %6421 = vadd.xlane.f32.xlu0 %v6420_v3  ;;  %10156 = vrcp.f32 %v3061_v32  ;;  %9704 = vmatmul.mubr.msk.bf16.vlgmr.msra.gmra.mrb[72].mxu1 %vm283_vm0, %v6657_v38  ;;  %v14982_v38 = vld [vmem:[#allocation11_spill] sm:$0xff]  ;;  %v4102_v26 = vsel %vm1953_vm1, %v3986_v5, 0.0  ;;  %v14984_v32 = vld [vmem:[#allocation40_spill] sm:$0xff] }
 0x705   :  { %6523 = vadd.xlane.f32.xlu1 %v6522_v41  ;;  %v3172_v29 = vpop.xlane.xlu1 %3171 }
 0x706   :  { %10158 = vrcp.f32 %v3172_v29  ;;  %v10145_v10 = vpop.eup %10144  ;;  %v14985_v29 = vld [vmem:[#allocation56_spill] sm:$0xff] }
 0x707   :  { %v3130_v46 = vpop.xlane.xlu0 %3129  ;;  %v3972_v31 = vmul.f32 %v10145_v10, %v14981_v28  ;;  %v6519_v28 = vsel %vm283_vm0, %v13592_v13, 0.0  ;;  %v6486_v13 = vsel %vm283_vm0, %v13498_v62, 0.0  ;;  %v6480_v62 = vsel %vm283_vm0, %v13526_v56, 0.0 }
 0x708   :  { %v13791_v17 = vpop.eup %10146  ;;  %6469 = vadd.xlane.f32.xlu0 %v6468_v11  ;;  %10160 = vrcp.f32 %v3130_v46 }
 0x709   :  { %v6659_v55 = vpack.c.bf16 %v13791_v17, %v13787_v35  ;;  %6526 = vadd.xlane.f32.xlu1 %v6525_v6  ;;  %v13798_v59 = vpop.xlane.xlu1 %6382  ;;  %v4063_v1 = vsel %vm1953_vm1, %v3972_v31, 0.0  ;;  %v14986_v31 = vld [vmem:[#allocation43_spill] sm:$0xff] }
 0x70a   :  { %v10149_v0 = vpop.eup %10148  ;;  %v13804_v50 = vadd.f32 %v4063_v1, %v14982_v38  ;;  %v14987_v1 = vld [vmem:[#allocation18_spill] sm:$0xff] }
 0x70b   :  { %v13801_v19 = vpop.eup %10150  ;;  %v3987_v52 = vmul.f32 %v10149_v0, %v14983_v58  ;;  %v3175_v48 = vpop.xlane.xlu0 %3174 }
 0x70c   :  { %v13809_v2 = vpop.eup %10152  ;;  %6430 = vadd.xlane.f32.xlu0 %v6429_v27  ;;  %10162 = vrcp.f32 %v3175_v48  ;;  %v14989_v48 = vld [vmem:[#allocation10_spill] sm:$0xff] }
 0x70d   :  { %v10155_v60 = vpop.eup %10154  ;;  %v4103_v36 = vsel %vm1953_vm1, %v3987_v52, 0.0  ;;  %6448 = vadd.xlane.f32.xlu1 %v6447_v30  ;;  %v3154_v49 = vpop.xlane.xlu1 %3153  ;;  %v6658_v21 = vpack.c.bf16 %v13809_v2, %v13801_v19  ;;  %v14988_v52 = vld [vmem:[#allocation59_spill] sm:$0xff] }
 0x70e   :  { %v10157_v3 = vpop.eup %10156  ;;  %v4104_v57 = vadd.f32 %v4103_v36, %v4102_v26  ;;  %v3965_v41 = vmul.f32 %v10155_v60, %v14984_v32  ;;  %10164 = vrcp.f32 %v3154_v49  ;;  %v6462_v60 = vsel %vm283_vm0, %v13610_v51, 0.0  ;;  %v14991_v32 = vld [vmem:[#allocation20_spill] sm:$0xff] }
 0x70f   :  { %v3957_v10 = vmul.f32 %v10157_v3, %v14985_v29  ;;  %v3109_v11 = vpop.xlane.xlu0 %3108  ;;  %9707 = vmatprep.mubr.msk.bf16.mxu1 %vm283_vm0, %v6658_v21  ;;  %v14990_v21 = vld [vmem:[#allocation12_spill] sm:$0xff]  ;;  %v6534_v51 = vsel %vm283_vm0, %v13627_v53, 0.0 }
 0x710   :  { %v10159_v5 = vpop.eup %10158  ;;  %v4044_v46 = vsel %vm1953_vm1, %v3965_v41, 0.0  ;;  %6478 = vadd.xlane.f32.xlu0 %v6477_v23  ;;  %10166 = vrcp.f32 %v3109_v11  ;;  %9708 = vmatmul.mubr.msk.bf16.gmra.mrb[76].mxu1 %vm283_vm0, %v6659_v55 }
 0x711   :  { %v13827_v6 = vadd.f32 %v4044_v46, %v14986_v31  ;;  %v4023_v0 = vsel %vm1953_vm1, %v3957_v10, 0.0  ;;  %v3994_v37 = vmul.f32 %v10159_v5, %v14987_v1  ;;  %6520 = vadd.xlane.f32.xlu1 %v6519_v28  ;;  %v3199_v38 = vpop.xlane.xlu1 %3198  ;;  %v14992_v5 = vld [vmem:[#allocation81_spill] sm:$0xff]  ;;  %v14993_v1 = vld [vmem:[#allocation8_spill] sm:$0xff] }
 0x712   :  { %v10161_v58 = vpop.eup %10160  ;;  %v13832_v27 = vadd.f32 %v4023_v0, %v14988_v52  ;;  %10168 = vrcp.f32 %v3199_v38 }
 0x713   :  { %v3980_v30 = vmul.f32 %v10161_v58, %v14989_v48  ;;  %v3196_v55 = vpop.xlane.xlu0 %3195  ;;  %v4123_v23 = vsel %vm1953_vm1, %v3994_v37, 0.0  ;;  %v6489_v58 = vsel %vm283_vm0, %v13502_v24, 0.0  ;;  %v6456_v37 = vsel %vm283_vm0, %v13645_v15, 0.0  ;;  %v14995_v24 = vld [vmem:[#allocation90_spill] sm:$0xff] }
 0x714   :  { %6487 = vadd.xlane.f32.xlu0 %v6486_v13  ;;  %10170 = vrcp.f32 %v3196_v55  ;;  %v14994_v13 = vld [vmem:[#allocation92_spill] sm:$0xff]  ;;  %v6528_v15 = vsel %vm283_vm0, %v13659_v14, 0.0 }
 0x715   :  { %v4084_v26 = vsel %vm1953_vm1, %v3980_v30, 0.0  ;;  %6463 = vadd.xlane.f32.xlu1 %v6462_v60  ;;  %v3088_v36 = vpop.xlane.xlu1 %3087 }
 0x716   :  { %v10163_v49 = vpop.eup %10162  ;;  %v13841_v3 = vadd.f32 %v4084_v26, %v14990_v21  ;;  %10172 = vrcp.f32 %v3088_v36 }
 0x717   :  { %v3995_v41 = vmul.f32 %v10163_v49, %v14991_v32  ;;  %v3064_v29 = vpop.xlane.xlu0 %3063 }
 0x718   :  { %v10165_v10 = vpop.eup %10164  ;;  %6481 = vadd.xlane.f32.xlu0 %v6480_v62  ;;  %10174 = vrcp.f32 %v3064_v29  ;;  %v14996_v29 = vld [vmem:[#allocation7_spill] sm:$0xff] }
 0x719   :  { %v4124_v11 = vsel %vm1953_vm1, %v3995_v41, 0.0  ;;  %v3988_v46 = vmul.f32 %v10165_v10, %v14992_v5  ;;  %6535 = vadd.xlane.f32.xlu1 %v6534_v51  ;;  %v3178_v28 = vpop.xlane.xlu1 %3177 }
 0x71a   :  { %v10167_v31 = vpop.eup %10166  ;;  %v4125_v0 = vadd.f32 %v4124_v11, %v4123_v23  ;;  %10176 = vrcp.f32 %v3178_v28  ;;  %v14997_v11 = vld [vmem:[#allocation3_spill] sm:$0xff] }
 0x71b   :  { %v4105_v56 = vsel %vm1953_vm1, %v3988_v46, 0.0  ;;  %v3973_v38 = vmul.f32 %v10167_v31, %v14993_v1  ;;  %v3133_v52 = vpop.xlane.xlu0 %3132  ;;  %v6444_v46 = vsel %vm283_vm0, %v13575_v54, 0.0 }
 0x71c   :  { %v10169_v53 = vpop.eup %10168  ;;  %v13855_v48 = vadd.f32 %v4105_v56, %v4104_v57  ;;  %6490 = vadd.xlane.f32.xlu0 %v6489_v58  ;;  %10178 = vrcp.f32 %v3133_v52  ;;  %v6483_v57 = vsel %vm283_vm0, %v13531_v45, 0.0  ;;  %v6465_v56 = vsel %vm283_vm0, %v13613_v22, 0.0 }
 0x71d   :  { %v4065_v30 = vsel %vm1953_vm1, %v3973_v38, 0.0  ;;  %v4003_v55 = vmul.f32 %v10169_v53, %v14994_v13  ;;  %6457 = vadd.xlane.f32.xlu1 %v6456_v37  ;;  %v3223_v60 = vpop.xlane.xlu1 %3222  ;;  %v14998_v38 = vld [vmem:[#allocation19_spill] sm:$0xff]  ;;  %v6516_v22 = vsel %vm283_vm0, %v13589_v25, 0.0 }
 0x71e   :  { %v10171_v26 = vpop.eup %10170  ;;  %v13862_v36 = vadd.f32 %v4065_v30, %v13804_v50  ;;  %10180 = vrcp.f32 %v3223_v60 }
 0x71f   :  { %v4002_v49 = vmul.f32 %v10171_v26, %v14995_v24  ;;  %v3220_v21 = vpop.xlane.xlu0 %3219  ;;  %v4145_v41 = vsel %vm1953_vm1, %v4003_v55, 0.0  ;;  %v15000_v55 = vld [vmem:[#allocation31_spill] sm:$0xff] }
 0x720   :  { %v10173_v32 = vpop.eup %10172  ;;  %6484 = vadd.xlane.f32.xlu0 %v6483_v57  ;;  %10182 = vrcp.f32 %v3220_v21  ;;  %v6453_v57 = vsel %vm283_vm0, %v13548_v8, 0.0 }
 0x721   :  { %v4144_v62 = vsel %vm1953_vm1, %v4002_v49, 0.0  ;;  %v3966_v50 = vmul.f32 %v10173_v32, %v14996_v29  ;;  %6529 = vadd.xlane.f32.xlu1 %v6528_v15  ;;  %v3157_v10 = vpop.xlane.xlu1 %3156 }
 0x722   :  { %v10175_v51 = vpop.eup %10174  ;;  %v13872_v23 = vadd.f32 %v4145_v41, %v4144_v62  ;;  %10184 = vrcp.f32 %v3157_v10  ;;  %v15002_v41 = vld [vmem:[#allocation83_spill] sm:$0xff] }
 0x723   :  { %v4046_v45 = vsel %vm1953_vm1, %v3966_v50, 0.0  ;;  %v3958_v5 = vmul.f32 %v10175_v51, %v14997_v11  ;;  %v6386_v14 = vpop.xlane.xlu0 %6385  ;;  %10186 = vrcp.f32 %v13716_v47  ;;  %v6492_v51 = vsel %vm283_vm0, %v13685_v44, 0.0 }
 0x724   :  { %v10177_v28 = vpop.eup %10176  ;;  %v13880_v31 = vadd.f32 %v4046_v45, %v13827_v6  ;;  %6445 = vadd.xlane.f32.xlu0 %v6444_v46  ;;  %10188 = vrcp.f32 %v13728_v61  ;;  %v14999_v6 = vld [vmem:[#allocation13_spill] sm:$0xff] }
 0x725   :  { %v4025_v1 = vsel %vm1953_vm1, %v3958_v5, 0.0  ;;  %v3996_v58 = vmul.f32 %v10177_v28, %v14998_v38  ;;  %6466 = vadd.xlane.f32.xlu1 %v6465_v56  ;;  %v3091_v52 = vpop.xlane.xlu1 %3090  ;;  %v6498_v5 = vsel %vm283_vm0, %v13673_v42, 0.0  ;;  %v15003_v28 = vld [vmem:[#allocation6_spill] sm:$0xff]  ;;  %v6501_v42 = vsel %vm283_vm0, %v13676_v20, 0.0 }
 0x726   :  { %v10179_v54 = vpop.eup %10178  ;;  %v13888_v53 = vadd.f32 %v4025_v1, %v13832_v27  ;;  %10190 = vrcp.f32 %v3091_v52  ;;  %v6459_v27 = vsel %vm283_vm0, %v13647_v7, 0.0 }
 0x727   :  { %10192 = vrcp.f32 %v13733_v4  ;;  %v4126_v47 = vsel %vm1953_vm1, %v3996_v58, 0.0  ;;  %v3981_v37 = vmul.f32 %v10179_v54, %v14999_v6  ;;  %v3112_v61 = vpop.xlane.xlu0 %3111  ;;  %v15004_v54 = vld [vmem:[#allocation30_spill] sm:$0xff] }
 0x728   :  { %v10181_v30 = vpop.eup %10180  ;;  %v13895_v13 = vadd.f32 %v4126_v47, %v4125_v0  ;;  %6517 = vadd.xlane.f32.xlu0 %v6516_v22  ;;  %10194 = vrcp.f32 %v3112_v61  ;;  %v15001_v0 = vld [vmem:[#allocation26_spill] sm:$0xff] }
 0x729   :  { %10196 = vrcp.f32 %v13798_v59  ;;  %v4086_v4 = vsel %vm1953_vm1, %v3981_v37, 0.0  ;;  %v4011_v60 = vmul.f32 %v10181_v30, %v15000_v55  ;;  %6460 = vadd.xlane.f32.xlu1 %v6459_v27  ;;  %v3181_v26 = vpop.xlane.xlu1 %3180  ;;  %v6531_v59 = vsel %vm283_vm0, %v13662_v40, 0.0 }
 0x72a   :  { %v10183_v24 = vpop.eup %10182  ;;  %v13903_v25 = vadd.f32 %v4086_v4, %v13841_v3  ;;  %10198 = vrcp.f32 %v3181_v26  ;;  %v6495_v55 = vsel %vm283_vm0, %v13687_v34, 0.0  ;;  %v15005_v26 = vld [vmem:[#allocation21_spill] sm:$0xff] }
 0x72b   :  { %v4010_v49 = vmul.f32 %v10183_v24, %v15001_v0  ;;  %v3202_v21 = vpop.xlane.xlu0 %3201  ;;  %v4166_v32 = vsel %vm1953_vm1, %v4011_v60, 0.0 }
 0x72c   :  { %v10185_v7 = vpop.eup %10184  ;;  %6454 = vadd.xlane.f32.xlu0 %v6453_v57  ;;  %10200 = vrcp.f32 %v3202_v21 }
 0x72d   :  { %v4165_v15 = vsel %vm1953_vm1, %v4010_v49, 0.0  ;;  %v3989_v3 = vmul.f32 %v10185_v7, %v15002_v41  ;;  %6532 = vadd.xlane.f32.xlu1 %v6531_v59  ;;  %v6389_v62 = vpop.xlane.xlu1 %6388  ;;  %v10187_v29 = vpop.eup %10186  ;;  %10202 = vrcp.f32 %v6386_v14  ;;  %v15006_v7 = vld [vmem:[#allocation89_spill] sm:$0xff] }
 0x72e   :  { %v13913_v50 = vadd.f32 %v4166_v32, %v4165_v15  ;;  %v10189_v10 = vpop.eup %10188 }
 0x72f   :  { %v4107_v8 = vsel %vm1953_vm1, %v3989_v3, 0.0  ;;  %v3067_v45 = vpop.xlane.xlu0 %3066 }
 0x730   :  { %v10191_v40 = vpop.eup %10190  ;;  %v13919_v11 = vadd.f32 %v4107_v8, %v13855_v48  ;;  %6493 = vadd.xlane.f32.xlu0 %v6492_v51  ;;  %10204 = vrcp.f32 %v3067_v45 }
 0x731   :  { %v10193_v46 = vpop.eup %10192  ;;  %v3967_v56 = vmul.f32 %v10191_v40, %v15003_v28  ;;  %10206 = vrcp.f32 %v6389_v62  ;;  %6499 = vadd.xlane.f32.xlu1 %v6498_v5  ;;  %v9593_v1 = vpop.f32.mrb[80].mxu0 }
 0x732   :  { %v3160_v14 = vpop.xlane.xlu1 %3159  ;;  %v10195_v38 = vpop.eup %10194  ;;  %v7278_v58 = vmul.f32 %v10187_v29, %v9593_v1  ;;  %v6504_v1 = vsel %vm283_vm0, %v13709_v33, 0.0 }
 0x733   :  { %10208 = vrcp.f32 %v3160_v14  ;;  %v6706_v44 = vpop.f32.mrb[81].mxu0  ;;  %v10197_v52 = vpop.eup %10196  ;;  %v4048_v48 = vsel %vm1953_vm1, %v3967_v56, 0.0  ;;  %v3974_v47 = vmul.f32 %v10195_v38, %v15004_v54 }
 0x734   :  { %v7276_v6 = vmul.f32 %v10189_v10, %v6706_v44  ;;  %v3136_v37 = vpop.xlane.xlu0 %3135  ;;  %v9594_v22 = vpop.f32.mrb[82].mxu0  ;;  %v13929_v30 = vadd.f32 %v4048_v48, %v13880_v31  ;;  %6502 = vadd.xlane.f32.xlu0 %v6501_v42  ;;  %v6510_v31 = vsel %vm283_vm0, %v13695_v18, 0.0  ;;  %v7343_v29 = vsel %vm1953_vm1, %v7278_v58, 0.0 }
 0x735   :  { %v10199_v61 = vpop.eup %10198  ;;  %10210 = vrcp.f32 %v3136_v37  ;;  %v7279_v27 = vmul.f32 %v10197_v52, %v9594_v22  ;;  %v6709_v4 = vpop.f32.mrb[83].mxu0  ;;  %v4067_v60 = vsel %vm1953_vm1, %v3974_v47, 0.0  ;;  %6496 = vadd.xlane.f32.xlu1 %v6495_v55  ;;  %v15008_v52 = vld [vmem:[#allocation111_spill] sm:$0xff]  ;;  %v15009_v47 = vld [vmem:[#allocation86_spill] sm:$0xff] }
 0x736   :  { %v3997_v24 = vmul.f32 %v10199_v61, %v15005_v26  ;;  %v7277_v0 = vmul.f32 %v10193_v46, %v6709_v4  ;;  %v3094_v20 = vpop.xlane.xlu1 %3093  ;;  %v10201_v49 = vpop.eup %10200  ;;  %v13936_v57 = vadd.f32 %v4067_v60, %v13862_v36  ;;  %v7340_v34 = vsel %vm1953_vm1, %v7276_v6, 0.0  ;;  %v15007_v46 = vld [vmem:[#allocation5_spill] sm:$0xff]  ;;  %v15010_v55 = vld [vmem:[#allocation14_spill] sm:$0xff] }
 0x737   :  { %10212 = vrcp.f32 %v3094_v20  ;;  %v4004_v59 = vmul.f32 %v10201_v49, %v15006_v7  ;;  %v6546_v36 = vsel %vm283_vm0, %v13759_v63, 0.0  ;;  %v10203_v62 = vpop.eup %10202  ;;  %v7345_v63 = vsel %vm1953_vm1, %v7279_v27, 0.0  ;;  %v15011_v7 = vld [vmem:[#allocation4_spill] sm:$0xff] }
 0x738   :  { %v4128_v21 = vsel %vm1953_vm1, %v3997_v24, 0.0  ;;  %v7341_v32 = vsel %vm1953_vm1, %v7277_v0, 0.0  ;;  %v3226_v15 = vpop.xlane.xlu0 %3225  ;;  %6511 = vadd.xlane.f32.xlu0 %v6510_v31  ;;  %v6537_v48 = vsel %vm283_vm0, %v15008_v52, 0.0  ;;  %v6507_v24 = vsel %vm283_vm0, %v13711_v9, 0.0 }
 0x739   :  { %v13945_v41 = vadd.f32 %v4128_v21, %v13895_v13  ;;  %v7342_v3 = vadd.f32 %v7341_v32, %v7340_v34  ;;  %10214 = vrcp.f32 %v3226_v15  ;;  %v4147_v18 = vsel %vm1953_vm1, %v4004_v59, 0.0  ;;  %6547 = vadd.xlane.f32.xlu1 %v6546_v36  ;;  %v13951_v10 = vpop.f32.mrb[84].mxu0  ;;  %v15012_v15 = vld [vmem:[#allocation27_spill] sm:$0xff] }
 0x73a   :  { %v3184_v8 = vpop.xlane.xlu1 %3183  ;;  %v10205_v51 = vpop.eup %10204  ;;  %v13954_v45 = vadd.f32 %v4147_v18, %v13872_v23  ;;  %v6540_v36 = vsel %vm283_vm0, %v13770_v16, 0.0 }
 0x73b   :  { %v7344_v13 = vadd.f32 %v7343_v29, %v7342_v3  ;;  %10216 = vrcp.f32 %v3184_v8  ;;  %v6722_v40 = vpop.f32.mrb[85].mxu0  ;;  %v10207_v5 = vpop.eup %10206  ;;  %v3959_v28 = vmul.f32 %v10205_v51, %v15007_v46  ;;  %v6543_v29 = vsel %vm283_vm0, %v13774_v43, 0.0  ;;  %v15013_v8 = vld [vmem:[#allocation22_spill] sm:$0xff] }
 0x73c   :  { %v7280_v56 = vmul.f32 %v10203_v62, %v6722_v40  ;;  %v3115_v14 = vpop.xlane.xlu0 %3114  ;;  %v13960_v38 = vpop.f32.mrb[86].mxu0  ;;  %6505 = vadd.xlane.f32.xlu0 %v6504_v1  ;;  %v6558_v1 = vsel %vm283_vm0, %v13787_v35, 0.0 }
 0x73d   :  { %v10209_v58 = vpop.eup %10208  ;;  %v7346_v44 = vadd.f32 %v7345_v63, %v7344_v13  ;;  %10218 = vrcp.f32 %v3115_v14  ;;  %v6725_v23 = vpop.f32.mrb[87].mxu0  ;;  %v4027_v54 = vsel %vm1953_vm1, %v3959_v28, 0.0  ;;  %6538 = vadd.xlane.f32.xlu1 %v6537_v48  ;;  %v6513_v28 = vsel %vm283_vm0, %v13698_v12, 0.0  ;;  %v15016_v48 = vld [vmem:[#allocation54_spill] sm:$0xff] }
 0x73e   :  { %v3990_v6 = vmul.f32 %v10209_v58, %v15009_v47  ;;  %v7347_v42 = vsel %vm1953_vm1, %v7280_v56, 0.0  ;;  %v7281_v37 = vmul.f32 %v10207_v5, %v6725_v23  ;;  %v6392_v33 = vpop.xlane.xlu1 %6391  ;;  %v13968_v61 = vadd.f32 %v4027_v54, %v13888_v53 }
 0x73f   :  { %v10211_v22 = vpop.eup %10210  ;;  %v7348_v27 = vadd.f32 %v7347_v42, %v7346_v44  ;;  %10220 = vrcp.f32 %v6392_v33  ;;  %v6549_v53 = vsel %vm283_vm0, %v13763_v39, 0.0  ;;  %v3215_v54 = vsel %vm283_vm0, %v15016_v48, 0.0  ;;  %v15024_v48 = vld [vmem:[#allocation28_spill] sm:$0xff] }
 0x740   :  { %v4109_v4 = vsel %vm1953_vm1, %v3990_v6, 0.0  ;;  %v3982_v60 = vmul.f32 %v10211_v22, %v15010_v55  ;;  %v7349_v26 = vsel %vm1953_vm1, %v7281_v37, 0.0  ;;  %v3205_v0 = vpop.xlane.xlu0 %3204  ;;  %6508 = vadd.xlane.f32.xlu0 %v6507_v24  ;;  %v15018_v55 = vld [vmem:[#allocation58_spill] sm:$0xff] }
 0x741   :  { %v10213_v20 = vpop.eup %10212  ;;  %v13976_v49 = vadd.f32 %v4109_v4, %v13919_v11  ;;  %v7350_v31 = vadd.f32 %v7349_v26, %v7348_v27  ;;  %10222 = vrcp.f32 %v3205_v0  ;;  %6550 = vadd.xlane.f32.xlu1 %v6549_v53  ;;  %v15019_v26 = vld [vmem:[#allocation65_spill] sm:$0xff]  ;;  %v15020_v53 = vld [vmem:[#allocation42_spill] sm:$0xff] }
 0x742   :  { %v4088_v21 = vsel %vm1953_vm1, %v3982_v60, 0.0  ;;  %v3968_v59 = vmul.f32 %v10213_v20, %v15011_v7  ;;  %v3163_v34 = vpop.xlane.xlu1 %3162  ;;  %v3239_v24 = vsel %vm283_vm0, %v15019_v26, 0.0  ;;  %v6555_v20 = vsel %vm283_vm0, %v13809_v2, 0.0 }
 0x743   :  { %v10215_v32 = vpop.eup %10214  ;;  %v13983_v9 = vadd.f32 %v4088_v21, %v13903_v25  ;;  %10224 = vrcp.f32 %v3163_v34 }
 0x744   :  { %v4050_v11 = vsel %vm1953_vm1, %v3968_v59, 0.0  ;;  %v4012_v3 = vmul.f32 %v10215_v32, %v15012_v15  ;;  %v3070_v62 = vpop.xlane.xlu0 %3069  ;;  %6541 = vadd.xlane.f32.xlu0 %v6540_v36  ;;  %v15021_v15 = vld [vmem:[#allocation16_spill] sm:$0xff] }
 0x745   :  { %v10217_v39 = vpop.eup %10216  ;;  %v13990_v18 = vadd.f32 %v4050_v11, %v13929_v30  ;;  %10226 = vrcp.f32 %v3070_v62  ;;  %6544 = vadd.xlane.f32.xlu1 %v6543_v29  ;;  %v15014_v30 = vld [vmem:[#allocation32_spill] sm:$0xff] }
 0x746   :  { %v4168_v25 = vsel %vm1953_vm1, %v4012_v3, 0.0  ;;  %v3998_v51 = vmul.f32 %v10217_v39, %v15013_v8  ;;  %v3097_v13 = vpop.xlane.xlu1 %3096 }
 0x747   :  { %v10219_v40 = vpop.eup %10218  ;;  %v13997_v5 = vadd.f32 %v4168_v25, %v13913_v50  ;;  %10228 = vrcp.f32 %v3097_v13  ;;  %v15022_v25 = vld [vmem:[#allocation24_spill] sm:$0xff] }
 0x748   :  { %v4130_v16 = vsel %vm1953_vm1, %v3998_v51, 0.0  ;;  %v3975_v46 = vmul.f32 %v10219_v40, %v15014_v30  ;;  %v3139_v63 = vpop.xlane.xlu0 %3138  ;;  %6514 = vadd.xlane.f32.xlu0 %v6513_v28 }
 0x749   :  { %v10221_v43 = vpop.eup %10220  ;;  %v14004_v56 = vadd.f32 %v4130_v16, %v13945_v41  ;;  %10230 = vrcp.f32 %v3139_v63  ;;  %6559 = vadd.xlane.f32.xlu1 %v6558_v1  ;;  %v15015_v41 = vld [vmem:[#allocation91_spill] sm:$0xff] }
 0x74a   :  { %v4069_v50 = vsel %vm1953_vm1, %v3975_v46, 0.0  ;;  %v7282_v14 = vmul.f32 %v10221_v43, %v13951_v10  ;;  %v3187_v58 = vpop.xlane.xlu1 %3186  ;;  %v6552_v10 = vsel %vm283_vm0, %v13801_v19, 0.0 }
 0x74b   :  { %v10223_v44 = vpop.eup %10222  ;;  %v14011_v23 = vadd.f32 %v4069_v50, %v13936_v57  ;;  %10232 = vrcp.f32 %v3187_v58  ;;  %v15017_v57 = vld [vmem:[#allocation88_spill] sm:$0xff] }
 0x74c   :  { %v7351_v12 = vsel %vm1953_vm1, %v7282_v14, 0.0  ;;  %v4005_v52 = vmul.f32 %v10223_v44, %v15015_v41  ;;  %v3229_v47 = vpop.xlane.xlu0 %3228  ;;  %3216 = vadd.xlane.f32.xlu0 %v3215_v54 }
 0x74d   :  { %v10225_v35 = vpop.eup %10224  ;;  %v7352_v6 = vadd.f32 %v7351_v12, %v7350_v31  ;;  %10234 = vrcp.f32 %v3229_v47  ;;  %6553 = vadd.xlane.f32.xlu1 %v6552_v10 }
 0x74e   :  { %v4149_v42 = vsel %vm1953_vm1, %v4005_v52, 0.0  ;;  %v3991_v37 = vmul.f32 %v10225_v35, %v15017_v57  ;;  %v6395_v33 = vpop.xlane.xlu1 %6394 }
 0x74f   :  { %v10227_v22 = vpop.eup %10226  ;;  %v14022_v27 = vadd.f32 %v4149_v42, %v13954_v45  ;;  %10236 = vrcp.f32 %v6395_v33 }
 0x750   :  { %v4111_v4 = vsel %vm1953_vm1, %v3991_v37, 0.0  ;;  %v3960_v60 = vmul.f32 %v10227_v22, %v15018_v55  ;;  %3240 = vadd.xlane.f32.xlu0 %v3239_v24  ;;  %v15026_v55 = vld [vmem:[#allocation94_spill] sm:$0xff]  ;;  %v15027_v24 = vld [vmem:[#allocation23_spill] sm:$0xff] }
 0x751   :  { %v10229_v0 = vpop.eup %10228  ;;  %v4112_v19 = vadd.f32 %v4111_v4, %v13976_v49  ;;  %v3118_v21 = vpop.xlane.xlu0 %3117  ;;  %6556 = vadd.xlane.f32.xlu1 %v6555_v20 }
 0x752   :  { %v4029_v31 = vsel %vm1953_vm1, %v3960_v60, 0.0  ;;  %v3969_v45 = vmul.f32 %v10229_v0, %v15020_v53  ;;  %v14033_v7 = vpop.f32.mrb[48].mxu1  ;;  %10238 = vrcp.f32 %v3118_v21  ;;  %v3166_v49 = vpop.xlane.xlu1 %3165 }
 0x753   :  { %v10231_v59 = vpop.eup %10230  ;;  %v14036_v34 = vadd.f32 %v4029_v31, %v13968_v61  ;;  %v14038_v32 = vpop.f32.mrb[49].mxu1  ;;  %10240 = vrcp.f32 %v3166_v49  ;;  %v6561_v61 = vsel %vm283_vm0, %v13791_v17, 0.0  ;;  %v15028_v49 = vld [vmem:[#allocation2_spill] sm:$0xff] }
 0x754   :  { %v4052_v11 = vsel %vm1953_vm1, %v3969_v45, 0.0  ;;  %v3983_v2 = vmul.f32 %v10231_v59, %v15021_v15  ;;  %v14042_v3 = vpop.f32.mrb[50].mxu1 }
 0x755   :  { %v10233_v36 = vpop.eup %10232  ;;  %v4053_v62 = vadd.f32 %v4052_v11, %v13990_v18  ;;  %v14045_v39 = vpop.f32.mrb[51].mxu1  ;;  %6562 = vadd.xlane.f32.xlu1 %v6561_v61  ;;  %v15023_v18 = vld [vmem:[#allocation29_spill] sm:$0xff] }
 0x756   :  { %v4090_v29 = vsel %vm1953_vm1, %v3983_v2, 0.0  ;;  %v3999_v8 = vmul.f32 %v10233_v36, %v15022_v25  ;;  %v3208_v51 = vpop.xlane.xlu0 %3207  ;;  %v3190_v16 = vpop.xlane.xlu1 %3189  ;;  %v15029_v2 = vld [vmem:[#allocation93_spill] sm:$0xff] }
 0x757   :  { %v10235_v13 = vpop.eup %10234  ;;  %v14052_v40 = vadd.f32 %v4090_v29, %v13983_v9  ;;  %10242 = vrcp.f32 %v3208_v51  ;;  %v4054_v37 = vrot.slane %v4053_v62, 4  ;;  %v15030_v51 = vld [vmem:[#allocation15_spill] sm:$0xff] }
 0x758   :  { %v4132_v30 = vsel %vm1953_vm1, %v3999_v8, 0.0  ;;  %v4013_v46 = vmul.f32 %v10235_v13, %v15023_v18  ;;  %10244 = vrcp.f32 %v3190_v16  ;;  %v15031_v18 = vld [vmem:[#allocation77_spill] sm:$0xff] }
 0x759   :  { %v10237_v28 = vpop.eup %10236  ;;  %v4133_v17 = vadd.f32 %v4132_v30, %v14004_v56  ;;  %v14059_v50 = vpop.f32.mrb[52].mxu1  ;;  %v4055_v45 = vadd.f32 %v4054_v37, %v4053_v62  ;;  %v15033_v37 = vld [vmem:[#allocation33_spill] sm:$0xff] }
 0x75a   :  { %v4170_v63 = vsel %vm1953_vm1, %v4013_v46, 0.0  ;;  %v7283_v43 = vmul.f32 %v10237_v28, %v13960_v38  ;;  %v3073_v1 = vpop.xlane.xlu0 %3072  ;;  %v14064_v14 = vpop.f32.mrb[53].mxu1 }
 0x75b   :  { %v14062_v9 = vadd.f32 %v4170_v63, %v13997_v5  ;;  %10246 = vrcp.f32 %v3073_v1  ;;  %v3214_v58 = vpop.xlane.xlu1 %3213  ;;  %v14067_v12 = vpop.f32.mrb[54].mxu1  ;;  %v15025_v5 = vld [vmem:[#allocation85_spill] sm:$0xff]  ;;  %v4056_v25 = vrot.slane %v4055_v45, 2 }
 0x75c   :  { %v7353_v44 = vsel %vm1953_vm1, %v7283_v43, 0.0  ;;  %10248 = vrcp.f32 %v3214_v58  ;;  %v10239_v56 = vpop.eup %10238  ;;  %v14071_v52 = vpop.f32.mrb[55].mxu1 }
 0x75d   :  { %v14069_v41 = vadd.f32 %v7353_v44, %v7352_v6  ;;  %v10241_v38 = vpop.eup %10240  ;;  %v3976_v54 = vmul.f32 %v10239_v56, %v15024_v48  ;;  %v4057_v43 = vadd.f32 %v4056_v25, %v4055_v45  ;;  %v15032_v44 = vld [vmem:[#allocation78_spill] sm:$0xff]  ;;  %v10384_v45 = vmov 0.0|0.0  }
 0x75e   :  { %v3142_v47 = vpop.xlane.xlu0 %3141  ;;  %v3992_v35 = vmul.f32 %v10241_v38, %v15025_v5  ;;  %9739 = vmatprep.subr.bf16.mxu1 %v10384_v45  ;;  %9733 = vmatprep.subr.bf16.mxu0 %v10384_v45 }
 0x75f   :  { %10250 = vrcp.f32 %v3142_v47  ;;  %v3238_v10 = vpop.xlane.xlu1 %3237  ;;  %v4071_v42 = vsel %vm1953_vm1, %v3976_v54, 0.0 }
 0x760   :  { %10252 = vrcp.f32 %v3238_v10  ;;  %v14077_v33 = vadd.f32 %v4071_v42, %v14011_v23  ;;  %v4113_v6 = vsel %vm1953_vm1, %v3992_v35, 0.0  ;;  %v4058_v10 = vrot.slane %v4057_v43, 1 }
 0x761   :  { %v10243_v57 = vpop.eup %10242  ;;  %v14080_v4 = vadd.f32 %v4113_v6, %v4112_v19 }
 0x762   :  { %v10245_v22 = vpop.eup %10244  ;;  %v4006_v60 = vmul.f32 %v10243_v57, %v15026_v55  ;;  %v3232_v26 = vpop.xlane.xlu0 %3231 }
 0x763   :  { %v4000_v0 = vmul.f32 %v10245_v22, %v15027_v24  ;;  %10254 = vrcp.f32 %v3232_v26  ;;  %v6404_v20 = vpop.xlane.xlu1 %6403  ;;  %v4186_v26 = vld [vmem:[%s14404_s5] sm:$0xff] }
 0x764   :  { %v4151_v31 = vsel %vm1953_vm1, %v4006_v60, 0.0  ;;  %10256 = vrcp.f32 %v6404_v20 }
 0x765   :  { %v10247_v53 = vpop.eup %10246  ;;  %v14086_v23 = vadd.f32 %v4151_v31, %v14022_v27  ;;  %v4134_v21 = vsel %vm1953_vm1, %v4000_v0, 0.0  ;;  %v4059_v31 = vadd.f32 %v4058_v10, %v4057_v43 }
 0x766   :  { %v10249_v59 = vpop.eup %10248  ;;  %v14089_v19 = vadd.f32 %v4134_v21, %v4133_v17  ;;  %v3961_v11 = vmul.f32 %v10247_v53, %v15028_v49  ;;  %v3121_v15 = vpop.xlane.xlu0 %3120 }
 0x767   :  { %v14093_v36 = vmul.f32 %v10249_v59, %v15029_v2  ;;  %10258 = vrcp.f32 %v3121_v15  ;;  %v6401_v61 = vpop.xlane.xlu1 %6400  ;;  %v15034_v59 = vld [vmem:[#allocation96_spill] sm:$0xff] }
 0x768   :  { %v4031_v29 = vsel %vm1953_vm1, %v3961_v11, 0.0  ;;  %10260 = vrcp.f32 %v6401_v61 }
 0x769   :  { %v10251_v62 = vpop.eup %10250  ;;  %v4032_v27 = vadd.f32 %v4031_v29, %v14036_v34  ;;  %v4155_v43 = vsel %vm1953_vm1, %v14093_v36, 0.0  ;;  %v10386_v36 = vmov 0.0  }
 0x76a   :  { %v10253_v8 = vpop.eup %10252  ;;  %v3984_v13 = vmul.f32 %v10251_v62, %v15030_v51  ;;  %v3211_v16 = vpop.xlane.xlu0 %3210  ;;  %9730 = vmatprep.mubr.msk.f32.mxu1 %vm10385_vm3, %v10386_v36  ;;  %9719 = vmatprep.mubr.msk.f32.mxu0 %vm10385_vm3, %v10386_v36 }
 0x76b   :  { %v4033_v30 = vrot.slane %v4032_v27, 4  ;;  %v14099_v46 = vmul.f32 %v10253_v8, %v15031_v18  ;;  %10262 = vrcp.f32 %v3211_v16  ;;  %v6410_v28 = vpop.xlane.xlu1 %6409 }
 0x76c   :  { %v4092_v17 = vsel %vm1953_vm1, %v3984_v13, 0.0  ;;  %10264 = vrcp.f32 %v6410_v28  ;;  %v8170_v28 = vld [vmem:[%s14404_s5 + $0x20] sm:$0xff] }
 0x76d   :  { %v10255_v63 = vpop.eup %10254  ;;  %v4034_v1 = vadd.f32 %v4033_v30, %v4032_v27  ;;  %v14103_v58 = vadd.f32 %v4092_v17, %v14052_v40  ;;  %v4189_v27 = vld [vmem:[%s14404_s5 + $0x18] sm:$0xff]  ;;  %v8171_v17 = vld [vmem:[%s14404_s5 + $0x28] sm:$0xff] }
 0x76e   :  { %v10257_v34 = vpop.eup %10256  ;;  %v4014_v56 = vmul.f32 %v10255_v63, %v15032_v44  ;;  %v3145_v38 = vpop.xlane.xlu0 %3144 }
 0x76f   :  { %v4035_v48 = vrot.slane %v4034_v1, 2  ;;  %v14107_v54 = vmul.f32 %v10257_v34, %v14033_v7  ;;  %10266 = vrcp.f32 %v3145_v38  ;;  %v6428_v47 = vpop.xlane.xlu1 %6427 }
 0x770   :  { %v4172_v5 = vsel %vm1953_vm1, %v4014_v56, 0.0  ;;  %10268 = vrcp.f32 %v6428_v47  ;;  %v9734_v56 = vpack.c.bf16 %v8171_v17, %v8170_v28 }
 0x771   :  { %v10259_v35 = vpop.eup %10258  ;;  %v4036_v42 = vadd.f32 %v4035_v48, %v4034_v1  ;;  %v14111_v57 = vadd.f32 %v4172_v5, %v14062_v9  ;;  %v4187_v9 = vld [vmem:[%s14404_s5 + $0x8] sm:$0xff]  ;;  %v15035_v1 = vld [vmem:[#allocation17_spill] sm:$0xff] }
 0x772   :  { %v10261_v40 = vpop.eup %10260  ;;  %v3977_v6 = vmul.f32 %v10259_v35, %v15033_v37  ;;  %v3235_v22 = vpop.xlane.xlu0 %3234  ;;  %v9740_v0 = vpack.c.bf16 %v4187_v9, %v4186_v26  ;;  %9735 = vmatpush3.bf16.msra.mxu0 %v9734_v56  ;;  %v8173_v37 = vld [vmem:[%s14404_s5 + $0x38] sm:$0xff] }
 0x773   :  { %v4037_v55 = vrot.slane %v4036_v42, 1  ;;  %v14115_v60 = vmul.f32 %v10261_v40, %v14045_v39  ;;  %10270 = vrcp.f32 %v3235_v22  ;;  %v14117_v7 = vpop.xlane.xlu1 %6475  ;;  %9736 = vmatprep.subr.bf16.mxu0 %v10384_v45  ;;  %v8172_v40 = vld [vmem:[%s14404_s5 + $0x30] sm:$0xff] }
 0x774   :  { %v4073_v24 = vsel %vm1953_vm1, %v3977_v6, 0.0  ;;  %9741 = vmatpush3.bf16.msra.mxu1 %v9740_v0  ;;  %v15036_v6 = vld [vmem:[#allocation80_spill] sm:$0xff]  ;;  %v9737_v26 = vpack.c.bf16 %v8173_v37, %v8172_v40 }
 0x775   :  { %v10263_v20 = vpop.eup %10262  ;;  %v4038_v53 = vadd.f32 %v4037_v55, %v4036_v42  ;;  %v4074_v39 = vadd.f32 %v4073_v24, %v14077_v33  ;;  %v9625_v15 = vpop.f32.mrb[88].mxu0  ;;  %9742 = vmatprep.subr.bf16.mxu1 %v10384_v45  ;;  %v4188_v33 = vld [vmem:[%s14404_s5 + $0x10] sm:$0xff]  ;;  %v7362_v40 = vsel %vm1953_vm1, %v14115_v60, 0.0 }
 0x776   :  { %v10265_v21 = vpop.eup %10264  ;;  %v4007_v49 = vmul.f32 %v10263_v20, %v15034_v59  ;;  %v3169_v11 = vpop.xlane.xlu0 %3168  ;;  %9738 = vmatpush3.bf16.msra.mxu0 %v9737_v26  ;;  %v15037_v59 = vld [vmem:[#allocation87_spill] sm:$0xff] }
 0x777   :  { %v7615_v2 = vsel %vm7521_vm2, %v4059_v31, %v4038_v53  ;;  %v4075_v61 = vrot.slane %v4074_v39, 4  ;;  %v14130_v29 = vmul.f32 %v10265_v21, %v14064_v14  ;;  %10272 = vrcp.f32 %v3169_v11  ;;  %v14132_v62 = vpop.f32.mrb[89].mxu0  ;;  %v6425_v25 = vpop.xlane.xlu1 %6424 }
 0x778   :  { %v4153_v8 = vsel %vm1953_vm1, %v4007_v49, 0.0  ;;  %10274 = vrcp.f32 %v6425_v25  ;;  %v14141_v51 = vpop.f32.mrb[90].mxu0  ;;  %v9743_v14 = vpack.c.bf16 %v4189_v27, %v4188_v33  ;;  %v4176_v21 = vsel %vm1953_vm1, %v14099_v46, 0.0 }
 0x779   :  { %v10267_v13 = vpop.eup %10266  ;;  %v4076_v16 = vadd.f32 %v4075_v61, %v4074_v39  ;;  %v4154_v30 = vadd.f32 %v4153_v8, %v14086_v23  ;;  %v6863_v18 = vpop.f32.mrb[91].mxu0 }
 0x77a   :  { %v10269_v63 = vpop.eup %10268  ;;  %v3985_v34 = vmul.f32 %v10267_v13, %v15035_v1  ;;  %v3193_v44 = vpop.xlane.xlu0 %3192  ;;  %9744 = vmatpush3.bf16.msra.mxu1 %v9743_v14  ;;  %v15038_v13 = vld [vmem:[#allocation25_spill] sm:$0xff] }
 0x77b   :  { %v4077_v38 = vrot.slane %v4076_v16, 2  ;;  %v14153_v23 = vmul.f32 %v10269_v63, %v9625_v15  ;;  %10276 = vrcp.f32 %v3193_v44  ;;  %v6473_v48 = vpop.xlane.xlu1 %6472  ;;  %v14155_v47 = vadd.f32 %v4155_v43, %v4154_v30 }
 0x77c   :  { %v4094_v5 = vsel %vm1953_vm1, %v3985_v34, 0.0 }
 0x77d   :  { %v10271_v35 = vpop.eup %10270  ;;  %v4078_v10 = vadd.f32 %v4077_v38, %v4076_v16  ;;  %v4095_v42 = vadd.f32 %v4094_v5, %v14103_v58 }
 0x77e   :  { %v4015_v22 = vmul.f32 %v10271_v35, %v15036_v6  ;;  %v6398_v55 = vpop.xlane.xlu0 %6397 }
 0x77f   :  { %v4079_v9 = vrot.slane %v4078_v10, 1  ;;  %v4096_v24 = vrot.slane %v4095_v42, 4  ;;  %10278 = vrcp.f32 %v6398_v55  ;;  %v6440_v58 = vpop.xlane.xlu1 %6439 }
 0x780   :  { %v4174_v0 = vsel %vm1953_vm1, %v4015_v22, 0.0  ;;  %10280 = vrcp.f32 %v6440_v58 }
 0x781   :  { %v10273_v20 = vpop.eup %10272  ;;  %v4080_v31 = vadd.f32 %v4079_v9, %v4078_v10  ;;  %v4097_v53 = vadd.f32 %v4096_v24, %v4095_v42  ;;  %v4175_v39 = vadd.f32 %v4174_v0, %v14111_v57  ;;  %v7364_v9 = vsel %vm1953_vm1, %v14107_v54, 0.0 }
 0x782   :  { %v10275_v45 = vpop.eup %10274  ;;  %v3993_v49 = vmul.f32 %v10273_v20, %v15037_v59  ;;  %v6407_v11 = vpop.xlane.xlu0 %6406 }
 0x783   :  { %v7616_v15 = vsel %vm7523_vm4, %v4080_v31, %v7615_v2  ;;  %v4098_v61 = vrot.slane %v4097_v53, 2  ;;  %v14172_v25 = vmul.f32 %v10275_v45, %v6863_v18  ;;  %10282 = vrcp.f32 %v6407_v11  ;;  %v6434_v33 = vpop.xlane.xlu1 %6433 }
 0x784   :  { %v4115_v27 = vsel %vm1953_vm1, %v3993_v49, 0.0  ;;  %10284 = vrcp.f32 %v6434_v33  ;;  %v14175_v8 = vadd.f32 %v4176_v21, %v4175_v39 }
 0x785   :  { %v10277_v57 = vpop.eup %10276  ;;  %v4099_v14 = vadd.f32 %v4098_v61, %v4097_v53  ;;  %10286 = vrcp.f32 %v14117_v7  ;;  %v4116_v46 = vadd.f32 %v4115_v27, %v14080_v4  ;;  %v9629_v30 = vpop.f32.mrb[92].mxu0 }
 0x786   :  { %v4001_v16 = vmul.f32 %v10277_v57, %v15038_v13  ;;  %10288 = vrcp.f32 %v6473_v48  ;;  %v6416_v2 = vpop.xlane.xlu0 %6415  ;;  %v6876_v17 = vpop.f32.mrb[93].mxu0 }
 0x787   :  { %v4100_v18 = vrot.slane %v4099_v14, 1  ;;  %v4117_v28 = vrot.slane %v4116_v46, 4  ;;  %10290 = vrcp.f32 %v6416_v2  ;;  %v6443_v63 = vpop.xlane.xlu1 %6442  ;;  %v9630_v1 = vpop.f32.mrb[94].mxu0 }
 0x788   :  { %v4136_v43 = vsel %vm1953_vm1, %v4001_v16, 0.0  ;;  %10292 = vrcp.f32 %v6443_v63  ;;  %v6879_v4 = vpop.f32.mrb[95].mxu0 }
 0x789   :  { %v10279_v34 = vpop.eup %10278  ;;  %v4101_v44 = vadd.f32 %v4100_v18, %v4099_v14  ;;  %v4118_v56 = vadd.f32 %v4117_v28, %v4116_v46  ;;  %v4137_v7 = vadd.f32 %v4136_v43, %v14089_v19  ;;  %v7368_v14 = vsel %vm1953_vm1, %v14130_v29, 0.0 }
 0x78a   :  { %v10281_v38 = vpop.eup %10280  ;;  %v7284_v48 = vmul.f32 %v10279_v34, %v14038_v32  ;;  %v6419_v5 = vpop.xlane.xlu0 %6418 }
 0x78b   :  { %v4119_v35 = vrot.slane %v4118_v56, 2  ;;  %v4138_v10 = vrot.slane %v4137_v7, 4  ;;  %v14183_v42 = vmul.f32 %v10281_v38, %v9629_v30  ;;  %10294 = vrcp.f32 %v6419_v5  ;;  %v6437_v36 = vpop.xlane.xlu1 %6436 }
 0x78c   :  { %v7361_v37 = vsel %vm1953_vm1, %v7284_v48, 0.0  ;;  %10296 = vrcp.f32 %v6437_v36  ;;  %v7617_v19 = vsel %vm7525_vm5, %v4101_v44, %v7616_v15 }
 0x78d   :  { %v10283_v6 = vpop.eup %10282  ;;  %v4120_v22 = vadd.f32 %v4119_v35, %v4118_v56  ;;  %v4139_v55 = vadd.f32 %v4138_v10, %v4137_v7  ;;  %v7363_v26 = vadd.f32 %v7362_v40, %v7361_v37  ;;  %v9657_v0 = vpop.f32.mrb[96].mxu0 }
 0x78e   :  { %v10285_v32 = vpop.eup %10284  ;;  %v7287_v24 = vmul.f32 %v10283_v6, %v14042_v3  ;;  %v6413_v58 = vpop.xlane.xlu0 %6412 }
 0x78f   :  { %v10287_v20 = vpop.eup %10286  ;;  %v4121_v31 = vrot.slane %v4120_v22, 1  ;;  %v4140_v60 = vrot.slane %v4139_v55, 2  ;;  %v7365_v53 = vadd.f32 %v7364_v9, %v7363_v26  ;;  %v14192_v39 = vmul.f32 %v10285_v32, %v6876_v17  ;;  %v14194_v45 = vpop.f32.mrb[97].mxu0 }
 0x790   :  { %v6452_v21 = vpop.xlane.xlu1 %6451  ;;  %v10289_v59 = vpop.eup %10288  ;;  %v7366_v49 = vsel %vm1953_vm1, %v7287_v24, 0.0  ;;  %10298 = vrcp.f32 %v6413_v58  ;;  %v14197_v11 = vmul.f32 %v10287_v20, %v9657_v0 }
 0x791   :  { %v14199_v54 = vpop.f32.mrb[98].mxu0  ;;  %v10291_v3 = vpop.eup %10290  ;;  %v4122_v15 = vadd.f32 %v4121_v31, %v4120_v22  ;;  %v4141_v61 = vadd.f32 %v4140_v60, %v4139_v55  ;;  %v7367_v33 = vadd.f32 %v7366_v49, %v7365_v53  ;;  %10300 = vrcp.f32 %v6452_v21 }
 0x792   :  { %v7017_v27 = vpop.f32.mrb[99].mxu0  ;;  %v10293_v57 = vpop.eup %10292  ;;  %v7290_v46 = vmul.f32 %v10291_v3, %v14059_v50  ;;  %v7383_v21 = vsel %vm1953_vm1, %v14172_v25, 0.0 }
 0x793   :  { %v6422_v13 = vpop.xlane.xlu0 %6421  ;;  %v14204_v16 = vmul.f32 %v10289_v59, %v7017_v27  ;;  %v4142_v2 = vrot.slane %v4141_v61, 1  ;;  %v14206_v30 = vmul.f32 %v10293_v57, %v9630_v1  ;;  %v7369_v18 = vadd.f32 %v7368_v14, %v7367_v33 }
 0x794   :  { %10302 = vrcp.f32 %v6422_v13  ;;  %v6524_v28 = vpop.xlane.xlu1 %6523  ;;  %v7618_v17 = vsel %vm7527_vm6, %v4122_v15, %v7617_v19  ;;  %v7385_v57 = vsel %vm1953_vm1, %v14153_v23, 0.0  ;;  %v7427_v23 = vsel %vm1953_vm1, %v14197_v11, 0.0 }
 0x795   :  { %10304 = vrcp.f32 %v6524_v28  ;;  %v10295_v63 = vpop.eup %10294  ;;  %v4143_v43 = vadd.f32 %v4142_v2, %v4141_v61  ;;  %v9641_v44 = vpop.f32.mrb[56].mxu1  ;;  %v7425_v28 = vsel %vm1953_vm1, %v14204_v16, 0.0 }
 0x796   :  { %v10297_v34 = vpop.eup %10296  ;;  %v7291_v29 = vmul.f32 %v10295_v63, %v14067_v12  ;;  %v14212_v7 = vpop.f32.mrb[100].mxu0 }
 0x797   :  { %v6470_v50 = vpop.xlane.xlu0 %6469  ;;  %v14210_v56 = vmul.f32 %v10297_v34, %v6879_v4  ;;  %v14214_v1 = vpop.f32.mrb[57].mxu1  ;;  %v14217_v38 = vsel %vm7529_vm7, %v4143_v43, %v7618_v17  ;;  %v7355_v4 = vrot.slane %v14069_v41, 4 }
 0x798   :  { %10306 = vrcp.f32 %v6470_v50  ;;  %v14219_v48 = vpop.f32.mrb[101].mxu0  ;;  %v6527_v5 = vpop.xlane.xlu1 %6526 }
 0x799   :  { %10308 = vrcp.f32 %v6527_v5  ;;  %v14221_v35 = vpop.f32.mrb[58].mxu1  ;;  %v14223_v10 = vpop.f32.mrb[102].mxu0  ;;  %v7356_v24 = vadd.f32 %v7355_v4, %v14069_v41 }
 0x79a   :  { %v10299_v12 = vpop.eup %10298  ;;  %v14226_v40 = vpop.f32.mrb[59].mxu1 }
 0x79b   :  { %v6431_v36 = vpop.xlane.xlu0 %6430  ;;  %v7289_v37 = vmul.f32 %v10299_v12, %v14071_v52  ;;  %v14229_v19 = vpop.f32.mrb[103].mxu0  ;;  %v7372_v52 = vsel %vm1953_vm1, %v7290_v46, 0.0  ;;  %v7357_v27 = vrot.slane %v7356_v24, 2 }
 0x79c   :  { %10310 = vrcp.f32 %v6431_v36  ;;  %v10301_v6 = vpop.eup %10300  ;;  %v6449_v22 = vpop.xlane.xlu1 %6448 }
 0x79d   :  { %v7370_v26 = vsel %vm1953_vm1, %v7289_v37, 0.0  ;;  %v14232_v32 = vmul.f32 %v10301_v6, %v9641_v44  ;;  %v9689_v31 = vpop.f32.mrb[104].mxu0  ;;  %v7358_v50 = vadd.f32 %v7357_v27, %v7356_v24 }
 0x79e   :  { %v10303_v55 = vpop.eup %10302  ;;  %v7371_v58 = vadd.f32 %v7370_v26, %v7369_v18  ;;  %v14239_v53 = vpop.f32.mrb[105].mxu0 }
 0x79f   :  { %v10305_v9 = vpop.eup %10304  ;;  %v7292_v0 = vmul.f32 %v10303_v55, %v14132_v62  ;;  %v6479_v20 = vpop.xlane.xlu0 %6478  ;;  %v7374_v62 = vsel %vm1953_vm1, %v7291_v29, 0.0  ;;  %v7359_v11 = vrot.slane %v7358_v50, 1 }
 0x7a0   :  { %10312 = vrcp.f32 %v6479_v20  ;;  %v14237_v60 = vmul.f32 %v10305_v9, %v9689_v31  ;;  %v7373_v59 = vadd.f32 %v7372_v52, %v7371_v58  ;;  %v14244_v3 = vpop.xlane.xlu1 %6520  ;;  %v9690_v41 = vpop.f32.mrb[106].mxu0 }
 0x7a1   :  { %v7382_v49 = vsel %vm1953_vm1, %v7292_v0, 0.0  ;;  %v14247_v33 = vpop.f32.mrb[107].mxu0  ;;  %v7360_v27 = vadd.f32 %v7359_v11, %v7358_v50 }
 0x7a2   :  { %v10307_v15 = vpop.eup %10306  ;;  %v7384_v61 = vadd.f32 %v7383_v21, %v7382_v49  ;;  %v7375_v14 = vadd.f32 %v7374_v62, %v7373_v59  ;;  %v7391_v59 = vsel %vm1953_vm1, %v14210_v56, 0.0 }
 0x7a3   :  { %v7308_v46 = vmul.f32 %v10307_v15, %v14194_v45  ;;  %v6488_v25 = vpop.xlane.xlu0 %6487  ;;  %v10309_v13 = vpop.eup %10308 }
 0x7a4   :  { %v7386_v2 = vadd.f32 %v7385_v57, %v7384_v61  ;;  %v7376_v18 = vrot.slane %v7375_v14, 4  ;;  %v14255_v63 = vmul.f32 %v10309_v13, %v9690_v41  ;;  %v6464_v43 = vpop.xlane.xlu1 %6463  ;;  %v7393_v57 = vsel %vm1953_vm1, %v14183_v42, 0.0 }
 0x7a5   :  { %v7424_v17 = vsel %vm1953_vm1, %v7308_v46, 0.0  ;;  %v14260_v12 = vpop.f32.mrb[60].mxu1 }
 0x7a6   :  { %v10311_v34 = vpop.eup %10310  ;;  %v7426_v29 = vadd.f32 %v7425_v28, %v7424_v17  ;;  %v7377_v44 = vadd.f32 %v7376_v18, %v7375_v14  ;;  %v14262_v16 = vpop.f32.mrb[61].mxu1 }
 0x7a7   :  { %v7295_v45 = vmul.f32 %v10311_v34, %v14141_v51  ;;  %v6482_v5 = vpop.xlane.xlu0 %6481  ;;  %v14267_v55 = vpop.f32.mrb[62].mxu1  ;;  %v7389_v51 = vsel %vm1953_vm1, %v14192_v39, 0.0 }
 0x7a8   :  { %v7428_v4 = vadd.f32 %v7427_v23, %v7426_v29  ;;  %10314 = vrcp.f32 %v6482_v5  ;;  %v7378_v36 = vrot.slane %v7377_v44, 2  ;;  %v14265_v6 = vpop.xlane.xlu1 %6535  ;;  %v14269_v24 = vpop.f32.mrb[63].mxu1 }
 0x7a9   :  { %v7387_v37 = vsel %vm1953_vm1, %v7295_v45, 0.0  ;;  %v14274_v31 = vpop.f32.mrb[108].mxu0  ;;  %10316 = vrcp.f32 %v6449_v22  ;;  %v7395_v22 = vsel %vm1953_vm1, %v14206_v30, 0.0 }
 0x7aa   :  { %v10313_v26 = vpop.eup %10312  ;;  %v7388_v9 = vadd.f32 %v7387_v37, %v7386_v2  ;;  %v7379_v58 = vadd.f32 %v7378_v36, %v7377_v44  ;;  %v14276_v21 = vpop.f32.mrb[109].mxu0  ;;  %10318 = vrcp.f32 %v6488_v25 }
 0x7ab   :  { %v7311_v0 = vmul.f32 %v10313_v26, %v14199_v54  ;;  %v6491_v20 = vpop.xlane.xlu0 %6490  ;;  %v14281_v62 = vpop.f32.mrb[110].mxu0 }
 0x7ac   :  { %v7390_v52 = vadd.f32 %v7389_v51, %v7388_v9  ;;  %v7380_v49 = vrot.slane %v7379_v58, 1  ;;  %v6458_v15 = vpop.xlane.xlu1 %6457  ;;  %v14283_v54 = vpop.f32.mrb[111].mxu0  ;;  %10320 = vrcp.f32 %v6491_v20 }
 0x7ad   :  { %v7429_v41 = vsel %vm1953_vm1, %v7311_v0, 0.0 }
 0x7ae   :  { %v7392_v39 = vadd.f32 %v7391_v59, %v7390_v52  ;;  %v7430_v61 = vadd.f32 %v7429_v41, %v7428_v4  ;;  %v7381_v14 = vadd.f32 %v7380_v49, %v7379_v58 }
 0x7af   :  { %v6485_v46 = vpop.xlane.xlu0 %6484 }
 0x7b0   :  { %v7394_v56 = vadd.f32 %v7393_v57, %v7392_v39  ;;  %10322 = vrcp.f32 %v6485_v46  ;;  %v6530_v13 = vpop.xlane.xlu1 %6529  ;;  %v7522_v2 = vsel %vm7521_vm2, %v7381_v14, %v7360_v27 }
 0x7b1   :  { %10324 = vrcp.f32 %v14244_v3  ;;  %v14292_v34 = vpop.f32.mrb[64].mxu1 }
 0x7b2   :  { %v10315_v18 = vpop.eup %10314  ;;  %v7396_v28 = vadd.f32 %v7395_v22, %v7394_v56  ;;  %v14294_v29 = vpop.f32.mrb[65].mxu1 }
 0x7b3   :  { %v7312_v25 = vmul.f32 %v10315_v18, %v14219_v48  ;;  %v6446_v17 = vpop.xlane.xlu0 %6445  ;;  %v14297_v30 = vpop.f32.mrb[66].mxu1 }
 0x7b4   :  { %v7397_v42 = vrot.slane %v7396_v28, 4  ;;  %10326 = vrcp.f32 %v6446_v17  ;;  %v6467_v44 = vpop.xlane.xlu1 %6466  ;;  %v14299_v5 = vpop.f32.mrb[67].mxu1 }
 0x7b5   :  { %v7431_v50 = vsel %vm1953_vm1, %v7312_v25, 0.0  ;;  %v10317_v4 = vpop.eup %10316  ;;  %10328 = vrcp.f32 %v6464_v43 }
 0x7b6   :  { %v7398_v23 = vadd.f32 %v7397_v42, %v7396_v28  ;;  %v7432_v45 = vadd.f32 %v7431_v50, %v7430_v61  ;;  %v10319_v48 = vpop.eup %10318  ;;  %v7301_v49 = vmul.f32 %v10317_v4, %v14226_v40 }
 0x7b7   :  { %v6518_v3 = vpop.xlane.xlu0 %6517  ;;  %v10321_v37 = vpop.eup %10320  ;;  %v7314_v51 = vmul.f32 %v10319_v48, %v14212_v7 }
 0x7b8   :  { %v7399_v36 = vrot.slane %v7398_v23, 2  ;;  %10330 = vrcp.f32 %v6518_v3  ;;  %v6461_v26 = vpop.xlane.xlu1 %6460  ;;  %v7315_v41 = vmul.f32 %v10321_v37, %v14223_v10  ;;  %v7404_v22 = vsel %vm1953_vm1, %v7301_v49, 0.0 }
 0x7b9   :  { %10332 = vrcp.f32 %v6458_v15  ;;  %v14303_v20 = vpop.f32.mrb[68].mxu1  ;;  %v7435_v14 = vsel %vm1953_vm1, %v7314_v51, 0.0 }
 0x7ba   :  { %v10323_v9 = vpop.eup %10322  ;;  %v7400_v11 = vadd.f32 %v7399_v36, %v7398_v23  ;;  %10334 = vrcp.f32 %v6530_v13  ;;  %v14305_v43 = vpop.f32.mrb[69].mxu1  ;;  %v7437_v18 = vsel %vm1953_vm1, %v7315_v41, 0.0 }
 0x7bb   :  { %v7313_v58 = vmul.f32 %v10323_v9, %v14229_v19  ;;  %10336 = vrcp.f32 %v6461_v26  ;;  %v6455_v0 = vpop.xlane.xlu0 %6454  ;;  %v10325_v59 = vpop.eup %10324 }
 0x7bc   :  { %v7401_v52 = vrot.slane %v7400_v11, 1  ;;  %10338 = vrcp.f32 %v6455_v0  ;;  %v6533_v7 = vpop.xlane.xlu1 %6532  ;;  %v14311_v39 = vpop.f32.mrb[70].mxu1  ;;  %v7325_v13 = vmul.f32 %v10325_v59, %v14247_v33  ;;  %v7471_v59 = vsel %vm1953_vm1, %v14255_v63, 0.0 }
 0x7bd   :  { %10340 = vrcp.f32 %v14265_v6  ;;  %v7433_v15 = vsel %vm1953_vm1, %v7313_v58, 0.0  ;;  %v14313_v57 = vpop.f32.mrb[71].mxu1 }
 0x7be   :  { %v10327_v19 = vpop.eup %10326  ;;  %v7402_v61 = vadd.f32 %v7401_v52, %v7400_v11  ;;  %v7434_v27 = vadd.f32 %v7433_v15, %v7432_v45  ;;  %10342 = vrcp.f32 %v6533_v7  ;;  %v7467_v3 = vsel %vm1953_vm1, %v7325_v13, 0.0 }
 0x7bf   :  { %v7300_v46 = vmul.f32 %v10327_v19, %v14214_v1  ;;  %v6494_v40 = vpop.xlane.xlu0 %6493  ;;  %10344 = vrcp.f32 %v6467_v44  ;;  %v10329_v6 = vpop.eup %10328  ;;  %v7406_v44 = vsel %vm1953_vm1, %v14232_v32, 0.0  ;;  %v7469_v32 = vsel %vm1953_vm1, %v14237_v60, 0.0 }
 0x7c0   :  { %v7436_v56 = vadd.f32 %v7435_v14, %v7434_v27  ;;  %v14318_v10 = vsel %vm7523_vm4, %v7402_v61, %v7522_v2  ;;  %v6500_v25 = vpop.xlane.xlu1 %6499  ;;  %10346 = vrcp.f32 %v6494_v40 }
 0x7c1   :  { %v7403_v28 = vsel %vm1953_vm1, %v7300_v46, 0.0  ;;  %10348 = vrcp.f32 %v6500_v25 }
 0x7c2   :  { %v10331_v17 = vpop.eup %10330  ;;  %v7438_v42 = vadd.f32 %v7437_v18, %v7436_v56  ;;  %v7405_v50 = vadd.f32 %v7404_v22, %v7403_v28 }
 0x7c3   :  { %v10333_v1 = vpop.eup %10332  ;;  %v7324_v2 = vmul.f32 %v10331_v17, %v14239_v53  ;;  %v6503_v23 = vpop.xlane.xlu0 %6502 }
 0x7c4   :  { %v10335_v45 = vpop.eup %10334  ;;  %v7407_v4 = vadd.f32 %v7406_v44, %v7405_v50  ;;  %10350 = vrcp.f32 %v6503_v23  ;;  %v6497_v36 = vpop.xlane.xlu1 %6496  ;;  %v7304_v53 = vmul.f32 %v10333_v1, %v14262_v16  ;;  %v7439_v19 = vrot.slane %v7438_v42, 4 }
 0x7c5   :  { %v10337_v33 = vpop.eup %10336  ;;  %v7466_v48 = vsel %vm1953_vm1, %v7324_v2, 0.0  ;;  %10352 = vrcp.f32 %v6497_v36  ;;  %v7328_v11 = vmul.f32 %v10335_v45, %v14276_v21  ;;  %v7306_v21 = vmul.f32 %v10329_v6, %v14260_v12 }
 0x7c6   :  { %v10339_v37 = vpop.eup %10338  ;;  %v7468_v26 = vadd.f32 %v7467_v3, %v7466_v48  ;;  %v7305_v49 = vmul.f32 %v10337_v33, %v14269_v24  ;;  %v7410_v27 = vsel %vm1953_vm1, %v7304_v53, 0.0  ;;  %v7440_v6 = vadd.f32 %v7439_v19, %v7438_v42 }
 0x7c7   :  { %v10341_v9 = vpop.eup %10340  ;;  %v7303_v51 = vmul.f32 %v10339_v37, %v14221_v35  ;;  %v6512_v58 = vpop.xlane.xlu0 %6511  ;;  %v7473_v14 = vsel %vm1953_vm1, %v7328_v11, 0.0  ;;  %v7414_v25 = vsel %vm1953_vm1, %v7306_v21, 0.0 }
 0x7c8   :  { %v10343_v0 = vpop.eup %10342  ;;  %v7470_v52 = vadd.f32 %v7469_v32, %v7468_v26  ;;  %v6548_v7 = vpop.xlane.xlu1 %6547  ;;  %v7330_v35 = vmul.f32 %v10341_v9, %v14274_v31  ;;  %v7412_v56 = vsel %vm1953_vm1, %v7305_v49, 0.0  ;;  %v7441_v33 = vrot.slane %v7440_v6, 2 }
 0x7c9   :  { %v7408_v41 = vsel %vm1953_vm1, %v7303_v51, 0.0  ;;  %v7329_v15 = vmul.f32 %v10343_v0, %v14283_v54  ;;  %v10345_v60 = vpop.eup %10344 }
 0x7ca   :  { %v7409_v16 = vadd.f32 %v7408_v41, %v7407_v4  ;;  %v7472_v61 = vadd.f32 %v7471_v59, %v7470_v52  ;;  %v10347_v46 = vpop.eup %10346  ;;  %v7307_v54 = vmul.f32 %v10345_v60, %v14267_v55  ;;  %v7477_v17 = vsel %vm1953_vm1, %v7330_v35, 0.0 }
 0x7cb   :  { %v6506_v63 = vpop.xlane.xlu0 %6505  ;;  %v7475_v22 = vsel %vm1953_vm1, %v7329_v15, 0.0  ;;  %v10349_v12 = vpop.eup %10348  ;;  %v7316_v50 = vmul.f32 %v10347_v46, %v14294_v29 }
 0x7cc   :  { %v7411_v24 = vadd.f32 %v7410_v27, %v7409_v16  ;;  %v7474_v40 = vadd.f32 %v7473_v14, %v7472_v61  ;;  %10354 = vrcp.f32 %v6506_v63  ;;  %v6539_v13 = vpop.xlane.xlu1 %6538  ;;  %v7416_v23 = vsel %vm1953_vm1, %v7307_v54, 0.0 }
 0x7cd   :  { %10356 = vrcp.f32 %v6512_v58  ;;  %v7318_v45 = vmul.f32 %v10349_v12, %v14292_v34  ;;  %v7445_v48 = vsel %vm1953_vm1, %v7316_v50, 0.0  ;;  %v7442_v58 = vadd.f32 %v7441_v33, %v7440_v6 }
 0x7ce   :  { %v7413_v31 = vadd.f32 %v7412_v56, %v7411_v24  ;;  %v7476_v18 = vadd.f32 %v7475_v22, %v7474_v40  ;;  %10358 = vrcp.f32 %v6539_v13  ;;  %v10351_v28 = vpop.eup %10350 }
 0x7cf   :  { %v6509_v1 = vpop.xlane.xlu0 %6508  ;;  %v10353_v55 = vpop.eup %10352  ;;  %v7319_v36 = vmul.f32 %v10351_v28, %v14297_v30  ;;  %v7448_v32 = vsel %vm1953_vm1, %v7318_v45, 0.0  ;;  %v7443_v27 = vrot.slane %v7442_v58, 1 }
 0x7d0   :  { %v7415_v44 = vadd.f32 %v7414_v25, %v7413_v31  ;;  %v7478_v2 = vadd.f32 %v7477_v17, %v7476_v18  ;;  %10360 = vrcp.f32 %v6509_v1  ;;  %v7317_v42 = vmul.f32 %v10353_v55, %v14299_v5  ;;  %v6551_v4 = vpop.xlane.xlu1 %6550 }
 0x7d1   :  { %10362 = vrcp.f32 %v6548_v7  ;;  %v7450_v0 = vsel %vm1953_vm1, %v7319_v36, 0.0 }
 0x7d2   :  { %v7417_v3 = vadd.f32 %v7416_v23, %v7415_v44  ;;  %v7446_v29 = vsel %vm1953_vm1, %v7317_v42, 0.0 }
 0x7d3   :  { %v6542_v37 = vpop.xlane.xlu0 %6541  ;;  %v7447_v9 = vadd.f32 %v7446_v29, %v7445_v48 }
 0x7d4   :  { %v7418_v26 = vrot.slane %v7417_v3, 4  ;;  %10364 = vrcp.f32 %v6542_v37  ;;  %v6545_v34 = vpop.xlane.xlu1 %6544 }
 0x7d5   :  { %10366 = vrcp.f32 %v6551_v4  ;;  %v7449_v11 = vadd.f32 %v7448_v32, %v7447_v9 }
 0x7d6   :  { %v10355_v53 = vpop.eup %10354  ;;  %v7419_v5 = vadd.f32 %v7418_v26, %v7417_v3  ;;  %10368 = vrcp.f32 %v6545_v34 }
 0x7d7   :  { %v10357_v51 = vpop.eup %10356  ;;  %v7320_v30 = vmul.f32 %v10355_v53, %v14305_v43  ;;  %v6515_v52 = vpop.xlane.xlu0 %6514  ;;  %v7451_v41 = vadd.f32 %v7450_v0, %v7449_v11 }
 0x7d8   :  { %v10359_v59 = vpop.eup %10358  ;;  %v7420_v49 = vrot.slane %v7419_v5, 2  ;;  %10370 = vrcp.f32 %v6515_v52  ;;  %v6560_v60 = vpop.xlane.xlu1 %6559  ;;  %v7322_v14 = vmul.f32 %v10357_v51, %v14303_v20  ;;  %v7444_v20 = vadd.f32 %v7443_v27, %v7442_v58  ;;  %v15039_v51 = vld [vmem:[#allocation95_spill] sm:$0xff] }
 0x7d9   :  { %v7452_v15 = vsel %vm1953_vm1, %v7320_v30, 0.0  ;;  %v7331_v7 = vmul.f32 %v10359_v59, %v14281_v62  ;;  %v9705_v19 = vpop.f32.mrb[72].mxu1 }
 0x7da   :  { %v10361_v16 = vpop.eup %10360  ;;  %v7421_v61 = vadd.f32 %v7420_v49, %v7419_v5  ;;  %v7453_v21 = vadd.f32 %v7452_v15, %v7451_v41  ;;  %v7245_v35 = vpop.f32.mrb[73].mxu1  ;;  %v7456_v28 = vsel %vm1953_vm1, %v7322_v14, 0.0 }
 0x7db   :  { %v7479_v43 = vsel %vm1953_vm1, %v7331_v7, 0.0  ;;  %v7321_v63 = vmul.f32 %v10361_v16, %v14313_v57  ;;  %v3217_v46 = vpop.xlane.xlu0 %3216  ;;  %v9706_v24 = vpop.f32.mrb[74].mxu1 }
 0x7dc   :  { %v7422_v40 = vrot.slane %v7421_v61, 1  ;;  %v7480_v54 = vadd.f32 %v7479_v43, %v7478_v2  ;;  %10372 = vrcp.f32 %v3217_v46  ;;  %v7248_v56 = vpop.f32.mrb[75].mxu1  ;;  %v10363_v62 = vpop.eup %10362 }
 0x7dd   :  { %v7454_v22 = vsel %vm1953_vm1, %v7321_v63, 0.0  ;;  %v6554_v13 = vpop.xlane.xlu1 %6553  ;;  %v7334_v44 = vmul.f32 %v10363_v62, %v9705_v19 }
 0x7de   :  { %v10365_v12 = vpop.eup %10364  ;;  %v7423_v6 = vadd.f32 %v7422_v40, %v7421_v61  ;;  %v7455_v31 = vadd.f32 %v7454_v22, %v7453_v21  ;;  %10374 = vrcp.f32 %v6554_v13  ;;  %v7481_v25 = vrot.slane %v7480_v54, 4  ;;  %v15040_v21 = vld [vmem:[#allocation79_spill] sm:$0xff] }
 0x7df   :  { %v10367_v18 = vpop.eup %10366  ;;  %v7332_v57 = vmul.f32 %v10365_v12, %v7245_v35  ;;  %v3241_v17 = vpop.xlane.xlu0 %3240  ;;  %v7490_v37 = vsel %vm1953_vm1, %v7334_v44, 0.0 }
 0x7e0   :  { %v10369_v50 = vpop.eup %10368  ;;  %v7457_v1 = vadd.f32 %v7456_v28, %v7455_v31  ;;  %10376 = vrcp.f32 %v3241_v17  ;;  %v7526_v55 = vsel %vm7525_vm5, %v7423_v6, %v14318_v10  ;;  %v7335_v4 = vmul.f32 %v10367_v18, %v9706_v24 }
 0x7e1   :  { %10378 = vrcp.f32 %v6560_v60  ;;  %v7333_v2 = vmul.f32 %v10369_v50, %v7248_v56  ;;  %v6557_v23 = vpop.xlane.xlu1 %6556  ;;  %v14368_v45 = vsel %vm7527_vm6, %v7444_v20, %v7526_v55  ;;  %v7482_v33 = vadd.f32 %v7481_v25, %v7480_v54 }
 0x7e2   :  { %v10371_v42 = vpop.eup %10370  ;;  %10380 = vrcp.f32 %v6557_v23  ;;  %v7487_v48 = vsel %vm1953_vm1, %v7332_v57, 0.0 }
 0x7e3   :  { %v7323_v3 = vmul.f32 %v10371_v42, %v14311_v39  ;;  %v7488_v36 = vsel %vm1953_vm1, %v7333_v2, 0.0  ;;  %v9709_v9 = vpop.f32.mrb[76].mxu1  ;;  %v7483_v11 = vrot.slane %v7482_v33, 2  ;;  %v7492_v39 = vsel %vm1953_vm1, %v7335_v4, 0.0 }
 0x7e4   :  { %v7489_v29 = vadd.f32 %v7488_v36, %v7487_v48  ;;  %v7261_v5 = vpop.f32.mrb[77].mxu1 }
 0x7e5   :  { %v7458_v10 = vsel %vm1953_vm1, %v7323_v3, 0.0  ;;  %v6563_v26 = vpop.xlane.xlu1 %6562  ;;  %v9710_v0 = vpop.f32.mrb[78].mxu1  ;;  %v7484_v61 = vadd.f32 %v7483_v11, %v7482_v33 }
 0x7e6   :  { %v10373_v32 = vpop.eup %10372  ;;  %v7459_v34 = vadd.f32 %v7458_v10, %v7457_v1  ;;  %v7491_v53 = vadd.f32 %v7490_v37, %v7489_v29  ;;  %10382 = vrcp.f32 %v6563_v26  ;;  %v7264_v49 = vpop.f32.mrb[79].mxu1 }
 0x7e7   :  { %v4009_v58 = vmul.f32 %v10373_v32, %v15039_v51  ;;  %v7485_v13 = vrot.slane %v7484_v61, 1 }
 0x7e8   :  { %v10375_v30 = vpop.eup %10374  ;;  %v7460_v52 = vrot.slane %v7459_v34, 4  ;;  %v7493_v59 = vadd.f32 %v7492_v39, %v7491_v53 }
 0x7e9   :  { %v4157_v41 = vsel %vm1953_vm1, %v4009_v58, 0.0  ;;  %v7336_v15 = vmul.f32 %v10375_v30, %v7261_v5  ;;  %v7486_v55 = vadd.f32 %v7485_v13, %v7484_v61  ;;  %v8176_v58 = vld [vmem:[%s14405_s6] ss:$0 sm:$0xff] }
 0x7ea   :  { %v10377_v7 = vpop.eup %10376  ;;  %v7461_v60 = vadd.f32 %v7460_v52, %v7459_v34  ;;  %v4158_v19 = vadd.f32 %v4157_v41, %v14155_v47 }
 0x7eb   :  { %v10379_v16 = vpop.eup %10378  ;;  %v4017_v35 = vmul.f32 %v10377_v7, %v15040_v21  ;;  %v7494_v27 = vsel %vm1953_vm1, %v7336_v15, 0.0 }
 0x7ec   :  { %v10381_v14 = vpop.eup %10380  ;;  %v7462_v43 = vrot.slane %v7461_v60, 2  ;;  %v4159_v63 = vrot.slane %v4158_v19, 4  ;;  %v7495_v46 = vadd.f32 %v7494_v27, %v7493_v59  ;;  %v7338_v40 = vmul.f32 %v10379_v16, %v9709_v9 }
 0x7ed   :  { %v4178_v24 = vsel %vm1953_vm1, %v4017_v35, 0.0  ;;  %v7337_v54 = vmul.f32 %v10381_v14, %v7264_v49 }
 0x7ee   :  { %v7463_v56 = vadd.f32 %v7462_v43, %v7461_v60  ;;  %v4160_v62 = vadd.f32 %v4159_v63, %v4158_v19  ;;  %v4179_v22 = vadd.f32 %v4178_v24, %v14175_v8  ;;  %v7498_v28 = vsel %vm1953_vm1, %v7338_v40, 0.0 }
 0x7ef   :  { %v7496_v47 = vsel %vm1953_vm1, %v7337_v54, 0.0 }
 0x7f0   :  { %v10383_v12 = vpop.eup %10382  ;;  %v7464_v6 = vrot.slane %v7463_v56, 1  ;;  %v4161_v31 = vrot.slane %v4160_v62, 2  ;;  %v4180_v18 = vrot.slane %v4179_v22, 4  ;;  %v7497_v20 = vadd.f32 %v7496_v47, %v7495_v46 }
 0x7f1   :  { %v7339_v25 = vmul.f32 %v10383_v12, %v9710_v0 }
 0x7f2   :  { %v7465_v57 = vadd.f32 %v7464_v6, %v7463_v56  ;;  %v4162_v17 = vadd.f32 %v4161_v31, %v4160_v62  ;;  %v4181_v50 = vadd.f32 %v4180_v18, %v4179_v22  ;;  %v7499_v1 = vadd.f32 %v7498_v28, %v7497_v20 }
 0x7f3   :  { %v7500_v44 = vsel %vm1953_vm1, %v7339_v25, 0.0 }
 0x7f4   :  { %v4163_v8 = vrot.slane %v4162_v17, 1  ;;  %v4182_v2 = vrot.slane %v4181_v50, 2  ;;  %v7501_v23 = vadd.f32 %v7500_v44, %v7499_v1  ;;  %v7530_v42 = vsel %vm7529_vm7, %v7465_v57, %v14368_v45 }
 0x7f5   :  { %v7532_v4 = vsel %vm7531_vm8, %v7486_v55, %v7530_v42 }
 0x7f6   :  { %v4164_v33 = vadd.f32 %v4163_v8, %v4162_v17  ;;  %v4183_v3 = vadd.f32 %v4182_v2, %v4181_v50  ;;  %v7502_v48 = vrot.slane %v7501_v23, 4 }
 0x7f8   :  { %v4184_v36 = vrot.slane %v4183_v3, 1  ;;  %v7503_v29 = vadd.f32 %v7502_v48, %v7501_v23  ;;  %v7620_v10 = vsel %vm7531_vm8, %v4164_v33, %v14217_v38 }
 0x7fa   :  { %v4185_v37 = vadd.f32 %v4184_v36, %v4183_v3  ;;  %v7504_v26 = vrot.slane %v7503_v29, 2 }
 0x7fc   :  { %v7505_v9 = vadd.f32 %v7504_v26, %v7503_v29  ;;  %v7621_v32 = vsel %vm7533_vm9, %v4185_v37, %v7620_v10 }
 0x7fd   :  { %9731 = vmatmul.mubr.msk.f32.vlgmr.msra.gmra.mrb[80].mxu1 %vm1953_vm1, %v7621_v32 }
 0x7fe   :  { %v7506_v34 = vrot.slane %v7505_v9, 1 }
 0x800   :  { %v7507_v53 = vadd.f32 %v7506_v34, %v7505_v9 }
 0x802   :  { %v7534_v45 = vsel %vm7533_vm9, %v7507_v53, %v7532_v4 }
 0x803   :  { %9720 = vmatmul.mubr.msk.f32.vlgmr.msra.gmra.mrb[112].mxu0 %vm1953_vm1, %v7534_v45 }
 0x8d0   :  { %v7690_v5 = vpop.f32.mrb[80].mxu1 }
 0x8d1   :  { %v9732_v11 = vpop.f32.mrb[81].mxu1 }
 0x8d6   :  { %v7603_v51 = vpop.f32.mrb[112].mxu0 }
 0x8d7   :  { %v7691_v38 = vadd.f32 %v7690_v5, %v7603_v51  ;;  %v9721_v39 = vpop.f32.mrb[113].mxu0 }
 0x8d9   :  { %v7701_v0 = vadd.f32 %v8176_v58, %v7691_v38 }
 0x8db   :  { %7702 = vst [vmem:[%s14406_s7] sm:$0xff] %v7701_v0 }

</bundles_post_ra>
